<compile_context>
chip_gen: v5e
topology: v5e:2x2
jax: 0.10.0
libtpu: 0.0.40
codegen_flags: <defaults>
</compile_context>

<pallas_src>
import functools

import jax
import jax.numpy as jnp
import numpy as np
from jax import lax
from jax.experimental import pallas as pl
from jax.experimental.pallas import tpu as pltpu


# ----------------------------------------------------------------------------
# Pallas kernel: one full ConvLSTM sequence (all timesteps) for one direction.
# Grid = (2,)  -> the two directions (forward / reverse), marked "parallel".
# The kernel sees (after squeezing the direction axis):
#   gx_ref   : [T, B, 4*S]  precomputed conv_x(x)+bias, gate-major flat layout,
#                           already time-reversed for the reverse direction
#   wh_ref   : [S, 4*S]     dense conv_h operator (zero border baked in)
#   peep_ref : [3, S]       (w_ci, w_cf, w_co) flattened in (H, W, Ch) order
#   out_ref  : [T, B, S]    stored hidden states (state BEFORE each update)
# ----------------------------------------------------------------------------
def convlstm_bidir_kernel(gx_ref, wh_ref, peep_ref, out_ref, *, T, B, S):
    # Hoist peephole broadcasts out of the unrolled time loop (JAX does not
    # CSE broadcast_in_dim).
    w_ci = jnp.broadcast_to(peep_ref[0:1, :], (B, S))
    w_cf = jnp.broadcast_to(peep_ref[1:2, :], (B, S))
    w_co = jnp.broadcast_to(peep_ref[2:3, :], (B, S))
    wh = wh_ref[...]                                            # [S, 4*S]

    h = jnp.zeros((B, S), jnp.float32)
    c = jnp.zeros((B, S), jnp.float32)

    # Fully unrolled time loop (T is a small compile-time constant).  The
    # value written at step t is the hidden state BEFORE the update at t,
    # matching the PyTorch loop; the final (discarded) update is skipped.
    for step in range(T - 1):
        out_ref[step] = h
        gates = gx_ref[step] + jnp.dot(
            h, wh, preferred_element_type=jnp.float32)          # [B, 4*S]
        g_i = gates[:, 0 * S:1 * S]
        g_f = gates[:, 1 * S:2 * S]
        g_c = gates[:, 2 * S:3 * S]
        g_o = gates[:, 3 * S:4 * S]

        i_g = jax.nn.sigmoid(g_i + w_ci * c)
        f_g = jax.nn.sigmoid(g_f + w_cf * c)
        c = f_g * c + i_g * jnp.tanh(g_c)
        o_g = jax.nn.sigmoid(g_o + w_co * c)
        h = o_g * jnp.tanh(c)

    # Forward direction: last slot holds the state before the (discarded)
    # final update.  Reverse direction: the PyTorch loop never writes index 0
    # (== kernel slot T-1 after the wrapper flip), so keep it zero.
    is_fwd = pl.program_id(0) == 0

    @pl.when(is_fwd)
    def _():
        out_ref[T - 1] = h

    @pl.when(jnp.logical_not(is_fwd))
    def _():
        out_ref[T - 1] = jnp.zeros((B, S), jnp.float32)


# ----------------------------------------------------------------------------
# Wrapper helpers
# ----------------------------------------------------------------------------
def _conv_h_dense(wh_hwio, H, W):
    """Dense [S, 4*S] operator equivalent to a 5x5 SAME conv on an HxW grid.

    wh_hwio: [5, 5, Ch, 4*Ch].  Input flattening order is (H, W, Ch); output
    flattening order is gate-major (gate, H, W, Ch) so gate g of the result
    is the contiguous slice [g*S : (g+1)*S].
    """
    Ch = wh_hwio.shape[2]
    Chh = wh_hwio.shape[3] // 4
    S_in = H * W * Ch
    eye = jnp.eye(S_in, dtype=jnp.float32).reshape(S_in, H, W, Ch)
    resp = lax.conv_general_dilated(
        eye, wh_hwio, (1, 1), "SAME",
        dimension_numbers=("NHWC", "HWIO", "NHWC"))          # [S, H, W, 4*Chh]
    resp = resp.reshape(S_in, H, W, 4, Chh).transpose(0, 3, 1, 2, 4)
    return resp.reshape(S_in, 4 * H * W * Chh)


def wrf_info_forward(wrf, params_for, params_rev):
    """wrf: [T, B, C, H, W] (PyTorch convention). Returns ([T,B,C,H,W], None)."""
    T, B, C, H, W = wrf.shape
    Ch = C // 2
    S = H * W * Ch

    x = jnp.transpose(wrf, (0, 1, 3, 4, 2)).astype(jnp.float32)   # [T,B,H,W,C]
    x_flat = x.reshape(T * B, H, W, C)

    def prep_direction(p, reverse):
        # gates_x = conv_x(x) + bias for ALL timesteps, gate-major flat.
        gx = lax.conv_general_dilated(
            x_flat, p["wx_hwio"], (1, 1), "SAME",
            dimension_numbers=("NHWC", "HWIO", "NHWC")) + p["bias"]
        gx = gx.reshape(T, B, H, W, 4, Ch).transpose(0, 1, 4, 2, 3, 5)
        gx = gx.reshape(T, B, 4 * S)
        if reverse:
            gx = gx[::-1]                       # kernel walks time backwards
        wh_dense = _conv_h_dense(p["wh_hwio"], H, W)            # [S, 4*S]
        peep = jnp.stack([p["w_ci"].reshape(S),
                          p["w_cf"].reshape(S),
                          p["w_co"].reshape(S)], axis=0)        # [3, S]
        return gx, wh_dense, peep

    gx_f, wh_f, pp_f = prep_direction(params_for, reverse=False)
    gx_r, wh_r, pp_r = prep_direction(params_rev, reverse=True)
    gx_all = jnp.stack([gx_f, gx_r], axis=0)    # [2, T, B, 4*S]
    wh_all = jnp.stack([wh_f, wh_r], axis=0)    # [2, S, 4*S]
    pp_all = jnp.stack([pp_f, pp_r], axis=0)    # [2, 3, S]

    kernel = functools.partial(convlstm_bidir_kernel, T=T, B=B, S=S)
    out_all = pl.pallas_call(
        kernel,
        out_shape=jax.ShapeDtypeStruct((2, T, B, S), jnp.float32),
        grid=(2,),
        in_specs=[
            pl.BlockSpec((None, T, B, 4 * S), lambda d: (d, 0, 0, 0)),
            pl.BlockSpec((None, S, 4 * S), lambda d: (d, 0, 0)),
            pl.BlockSpec((None, 3, S), lambda d: (d, 0, 0)),
        ],
        out_specs=pl.BlockSpec((None, T, B, S), lambda d: (d, 0, 0, 0)),
        compiler_params=pltpu.CompilerParams(
            dimension_semantics=("parallel",)),
    )(gx_all, wh_all, pp_all)

    # Forward direction: kernel order == PyTorch order.
    h_for = out_all[0]                                          # [T, B, S]
    # Reverse direction: kernel step s visited time index T-1-s, so flip.
    # The kernel already wrote zeros into its last slot (== index 0 here).
    h_rev = jnp.flip(out_all[1], axis=0)

    def to_torch_layout(hflat):
        return jnp.transpose(hflat.reshape(T, B, H, W, Ch), (0, 1, 4, 2, 3))

    out = jnp.concatenate([to_torch_layout(h_for), to_torch_layout(h_rev)],
                          axis=2)                               # [T,B,C,H,W]
    return out, None


# ----------------------------------------------------------------------------
# Pure-JAX reference (mirrors the PyTorch loops) for a correctness check.
# ----------------------------------------------------------------------------
def _cell_ref(x, h, c, p):
    dn = ("NHWC", "HWIO", "NHWC")
    g = (lax.conv_general_dilated(x, p["wx_hwio"], (1, 1), "SAME",
                                  dimension_numbers=dn)
         + lax.conv_general_dilated(h, p["wh_hwio"], (1, 1), "SAME",
                                    dimension_numbers=dn)
         + p["bias"])
    gi, gf, gc, go = jnp.split(g, 4, axis=-1)
    i = jax.nn.sigmoid(gi + p["w_ci"] * c)
    f = jax.nn.sigmoid(gf + p["w_cf"] * c)
    cn = f * c + i * jnp.tanh(gc)
    o = jax.nn.sigmoid(go + p["w_co"] * cn)
    return o * jnp.tanh(cn), cn


def wrf_info_ref(wrf, params_for, params_rev):
    T, B, C, H, W = wrf.shape
    Ch = C // 2
    x = jnp.transpose(wrf, (0, 1, 3, 4, 2)).astype(jnp.float32)

    h = jnp.zeros((B, H, W, Ch), jnp.float32)
    c = jnp.zeros_like(h)
    outs_for = []
    for i in range(T):
        outs_for.append(h)
        h, c = _cell_ref(x[i], h, c, params_for)

    h = jnp.zeros((B, H, W, Ch), jnp.float32)
    c = jnp.zeros_like(h)
    outs_rev = [jnp.zeros((B, H, W, Ch), jnp.float32) for _ in range(T)]
    for i in range(T - 1, 0, -1):
        outs_rev[i] = h
        h, c = _cell_ref(x[i], h, c, params_rev)

    h_for = jnp.transpose(jnp.stack(outs_for, 0), (0, 1, 4, 2, 3))
    h_rev = jnp.transpose(jnp.stack(outs_rev, 0), (0, 1, 4, 2, 3))
    return jnp.concatenate([h_for, h_rev], axis=2), None


def make_params(key, Cin, Ch, H, W):
    ks = jax.random.split(key, 7)
    wx_hwio = jax.random.normal(ks[0], (5, 5, Cin, 4 * Ch), jnp.float32) * 0.1
    wh_hwio = jax.random.normal(ks[1], (5, 5, Ch, 4 * Ch), jnp.float32) * 0.1
    bias = (jax.random.normal(ks[2], (4 * Ch,), jnp.float32) * 0.1
            + jax.random.normal(ks[3], (4 * Ch,), jnp.float32) * 0.1
            ).reshape(1, 4 * Ch)
    w_ci = jax.random.normal(ks[4], (H, W, Ch), jnp.float32) * 0.1
    w_cf = jax.random.normal(ks[5], (H, W, Ch), jnp.float32) * 0.1
    w_co = jax.random.normal(ks[6], (H, W, Ch), jnp.float32) * 0.1
    return dict(wx_hwio=wx_hwio, wh_hwio=wh_hwio, bias=bias,
                w_ci=w_ci, w_cf=w_cf, w_co=w_co)


if __name__ == "__main__":
    config_dict = {"GridRowColNum": 32, "ForecastHourNum": 6}
    channels = 8
    Ch = channels // 2
    H = W = config_dict["GridRowColNum"] // 2 // 2   # 8
    T = config_dict["ForecastHourNum"]
    B = 2

    key = jax.random.PRNGKey(0)
    k_wrf, k_for, k_rev = jax.random.split(key, 3)
    # wrf in PyTorch convention: [ForecastHourNum, batch, channels, H, W]
    wrf = jax.random.normal(k_wrf, (T, B, channels, H, W), jnp.float32)

    params_for = make_params(k_for, channels, Ch, H, W)
    params_rev = make_params(k_rev, channels, Ch, H, W)

    fwd = jax.jit(wrf_info_forward)
    out, _ = fwd(wrf, params_for, params_rev)
    out = jax.block_until_ready(out)

    ref, _ = wrf_info_ref(wrf, params_for, params_rev)
    ref = jax.block_until_ready(ref)

    assert out.shape == (T, B, channels, H, W), out.shape
    err = float(jnp.max(jnp.abs(out - ref)))
    assert np.isfinite(err) and err < 3e-2, f"max abs err {err}"
    print("KERNEL_OK")
</pallas_src>

<mosaic_0001>
module attributes {stable_mosaic.version = 11 : i64} {
  func.func @convlstm_bidir_kernel(%arg0: i32, %arg1: memref<1x6x2x1024xf32, #tpu.memory_space<vmem>>, %arg2: memref<1x256x1024xf32, #tpu.memory_space<vmem>>, %arg3: memref<1x3x256xf32, #tpu.memory_space<vmem>>, %arg4: memref<1x6x2x256xf32, #tpu.memory_space<vmem>>) attributes {dimension_semantics = [#tpu.dimension_semantics<parallel>], iteration_bounds = array<i64: 2>, scalar_prefetch = 0 : i64, scratch_operands = 0 : i64, tpu.core_type = #tpu.core_type<tc>, window_params = [{transform_indices = @transform_0, window_bounds = array<i64: 1, 6, 2, 1024>}, {transform_indices = @transform_1, window_bounds = array<i64: 1, 256, 1024>}, {transform_indices = @transform_2, window_bounds = array<i64: 1, 3, 256>}, {transform_indices = @transform_3, window_bounds = array<i64: 1, 6, 2, 256>}]} {
    %c0 = arith.constant 0 : index
    %c0_0 = arith.constant 0 : index
    %c0_1 = arith.constant 0 : index
    %0 = vector.load %arg3[%c0, %c0_0, %c0_1] : memref<1x3x256xf32, #tpu.memory_space<vmem>>, vector<1x1x256xf32>
    %1 = vector.shape_cast %0 : vector<1x1x256xf32> to vector<1x256xf32>
    %2 = vector.shape_cast %1 : vector<1x256xf32> to vector<1x256xf32>
    %3 = vector.broadcast %2 : vector<1x256xf32> to vector<2x256xf32>
    %c0_2 = arith.constant 0 : index
    %c1 = arith.constant 1 : index
    %c0_3 = arith.constant 0 : index
    %4 = vector.load %arg3[%c0_2, %c1, %c0_3] : memref<1x3x256xf32, #tpu.memory_space<vmem>>, vector<1x1x256xf32>
    %5 = vector.shape_cast %4 : vector<1x1x256xf32> to vector<1x256xf32>
    %6 = vector.shape_cast %5 : vector<1x256xf32> to vector<1x256xf32>
    %7 = vector.broadcast %6 : vector<1x256xf32> to vector<2x256xf32>
    %c0_4 = arith.constant 0 : index
    %c2 = arith.constant 2 : index
    %c0_5 = arith.constant 0 : index
    %8 = vector.load %arg3[%c0_4, %c2, %c0_5] : memref<1x3x256xf32, #tpu.memory_space<vmem>>, vector<1x1x256xf32>
    %9 = vector.shape_cast %8 : vector<1x1x256xf32> to vector<1x256xf32>
    %10 = vector.shape_cast %9 : vector<1x256xf32> to vector<1x256xf32>
    %11 = vector.broadcast %10 : vector<1x256xf32> to vector<2x256xf32>
    %c0_6 = arith.constant 0 : index
    %c0_7 = arith.constant 0 : index
    %c0_8 = arith.constant 0 : index
    %12 = vector.load %arg2[%c0_6, %c0_7, %c0_8] : memref<1x256x1024xf32, #tpu.memory_space<vmem>>, vector<1x256x1024xf32>
    %13 = vector.shape_cast %12 : vector<1x256x1024xf32> to vector<256x1024xf32>
    %cst = arith.constant 0.000000e+00 : f32
    %14 = vector.broadcast %cst : f32 to vector<2x256xf32>
    %cst_9 = arith.constant 0.000000e+00 : f32
    %15 = vector.broadcast %cst_9 : f32 to vector<2x256xf32>
    %c0_10 = arith.constant 0 : index
    %c0_11 = arith.constant 0 : index
    %c0_12 = arith.constant 0 : index
    %c0_13 = arith.constant 0 : index
    %16 = vector.load %arg4[%c0_10, %c0_11, %c0_12, %c0_13] : memref<1x6x2x256xf32, #tpu.memory_space<vmem>>, vector<1x1x2x256xf32>
    %17 = vector.shape_cast %16 : vector<1x1x2x256xf32> to vector<2x256xf32>
    %18 = vector.shape_cast %14 : vector<2x256xf32> to vector<1x1x2x256xf32>
    tpu.vector_store %arg4[%c0_10, %c0_11, %c0_12, %c0_13], %18 {strides = array<i32>} : memref<1x6x2x256xf32, #tpu.memory_space<vmem>>, vector<1x1x2x256xf32>,
    %c0_14 = arith.constant 0 : index
    %c0_15 = arith.constant 0 : index
    %c0_16 = arith.constant 0 : index
    %c0_17 = arith.constant 0 : index
    %19 = vector.load %arg1[%c0_14, %c0_15, %c0_16, %c0_17] : memref<1x6x2x1024xf32, #tpu.memory_space<vmem>>, vector<1x1x2x1024xf32>
    %20 = vector.shape_cast %19 : vector<1x1x2x1024xf32> to vector<2x1024xf32>
    %cst_18 = arith.constant dense<0.000000e+00> : vector<2x1024xf32>
    %21 = tpu.matmul %14, %13, %cst_18 {dimension_numbers = #tpu.dot_dimension_numbers<[1], [0], [0], [1], [0, 0, 1, 1], [], []>} : vector<2x256xf32>, vector<256x1024xf32>, vector<2x1024xf32> -> vector<2x1024xf32>
    %22 = arith.addf %20, %21 : vector<2x1024xf32>
    %23 = vector.extract_strided_slice %22 {offsets = [0, 0], sizes = [2, 256], strides = [1, 1]} : vector<2x1024xf32> to vector<2x256xf32>
    %24 = vector.extract_strided_slice %22 {offsets = [0, 256], sizes = [2, 256], strides = [1, 1]} : vector<2x1024xf32> to vector<2x256xf32>
    %25 = vector.extract_strided_slice %22 {offsets = [0, 512], sizes = [2, 256], strides = [1, 1]} : vector<2x1024xf32> to vector<2x256xf32>
    %26 = vector.extract_strided_slice %22 {offsets = [0, 768], sizes = [2, 256], strides = [1, 1]} : vector<2x1024xf32> to vector<2x256xf32>
    %27 = arith.mulf %3, %15 : vector<2x256xf32>
    %28 = arith.addf %23, %27 : vector<2x256xf32>
    %29 = arith.negf %28 : vector<2x256xf32>
    %30 = math.exp %29 : vector<2x256xf32>
    %cst_19 = arith.constant 1.000000e+00 : f32
    %31 = vector.broadcast %cst_19 : f32 to vector<2x256xf32>
    %32 = arith.addf %31, %30 : vector<2x256xf32>
    %33 = arith.divf %31, %32 : vector<2x256xf32>
    %34 = arith.mulf %7, %15 : vector<2x256xf32>
    %35 = arith.addf %24, %34 : vector<2x256xf32>
    %36 = arith.negf %35 : vector<2x256xf32>
    %37 = math.exp %36 : vector<2x256xf32>
    %cst_20 = arith.constant 1.000000e+00 : f32
    %38 = vector.broadcast %cst_20 : f32 to vector<2x256xf32>
    %39 = arith.addf %38, %37 : vector<2x256xf32>
    %40 = arith.divf %38, %39 : vector<2x256xf32>
    %41 = arith.mulf %40, %15 : vector<2x256xf32>
    %42 = math.tanh %25 : vector<2x256xf32>
    %43 = arith.mulf %33, %42 : vector<2x256xf32>
    %44 = arith.addf %41, %43 : vector<2x256xf32>
    %45 = arith.mulf %11, %44 : vector<2x256xf32>
    %46 = arith.addf %26, %45 : vector<2x256xf32>
    %47 = arith.negf %46 : vector<2x256xf32>
    %48 = math.exp %47 : vector<2x256xf32>
    %cst_21 = arith.constant 1.000000e+00 : f32
    %49 = vector.broadcast %cst_21 : f32 to vector<2x256xf32>
    %50 = arith.addf %49, %48 : vector<2x256xf32>
    %51 = arith.divf %49, %50 : vector<2x256xf32>
    %52 = math.tanh %44 : vector<2x256xf32>
    %53 = arith.mulf %51, %52 : vector<2x256xf32>
    %c0_22 = arith.constant 0 : index
    %c1_23 = arith.constant 1 : index
    %c0_24 = arith.constant 0 : index
    %c0_25 = arith.constant 0 : index
    %54 = vector.load %arg4[%c0_22, %c1_23, %c0_24, %c0_25] : memref<1x6x2x256xf32, #tpu.memory_space<vmem>>, vector<1x1x2x256xf32>
    %55 = vector.shape_cast %54 : vector<1x1x2x256xf32> to vector<2x256xf32>
    %56 = vector.shape_cast %53 : vector<2x256xf32> to vector<1x1x2x256xf32>
    tpu.vector_store %arg4[%c0_22, %c1_23, %c0_24, %c0_25], %56 {strides = array<i32>} : memref<1x6x2x256xf32, #tpu.memory_space<vmem>>, vector<1x1x2x256xf32>,
    %c0_26 = arith.constant 0 : index
    %c1_27 = arith.constant 1 : index
    %c0_28 = arith.constant 0 : index
    %c0_29 = arith.constant 0 : index
    %57 = vector.load %arg1[%c0_26, %c1_27, %c0_28, %c0_29] : memref<1x6x2x1024xf32, #tpu.memory_space<vmem>>, vector<1x1x2x1024xf32>
    %58 = vector.shape_cast %57 : vector<1x1x2x1024xf32> to vector<2x1024xf32>
    %cst_30 = arith.constant dense<0.000000e+00> : vector<2x1024xf32>
    %59 = tpu.matmul %53, %13, %cst_30 {dimension_numbers = #tpu.dot_dimension_numbers<[1], [0], [0], [1], [0, 0, 1, 1], [], []>} : vector<2x256xf32>, vector<256x1024xf32>, vector<2x1024xf32> -> vector<2x1024xf32>
    %60 = arith.addf %58, %59 : vector<2x1024xf32>
    %61 = vector.extract_strided_slice %60 {offsets = [0, 0], sizes = [2, 256], strides = [1, 1]} : vector<2x1024xf32> to vector<2x256xf32>
    %62 = vector.extract_strided_slice %60 {offsets = [0, 256], sizes = [2, 256], strides = [1, 1]} : vector<2x1024xf32> to vector<2x256xf32>
    %63 = vector.extract_strided_slice %60 {offsets = [0, 512], sizes = [2, 256], strides = [1, 1]} : vector<2x1024xf32> to vector<2x256xf32>
    %64 = vector.extract_strided_slice %60 {offsets = [0, 768], sizes = [2, 256], strides = [1, 1]} : vector<2x1024xf32> to vector<2x256xf32>
    %65 = arith.mulf %3, %44 : vector<2x256xf32>
    %66 = arith.addf %61, %65 : vector<2x256xf32>
    %67 = arith.negf %66 : vector<2x256xf32>
    %68 = math.exp %67 : vector<2x256xf32>
    %cst_31 = arith.constant 1.000000e+00 : f32
    %69 = vector.broadcast %cst_31 : f32 to vector<2x256xf32>
    %70 = arith.addf %69, %68 : vector<2x256xf32>
    %71 = arith.divf %69, %70 : vector<2x256xf32>
    %72 = arith.mulf %7, %44 : vector<2x256xf32>
    %73 = arith.addf %62, %72 : vector<2x256xf32>
    %74 = arith.negf %73 : vector<2x256xf32>
    %75 = math.exp %74 : vector<2x256xf32>
    %cst_32 = arith.constant 1.000000e+00 : f32
    %76 = vector.broadcast %cst_32 : f32 to vector<2x256xf32>
    %77 = arith.addf %76, %75 : vector<2x256xf32>
    %78 = arith.divf %76, %77 : vector<2x256xf32>
    %79 = arith.mulf %78, %44 : vector<2x256xf32>
    %80 = math.tanh %63 : vector<2x256xf32>
    %81 = arith.mulf %71, %80 : vector<2x256xf32>
    %82 = arith.addf %79, %81 : vector<2x256xf32>
    %83 = arith.mulf %11, %82 : vector<2x256xf32>
    %84 = arith.addf %64, %83 : vector<2x256xf32>
    %85 = arith.negf %84 : vector<2x256xf32>
    %86 = math.exp %85 : vector<2x256xf32>
    %cst_33 = arith.constant 1.000000e+00 : f32
    %87 = vector.broadcast %cst_33 : f32 to vector<2x256xf32>
    %88 = arith.addf %87, %86 : vector<2x256xf32>
    %89 = arith.divf %87, %88 : vector<2x256xf32>
    %90 = math.tanh %82 : vector<2x256xf32>
    %91 = arith.mulf %89, %90 : vector<2x256xf32>
    %c0_34 = arith.constant 0 : index
    %c2_35 = arith.constant 2 : index
    %c0_36 = arith.constant 0 : index
    %c0_37 = arith.constant 0 : index
    %92 = vector.load %arg4[%c0_34, %c2_35, %c0_36, %c0_37] : memref<1x6x2x256xf32, #tpu.memory_space<vmem>>, vector<1x1x2x256xf32>
    %93 = vector.shape_cast %92 : vector<1x1x2x256xf32> to vector<2x256xf32>
    %94 = vector.shape_cast %91 : vector<2x256xf32> to vector<1x1x2x256xf32>
    tpu.vector_store %arg4[%c0_34, %c2_35, %c0_36, %c0_37], %94 {strides = array<i32>} : memref<1x6x2x256xf32, #tpu.memory_space<vmem>>, vector<1x1x2x256xf32>,
    %c0_38 = arith.constant 0 : index
    %c2_39 = arith.constant 2 : index
    %c0_40 = arith.constant 0 : index
    %c0_41 = arith.constant 0 : index
    %95 = vector.load %arg1[%c0_38, %c2_39, %c0_40, %c0_41] : memref<1x6x2x1024xf32, #tpu.memory_space<vmem>>, vector<1x1x2x1024xf32>
    %96 = vector.shape_cast %95 : vector<1x1x2x1024xf32> to vector<2x1024xf32>
    %cst_42 = arith.constant dense<0.000000e+00> : vector<2x1024xf32>
    %97 = tpu.matmul %91, %13, %cst_42 {dimension_numbers = #tpu.dot_dimension_numbers<[1], [0], [0], [1], [0, 0, 1, 1], [], []>} : vector<2x256xf32>, vector<256x1024xf32>, vector<2x1024xf32> -> vector<2x1024xf32>
    %98 = arith.addf %96, %97 : vector<2x1024xf32>
    %99 = vector.extract_strided_slice %98 {offsets = [0, 0], sizes = [2, 256], strides = [1, 1]} : vector<2x1024xf32> to vector<2x256xf32>
    %100 = vector.extract_strided_slice %98 {offsets = [0, 256], sizes = [2, 256], strides = [1, 1]} : vector<2x1024xf32> to vector<2x256xf32>
    %101 = vector.extract_strided_slice %98 {offsets = [0, 512], sizes = [2, 256], strides = [1, 1]} : vector<2x1024xf32> to vector<2x256xf32>
    %102 = vector.extract_strided_slice %98 {offsets = [0, 768], sizes = [2, 256], strides = [1, 1]} : vector<2x1024xf32> to vector<2x256xf32>
    %103 = arith.mulf %3, %82 : vector<2x256xf32>
    %104 = arith.addf %99, %103 : vector<2x256xf32>
    %105 = arith.negf %104 : vector<2x256xf32>
    %106 = math.exp %105 : vector<2x256xf32>
    %cst_43 = arith.constant 1.000000e+00 : f32
    %107 = vector.broadcast %cst_43 : f32 to vector<2x256xf32>
    %108 = arith.addf %107, %106 : vector<2x256xf32>
    %109 = arith.divf %107, %108 : vector<2x256xf32>
    %110 = arith.mulf %7, %82 : vector<2x256xf32>
    %111 = arith.addf %100, %110 : vector<2x256xf32>
    %112 = arith.negf %111 : vector<2x256xf32>
    %113 = math.exp %112 : vector<2x256xf32>
    %cst_44 = arith.constant 1.000000e+00 : f32
    %114 = vector.broadcast %cst_44 : f32 to vector<2x256xf32>
    %115 = arith.addf %114, %113 : vector<2x256xf32>
    %116 = arith.divf %114, %115 : vector<2x256xf32>
    %117 = arith.mulf %116, %82 : vector<2x256xf32>
    %118 = math.tanh %101 : vector<2x256xf32>
    %119 = arith.mulf %109, %118 : vector<2x256xf32>
    %120 = arith.addf %117, %119 : vector<2x256xf32>
    %121 = arith.mulf %11, %120 : vector<2x256xf32>
    %122 = arith.addf %102, %121 : vector<2x256xf32>
    %123 = arith.negf %122 : vector<2x256xf32>
    %124 = math.exp %123 : vector<2x256xf32>
    %cst_45 = arith.constant 1.000000e+00 : f32
    %125 = vector.broadcast %cst_45 : f32 to vector<2x256xf32>
    %126 = arith.addf %125, %124 : vector<2x256xf32>
    %127 = arith.divf %125, %126 : vector<2x256xf32>
    %128 = math.tanh %120 : vector<2x256xf32>
    %129 = arith.mulf %127, %128 : vector<2x256xf32>
    %c0_46 = arith.constant 0 : index
    %c3 = arith.constant 3 : index
    %c0_47 = arith.constant 0 : index
    %c0_48 = arith.constant 0 : index
    %130 = vector.load %arg4[%c0_46, %c3, %c0_47, %c0_48] : memref<1x6x2x256xf32, #tpu.memory_space<vmem>>, vector<1x1x2x256xf32>
    %131 = vector.shape_cast %130 : vector<1x1x2x256xf32> to vector<2x256xf32>
    %132 = vector.shape_cast %129 : vector<2x256xf32> to vector<1x1x2x256xf32>
    tpu.vector_store %arg4[%c0_46, %c3, %c0_47, %c0_48], %132 {strides = array<i32>} : memref<1x6x2x256xf32, #tpu.memory_space<vmem>>, vector<1x1x2x256xf32>,
    %c0_49 = arith.constant 0 : index
    %c3_50 = arith.constant 3 : index
    %c0_51 = arith.constant 0 : index
    %c0_52 = arith.constant 0 : index
    %133 = vector.load %arg1[%c0_49, %c3_50, %c0_51, %c0_52] : memref<1x6x2x1024xf32, #tpu.memory_space<vmem>>, vector<1x1x2x1024xf32>
    %134 = vector.shape_cast %133 : vector<1x1x2x1024xf32> to vector<2x1024xf32>
    %cst_53 = arith.constant dense<0.000000e+00> : vector<2x1024xf32>
    %135 = tpu.matmul %129, %13, %cst_53 {dimension_numbers = #tpu.dot_dimension_numbers<[1], [0], [0], [1], [0, 0, 1, 1], [], []>} : vector<2x256xf32>, vector<256x1024xf32>, vector<2x1024xf32> -> vector<2x1024xf32>
    %136 = arith.addf %134, %135 : vector<2x1024xf32>
    %137 = vector.extract_strided_slice %136 {offsets = [0, 0], sizes = [2, 256], strides = [1, 1]} : vector<2x1024xf32> to vector<2x256xf32>
    %138 = vector.extract_strided_slice %136 {offsets = [0, 256], sizes = [2, 256], strides = [1, 1]} : vector<2x1024xf32> to vector<2x256xf32>
    %139 = vector.extract_strided_slice %136 {offsets = [0, 512], sizes = [2, 256], strides = [1, 1]} : vector<2x1024xf32> to vector<2x256xf32>
    %140 = vector.extract_strided_slice %136 {offsets = [0, 768], sizes = [2, 256], strides = [1, 1]} : vector<2x1024xf32> to vector<2x256xf32>
    %141 = arith.mulf %3, %120 : vector<2x256xf32>
    %142 = arith.addf %137, %141 : vector<2x256xf32>
    %143 = arith.negf %142 : vector<2x256xf32>
    %144 = math.exp %143 : vector<2x256xf32>
    %cst_54 = arith.constant 1.000000e+00 : f32
    %145 = vector.broadcast %cst_54 : f32 to vector<2x256xf32>
    %146 = arith.addf %145, %144 : vector<2x256xf32>
    %147 = arith.divf %145, %146 : vector<2x256xf32>
    %148 = arith.mulf %7, %120 : vector<2x256xf32>
    %149 = arith.addf %138, %148 : vector<2x256xf32>
    %150 = arith.negf %149 : vector<2x256xf32>
    %151 = math.exp %150 : vector<2x256xf32>
    %cst_55 = arith.constant 1.000000e+00 : f32
    %152 = vector.broadcast %cst_55 : f32 to vector<2x256xf32>
    %153 = arith.addf %152, %151 : vector<2x256xf32>
    %154 = arith.divf %152, %153 : vector<2x256xf32>
    %155 = arith.mulf %154, %120 : vector<2x256xf32>
    %156 = math.tanh %139 : vector<2x256xf32>
    %157 = arith.mulf %147, %156 : vector<2x256xf32>
    %158 = arith.addf %155, %157 : vector<2x256xf32>
    %159 = arith.mulf %11, %158 : vector<2x256xf32>
    %160 = arith.addf %140, %159 : vector<2x256xf32>
    %161 = arith.negf %160 : vector<2x256xf32>
    %162 = math.exp %161 : vector<2x256xf32>
    %cst_56 = arith.constant 1.000000e+00 : f32
    %163 = vector.broadcast %cst_56 : f32 to vector<2x256xf32>
    %164 = arith.addf %163, %162 : vector<2x256xf32>
    %165 = arith.divf %163, %164 : vector<2x256xf32>
    %166 = math.tanh %158 : vector<2x256xf32>
    %167 = arith.mulf %165, %166 : vector<2x256xf32>
    %c0_57 = arith.constant 0 : index
    %c4 = arith.constant 4 : index
    %c0_58 = arith.constant 0 : index
    %c0_59 = arith.constant 0 : index
    %168 = vector.load %arg4[%c0_57, %c4, %c0_58, %c0_59] : memref<1x6x2x256xf32, #tpu.memory_space<vmem>>, vector<1x1x2x256xf32>
    %169 = vector.shape_cast %168 : vector<1x1x2x256xf32> to vector<2x256xf32>
    %170 = vector.shape_cast %167 : vector<2x256xf32> to vector<1x1x2x256xf32>
    tpu.vector_store %arg4[%c0_57, %c4, %c0_58, %c0_59], %170 {strides = array<i32>} : memref<1x6x2x256xf32, #tpu.memory_space<vmem>>, vector<1x1x2x256xf32>,
    %c0_60 = arith.constant 0 : index
    %c4_61 = arith.constant 4 : index
    %c0_62 = arith.constant 0 : index
    %c0_63 = arith.constant 0 : index
    %171 = vector.load %arg1[%c0_60, %c4_61, %c0_62, %c0_63] : memref<1x6x2x1024xf32, #tpu.memory_space<vmem>>, vector<1x1x2x1024xf32>
    %172 = vector.shape_cast %171 : vector<1x1x2x1024xf32> to vector<2x1024xf32>
    %cst_64 = arith.constant dense<0.000000e+00> : vector<2x1024xf32>
    %173 = tpu.matmul %167, %13, %cst_64 {dimension_numbers = #tpu.dot_dimension_numbers<[1], [0], [0], [1], [0, 0, 1, 1], [], []>} : vector<2x256xf32>, vector<256x1024xf32>, vector<2x1024xf32> -> vector<2x1024xf32>
    %174 = arith.addf %172, %173 : vector<2x1024xf32>
    %175 = vector.extract_strided_slice %174 {offsets = [0, 0], sizes = [2, 256], strides = [1, 1]} : vector<2x1024xf32> to vector<2x256xf32>
    %176 = vector.extract_strided_slice %174 {offsets = [0, 256], sizes = [2, 256], strides = [1, 1]} : vector<2x1024xf32> to vector<2x256xf32>
    %177 = vector.extract_strided_slice %174 {offsets = [0, 512], sizes = [2, 256], strides = [1, 1]} : vector<2x1024xf32> to vector<2x256xf32>
    %178 = vector.extract_strided_slice %174 {offsets = [0, 768], sizes = [2, 256], strides = [1, 1]} : vector<2x1024xf32> to vector<2x256xf32>
    %179 = arith.mulf %3, %158 : vector<2x256xf32>
    %180 = arith.addf %175, %179 : vector<2x256xf32>
    %181 = arith.negf %180 : vector<2x256xf32>
    %182 = math.exp %181 : vector<2x256xf32>
    %cst_65 = arith.constant 1.000000e+00 : f32
    %183 = vector.broadcast %cst_65 : f32 to vector<2x256xf32>
    %184 = arith.addf %183, %182 : vector<2x256xf32>
    %185 = arith.divf %183, %184 : vector<2x256xf32>
    %186 = arith.mulf %7, %158 : vector<2x256xf32>
    %187 = arith.addf %176, %186 : vector<2x256xf32>
    %188 = arith.negf %187 : vector<2x256xf32>
    %189 = math.exp %188 : vector<2x256xf32>
    %cst_66 = arith.constant 1.000000e+00 : f32
    %190 = vector.broadcast %cst_66 : f32 to vector<2x256xf32>
    %191 = arith.addf %190, %189 : vector<2x256xf32>
    %192 = arith.divf %190, %191 : vector<2x256xf32>
    %193 = arith.mulf %192, %158 : vector<2x256xf32>
    %194 = math.tanh %177 : vector<2x256xf32>
    %195 = arith.mulf %185, %194 : vector<2x256xf32>
    %196 = arith.addf %193, %195 : vector<2x256xf32>
    %197 = arith.mulf %11, %196 : vector<2x256xf32>
    %198 = arith.addf %178, %197 : vector<2x256xf32>
    %199 = arith.negf %198 : vector<2x256xf32>
    %200 = math.exp %199 : vector<2x256xf32>
    %cst_67 = arith.constant 1.000000e+00 : f32
    %201 = vector.broadcast %cst_67 : f32 to vector<2x256xf32>
    %202 = arith.addf %201, %200 : vector<2x256xf32>
    %203 = arith.divf %201, %202 : vector<2x256xf32>
    %204 = math.tanh %196 : vector<2x256xf32>
    %205 = arith.mulf %203, %204 : vector<2x256xf32>
    %c0_i32 = arith.constant 0 : i32
    %206 = arith.cmpi eq, %arg0, %c0_i32 : i32
    %207 = arith.extui %206 : i1 to i32
    %c0_i32_68 = arith.constant 0 : i32
    %208 = arith.cmpi ne, %207, %c0_i32_68 : i32
    scf.if %208 {
      %c0_70 = arith.constant 0 : index
      %c5 = arith.constant 5 : index
      %c0_71 = arith.constant 0 : index
      %c0_72 = arith.constant 0 : index
      %212 = vector.load %arg4[%c0_70, %c5, %c0_71, %c0_72] : memref<1x6x2x256xf32, #tpu.memory_space<vmem>>, vector<1x1x2x256xf32>
      %213 = vector.shape_cast %212 : vector<1x1x2x256xf32> to vector<2x256xf32>
      %214 = vector.shape_cast %205 : vector<2x256xf32> to vector<1x1x2x256xf32>
      tpu.vector_store %arg4[%c0_70, %c5, %c0_71, %c0_72], %214 {strides = array<i32>} : memref<1x6x2x256xf32, #tpu.memory_space<vmem>>, vector<1x1x2x256xf32>,
    } else {
    }
    %true = arith.constant true
    %209 = arith.xori %206, %true : i1
    %210 = arith.extui %209 : i1 to i32
    %c0_i32_69 = arith.constant 0 : i32
    %211 = arith.cmpi ne, %210, %c0_i32_69 : i32
    scf.if %211 {
      %cst_70 = arith.constant 0.000000e+00 : f32
      %212 = vector.broadcast %cst_70 : f32 to vector<2x256xf32>
      %c0_71 = arith.constant 0 : index
      %c5 = arith.constant 5 : index
      %c0_72 = arith.constant 0 : index
      %c0_73 = arith.constant 0 : index
      %213 = vector.load %arg4[%c0_71, %c5, %c0_72, %c0_73] : memref<1x6x2x256xf32, #tpu.memory_space<vmem>>, vector<1x1x2x256xf32>
      %214 = vector.shape_cast %213 : vector<1x1x2x256xf32> to vector<2x256xf32>
      %215 = vector.shape_cast %212 : vector<2x256xf32> to vector<1x1x2x256xf32>
      tpu.vector_store %arg4[%c0_71, %c5, %c0_72, %c0_73], %215 {strides = array<i32>} : memref<1x6x2x256xf32, #tpu.memory_space<vmem>>, vector<1x1x2x256xf32>,
    } else {
    }
    return
  }
  func.func @transform_0(%arg0: i32) -> (i32, i32, i32, i32) {
    %c0_i32 = arith.constant 0 : i32
    %c0_i32_0 = arith.constant 0 : i32
    %c0_i32_1 = arith.constant 0 : i32
    %c0_i32_2 = arith.constant 0 : i32
    return %arg0, %c0_i32, %c0_i32_0, %c0_i32_1 : i32, i32, i32, i32
  }
  func.func @transform_1(%arg0: i32) -> (i32, i32, i32) {
    %c0_i32 = arith.constant 0 : i32
    %c0_i32_0 = arith.constant 0 : i32
    %c0_i32_1 = arith.constant 0 : i32
    return %arg0, %c0_i32, %c0_i32_0 : i32, i32, i32
  }
  func.func @transform_2(%arg0: i32) -> (i32, i32, i32) {
    %c0_i32 = arith.constant 0 : i32
    %c0_i32_0 = arith.constant 0 : i32
    %c0_i32_1 = arith.constant 0 : i32
    return %arg0, %c0_i32, %c0_i32_0 : i32, i32, i32
  }
  func.func @transform_3(%arg0: i32) -> (i32, i32, i32, i32) {
    %c0_i32 = arith.constant 0 : i32
    %c0_i32_0 = arith.constant 0 : i32
    %c0_i32_1 = arith.constant 0 : i32
    %c0_i32_2 = arith.constant 0 : i32
    return %arg0, %c0_i32, %c0_i32_0, %c0_i32_1 : i32, i32, i32, i32
  }
}

</mosaic_0001>

<bundles_post_ra>
// kernel: squeeze.3
= control target key start
LH: loop header
LB: loop body
LE: loop exit
PB: predicated region body
PF: predicated region fallthrough
CT: control target
= control target key end

     0   :  { %vm135_vm0 = vcmask 1047556   ;;  %s3236_s30 = smov 120   ;;  %s3237_s2 = smov 116   ;;  %vm51_vm1 = vcmask 31744   ;;  %s6595_s0 = inlined_call_operand.vmem [shape: f32[1,6,2,256], index: 0, kind: input, shape index: {}]   ;;  %s6596_s1 = inlined_call_operand.vmem [shape: f32[6,2,8,8,4], index: 1, kind: output, shape index: {}]  }
   0x1   :  { %v2434_v0 = vld [vmem:[%s6595_s0 + $0x6] sm:$0x3]  ;;  %v2435_v1 = vld [vmem:[%s6595_s0 + $0x4] sm:$0x3]  ;;  %v2436_v2 = vld [vmem:[%s6595_s0 + $0x2] sm:$0x3] }
   0x2   :  { %39 = vst [vmem:[#allocation0 + $0x18] sm:$0x3] %v2434_v0  ;;  %v48_v3 = vld [vmem:[%s6595_s0] sm:$0x3]  ;;  %v2426_v4 = vld [vmem:[%s6595_s0 + $0x16] sm:$0x3] }
   0x3   :  { %43 = vst [vmem:[#allocation0 + $0x10] sm:$0x3] %v2435_v1  ;;  %v2427_v5 = vld [vmem:[%s6595_s0 + $0x14] sm:$0x3]  ;;  %v2428_v6 = vld [vmem:[%s6595_s0 + $0x12] sm:$0x3] }
   0x4   :  { %47 = vst [vmem:[#allocation0 + $0x8] sm:$0x3] %v2436_v2  ;;  %v2429_v7 = vld [vmem:[%s6595_s0 + $0x10] sm:$0x3]  ;;  %v2430_v8 = vld [vmem:[%s6595_s0 + $0xe] sm:$0x3] }
   0x5   :  { %49 = vst [vmem:[#allocation0] sm:$0x3] %v48_v3  ;;  %v2431_v9 = vld [vmem:[%s6595_s0 + $0xc] sm:$0x3]  ;;  %v2432_v10 = vld [vmem:[%s6595_s0 + $0xa] sm:$0x3] }
   0x6   :  { %7 = vst [vmem:[#allocation0 + $0x58] sm:$0x3] %v2426_v4  ;;  %v2433_v11 = vld [vmem:[%s6595_s0 + $0x8] sm:$0x3]  ;;  %s3235_s0 = smov 124   ;;  %s3238_s3 = smov 112  }
   0x7   :  { %11 = vst [vmem:[#allocation0 + $0x50] sm:$0x3] %v2427_v5  ;;  %s3239_s4 = smov 108   ;;  %s3240_s5 = smov 104  }
   0x8   :  { %15 = vst [vmem:[#allocation0 + $0x48] sm:$0x3] %v2428_v6  ;;  %s3241_s6 = smov 100   ;;  %s3242_s7 = smov 96  }
   0x9   :  { %19 = vst [vmem:[#allocation0 + $0x40] sm:$0x3] %v2429_v7  ;;  %s3243_s8 = smov 92   ;;  %s3244_s9 = smov 88  }
   0xa   :  { %v134_v12 = vld.sshfl [vmem:[#allocation0 + $0x10] sm:$0xff pattern:$0x98100000]   ;;  %23 = vst [vmem:[#allocation0 + $0x38] sm:$0x3] %v2430_v8  ;;  %s3245_s10 = smov 84  }
   0xb   :  { %27 = vst [vmem:[#allocation0 + $0x30] sm:$0x3] %v2431_v9  ;;  %s3246_s11 = smov 80   ;;  %s3247_s12 = smov 76  }
   0xc   :  { %v132_v13 = vld.sshfl [vmem:[#allocation0] sm:$0xff pattern:$0x99999810]   ;;  %31 = vst [vmem:[#allocation0 + $0x28] sm:$0x3] %v2432_v10  ;;  %s3248_s23 = smov 72  }
   0xd   :  { %v3313_v14 = vsel %vm135_vm0, %v134_v12, %v132_v13  ;;  %35 = vst [vmem:[#allocation0 + $0x20] sm:$0x3] %v2433_v11  ;;  %s3250_s29 = smov 64   ;;  %s3251_s16 = smov 60  }
   0xe   :  { %137 = vrot.lane.b32.xlu0 %v3313_v14, %s3235_s0  ;;  %v184_v15 = vld.sshfl [vmem:[#allocation0 + $0x50] sm:$0xff pattern:$0x98100000]   ;;  %s3253_s20 = smov 52   ;;  %s3255_s24 = smov 44  }
   0xf   :  { %v1834_v48 = vld.sshfl [vmem:[#allocation0] sm:$0xff pattern:$0x99999810]   ;;  %v1836_v50 = vld.sshfl [vmem:[#allocation0 + $0x10] sm:$0xff pattern:$0x98100000]  }
  0x10   :  { %v182_v16 = vld.sshfl [vmem:[#allocation0 + $0x40] sm:$0xff pattern:$0x99999810]   ;;  %v4164_v51 = vsel %vm135_vm0, %v1836_v50, %v1834_v48  ;;  %v1664_v53 = vld.sshfl [vmem:[#allocation0 + $0x50] sm:$0xff pattern:$0x98100000]  }
  0x11   :  { %v3317_v17 = vsel %vm135_vm0, %v184_v15, %v182_v16  ;;  %v1662_v52 = vld.sshfl [vmem:[#allocation0 + $0x40] sm:$0xff pattern:$0x99999810]   ;;  %s3259_s19 = smov 28   ;;  %s3261_s25 = smov 20  }
  0x12   :  { %187 = vrot.lane.b32.xlu1 %v3317_v17, %s3235_s0  ;;  %v159_v18 = vld.sshfl [vmem:[#allocation0 + $0x30] sm:$0xff pattern:$0x98100000]   ;;  %v4177_v54 = vsel %vm135_vm0, %v1664_v53, %v1662_v52  ;;  %s3262_s13 = smov 16   ;;  %s3264_s18 = smov 8  }
  0x13   :  { %v1861_v56 = vld.sshfl [vmem:[#allocation0 + $0x30] sm:$0xff pattern:$0x98100000]  }
  0x14   :  { %v157_v19 = vld.sshfl [vmem:[#allocation0 + $0x20] sm:$0xff pattern:$0x99999810]  }
  0x15   :  { %v3321_v20 = vsel %vm135_vm0, %v159_v18, %v157_v19  ;;  %v1859_v55 = vld.sshfl [vmem:[#allocation0 + $0x20] sm:$0xff pattern:$0x99999810]  }
  0x16   :  { %162 = vrot.lane.b32.xlu0 %v3321_v20, %s3235_s0  ;;  %236 = vrot.lane.b32.xlu2 %v3321_v20, %s3236_s30  ;;  %v4190_v57 = vsel %vm135_vm0, %v1861_v56, %v1859_v55 }
  0x1a   :  { %211 = vrot.lane.b32.xlu1 %v3313_v14, %s3236_s30 }
  0x1e   :  { %285 = vrot.lane.b32.xlu0 %v3313_v14, %s3237_s2  ;;  %261 = vrot.lane.b32.xlu2 %v3317_v17, %s3236_s30  ;;  %s3263_s30 = smov 12  }
  0x22   :  { %310 = vrot.lane.b32.xlu1 %v3321_v20, %s3237_s2 }
  0x26   :  { %359 = vrot.lane.b32.xlu0 %v3313_v14, %s3238_s3  ;;  %335 = vrot.lane.b32.xlu2 %v3317_v17, %s3237_s2  ;;  %s3258_s2 = smov 32  }
  0x2a   :  { %384 = vrot.lane.b32.xlu1 %v3321_v20, %s3238_s3 }
  0x2e   :  { %433 = vrot.lane.b32.xlu0 %v3313_v14, %s3239_s4  ;;  %409 = vrot.lane.b32.xlu2 %v3317_v17, %s3238_s3  ;;  %s3252_s3 = smov 56  }
  0x32   :  { %458 = vrot.lane.b32.xlu1 %v3321_v20, %s3239_s4 }
  0x36   :  { %507 = vrot.lane.b32.xlu0 %v3313_v14, %s3240_s5  ;;  %483 = vrot.lane.b32.xlu2 %v3317_v17, %s3239_s4 }
  0x3a   :  { %532 = vrot.lane.b32.xlu1 %v3321_v20, %s3240_s5 }
  0x3e   :  { %581 = vrot.lane.b32.xlu0 %v3313_v14, %s3241_s6  ;;  %557 = vrot.lane.b32.xlu2 %v3317_v17, %s3240_s5 }
  0x42   :  { %606 = vrot.lane.b32.xlu1 %v3321_v20, %s3241_s6 }
  0x46   :  { %655 = vrot.lane.b32.xlu0 %v3313_v14, %s3242_s7  ;;  %631 = vrot.lane.b32.xlu2 %v3317_v17, %s3241_s6 }
  0x4a   :  { %680 = vrot.lane.b32.xlu1 %v3321_v20, %s3242_s7 }
  0x4e   :  { %729 = vrot.lane.b32.xlu0 %v3313_v14, %s3243_s8  ;;  %705 = vrot.lane.b32.xlu2 %v3317_v17, %s3242_s7  ;;  %s3254_s7 = smov 48  }
  0x52   :  { %754 = vrot.lane.b32.xlu1 %v3321_v20, %s3243_s8 }
  0x56   :  { %803 = vrot.lane.b32.xlu0 %v3313_v14, %s3244_s9  ;;  %779 = vrot.lane.b32.xlu2 %v3317_v17, %s3243_s8 }
  0x5a   :  { %828 = vrot.lane.b32.xlu1 %v3321_v20, %s3244_s9 }
  0x5e   :  { %877 = vrot.lane.b32.xlu0 %v3313_v14, %s3245_s10  ;;  %853 = vrot.lane.b32.xlu2 %v3317_v17, %s3244_s9 }
  0x62   :  { %902 = vrot.lane.b32.xlu1 %v3321_v20, %s3245_s10 }
  0x66   :  { %951 = vrot.lane.b32.xlu0 %v3313_v14, %s3246_s11  ;;  %927 = vrot.lane.b32.xlu2 %v3317_v17, %s3245_s10  ;;  %s3249_s10 = smov 68  }
  0x6a   :  { %976 = vrot.lane.b32.xlu1 %v3321_v20, %s3246_s11 }
  0x6e   :  { %1025 = vrot.lane.b32.xlu0 %v3313_v14, %s3247_s12  ;;  %1001 = vrot.lane.b32.xlu2 %v3317_v17, %s3246_s11  ;;  %s3256_s11 = smov 40  }
  0x70   :  { %v237_v21 = vpop.permute.xlu2 %236  }
  0x71   :  { %2492 = vst.msk [vmem:[%s6596_s1 + $0x102] sm:$0x1] %vm51_vm1, %v237_v21  }
  0x72   :  { %1050 = vrot.lane.b32.xlu1 %v3321_v20, %s3247_s12  ;;  %2493 = vst.msk [vmem:[%s6596_s1 + $0x141] sm:$0x2] %vm51_vm1, %v237_v21  }
  0x73   :  { %2494 = vst.msk [vmem:[%s6596_s1 + $0x120] sm:$0x4] %vm51_vm1, %v237_v21  }
  0x74   :  { %2495 = vst.msk [vmem:[%s6596_s1 + $0x15f] sm:$0x8] %vm51_vm1, %v237_v21  }
  0x75   :  { %2496 = vst.msk [vmem:[%s6596_s1 + $0x17e] sm:$0x10] %vm51_vm1, %v237_v21  }
  0x76   :  { %1099 = vrot.lane.b32.xlu0 %v3313_v14, %s3248_s23  ;;  %2497 = vst.msk [vmem:[%s6596_s1 + $0x1bd] sm:$0x20] %vm51_vm1, %v237_v21   ;;  %1075 = vrot.lane.b32.xlu2 %v3317_v17, %s3247_s12 }
  0x77   :  { %2498 = vst.msk [vmem:[%s6596_s1 + $0x19c] sm:$0x40] %vm51_vm1, %v237_v21  }
  0x78   :  { %2499 = vst.msk [vmem:[%s6596_s1 + $0x1db] sm:$0x80] %vm51_vm1, %v237_v21   ;;  %v262_v22 = vpop.permute.xlu2 %261  }
  0x79   :  { %2500 = vst.msk [vmem:[%s6596_s1 + $0x202] sm:$0x1] %vm51_vm1, %v262_v22  }
  0x7a   :  { %1124 = vrot.lane.b32.xlu1 %v3321_v20, %s3248_s23  ;;  %2501 = vst.msk [vmem:[%s6596_s1 + $0x241] sm:$0x2] %vm51_vm1, %v262_v22  }
  0x7b   :  { %2502 = vst.msk [vmem:[%s6596_s1 + $0x220] sm:$0x4] %vm51_vm1, %v262_v22  }
  0x7c   :  { %2503 = vst.msk [vmem:[%s6596_s1 + $0x25f] sm:$0x8] %vm51_vm1, %v262_v22  }
  0x7d   :  { %2504 = vst.msk [vmem:[%s6596_s1 + $0x27e] sm:$0x10] %vm51_vm1, %v262_v22  }
  0x7e   :  { %1173 = vrot.lane.b32.xlu0 %v3313_v14, %s3249_s10  ;;  %2505 = vst.msk [vmem:[%s6596_s1 + $0x2bd] sm:$0x20] %vm51_vm1, %v262_v22   ;;  %1149 = vrot.lane.b32.xlu2 %v3317_v17, %s3248_s23 }
  0x7f   :  { %2506 = vst.msk [vmem:[%s6596_s1 + $0x29c] sm:$0x40] %vm51_vm1, %v262_v22  }
  0x80   :  { %v138_v23 = vpop.permute.xlu0 %137   ;;  %2507 = vst.msk [vmem:[%s6596_s1 + $0x2db] sm:$0x80] %vm51_vm1, %v262_v22   ;;  %v3459_v25 = vpop.permute.xlu2 %335  }
  0x81   :  { %2460 = vst.msk [vmem:[%s6596_s1 + $0x1] sm:$0x1] %vm51_vm1, %v138_v23  }
  0x82   :  { %1198 = vrot.lane.b32.xlu1 %v3321_v20, %s3249_s10  ;;  %2461 = vst.msk [vmem:[%s6596_s1 + $0x40] sm:$0x2] %vm51_vm1, %v138_v23  }
  0x83   :  { %2462 = vst.msk [vmem:[%s6596_s1 + $0x1f] sm:$0x4] %vm51_vm1, %v138_v23  }
  0x84   :  { %2463 = vst.msk [vmem:[%s6596_s1 + $0x5e] sm:$0x8] %vm51_vm1, %v138_v23   ;;  %v188_v24 = vpop.permute.xlu1 %187  }
  0x85   :  { %2464 = vst.msk [vmem:[%s6596_s1 + $0x7d] sm:$0x10] %vm51_vm1, %v138_v23  }
  0x86   :  { %2465 = vst.msk [vmem:[%s6596_s1 + $0xbc] sm:$0x20] %vm51_vm1, %v138_v23   ;;  %1247 = vrot.lane.b32.xlu0 %v3313_v14, %s3250_s29  ;;  %1223 = vrot.lane.b32.xlu2 %v3317_v17, %s3249_s10 }
  0x87   :  { %2466 = vst.msk [vmem:[%s6596_s1 + $0x9b] sm:$0x40] %vm51_vm1, %v138_v23  }
  0x88   :  { %2467 = vst.msk [vmem:[%s6596_s1 + $0xda] sm:$0x80] %vm51_vm1, %v138_v23   ;;  %v163_v26 = vpop.permute.xlu0 %162   ;;  %v410_v31 = vpop.permute.xlu2 %409  }
  0x89   :  { %2476 = vst.msk [vmem:[%s6596_s1 + $0x201] sm:$0x1] %vm51_vm1, %v188_v24  }
  0x8a   :  { %2477 = vst.msk [vmem:[%s6596_s1 + $0x240] sm:$0x2] %vm51_vm1, %v188_v24   ;;  %1272 = vrot.lane.b32.xlu1 %v3321_v20, %s3250_s29 }
  0x8b   :  { %2478 = vst.msk [vmem:[%s6596_s1 + $0x21f] sm:$0x4] %vm51_vm1, %v188_v24  }
  0x8c   :  { %2479 = vst.msk [vmem:[%s6596_s1 + $0x25e] sm:$0x8] %vm51_vm1, %v188_v24   ;;  %v212_v27 = vpop.permute.xlu1 %211  }
  0x8d   :  { %2480 = vst.msk [vmem:[%s6596_s1 + $0x27d] sm:$0x10] %vm51_vm1, %v188_v24  }
  0x8e   :  { %2481 = vst.msk [vmem:[%s6596_s1 + $0x2bc] sm:$0x20] %vm51_vm1, %v188_v24   ;;  %1321 = vrot.lane.b32.xlu0 %v3313_v14, %s3251_s16  ;;  %1297 = vrot.lane.b32.xlu2 %v3317_v17, %s3250_s29  ;;  %s3257_s29 = smov 36  }
  0x8f   :  { %2482 = vst.msk [vmem:[%s6596_s1 + $0x29b] sm:$0x40] %vm51_vm1, %v188_v24  }
  0x90   :  { %2483 = vst.msk [vmem:[%s6596_s1 + $0x2da] sm:$0x80] %vm51_vm1, %v188_v24   ;;  %v286_v28 = vpop.permute.xlu0 %285   ;;  %v484_v34 = vpop.permute.xlu2 %483  }
  0x91   :  { %2468 = vst.msk [vmem:[%s6596_s1 + $0x101] sm:$0x1] %vm51_vm1, %v163_v26  }
  0x92   :  { %2469 = vst.msk [vmem:[%s6596_s1 + $0x140] sm:$0x2] %vm51_vm1, %v163_v26   ;;  %1346 = vrot.lane.b32.xlu1 %v3321_v20, %s3251_s16 }
  0x93   :  { %2470 = vst.msk [vmem:[%s6596_s1 + $0x11f] sm:$0x4] %vm51_vm1, %v163_v26  }
  0x94   :  { %2471 = vst.msk [vmem:[%s6596_s1 + $0x15e] sm:$0x8] %vm51_vm1, %v163_v26   ;;  %v311_v29 = vpop.permute.xlu1 %310  }
  0x95   :  { %2472 = vst.msk [vmem:[%s6596_s1 + $0x17d] sm:$0x10] %vm51_vm1, %v163_v26  }
  0x96   :  { %2473 = vst.msk [vmem:[%s6596_s1 + $0x1bc] sm:$0x20] %vm51_vm1, %v163_v26   ;;  %1395 = vrot.lane.b32.xlu0 %v3313_v14, %s3252_s3  ;;  %1371 = vrot.lane.b32.xlu2 %v3317_v17, %s3251_s16 }
  0x97   :  { %2474 = vst.msk [vmem:[%s6596_s1 + $0x19b] sm:$0x40] %vm51_vm1, %v163_v26  }
  0x98   :  { %2475 = vst.msk [vmem:[%s6596_s1 + $0x1da] sm:$0x80] %vm51_vm1, %v163_v26   ;;  %v3535_v30 = vpop.permute.xlu0 %359   ;;  %v558_v37 = vpop.permute.xlu2 %557  }
  0x99   :  { %2484 = vst.msk [vmem:[%s6596_s1 + $0x2] sm:$0x1] %vm51_vm1, %v212_v27  }
  0x9a   :  { %2485 = vst.msk [vmem:[%s6596_s1 + $0x41] sm:$0x2] %vm51_vm1, %v212_v27   ;;  %1420 = vrot.lane.b32.xlu1 %v3321_v20, %s3252_s3 }
  0x9b   :  { %2486 = vst.msk [vmem:[%s6596_s1 + $0x20] sm:$0x4] %vm51_vm1, %v212_v27  }
  0x9c   :  { %2487 = vst.msk [vmem:[%s6596_s1 + $0x5f] sm:$0x8] %vm51_vm1, %v212_v27   ;;  %v385_v32 = vpop.permute.xlu1 %384  }
  0x9d   :  { %2488 = vst.msk [vmem:[%s6596_s1 + $0x7e] sm:$0x10] %vm51_vm1, %v212_v27  }
  0x9e   :  { %2489 = vst.msk [vmem:[%s6596_s1 + $0xbd] sm:$0x20] %vm51_vm1, %v212_v27   ;;  %1469 = vrot.lane.b32.xlu0 %v3313_v14, %s3253_s20  ;;  %1445 = vrot.lane.b32.xlu2 %v3317_v17, %s3252_s3 }
  0x9f   :  { %2490 = vst.msk [vmem:[%s6596_s1 + $0x9c] sm:$0x40] %vm51_vm1, %v212_v27  }
  0xa0   :  { %2491 = vst.msk [vmem:[%s6596_s1 + $0xdb] sm:$0x80] %vm51_vm1, %v212_v27   ;;  %v434_v33 = vpop.permute.xlu0 %433   ;;  %v632_v40 = vpop.permute.xlu2 %631  }
  0xa1   :  { %2508 = vst.msk [vmem:[%s6596_s1 + $0x3] sm:$0x1] %vm51_vm1, %v286_v28  }
  0xa2   :  { %2509 = vst.msk [vmem:[%s6596_s1 + $0x42] sm:$0x2] %vm51_vm1, %v286_v28   ;;  %1494 = vrot.lane.b32.xlu1 %v3321_v20, %s3253_s20 }
  0xa3   :  { %2510 = vst.msk [vmem:[%s6596_s1 + $0x21] sm:$0x4] %vm51_vm1, %v286_v28  }
  0xa4   :  { %2511 = vst.msk [vmem:[%s6596_s1 + $0x60] sm:$0x8] %vm51_vm1, %v286_v28   ;;  %v459_v35 = vpop.permute.xlu1 %458  }
  0xa5   :  { %2512 = vst.msk [vmem:[%s6596_s1 + $0x7f] sm:$0x10] %vm51_vm1, %v286_v28  }
  0xa6   :  { %2513 = vst.msk [vmem:[%s6596_s1 + $0xbe] sm:$0x20] %vm51_vm1, %v286_v28   ;;  %1543 = vrot.lane.b32.xlu0 %v3313_v14, %s3254_s7  ;;  %1519 = vrot.lane.b32.xlu2 %v3317_v17, %s3253_s20 }
  0xa7   :  { %2514 = vst.msk [vmem:[%s6596_s1 + $0x9d] sm:$0x40] %vm51_vm1, %v286_v28  }
  0xa8   :  { %2515 = vst.msk [vmem:[%s6596_s1 + $0xdc] sm:$0x80] %vm51_vm1, %v286_v28   ;;  %v508_v36 = vpop.permute.xlu0 %507   ;;  %v706_v43 = vpop.permute.xlu2 %705  }
  0xa9   :  { %2524 = vst.msk [vmem:[%s6596_s1 + $0x203] sm:$0x1] %vm51_vm1, %v3459_v25  }
  0xaa   :  { %2525 = vst.msk [vmem:[%s6596_s1 + $0x242] sm:$0x2] %vm51_vm1, %v3459_v25   ;;  %1568 = vrot.lane.b32.xlu1 %v3321_v20, %s3254_s7 }
  0xab   :  { %2526 = vst.msk [vmem:[%s6596_s1 + $0x221] sm:$0x4] %vm51_vm1, %v3459_v25  }
  0xac   :  { %2527 = vst.msk [vmem:[%s6596_s1 + $0x260] sm:$0x8] %vm51_vm1, %v3459_v25   ;;  %v533_v38 = vpop.permute.xlu1 %532  }
  0xad   :  { %2528 = vst.msk [vmem:[%s6596_s1 + $0x27f] sm:$0x10] %vm51_vm1, %v3459_v25  }
  0xae   :  { %2529 = vst.msk [vmem:[%s6596_s1 + $0x2be] sm:$0x20] %vm51_vm1, %v3459_v25   ;;  %1617 = vrot.lane.b32.xlu0 %v3313_v14, %s3255_s24  ;;  %1593 = vrot.lane.b32.xlu2 %v3317_v17, %s3254_s7  ;;  %s3260_s7 = smov 24  }
  0xaf   :  { %2530 = vst.msk [vmem:[%s6596_s1 + $0x29d] sm:$0x40] %vm51_vm1, %v3459_v25  }
  0xb0   :  { %2531 = vst.msk [vmem:[%s6596_s1 + $0x2dc] sm:$0x80] %vm51_vm1, %v3459_v25   ;;  %v582_v39 = vpop.permute.xlu0 %581   ;;  %v4081_v46 = vpop.permute.xlu2 %779  }
  0xb1   :  { %2516 = vst.msk [vmem:[%s6596_s1 + $0x103] sm:$0x1] %vm51_vm1, %v311_v29  }
  0xb2   :  { %2517 = vst.msk [vmem:[%s6596_s1 + $0x142] sm:$0x2] %vm51_vm1, %v311_v29   ;;  %1642 = vrot.lane.b32.xlu1 %v3321_v20, %s3255_s24 }
  0xb3   :  { %2518 = vst.msk [vmem:[%s6596_s1 + $0x121] sm:$0x4] %vm51_vm1, %v311_v29  }
  0xb4   :  { %2519 = vst.msk [vmem:[%s6596_s1 + $0x160] sm:$0x8] %vm51_vm1, %v311_v29   ;;  %v607_v41 = vpop.permute.xlu1 %606  }
  0xb5   :  { %2520 = vst.msk [vmem:[%s6596_s1 + $0x17f] sm:$0x10] %vm51_vm1, %v311_v29  }
  0xb6   :  { %2521 = vst.msk [vmem:[%s6596_s1 + $0x1be] sm:$0x20] %vm51_vm1, %v311_v29   ;;  %1691 = vrot.lane.b32.xlu0 %v3313_v14, %s3256_s11  ;;  %1667 = vrot.lane.b32.xlu2 %v4177_v54, %s3255_s24 }
  0xb7   :  { %2522 = vst.msk [vmem:[%s6596_s1 + $0x19d] sm:$0x40] %vm51_vm1, %v311_v29  }
  0xb8   :  { %2523 = vst.msk [vmem:[%s6596_s1 + $0x1dc] sm:$0x80] %vm51_vm1, %v311_v29   ;;  %v656_v42 = vpop.permute.xlu0 %655   ;;  %v4198_v58 = vpop.permute.xlu2 %853  }
  0xb9   :  { %2532 = vst.msk [vmem:[%s6596_s1 + $0x4] sm:$0x1] %vm51_vm1, %v3535_v30  }
  0xba   :  { %2533 = vst.msk [vmem:[%s6596_s1 + $0x43] sm:$0x2] %vm51_vm1, %v3535_v30   ;;  %1716 = vrot.lane.b32.xlu1 %v3321_v20, %s3256_s11 }
  0xbb   :  { %2534 = vst.msk [vmem:[%s6596_s1 + $0x22] sm:$0x4] %vm51_vm1, %v3535_v30  }
  0xbc   :  { %2535 = vst.msk [vmem:[%s6596_s1 + $0x61] sm:$0x8] %vm51_vm1, %v3535_v30   ;;  %v681_v44 = vpop.permute.xlu1 %680  }
  0xbd   :  { %2536 = vst.msk [vmem:[%s6596_s1 + $0x80] sm:$0x10] %vm51_vm1, %v3535_v30  }
  0xbe   :  { %2537 = vst.msk [vmem:[%s6596_s1 + $0xbf] sm:$0x20] %vm51_vm1, %v3535_v30   ;;  %1765 = vrot.lane.b32.xlu0 %v3313_v14, %s3257_s29  ;;  %1741 = vrot.lane.b32.xlu2 %v4177_v54, %s3256_s11 }
  0xbf   :  { %2538 = vst.msk [vmem:[%s6596_s1 + $0x9e] sm:$0x40] %vm51_vm1, %v3535_v30  }
  0xc0   :  { %2539 = vst.msk [vmem:[%s6596_s1 + $0xdd] sm:$0x80] %vm51_vm1, %v3535_v30   ;;  %v730_v45 = vpop.permute.xlu0 %729   ;;  %v928_v61 = vpop.permute.xlu2 %927  }
  0xc1   :  { %2548 = vst.msk [vmem:[%s6596_s1 + $0x204] sm:$0x1] %vm51_vm1, %v410_v31  }
  0xc2   :  { %2549 = vst.msk [vmem:[%s6596_s1 + $0x243] sm:$0x2] %vm51_vm1, %v410_v31   ;;  %1790 = vrot.lane.b32.xlu1 %v3321_v20, %s3257_s29 }
  0xc3   :  { %2550 = vst.msk [vmem:[%s6596_s1 + $0x222] sm:$0x4] %vm51_vm1, %v410_v31  }
  0xc4   :  { %2551 = vst.msk [vmem:[%s6596_s1 + $0x261] sm:$0x8] %vm51_vm1, %v410_v31   ;;  %v4115_v47 = vpop.permute.xlu1 %754  }
  0xc5   :  { %2552 = vst.msk [vmem:[%s6596_s1 + $0x280] sm:$0x10] %vm51_vm1, %v410_v31  }
  0xc6   :  { %2553 = vst.msk [vmem:[%s6596_s1 + $0x2bf] sm:$0x20] %vm51_vm1, %v410_v31   ;;  %1839 = vrot.lane.b32.xlu0 %v4164_v51, %s3258_s2  ;;  %1815 = vrot.lane.b32.xlu2 %v4177_v54, %s3257_s29 }
  0xc7   :  { %2554 = vst.msk [vmem:[%s6596_s1 + $0x29e] sm:$0x40] %vm51_vm1, %v410_v31  }
  0xc8   :  { %2555 = vst.msk [vmem:[%s6596_s1 + $0x2dd] sm:$0x80] %vm51_vm1, %v410_v31   ;;  %v4153_v49 = vpop.permute.xlu0 %803   ;;  %v1002_v0 = vpop.permute.xlu2 %1001  }
  0xc9   :  { %2540 = vst.msk [vmem:[%s6596_s1 + $0x104] sm:$0x1] %vm51_vm1, %v385_v32  }
  0xca   :  { %2541 = vst.msk [vmem:[%s6596_s1 + $0x143] sm:$0x2] %vm51_vm1, %v385_v32   ;;  %1864 = vrot.lane.b32.xlu1 %v4190_v57, %s3258_s2 }
  0xcb   :  { %2542 = vst.msk [vmem:[%s6596_s1 + $0x122] sm:$0x4] %vm51_vm1, %v385_v32  }
  0xcc   :  { %2543 = vst.msk [vmem:[%s6596_s1 + $0x161] sm:$0x8] %vm51_vm1, %v385_v32   ;;  %v4236_v59 = vpop.permute.xlu1 %828  }
  0xcd   :  { %2544 = vst.msk [vmem:[%s6596_s1 + $0x180] sm:$0x10] %vm51_vm1, %v385_v32  }
  0xce   :  { %2545 = vst.msk [vmem:[%s6596_s1 + $0x1bf] sm:$0x20] %vm51_vm1, %v385_v32   ;;  %1913 = vrot.lane.b32.xlu0 %v4164_v51, %s3259_s19  ;;  %1889 = vrot.lane.b32.xlu2 %v4177_v54, %s3258_s2 }
  0xcf   :  { %2546 = vst.msk [vmem:[%s6596_s1 + $0x19e] sm:$0x40] %vm51_vm1, %v385_v32  }
  0xd0   :  { %2547 = vst.msk [vmem:[%s6596_s1 + $0x1dd] sm:$0x80] %vm51_vm1, %v385_v32   ;;  %v878_v60 = vpop.permute.xlu0 %877   ;;  %v1076_v3 = vpop.permute.xlu2 %1075  }
  0xd1   :  { %2556 = vst.msk [vmem:[%s6596_s1 + $0x5] sm:$0x1] %vm51_vm1, %v434_v33  }
  0xd2   :  { %2557 = vst.msk [vmem:[%s6596_s1 + $0x44] sm:$0x2] %vm51_vm1, %v434_v33   ;;  %1938 = vrot.lane.b32.xlu1 %v4190_v57, %s3259_s19 }
  0xd3   :  { %2558 = vst.msk [vmem:[%s6596_s1 + $0x23] sm:$0x4] %vm51_vm1, %v434_v33  }
  0xd4   :  { %2559 = vst.msk [vmem:[%s6596_s1 + $0x62] sm:$0x8] %vm51_vm1, %v434_v33   ;;  %v903_v62 = vpop.permute.xlu1 %902  }
  0xd5   :  { %2560 = vst.msk [vmem:[%s6596_s1 + $0x81] sm:$0x10] %vm51_vm1, %v434_v33  }
  0xd6   :  { %2561 = vst.msk [vmem:[%s6596_s1 + $0xc0] sm:$0x20] %vm51_vm1, %v434_v33   ;;  %1987 = vrot.lane.b32.xlu0 %v4164_v51, %s3260_s7  ;;  %1963 = vrot.lane.b32.xlu2 %v4177_v54, %s3259_s19 }
  0xd7   :  { %2562 = vst.msk [vmem:[%s6596_s1 + $0x9f] sm:$0x40] %vm51_vm1, %v434_v33  }
  0xd8   :  { %2563 = vst.msk [vmem:[%s6596_s1 + $0xde] sm:$0x80] %vm51_vm1, %v434_v33   ;;  %v952_v63 = vpop.permute.xlu0 %951   ;;  %v1150_v6 = vpop.permute.xlu2 %1149  }
  0xd9   :  { %2572 = vst.msk [vmem:[%s6596_s1 + $0x205] sm:$0x1] %vm51_vm1, %v484_v34  }
  0xda   :  { %2573 = vst.msk [vmem:[%s6596_s1 + $0x244] sm:$0x2] %vm51_vm1, %v484_v34   ;;  %2012 = vrot.lane.b32.xlu1 %v4190_v57, %s3260_s7 }
  0xdb   :  { %2574 = vst.msk [vmem:[%s6596_s1 + $0x223] sm:$0x4] %vm51_vm1, %v484_v34  }
  0xdc   :  { %2575 = vst.msk [vmem:[%s6596_s1 + $0x262] sm:$0x8] %vm51_vm1, %v484_v34   ;;  %v977_v1 = vpop.permute.xlu1 %976  }
  0xdd   :  { %2576 = vst.msk [vmem:[%s6596_s1 + $0x281] sm:$0x10] %vm51_vm1, %v484_v34  }
  0xde   :  { %2577 = vst.msk [vmem:[%s6596_s1 + $0x2c0] sm:$0x20] %vm51_vm1, %v484_v34   ;;  %2061 = vrot.lane.b32.xlu0 %v4164_v51, %s3261_s25  ;;  %2037 = vrot.lane.b32.xlu2 %v4177_v54, %s3260_s7  ;;  %s3265_s7 = smov 4  }
  0xdf   :  { %2578 = vst.msk [vmem:[%s6596_s1 + $0x29f] sm:$0x40] %vm51_vm1, %v484_v34  }
  0xe0   :  { %2579 = vst.msk [vmem:[%s6596_s1 + $0x2de] sm:$0x80] %vm51_vm1, %v484_v34   ;;  %v1026_v2 = vpop.permute.xlu0 %1025   ;;  %v1224_v9 = vpop.permute.xlu2 %1223  }
  0xe1   :  { %2564 = vst.msk [vmem:[%s6596_s1 + $0x105] sm:$0x1] %vm51_vm1, %v459_v35  }
  0xe2   :  { %2565 = vst.msk [vmem:[%s6596_s1 + $0x144] sm:$0x2] %vm51_vm1, %v459_v35   ;;  %2086 = vrot.lane.b32.xlu1 %v4190_v57, %s3261_s25 }
  0xe3   :  { %2566 = vst.msk [vmem:[%s6596_s1 + $0x123] sm:$0x4] %vm51_vm1, %v459_v35  }
  0xe4   :  { %2567 = vst.msk [vmem:[%s6596_s1 + $0x162] sm:$0x8] %vm51_vm1, %v459_v35   ;;  %v1051_v4 = vpop.permute.xlu1 %1050  }
  0xe5   :  { %2568 = vst.msk [vmem:[%s6596_s1 + $0x181] sm:$0x10] %vm51_vm1, %v459_v35  }
  0xe6   :  { %2569 = vst.msk [vmem:[%s6596_s1 + $0x1c0] sm:$0x20] %vm51_vm1, %v459_v35   ;;  %2135 = vrot.lane.b32.xlu0 %v4164_v51, %s3262_s13  ;;  %2111 = vrot.lane.b32.xlu2 %v4177_v54, %s3261_s25 }
  0xe7   :  { %2570 = vst.msk [vmem:[%s6596_s1 + $0x19f] sm:$0x40] %vm51_vm1, %v459_v35  }
  0xe8   :  { %2571 = vst.msk [vmem:[%s6596_s1 + $0x1de] sm:$0x80] %vm51_vm1, %v459_v35   ;;  %v1100_v5 = vpop.permute.xlu0 %1099   ;;  %v1298_v12 = vpop.permute.xlu2 %1297  }
  0xe9   :  { %2580 = vst.msk [vmem:[%s6596_s1 + $0x6] sm:$0x1] %vm51_vm1, %v508_v36  }
  0xea   :  { %2581 = vst.msk [vmem:[%s6596_s1 + $0x45] sm:$0x2] %vm51_vm1, %v508_v36   ;;  %2160 = vrot.lane.b32.xlu1 %v4190_v57, %s3262_s13 }
  0xeb   :  { %2582 = vst.msk [vmem:[%s6596_s1 + $0x24] sm:$0x4] %vm51_vm1, %v508_v36  }
  0xec   :  { %2583 = vst.msk [vmem:[%s6596_s1 + $0x63] sm:$0x8] %vm51_vm1, %v508_v36   ;;  %v1125_v7 = vpop.permute.xlu1 %1124  }
  0xed   :  { %2584 = vst.msk [vmem:[%s6596_s1 + $0x82] sm:$0x10] %vm51_vm1, %v508_v36  }
  0xee   :  { %2585 = vst.msk [vmem:[%s6596_s1 + $0xc1] sm:$0x20] %vm51_vm1, %v508_v36   ;;  %2209 = vrot.lane.b32.xlu0 %v4164_v51, %s3263_s30  ;;  %2185 = vrot.lane.b32.xlu2 %v4177_v54, %s3262_s13 }
  0xef   :  { %2586 = vst.msk [vmem:[%s6596_s1 + $0xa0] sm:$0x40] %vm51_vm1, %v508_v36  }
  0xf0   :  { %2587 = vst.msk [vmem:[%s6596_s1 + $0xdf] sm:$0x80] %vm51_vm1, %v508_v36   ;;  %v1174_v8 = vpop.permute.xlu0 %1173   ;;  %v1372_v15 = vpop.permute.xlu2 %1371  }
  0xf1   :  { %2596 = vst.msk [vmem:[%s6596_s1 + $0x206] sm:$0x1] %vm51_vm1, %v558_v37  }
  0xf2   :  { %2597 = vst.msk [vmem:[%s6596_s1 + $0x245] sm:$0x2] %vm51_vm1, %v558_v37   ;;  %2234 = vrot.lane.b32.xlu1 %v4190_v57, %s3263_s30 }
  0xf3   :  { %2598 = vst.msk [vmem:[%s6596_s1 + $0x224] sm:$0x4] %vm51_vm1, %v558_v37  }
  0xf4   :  { %2599 = vst.msk [vmem:[%s6596_s1 + $0x263] sm:$0x8] %vm51_vm1, %v558_v37   ;;  %v1199_v10 = vpop.permute.xlu1 %1198  }
  0xf5   :  { %2600 = vst.msk [vmem:[%s6596_s1 + $0x282] sm:$0x10] %vm51_vm1, %v558_v37  }
  0xf6   :  { %2601 = vst.msk [vmem:[%s6596_s1 + $0x2c1] sm:$0x20] %vm51_vm1, %v558_v37   ;;  %2283 = vrot.lane.b32.xlu0 %v4164_v51, %s3264_s18  ;;  %2259 = vrot.lane.b32.xlu2 %v4177_v54, %s3263_s30 }
  0xf7   :  { %2602 = vst.msk [vmem:[%s6596_s1 + $0x2a0] sm:$0x40] %vm51_vm1, %v558_v37  }
  0xf8   :  { %2603 = vst.msk [vmem:[%s6596_s1 + $0x2df] sm:$0x80] %vm51_vm1, %v558_v37   ;;  %v1248_v11 = vpop.permute.xlu0 %1247   ;;  %v1446_v18 = vpop.permute.xlu2 %1445  }
  0xf9   :  { %2588 = vst.msk [vmem:[%s6596_s1 + $0x106] sm:$0x1] %vm51_vm1, %v533_v38  }
  0xfa   :  { %2589 = vst.msk [vmem:[%s6596_s1 + $0x145] sm:$0x2] %vm51_vm1, %v533_v38   ;;  %2308 = vrot.lane.b32.xlu1 %v4190_v57, %s3264_s18 }
  0xfb   :  { %2590 = vst.msk [vmem:[%s6596_s1 + $0x124] sm:$0x4] %vm51_vm1, %v533_v38  }
  0xfc   :  { %2591 = vst.msk [vmem:[%s6596_s1 + $0x163] sm:$0x8] %vm51_vm1, %v533_v38   ;;  %v1273_v13 = vpop.permute.xlu1 %1272  }
  0xfd   :  { %2592 = vst.msk [vmem:[%s6596_s1 + $0x182] sm:$0x10] %vm51_vm1, %v533_v38  }
  0xfe   :  { %2593 = vst.msk [vmem:[%s6596_s1 + $0x1c1] sm:$0x20] %vm51_vm1, %v533_v38   ;;  %2357 = vrot.lane.b32.xlu0 %v4164_v51, %s3265_s7  ;;  %2333 = vrot.lane.b32.xlu2 %v4177_v54, %s3264_s18 }
  0xff   :  { %2594 = vst.msk [vmem:[%s6596_s1 + $0x1a0] sm:$0x40] %vm51_vm1, %v533_v38  }
 0x100   :  { %2595 = vst.msk [vmem:[%s6596_s1 + $0x1df] sm:$0x80] %vm51_vm1, %v533_v38   ;;  %v1322_v14 = vpop.permute.xlu0 %1321   ;;  %v1520_v21 = vpop.permute.xlu2 %1519  }
 0x101   :  { %2604 = vst.msk [vmem:[%s6596_s1 + $0x7] sm:$0x1] %vm51_vm1, %v582_v39  }
 0x102   :  { %2605 = vst.msk [vmem:[%s6596_s1 + $0x46] sm:$0x2] %vm51_vm1, %v582_v39   ;;  %2382 = vrot.lane.b32.xlu1 %v4190_v57, %s3265_s7 }
 0x103   :  { %2606 = vst.msk [vmem:[%s6596_s1 + $0x25] sm:$0x4] %vm51_vm1, %v582_v39  }
 0x104   :  { %2607 = vst.msk [vmem:[%s6596_s1 + $0x64] sm:$0x8] %vm51_vm1, %v582_v39   ;;  %v1347_v16 = vpop.permute.xlu1 %1346  }
 0x105   :  { %2608 = vst.msk [vmem:[%s6596_s1 + $0x83] sm:$0x10] %vm51_vm1, %v582_v39  }
 0x106   :  { %2609 = vst.msk [vmem:[%s6596_s1 + $0xc2] sm:$0x20] %vm51_vm1, %v582_v39   ;;  %2407 = vrot.lane.b32.xlu2 %v4177_v54, %s3265_s7 }
 0x107   :  { %2610 = vst.msk [vmem:[%s6596_s1 + $0xa1] sm:$0x40] %vm51_vm1, %v582_v39  }
 0x108   :  { %2611 = vst.msk [vmem:[%s6596_s1 + $0xe0] sm:$0x80] %vm51_vm1, %v582_v39   ;;  %v1396_v17 = vpop.permute.xlu0 %1395   ;;  %v1594_v24 = vpop.permute.xlu2 %1593  }
 0x109   :  { %2620 = vst.msk [vmem:[%s6596_s1 + $0x207] sm:$0x1] %vm51_vm1, %v632_v40  }
 0x10a   :  { %2621 = vst.msk [vmem:[%s6596_s1 + $0x246] sm:$0x2] %vm51_vm1, %v632_v40  }
 0x10b   :  { %2622 = vst.msk [vmem:[%s6596_s1 + $0x225] sm:$0x4] %vm51_vm1, %v632_v40  }
 0x10c   :  { %2623 = vst.msk [vmem:[%s6596_s1 + $0x264] sm:$0x8] %vm51_vm1, %v632_v40   ;;  %v1421_v19 = vpop.permute.xlu1 %1420  }
 0x10d   :  { %2624 = vst.msk [vmem:[%s6596_s1 + $0x283] sm:$0x10] %vm51_vm1, %v632_v40  }
 0x10e   :  { %2625 = vst.msk [vmem:[%s6596_s1 + $0x2c2] sm:$0x20] %vm51_vm1, %v632_v40  }
 0x10f   :  { %2626 = vst.msk [vmem:[%s6596_s1 + $0x2a1] sm:$0x40] %vm51_vm1, %v632_v40  }
 0x110   :  { %2627 = vst.msk [vmem:[%s6596_s1 + $0x2e0] sm:$0x80] %vm51_vm1, %v632_v40   ;;  %v1470_v20 = vpop.permute.xlu0 %1469   ;;  %v1668_v27 = vpop.permute.xlu2 %1667  }
 0x111   :  { %2612 = vst.msk [vmem:[%s6596_s1 + $0x107] sm:$0x1] %vm51_vm1, %v607_v41  }
 0x112   :  { %2613 = vst.msk [vmem:[%s6596_s1 + $0x146] sm:$0x2] %vm51_vm1, %v607_v41  }
 0x113   :  { %2614 = vst.msk [vmem:[%s6596_s1 + $0x125] sm:$0x4] %vm51_vm1, %v607_v41  }
 0x114   :  { %2615 = vst.msk [vmem:[%s6596_s1 + $0x164] sm:$0x8] %vm51_vm1, %v607_v41   ;;  %v1495_v22 = vpop.permute.xlu1 %1494  }
 0x115   :  { %2616 = vst.msk [vmem:[%s6596_s1 + $0x183] sm:$0x10] %vm51_vm1, %v607_v41  }
 0x116   :  { %2617 = vst.msk [vmem:[%s6596_s1 + $0x1c2] sm:$0x20] %vm51_vm1, %v607_v41  }
 0x117   :  { %2618 = vst.msk [vmem:[%s6596_s1 + $0x1a1] sm:$0x40] %vm51_vm1, %v607_v41  }
 0x118   :  { %2619 = vst.msk [vmem:[%s6596_s1 + $0x1e0] sm:$0x80] %vm51_vm1, %v607_v41   ;;  %v1544_v23 = vpop.permute.xlu0 %1543   ;;  %v1742_v30 = vpop.permute.xlu2 %1741  }
 0x119   :  { %2628 = vst.msk [vmem:[%s6596_s1 + $0x8] sm:$0x1] %vm51_vm1, %v656_v42  }
 0x11a   :  { %2629 = vst.msk [vmem:[%s6596_s1 + $0x47] sm:$0x2] %vm51_vm1, %v656_v42  }
 0x11b   :  { %2630 = vst.msk [vmem:[%s6596_s1 + $0x26] sm:$0x4] %vm51_vm1, %v656_v42  }
 0x11c   :  { %2631 = vst.msk [vmem:[%s6596_s1 + $0x65] sm:$0x8] %vm51_vm1, %v656_v42   ;;  %v1569_v25 = vpop.permute.xlu1 %1568  }
 0x11d   :  { %2632 = vst.msk [vmem:[%s6596_s1 + $0x84] sm:$0x10] %vm51_vm1, %v656_v42  }
 0x11e   :  { %2633 = vst.msk [vmem:[%s6596_s1 + $0xc3] sm:$0x20] %vm51_vm1, %v656_v42  }
 0x11f   :  { %2634 = vst.msk [vmem:[%s6596_s1 + $0xa2] sm:$0x40] %vm51_vm1, %v656_v42  }
 0x120   :  { %2635 = vst.msk [vmem:[%s6596_s1 + $0xe1] sm:$0x80] %vm51_vm1, %v656_v42   ;;  %v1618_v26 = vpop.permute.xlu0 %1617   ;;  %v1816_v33 = vpop.permute.xlu2 %1815  }
 0x121   :  { %2644 = vst.msk [vmem:[%s6596_s1 + $0x208] sm:$0x1] %vm51_vm1, %v706_v43  }
 0x122   :  { %2645 = vst.msk [vmem:[%s6596_s1 + $0x247] sm:$0x2] %vm51_vm1, %v706_v43  }
 0x123   :  { %2646 = vst.msk [vmem:[%s6596_s1 + $0x226] sm:$0x4] %vm51_vm1, %v706_v43  }
 0x124   :  { %2647 = vst.msk [vmem:[%s6596_s1 + $0x265] sm:$0x8] %vm51_vm1, %v706_v43   ;;  %v1643_v28 = vpop.permute.xlu1 %1642  }
 0x125   :  { %2648 = vst.msk [vmem:[%s6596_s1 + $0x284] sm:$0x10] %vm51_vm1, %v706_v43  }
 0x126   :  { %2649 = vst.msk [vmem:[%s6596_s1 + $0x2c3] sm:$0x20] %vm51_vm1, %v706_v43  }
 0x127   :  { %2650 = vst.msk [vmem:[%s6596_s1 + $0x2a2] sm:$0x40] %vm51_vm1, %v706_v43  }
 0x128   :  { %2651 = vst.msk [vmem:[%s6596_s1 + $0x2e1] sm:$0x80] %vm51_vm1, %v706_v43   ;;  %v1692_v29 = vpop.permute.xlu0 %1691   ;;  %v1890_v36 = vpop.permute.xlu2 %1889  }
 0x129   :  { %2636 = vst.msk [vmem:[%s6596_s1 + $0x108] sm:$0x1] %vm51_vm1, %v681_v44  }
 0x12a   :  { %2637 = vst.msk [vmem:[%s6596_s1 + $0x147] sm:$0x2] %vm51_vm1, %v681_v44  }
 0x12b   :  { %2638 = vst.msk [vmem:[%s6596_s1 + $0x126] sm:$0x4] %vm51_vm1, %v681_v44  }
 0x12c   :  { %2639 = vst.msk [vmem:[%s6596_s1 + $0x165] sm:$0x8] %vm51_vm1, %v681_v44   ;;  %v1717_v31 = vpop.permute.xlu1 %1716  }
 0x12d   :  { %2640 = vst.msk [vmem:[%s6596_s1 + $0x184] sm:$0x10] %vm51_vm1, %v681_v44  }
 0x12e   :  { %2641 = vst.msk [vmem:[%s6596_s1 + $0x1c3] sm:$0x20] %vm51_vm1, %v681_v44  }
 0x12f   :  { %2642 = vst.msk [vmem:[%s6596_s1 + $0x1a2] sm:$0x40] %vm51_vm1, %v681_v44  }
 0x130   :  { %2643 = vst.msk [vmem:[%s6596_s1 + $0x1e1] sm:$0x80] %vm51_vm1, %v681_v44   ;;  %v1766_v32 = vpop.permute.xlu0 %1765   ;;  %v1964_v39 = vpop.permute.xlu2 %1963  }
 0x131   :  { %2652 = vst.msk [vmem:[%s6596_s1 + $0x9] sm:$0x1] %vm51_vm1, %v730_v45  }
 0x132   :  { %2653 = vst.msk [vmem:[%s6596_s1 + $0x48] sm:$0x2] %vm51_vm1, %v730_v45  }
 0x133   :  { %2654 = vst.msk [vmem:[%s6596_s1 + $0x27] sm:$0x4] %vm51_vm1, %v730_v45  }
 0x134   :  { %2655 = vst.msk [vmem:[%s6596_s1 + $0x66] sm:$0x8] %vm51_vm1, %v730_v45   ;;  %v1791_v34 = vpop.permute.xlu1 %1790  }
 0x135   :  { %2656 = vst.msk [vmem:[%s6596_s1 + $0x85] sm:$0x10] %vm51_vm1, %v730_v45  }
 0x136   :  { %2657 = vst.msk [vmem:[%s6596_s1 + $0xc4] sm:$0x20] %vm51_vm1, %v730_v45  }
 0x137   :  { %2658 = vst.msk [vmem:[%s6596_s1 + $0xa3] sm:$0x40] %vm51_vm1, %v730_v45  }
 0x138   :  { %2659 = vst.msk [vmem:[%s6596_s1 + $0xe2] sm:$0x80] %vm51_vm1, %v730_v45   ;;  %v1840_v35 = vpop.permute.xlu0 %1839   ;;  %v2038_v42 = vpop.permute.xlu2 %2037  }
 0x139   :  { %2668 = vst.msk [vmem:[%s6596_s1 + $0x209] sm:$0x1] %vm51_vm1, %v4081_v46  }
 0x13a   :  { %2669 = vst.msk [vmem:[%s6596_s1 + $0x248] sm:$0x2] %vm51_vm1, %v4081_v46  }
 0x13b   :  { %2670 = vst.msk [vmem:[%s6596_s1 + $0x227] sm:$0x4] %vm51_vm1, %v4081_v46  }
 0x13c   :  { %2671 = vst.msk [vmem:[%s6596_s1 + $0x266] sm:$0x8] %vm51_vm1, %v4081_v46   ;;  %v1865_v37 = vpop.permute.xlu1 %1864  }
 0x13d   :  { %2672 = vst.msk [vmem:[%s6596_s1 + $0x285] sm:$0x10] %vm51_vm1, %v4081_v46  }
 0x13e   :  { %2673 = vst.msk [vmem:[%s6596_s1 + $0x2c4] sm:$0x20] %vm51_vm1, %v4081_v46  }
 0x13f   :  { %2674 = vst.msk [vmem:[%s6596_s1 + $0x2a3] sm:$0x40] %vm51_vm1, %v4081_v46  }
 0x140   :  { %2675 = vst.msk [vmem:[%s6596_s1 + $0x2e2] sm:$0x80] %vm51_vm1, %v4081_v46   ;;  %v1914_v38 = vpop.permute.xlu0 %1913   ;;  %v2112_v45 = vpop.permute.xlu2 %2111  }
 0x141   :  { %2660 = vst.msk [vmem:[%s6596_s1 + $0x109] sm:$0x1] %vm51_vm1, %v4115_v47  }
 0x142   :  { %2661 = vst.msk [vmem:[%s6596_s1 + $0x148] sm:$0x2] %vm51_vm1, %v4115_v47  }
 0x143   :  { %2662 = vst.msk [vmem:[%s6596_s1 + $0x127] sm:$0x4] %vm51_vm1, %v4115_v47  }
 0x144   :  { %2663 = vst.msk [vmem:[%s6596_s1 + $0x166] sm:$0x8] %vm51_vm1, %v4115_v47   ;;  %v1939_v40 = vpop.permute.xlu1 %1938  }
 0x145   :  { %2664 = vst.msk [vmem:[%s6596_s1 + $0x185] sm:$0x10] %vm51_vm1, %v4115_v47  }
 0x146   :  { %2665 = vst.msk [vmem:[%s6596_s1 + $0x1c4] sm:$0x20] %vm51_vm1, %v4115_v47  }
 0x147   :  { %2666 = vst.msk [vmem:[%s6596_s1 + $0x1a3] sm:$0x40] %vm51_vm1, %v4115_v47  }
 0x148   :  { %2667 = vst.msk [vmem:[%s6596_s1 + $0x1e2] sm:$0x80] %vm51_vm1, %v4115_v47   ;;  %v1988_v41 = vpop.permute.xlu0 %1987   ;;  %v2186_v48 = vpop.permute.xlu2 %2185  }
 0x149   :  { %2676 = vst.msk [vmem:[%s6596_s1 + $0xa] sm:$0x1] %vm51_vm1, %v4153_v49  }
 0x14a   :  { %2677 = vst.msk [vmem:[%s6596_s1 + $0x49] sm:$0x2] %vm51_vm1, %v4153_v49  }
 0x14b   :  { %2678 = vst.msk [vmem:[%s6596_s1 + $0x28] sm:$0x4] %vm51_vm1, %v4153_v49  }
 0x14c   :  { %2679 = vst.msk [vmem:[%s6596_s1 + $0x67] sm:$0x8] %vm51_vm1, %v4153_v49   ;;  %v2013_v43 = vpop.permute.xlu1 %2012  }
 0x14d   :  { %2680 = vst.msk [vmem:[%s6596_s1 + $0x86] sm:$0x10] %vm51_vm1, %v4153_v49  }
 0x14e   :  { %2681 = vst.msk [vmem:[%s6596_s1 + $0xc5] sm:$0x20] %vm51_vm1, %v4153_v49  }
 0x14f   :  { %2682 = vst.msk [vmem:[%s6596_s1 + $0xa4] sm:$0x40] %vm51_vm1, %v4153_v49  }
 0x150   :  { %2683 = vst.msk [vmem:[%s6596_s1 + $0xe3] sm:$0x80] %vm51_vm1, %v4153_v49   ;;  %v2062_v44 = vpop.permute.xlu0 %2061   ;;  %v2260_v51 = vpop.permute.xlu2 %2259  }
 0x151   :  { %2692 = vst.msk [vmem:[%s6596_s1 + $0x20a] sm:$0x1] %vm51_vm1, %v4198_v58  }
 0x152   :  { %2693 = vst.msk [vmem:[%s6596_s1 + $0x249] sm:$0x2] %vm51_vm1, %v4198_v58  }
 0x153   :  { %2694 = vst.msk [vmem:[%s6596_s1 + $0x228] sm:$0x4] %vm51_vm1, %v4198_v58  }
 0x154   :  { %2695 = vst.msk [vmem:[%s6596_s1 + $0x267] sm:$0x8] %vm51_vm1, %v4198_v58   ;;  %v2087_v46 = vpop.permute.xlu1 %2086  }
 0x155   :  { %2696 = vst.msk [vmem:[%s6596_s1 + $0x286] sm:$0x10] %vm51_vm1, %v4198_v58  }
 0x156   :  { %2697 = vst.msk [vmem:[%s6596_s1 + $0x2c5] sm:$0x20] %vm51_vm1, %v4198_v58  }
 0x157   :  { %2698 = vst.msk [vmem:[%s6596_s1 + $0x2a4] sm:$0x40] %vm51_vm1, %v4198_v58  }
 0x158   :  { %2699 = vst.msk [vmem:[%s6596_s1 + $0x2e3] sm:$0x80] %vm51_vm1, %v4198_v58   ;;  %v2136_v47 = vpop.permute.xlu0 %2135   ;;  %v2334_v54 = vpop.permute.xlu2 %2333  }
 0x159   :  { %2684 = vst.msk [vmem:[%s6596_s1 + $0x10a] sm:$0x1] %vm51_vm1, %v4236_v59  }
 0x15a   :  { %2685 = vst.msk [vmem:[%s6596_s1 + $0x149] sm:$0x2] %vm51_vm1, %v4236_v59  }
 0x15b   :  { %2686 = vst.msk [vmem:[%s6596_s1 + $0x128] sm:$0x4] %vm51_vm1, %v4236_v59  }
 0x15c   :  { %2687 = vst.msk [vmem:[%s6596_s1 + $0x167] sm:$0x8] %vm51_vm1, %v4236_v59   ;;  %v2161_v49 = vpop.permute.xlu1 %2160  }
 0x15d   :  { %2688 = vst.msk [vmem:[%s6596_s1 + $0x186] sm:$0x10] %vm51_vm1, %v4236_v59  }
 0x15e   :  { %2689 = vst.msk [vmem:[%s6596_s1 + $0x1c5] sm:$0x20] %vm51_vm1, %v4236_v59  }
 0x15f   :  { %2690 = vst.msk [vmem:[%s6596_s1 + $0x1a4] sm:$0x40] %vm51_vm1, %v4236_v59  }
 0x160   :  { %2691 = vst.msk [vmem:[%s6596_s1 + $0x1e3] sm:$0x80] %vm51_vm1, %v4236_v59   ;;  %v2210_v50 = vpop.permute.xlu0 %2209   ;;  %v2408_v57 = vpop.permute.xlu2 %2407   ;;  %v50_v59 = vld [vmem:[#allocation0] sm:$0x3]  }
 0x161   :  { %2700 = vst.msk [vmem:[%s6596_s1 + $0xb] sm:$0x1] %vm51_vm1, %v878_v60  }
 0x162   :  { %2701 = vst.msk [vmem:[%s6596_s1 + $0x4a] sm:$0x2] %vm51_vm1, %v878_v60  }
 0x163   :  { %2702 = vst.msk [vmem:[%s6596_s1 + $0x29] sm:$0x4] %vm51_vm1, %v878_v60  }
 0x164   :  { %2703 = vst.msk [vmem:[%s6596_s1 + $0x68] sm:$0x8] %vm51_vm1, %v878_v60   ;;  %v2235_v52 = vpop.permute.xlu1 %2234  }
 0x165   :  { %2704 = vst.msk [vmem:[%s6596_s1 + $0x87] sm:$0x10] %vm51_vm1, %v878_v60  }
 0x166   :  { %2705 = vst.msk [vmem:[%s6596_s1 + $0xc6] sm:$0x20] %vm51_vm1, %v878_v60  }
 0x167   :  { %2706 = vst.msk [vmem:[%s6596_s1 + $0xa5] sm:$0x40] %vm51_vm1, %v878_v60  }
 0x168   :  { %2707 = vst.msk [vmem:[%s6596_s1 + $0xe4] sm:$0x80] %vm51_vm1, %v878_v60   ;;  %v2284_v53 = vpop.permute.xlu0 %2283   ;;  %v56_v60 = vld [vmem:[#allocation0 + $0x8] sm:$0x3]  }
 0x169   :  { %2716 = vst.msk [vmem:[%s6596_s1 + $0x20b] sm:$0x1] %vm51_vm1, %v928_v61  }
 0x16a   :  { %2717 = vst.msk [vmem:[%s6596_s1 + $0x24a] sm:$0x2] %vm51_vm1, %v928_v61  }
 0x16b   :  { %2718 = vst.msk [vmem:[%s6596_s1 + $0x229] sm:$0x4] %vm51_vm1, %v928_v61  }
 0x16c   :  { %2719 = vst.msk [vmem:[%s6596_s1 + $0x268] sm:$0x8] %vm51_vm1, %v928_v61   ;;  %v2309_v55 = vpop.permute.xlu1 %2308  }
 0x16d   :  { %2720 = vst.msk [vmem:[%s6596_s1 + $0x287] sm:$0x10] %vm51_vm1, %v928_v61  }
 0x16e   :  { %2721 = vst.msk [vmem:[%s6596_s1 + $0x2c6] sm:$0x20] %vm51_vm1, %v928_v61  }
 0x16f   :  { %2722 = vst.msk [vmem:[%s6596_s1 + $0x2a5] sm:$0x40] %vm51_vm1, %v928_v61  }
 0x170   :  { %2723 = vst.msk [vmem:[%s6596_s1 + $0x2e4] sm:$0x80] %vm51_vm1, %v928_v61   ;;  %v2358_v56 = vpop.permute.xlu0 %2357   ;;  %v63_v61 = vld [vmem:[#allocation0 + $0x10] sm:$0x3]  }
 0x171   :  { %2708 = vst.msk [vmem:[%s6596_s1 + $0x10b] sm:$0x1] %vm51_vm1, %v903_v62  }
 0x172   :  { %2709 = vst.msk [vmem:[%s6596_s1 + $0x14a] sm:$0x2] %vm51_vm1, %v903_v62  }
 0x173   :  { %2710 = vst.msk [vmem:[%s6596_s1 + $0x129] sm:$0x4] %vm51_vm1, %v903_v62  }
 0x174   :  { %2711 = vst.msk [vmem:[%s6596_s1 + $0x168] sm:$0x8] %vm51_vm1, %v903_v62   ;;  %v2383_v58 = vpop.permute.xlu1 %2382  }
 0x175   :  { %2712 = vst.msk [vmem:[%s6596_s1 + $0x187] sm:$0x10] %vm51_vm1, %v903_v62  }
 0x176   :  { %2713 = vst.msk [vmem:[%s6596_s1 + $0x1c6] sm:$0x20] %vm51_vm1, %v903_v62  }
 0x177   :  { %2714 = vst.msk [vmem:[%s6596_s1 + $0x1a5] sm:$0x40] %vm51_vm1, %v903_v62  }
 0x178   :  { %2715 = vst.msk [vmem:[%s6596_s1 + $0x1e4] sm:$0x80] %vm51_vm1, %v903_v62   ;;  %v70_v62 = vld [vmem:[#allocation0 + $0x18] sm:$0x3]  }
 0x179   :  { %2724 = vst.msk [vmem:[%s6596_s1 + $0xc] sm:$0x1] %vm51_vm1, %v952_v63  }
 0x17a   :  { %2725 = vst.msk [vmem:[%s6596_s1 + $0x4b] sm:$0x2] %vm51_vm1, %v952_v63  }
 0x17b   :  { %2726 = vst.msk [vmem:[%s6596_s1 + $0x2a] sm:$0x4] %vm51_vm1, %v952_v63  }
 0x17c   :  { %2727 = vst.msk [vmem:[%s6596_s1 + $0x69] sm:$0x8] %vm51_vm1, %v952_v63  }
 0x17d   :  { %2728 = vst.msk [vmem:[%s6596_s1 + $0x88] sm:$0x10] %vm51_vm1, %v952_v63  }
 0x17e   :  { %2729 = vst.msk [vmem:[%s6596_s1 + $0xc7] sm:$0x20] %vm51_vm1, %v952_v63  }
 0x17f   :  { %2730 = vst.msk [vmem:[%s6596_s1 + $0xa6] sm:$0x40] %vm51_vm1, %v952_v63  }
 0x180   :  { %2731 = vst.msk [vmem:[%s6596_s1 + $0xe5] sm:$0x80] %vm51_vm1, %v952_v63   ;;  %v77_v63 = vld [vmem:[#allocation0 + $0x20] sm:$0x3]  }
 0x181   :  { %2740 = vst.msk [vmem:[%s6596_s1 + $0x20c] sm:$0x1] %vm51_vm1, %v1002_v0  }
 0x182   :  { %2741 = vst.msk [vmem:[%s6596_s1 + $0x24b] sm:$0x2] %vm51_vm1, %v1002_v0  }
 0x183   :  { %2742 = vst.msk [vmem:[%s6596_s1 + $0x22a] sm:$0x4] %vm51_vm1, %v1002_v0  }
 0x184   :  { %2743 = vst.msk [vmem:[%s6596_s1 + $0x269] sm:$0x8] %vm51_vm1, %v1002_v0  }
 0x185   :  { %2744 = vst.msk [vmem:[%s6596_s1 + $0x288] sm:$0x10] %vm51_vm1, %v1002_v0  }
 0x186   :  { %2745 = vst.msk [vmem:[%s6596_s1 + $0x2c7] sm:$0x20] %vm51_vm1, %v1002_v0  }
 0x187   :  { %2746 = vst.msk [vmem:[%s6596_s1 + $0x2a6] sm:$0x40] %vm51_vm1, %v1002_v0  }
 0x188   :  { %2747 = vst.msk [vmem:[%s6596_s1 + $0x2e5] sm:$0x80] %vm51_vm1, %v1002_v0   ;;  %v84_v0 = vld [vmem:[#allocation0 + $0x28] sm:$0x3]  }
 0x189   :  { %2732 = vst.msk [vmem:[%s6596_s1 + $0x10c] sm:$0x1] %vm51_vm1, %v977_v1  }
 0x18a   :  { %2733 = vst.msk [vmem:[%s6596_s1 + $0x14b] sm:$0x2] %vm51_vm1, %v977_v1  }
 0x18b   :  { %2734 = vst.msk [vmem:[%s6596_s1 + $0x12a] sm:$0x4] %vm51_vm1, %v977_v1  }
 0x18c   :  { %2735 = vst.msk [vmem:[%s6596_s1 + $0x169] sm:$0x8] %vm51_vm1, %v977_v1  }
 0x18d   :  { %2736 = vst.msk [vmem:[%s6596_s1 + $0x188] sm:$0x10] %vm51_vm1, %v977_v1  }
 0x18e   :  { %2737 = vst.msk [vmem:[%s6596_s1 + $0x1c7] sm:$0x20] %vm51_vm1, %v977_v1  }
 0x18f   :  { %2738 = vst.msk [vmem:[%s6596_s1 + $0x1a6] sm:$0x40] %vm51_vm1, %v977_v1  }
 0x190   :  { %2739 = vst.msk [vmem:[%s6596_s1 + $0x1e5] sm:$0x80] %vm51_vm1, %v977_v1   ;;  %v91_v1 = vld [vmem:[#allocation0 + $0x30] sm:$0x3]  }
 0x191   :  { %2748 = vst.msk [vmem:[%s6596_s1 + $0xd] sm:$0x1] %vm51_vm1, %v1026_v2  }
 0x192   :  { %2749 = vst.msk [vmem:[%s6596_s1 + $0x4c] sm:$0x2] %vm51_vm1, %v1026_v2  }
 0x193   :  { %2750 = vst.msk [vmem:[%s6596_s1 + $0x2b] sm:$0x4] %vm51_vm1, %v1026_v2  }
 0x194   :  { %2751 = vst.msk [vmem:[%s6596_s1 + $0x6a] sm:$0x8] %vm51_vm1, %v1026_v2  }
 0x195   :  { %2752 = vst.msk [vmem:[%s6596_s1 + $0x89] sm:$0x10] %vm51_vm1, %v1026_v2  }
 0x196   :  { %2753 = vst.msk [vmem:[%s6596_s1 + $0xc8] sm:$0x20] %vm51_vm1, %v1026_v2  }
 0x197   :  { %2754 = vst.msk [vmem:[%s6596_s1 + $0xa7] sm:$0x40] %vm51_vm1, %v1026_v2  }
 0x198   :  { %2755 = vst.msk [vmem:[%s6596_s1 + $0xe6] sm:$0x80] %vm51_vm1, %v1026_v2   ;;  %v98_v2 = vld [vmem:[#allocation0 + $0x38] sm:$0x3]  }
 0x199   :  { %2764 = vst.msk [vmem:[%s6596_s1 + $0x20d] sm:$0x1] %vm51_vm1, %v1076_v3  }
 0x19a   :  { %2765 = vst.msk [vmem:[%s6596_s1 + $0x24c] sm:$0x2] %vm51_vm1, %v1076_v3  }
 0x19b   :  { %2766 = vst.msk [vmem:[%s6596_s1 + $0x22b] sm:$0x4] %vm51_vm1, %v1076_v3  }
 0x19c   :  { %2767 = vst.msk [vmem:[%s6596_s1 + $0x26a] sm:$0x8] %vm51_vm1, %v1076_v3  }
 0x19d   :  { %2768 = vst.msk [vmem:[%s6596_s1 + $0x289] sm:$0x10] %vm51_vm1, %v1076_v3  }
 0x19e   :  { %2769 = vst.msk [vmem:[%s6596_s1 + $0x2c8] sm:$0x20] %vm51_vm1, %v1076_v3  }
 0x19f   :  { %2770 = vst.msk [vmem:[%s6596_s1 + $0x2a7] sm:$0x40] %vm51_vm1, %v1076_v3  }
 0x1a0   :  { %2771 = vst.msk [vmem:[%s6596_s1 + $0x2e6] sm:$0x80] %vm51_vm1, %v1076_v3   ;;  %v105_v3 = vld [vmem:[#allocation0 + $0x40] sm:$0x3]  }
 0x1a1   :  { %2756 = vst.msk [vmem:[%s6596_s1 + $0x10d] sm:$0x1] %vm51_vm1, %v1051_v4  }
 0x1a2   :  { %2757 = vst.msk [vmem:[%s6596_s1 + $0x14c] sm:$0x2] %vm51_vm1, %v1051_v4  }
 0x1a3   :  { %2758 = vst.msk [vmem:[%s6596_s1 + $0x12b] sm:$0x4] %vm51_vm1, %v1051_v4  }
 0x1a4   :  { %2759 = vst.msk [vmem:[%s6596_s1 + $0x16a] sm:$0x8] %vm51_vm1, %v1051_v4  }
 0x1a5   :  { %2760 = vst.msk [vmem:[%s6596_s1 + $0x189] sm:$0x10] %vm51_vm1, %v1051_v4  }
 0x1a6   :  { %2761 = vst.msk [vmem:[%s6596_s1 + $0x1c8] sm:$0x20] %vm51_vm1, %v1051_v4  }
 0x1a7   :  { %2762 = vst.msk [vmem:[%s6596_s1 + $0x1a7] sm:$0x40] %vm51_vm1, %v1051_v4  }
 0x1a8   :  { %2763 = vst.msk [vmem:[%s6596_s1 + $0x1e6] sm:$0x80] %vm51_vm1, %v1051_v4   ;;  %v112_v4 = vld [vmem:[#allocation0 + $0x48] sm:$0x3]  }
 0x1a9   :  { %2772 = vst.msk [vmem:[%s6596_s1 + $0xe] sm:$0x1] %vm51_vm1, %v1100_v5  }
 0x1aa   :  { %2773 = vst.msk [vmem:[%s6596_s1 + $0x4d] sm:$0x2] %vm51_vm1, %v1100_v5  }
 0x1ab   :  { %2774 = vst.msk [vmem:[%s6596_s1 + $0x2c] sm:$0x4] %vm51_vm1, %v1100_v5  }
 0x1ac   :  { %2775 = vst.msk [vmem:[%s6596_s1 + $0x6b] sm:$0x8] %vm51_vm1, %v1100_v5  }
 0x1ad   :  { %2776 = vst.msk [vmem:[%s6596_s1 + $0x8a] sm:$0x10] %vm51_vm1, %v1100_v5  }
 0x1ae   :  { %2777 = vst.msk [vmem:[%s6596_s1 + $0xc9] sm:$0x20] %vm51_vm1, %v1100_v5  }
 0x1af   :  { %2778 = vst.msk [vmem:[%s6596_s1 + $0xa8] sm:$0x40] %vm51_vm1, %v1100_v5  }
 0x1b0   :  { %2779 = vst.msk [vmem:[%s6596_s1 + $0xe7] sm:$0x80] %vm51_vm1, %v1100_v5   ;;  %v119_v5 = vld [vmem:[#allocation0 + $0x50] sm:$0x3]  }
 0x1b1   :  { %2788 = vst.msk [vmem:[%s6596_s1 + $0x20e] sm:$0x1] %vm51_vm1, %v1150_v6  }
 0x1b2   :  { %2789 = vst.msk [vmem:[%s6596_s1 + $0x24d] sm:$0x2] %vm51_vm1, %v1150_v6  }
 0x1b3   :  { %2790 = vst.msk [vmem:[%s6596_s1 + $0x22c] sm:$0x4] %vm51_vm1, %v1150_v6  }
 0x1b4   :  { %2791 = vst.msk [vmem:[%s6596_s1 + $0x26b] sm:$0x8] %vm51_vm1, %v1150_v6  }
 0x1b5   :  { %2792 = vst.msk [vmem:[%s6596_s1 + $0x28a] sm:$0x10] %vm51_vm1, %v1150_v6  }
 0x1b6   :  { %2793 = vst.msk [vmem:[%s6596_s1 + $0x2c9] sm:$0x20] %vm51_vm1, %v1150_v6  }
 0x1b7   :  { %2794 = vst.msk [vmem:[%s6596_s1 + $0x2a8] sm:$0x40] %vm51_vm1, %v1150_v6  }
 0x1b8   :  { %2795 = vst.msk [vmem:[%s6596_s1 + $0x2e7] sm:$0x80] %vm51_vm1, %v1150_v6   ;;  %v126_v6 = vld [vmem:[#allocation0 + $0x58] sm:$0x3]  }
 0x1b9   :  { %2780 = vst.msk [vmem:[%s6596_s1 + $0x10e] sm:$0x1] %vm51_vm1, %v1125_v7  }
 0x1ba   :  { %2781 = vst.msk [vmem:[%s6596_s1 + $0x14d] sm:$0x2] %vm51_vm1, %v1125_v7  }
 0x1bb   :  { %2782 = vst.msk [vmem:[%s6596_s1 + $0x12c] sm:$0x4] %vm51_vm1, %v1125_v7  }
 0x1bc   :  { %2783 = vst.msk [vmem:[%s6596_s1 + $0x16b] sm:$0x8] %vm51_vm1, %v1125_v7  }
 0x1bd   :  { %2784 = vst.msk [vmem:[%s6596_s1 + $0x18a] sm:$0x10] %vm51_vm1, %v1125_v7  }
 0x1be   :  { %2785 = vst.msk [vmem:[%s6596_s1 + $0x1c9] sm:$0x20] %vm51_vm1, %v1125_v7  }
 0x1bf   :  { %2786 = vst.msk [vmem:[%s6596_s1 + $0x1a8] sm:$0x40] %vm51_vm1, %v1125_v7  }
 0x1c0   :  { %2787 = vst.msk [vmem:[%s6596_s1 + $0x1e7] sm:$0x80] %vm51_vm1, %v1125_v7  }
 0x1c1   :  { %2796 = vst.msk [vmem:[%s6596_s1 + $0xf] sm:$0x1] %vm51_vm1, %v1174_v8  }
 0x1c2   :  { %2797 = vst.msk [vmem:[%s6596_s1 + $0x4e] sm:$0x2] %vm51_vm1, %v1174_v8  }
 0x1c3   :  { %2798 = vst.msk [vmem:[%s6596_s1 + $0x2d] sm:$0x4] %vm51_vm1, %v1174_v8  }
 0x1c4   :  { %2799 = vst.msk [vmem:[%s6596_s1 + $0x6c] sm:$0x8] %vm51_vm1, %v1174_v8  }
 0x1c5   :  { %2800 = vst.msk [vmem:[%s6596_s1 + $0x8b] sm:$0x10] %vm51_vm1, %v1174_v8  }
 0x1c6   :  { %2801 = vst.msk [vmem:[%s6596_s1 + $0xca] sm:$0x20] %vm51_vm1, %v1174_v8  }
 0x1c7   :  { %2802 = vst.msk [vmem:[%s6596_s1 + $0xa9] sm:$0x40] %vm51_vm1, %v1174_v8  }
 0x1c8   :  { %2803 = vst.msk [vmem:[%s6596_s1 + $0xe8] sm:$0x80] %vm51_vm1, %v1174_v8  }
 0x1c9   :  { %2812 = vst.msk [vmem:[%s6596_s1 + $0x20f] sm:$0x1] %vm51_vm1, %v1224_v9  }
 0x1ca   :  { %2813 = vst.msk [vmem:[%s6596_s1 + $0x24e] sm:$0x2] %vm51_vm1, %v1224_v9  }
 0x1cb   :  { %2814 = vst.msk [vmem:[%s6596_s1 + $0x22d] sm:$0x4] %vm51_vm1, %v1224_v9  }
 0x1cc   :  { %2815 = vst.msk [vmem:[%s6596_s1 + $0x26c] sm:$0x8] %vm51_vm1, %v1224_v9  }
 0x1cd   :  { %2816 = vst.msk [vmem:[%s6596_s1 + $0x28b] sm:$0x10] %vm51_vm1, %v1224_v9  }
 0x1ce   :  { %2817 = vst.msk [vmem:[%s6596_s1 + $0x2ca] sm:$0x20] %vm51_vm1, %v1224_v9  }
 0x1cf   :  { %2818 = vst.msk [vmem:[%s6596_s1 + $0x2a9] sm:$0x40] %vm51_vm1, %v1224_v9  }
 0x1d0   :  { %2819 = vst.msk [vmem:[%s6596_s1 + $0x2e8] sm:$0x80] %vm51_vm1, %v1224_v9  }
 0x1d1   :  { %2804 = vst.msk [vmem:[%s6596_s1 + $0x10f] sm:$0x1] %vm51_vm1, %v1199_v10  }
 0x1d2   :  { %2805 = vst.msk [vmem:[%s6596_s1 + $0x14e] sm:$0x2] %vm51_vm1, %v1199_v10  }
 0x1d3   :  { %2806 = vst.msk [vmem:[%s6596_s1 + $0x12d] sm:$0x4] %vm51_vm1, %v1199_v10  }
 0x1d4   :  { %2807 = vst.msk [vmem:[%s6596_s1 + $0x16c] sm:$0x8] %vm51_vm1, %v1199_v10  }
 0x1d5   :  { %2808 = vst.msk [vmem:[%s6596_s1 + $0x18b] sm:$0x10] %vm51_vm1, %v1199_v10  }
 0x1d6   :  { %2809 = vst.msk [vmem:[%s6596_s1 + $0x1ca] sm:$0x20] %vm51_vm1, %v1199_v10  }
 0x1d7   :  { %2810 = vst.msk [vmem:[%s6596_s1 + $0x1a9] sm:$0x40] %vm51_vm1, %v1199_v10  }
 0x1d8   :  { %2811 = vst.msk [vmem:[%s6596_s1 + $0x1e8] sm:$0x80] %vm51_vm1, %v1199_v10  }
 0x1d9   :  { %2820 = vst.msk [vmem:[%s6596_s1 + $0x10] sm:$0x1] %vm51_vm1, %v1248_v11  }
 0x1da   :  { %2821 = vst.msk [vmem:[%s6596_s1 + $0x4f] sm:$0x2] %vm51_vm1, %v1248_v11  }
 0x1db   :  { %2822 = vst.msk [vmem:[%s6596_s1 + $0x2e] sm:$0x4] %vm51_vm1, %v1248_v11  }
 0x1dc   :  { %2823 = vst.msk [vmem:[%s6596_s1 + $0x6d] sm:$0x8] %vm51_vm1, %v1248_v11  }
 0x1dd   :  { %2824 = vst.msk [vmem:[%s6596_s1 + $0x8c] sm:$0x10] %vm51_vm1, %v1248_v11  }
 0x1de   :  { %2825 = vst.msk [vmem:[%s6596_s1 + $0xcb] sm:$0x20] %vm51_vm1, %v1248_v11  }
 0x1df   :  { %2826 = vst.msk [vmem:[%s6596_s1 + $0xaa] sm:$0x40] %vm51_vm1, %v1248_v11  }
 0x1e0   :  { %2827 = vst.msk [vmem:[%s6596_s1 + $0xe9] sm:$0x80] %vm51_vm1, %v1248_v11  }
 0x1e1   :  { %2836 = vst.msk [vmem:[%s6596_s1 + $0x210] sm:$0x1] %vm51_vm1, %v1298_v12  }
 0x1e2   :  { %2837 = vst.msk [vmem:[%s6596_s1 + $0x24f] sm:$0x2] %vm51_vm1, %v1298_v12  }
 0x1e3   :  { %2838 = vst.msk [vmem:[%s6596_s1 + $0x22e] sm:$0x4] %vm51_vm1, %v1298_v12  }
 0x1e4   :  { %2839 = vst.msk [vmem:[%s6596_s1 + $0x26d] sm:$0x8] %vm51_vm1, %v1298_v12  }
 0x1e5   :  { %2840 = vst.msk [vmem:[%s6596_s1 + $0x28c] sm:$0x10] %vm51_vm1, %v1298_v12  }
 0x1e6   :  { %2841 = vst.msk [vmem:[%s6596_s1 + $0x2cb] sm:$0x20] %vm51_vm1, %v1298_v12  }
 0x1e7   :  { %2842 = vst.msk [vmem:[%s6596_s1 + $0x2aa] sm:$0x40] %vm51_vm1, %v1298_v12  }
 0x1e8   :  { %2843 = vst.msk [vmem:[%s6596_s1 + $0x2e9] sm:$0x80] %vm51_vm1, %v1298_v12  }
 0x1e9   :  { %2828 = vst.msk [vmem:[%s6596_s1 + $0x110] sm:$0x1] %vm51_vm1, %v1273_v13  }
 0x1ea   :  { %2829 = vst.msk [vmem:[%s6596_s1 + $0x14f] sm:$0x2] %vm51_vm1, %v1273_v13  }
 0x1eb   :  { %2830 = vst.msk [vmem:[%s6596_s1 + $0x12e] sm:$0x4] %vm51_vm1, %v1273_v13  }
 0x1ec   :  { %2831 = vst.msk [vmem:[%s6596_s1 + $0x16d] sm:$0x8] %vm51_vm1, %v1273_v13  }
 0x1ed   :  { %2832 = vst.msk [vmem:[%s6596_s1 + $0x18c] sm:$0x10] %vm51_vm1, %v1273_v13  }
 0x1ee   :  { %2833 = vst.msk [vmem:[%s6596_s1 + $0x1cb] sm:$0x20] %vm51_vm1, %v1273_v13  }
 0x1ef   :  { %2834 = vst.msk [vmem:[%s6596_s1 + $0x1aa] sm:$0x40] %vm51_vm1, %v1273_v13  }
 0x1f0   :  { %2835 = vst.msk [vmem:[%s6596_s1 + $0x1e9] sm:$0x80] %vm51_vm1, %v1273_v13  }
 0x1f1   :  { %2844 = vst.msk [vmem:[%s6596_s1 + $0x11] sm:$0x1] %vm51_vm1, %v1322_v14  }
 0x1f2   :  { %2845 = vst.msk [vmem:[%s6596_s1 + $0x50] sm:$0x2] %vm51_vm1, %v1322_v14  }
 0x1f3   :  { %2846 = vst.msk [vmem:[%s6596_s1 + $0x2f] sm:$0x4] %vm51_vm1, %v1322_v14  }
 0x1f4   :  { %2847 = vst.msk [vmem:[%s6596_s1 + $0x6e] sm:$0x8] %vm51_vm1, %v1322_v14  }
 0x1f5   :  { %2848 = vst.msk [vmem:[%s6596_s1 + $0x8d] sm:$0x10] %vm51_vm1, %v1322_v14  }
 0x1f6   :  { %2849 = vst.msk [vmem:[%s6596_s1 + $0xcc] sm:$0x20] %vm51_vm1, %v1322_v14  }
 0x1f7   :  { %2850 = vst.msk [vmem:[%s6596_s1 + $0xab] sm:$0x40] %vm51_vm1, %v1322_v14  }
 0x1f8   :  { %2851 = vst.msk [vmem:[%s6596_s1 + $0xea] sm:$0x80] %vm51_vm1, %v1322_v14  }
 0x1f9   :  { %2860 = vst.msk [vmem:[%s6596_s1 + $0x211] sm:$0x1] %vm51_vm1, %v1372_v15  }
 0x1fa   :  { %2861 = vst.msk [vmem:[%s6596_s1 + $0x250] sm:$0x2] %vm51_vm1, %v1372_v15  }
 0x1fb   :  { %2862 = vst.msk [vmem:[%s6596_s1 + $0x22f] sm:$0x4] %vm51_vm1, %v1372_v15  }
 0x1fc   :  { %2863 = vst.msk [vmem:[%s6596_s1 + $0x26e] sm:$0x8] %vm51_vm1, %v1372_v15  }
 0x1fd   :  { %2864 = vst.msk [vmem:[%s6596_s1 + $0x28d] sm:$0x10] %vm51_vm1, %v1372_v15  }
 0x1fe   :  { %2865 = vst.msk [vmem:[%s6596_s1 + $0x2cc] sm:$0x20] %vm51_vm1, %v1372_v15  }
 0x1ff   :  { %2866 = vst.msk [vmem:[%s6596_s1 + $0x2ab] sm:$0x40] %vm51_vm1, %v1372_v15  }
 0x200   :  { %2867 = vst.msk [vmem:[%s6596_s1 + $0x2ea] sm:$0x80] %vm51_vm1, %v1372_v15  }
 0x201   :  { %2852 = vst.msk [vmem:[%s6596_s1 + $0x111] sm:$0x1] %vm51_vm1, %v1347_v16  }
 0x202   :  { %2853 = vst.msk [vmem:[%s6596_s1 + $0x150] sm:$0x2] %vm51_vm1, %v1347_v16  }
 0x203   :  { %2854 = vst.msk [vmem:[%s6596_s1 + $0x12f] sm:$0x4] %vm51_vm1, %v1347_v16  }
 0x204   :  { %2855 = vst.msk [vmem:[%s6596_s1 + $0x16e] sm:$0x8] %vm51_vm1, %v1347_v16  }
 0x205   :  { %2856 = vst.msk [vmem:[%s6596_s1 + $0x18d] sm:$0x10] %vm51_vm1, %v1347_v16  }
 0x206   :  { %2857 = vst.msk [vmem:[%s6596_s1 + $0x1cc] sm:$0x20] %vm51_vm1, %v1347_v16  }
 0x207   :  { %2858 = vst.msk [vmem:[%s6596_s1 + $0x1ab] sm:$0x40] %vm51_vm1, %v1347_v16  }
 0x208   :  { %2859 = vst.msk [vmem:[%s6596_s1 + $0x1ea] sm:$0x80] %vm51_vm1, %v1347_v16  }
 0x209   :  { %2868 = vst.msk [vmem:[%s6596_s1 + $0x12] sm:$0x1] %vm51_vm1, %v1396_v17  }
 0x20a   :  { %2869 = vst.msk [vmem:[%s6596_s1 + $0x51] sm:$0x2] %vm51_vm1, %v1396_v17  }
 0x20b   :  { %2870 = vst.msk [vmem:[%s6596_s1 + $0x30] sm:$0x4] %vm51_vm1, %v1396_v17  }
 0x20c   :  { %2871 = vst.msk [vmem:[%s6596_s1 + $0x6f] sm:$0x8] %vm51_vm1, %v1396_v17  }
 0x20d   :  { %2872 = vst.msk [vmem:[%s6596_s1 + $0x8e] sm:$0x10] %vm51_vm1, %v1396_v17  }
 0x20e   :  { %2873 = vst.msk [vmem:[%s6596_s1 + $0xcd] sm:$0x20] %vm51_vm1, %v1396_v17  }
 0x20f   :  { %2874 = vst.msk [vmem:[%s6596_s1 + $0xac] sm:$0x40] %vm51_vm1, %v1396_v17  }
 0x210   :  { %2875 = vst.msk [vmem:[%s6596_s1 + $0xeb] sm:$0x80] %vm51_vm1, %v1396_v17  }
 0x211   :  { %2884 = vst.msk [vmem:[%s6596_s1 + $0x212] sm:$0x1] %vm51_vm1, %v1446_v18  }
 0x212   :  { %2885 = vst.msk [vmem:[%s6596_s1 + $0x251] sm:$0x2] %vm51_vm1, %v1446_v18  }
 0x213   :  { %2886 = vst.msk [vmem:[%s6596_s1 + $0x230] sm:$0x4] %vm51_vm1, %v1446_v18  }
 0x214   :  { %2887 = vst.msk [vmem:[%s6596_s1 + $0x26f] sm:$0x8] %vm51_vm1, %v1446_v18  }
 0x215   :  { %2888 = vst.msk [vmem:[%s6596_s1 + $0x28e] sm:$0x10] %vm51_vm1, %v1446_v18  }
 0x216   :  { %2889 = vst.msk [vmem:[%s6596_s1 + $0x2cd] sm:$0x20] %vm51_vm1, %v1446_v18  }
 0x217   :  { %2890 = vst.msk [vmem:[%s6596_s1 + $0x2ac] sm:$0x40] %vm51_vm1, %v1446_v18  }
 0x218   :  { %2891 = vst.msk [vmem:[%s6596_s1 + $0x2eb] sm:$0x80] %vm51_vm1, %v1446_v18  }
 0x219   :  { %2876 = vst.msk [vmem:[%s6596_s1 + $0x112] sm:$0x1] %vm51_vm1, %v1421_v19  }
 0x21a   :  { %2877 = vst.msk [vmem:[%s6596_s1 + $0x151] sm:$0x2] %vm51_vm1, %v1421_v19  }
 0x21b   :  { %2878 = vst.msk [vmem:[%s6596_s1 + $0x130] sm:$0x4] %vm51_vm1, %v1421_v19  }
 0x21c   :  { %2879 = vst.msk [vmem:[%s6596_s1 + $0x16f] sm:$0x8] %vm51_vm1, %v1421_v19  }
 0x21d   :  { %2880 = vst.msk [vmem:[%s6596_s1 + $0x18e] sm:$0x10] %vm51_vm1, %v1421_v19  }
 0x21e   :  { %2881 = vst.msk [vmem:[%s6596_s1 + $0x1cd] sm:$0x20] %vm51_vm1, %v1421_v19  }
 0x21f   :  { %2882 = vst.msk [vmem:[%s6596_s1 + $0x1ac] sm:$0x40] %vm51_vm1, %v1421_v19  }
 0x220   :  { %2883 = vst.msk [vmem:[%s6596_s1 + $0x1eb] sm:$0x80] %vm51_vm1, %v1421_v19  }
 0x221   :  { %2892 = vst.msk [vmem:[%s6596_s1 + $0x13] sm:$0x1] %vm51_vm1, %v1470_v20  }
 0x222   :  { %2893 = vst.msk [vmem:[%s6596_s1 + $0x52] sm:$0x2] %vm51_vm1, %v1470_v20  }
 0x223   :  { %2894 = vst.msk [vmem:[%s6596_s1 + $0x31] sm:$0x4] %vm51_vm1, %v1470_v20  }
 0x224   :  { %2895 = vst.msk [vmem:[%s6596_s1 + $0x70] sm:$0x8] %vm51_vm1, %v1470_v20  }
 0x225   :  { %2896 = vst.msk [vmem:[%s6596_s1 + $0x8f] sm:$0x10] %vm51_vm1, %v1470_v20  }
 0x226   :  { %2897 = vst.msk [vmem:[%s6596_s1 + $0xce] sm:$0x20] %vm51_vm1, %v1470_v20  }
 0x227   :  { %2898 = vst.msk [vmem:[%s6596_s1 + $0xad] sm:$0x40] %vm51_vm1, %v1470_v20  }
 0x228   :  { %2899 = vst.msk [vmem:[%s6596_s1 + $0xec] sm:$0x80] %vm51_vm1, %v1470_v20  }
 0x229   :  { %2908 = vst.msk [vmem:[%s6596_s1 + $0x213] sm:$0x1] %vm51_vm1, %v1520_v21  }
 0x22a   :  { %2909 = vst.msk [vmem:[%s6596_s1 + $0x252] sm:$0x2] %vm51_vm1, %v1520_v21  }
 0x22b   :  { %2910 = vst.msk [vmem:[%s6596_s1 + $0x231] sm:$0x4] %vm51_vm1, %v1520_v21  }
 0x22c   :  { %2911 = vst.msk [vmem:[%s6596_s1 + $0x270] sm:$0x8] %vm51_vm1, %v1520_v21  }
 0x22d   :  { %2912 = vst.msk [vmem:[%s6596_s1 + $0x28f] sm:$0x10] %vm51_vm1, %v1520_v21  }
 0x22e   :  { %2913 = vst.msk [vmem:[%s6596_s1 + $0x2ce] sm:$0x20] %vm51_vm1, %v1520_v21  }
 0x22f   :  { %2914 = vst.msk [vmem:[%s6596_s1 + $0x2ad] sm:$0x40] %vm51_vm1, %v1520_v21  }
 0x230   :  { %2915 = vst.msk [vmem:[%s6596_s1 + $0x2ec] sm:$0x80] %vm51_vm1, %v1520_v21  }
 0x231   :  { %2900 = vst.msk [vmem:[%s6596_s1 + $0x113] sm:$0x1] %vm51_vm1, %v1495_v22  }
 0x232   :  { %2901 = vst.msk [vmem:[%s6596_s1 + $0x152] sm:$0x2] %vm51_vm1, %v1495_v22  }
 0x233   :  { %2902 = vst.msk [vmem:[%s6596_s1 + $0x131] sm:$0x4] %vm51_vm1, %v1495_v22  }
 0x234   :  { %2903 = vst.msk [vmem:[%s6596_s1 + $0x170] sm:$0x8] %vm51_vm1, %v1495_v22  }
 0x235   :  { %2904 = vst.msk [vmem:[%s6596_s1 + $0x18f] sm:$0x10] %vm51_vm1, %v1495_v22  }
 0x236   :  { %2905 = vst.msk [vmem:[%s6596_s1 + $0x1ce] sm:$0x20] %vm51_vm1, %v1495_v22  }
 0x237   :  { %2906 = vst.msk [vmem:[%s6596_s1 + $0x1ad] sm:$0x40] %vm51_vm1, %v1495_v22  }
 0x238   :  { %2907 = vst.msk [vmem:[%s6596_s1 + $0x1ec] sm:$0x80] %vm51_vm1, %v1495_v22  }
 0x239   :  { %2916 = vst.msk [vmem:[%s6596_s1 + $0x14] sm:$0x1] %vm51_vm1, %v1544_v23  }
 0x23a   :  { %2917 = vst.msk [vmem:[%s6596_s1 + $0x53] sm:$0x2] %vm51_vm1, %v1544_v23  }
 0x23b   :  { %2918 = vst.msk [vmem:[%s6596_s1 + $0x32] sm:$0x4] %vm51_vm1, %v1544_v23  }
 0x23c   :  { %2919 = vst.msk [vmem:[%s6596_s1 + $0x71] sm:$0x8] %vm51_vm1, %v1544_v23  }
 0x23d   :  { %2920 = vst.msk [vmem:[%s6596_s1 + $0x90] sm:$0x10] %vm51_vm1, %v1544_v23  }
 0x23e   :  { %2921 = vst.msk [vmem:[%s6596_s1 + $0xcf] sm:$0x20] %vm51_vm1, %v1544_v23  }
 0x23f   :  { %2922 = vst.msk [vmem:[%s6596_s1 + $0xae] sm:$0x40] %vm51_vm1, %v1544_v23  }
 0x240   :  { %2923 = vst.msk [vmem:[%s6596_s1 + $0xed] sm:$0x80] %vm51_vm1, %v1544_v23  }
 0x241   :  { %2932 = vst.msk [vmem:[%s6596_s1 + $0x214] sm:$0x1] %vm51_vm1, %v1594_v24  }
 0x242   :  { %2933 = vst.msk [vmem:[%s6596_s1 + $0x253] sm:$0x2] %vm51_vm1, %v1594_v24  }
 0x243   :  { %2934 = vst.msk [vmem:[%s6596_s1 + $0x232] sm:$0x4] %vm51_vm1, %v1594_v24  }
 0x244   :  { %2935 = vst.msk [vmem:[%s6596_s1 + $0x271] sm:$0x8] %vm51_vm1, %v1594_v24  }
 0x245   :  { %2936 = vst.msk [vmem:[%s6596_s1 + $0x290] sm:$0x10] %vm51_vm1, %v1594_v24  }
 0x246   :  { %2937 = vst.msk [vmem:[%s6596_s1 + $0x2cf] sm:$0x20] %vm51_vm1, %v1594_v24  }
 0x247   :  { %2938 = vst.msk [vmem:[%s6596_s1 + $0x2ae] sm:$0x40] %vm51_vm1, %v1594_v24  }
 0x248   :  { %2939 = vst.msk [vmem:[%s6596_s1 + $0x2ed] sm:$0x80] %vm51_vm1, %v1594_v24  }
 0x249   :  { %2924 = vst.msk [vmem:[%s6596_s1 + $0x114] sm:$0x1] %vm51_vm1, %v1569_v25  }
 0x24a   :  { %2925 = vst.msk [vmem:[%s6596_s1 + $0x153] sm:$0x2] %vm51_vm1, %v1569_v25  }
 0x24b   :  { %2926 = vst.msk [vmem:[%s6596_s1 + $0x132] sm:$0x4] %vm51_vm1, %v1569_v25  }
 0x24c   :  { %2927 = vst.msk [vmem:[%s6596_s1 + $0x171] sm:$0x8] %vm51_vm1, %v1569_v25  }
 0x24d   :  { %2928 = vst.msk [vmem:[%s6596_s1 + $0x190] sm:$0x10] %vm51_vm1, %v1569_v25  }
 0x24e   :  { %2929 = vst.msk [vmem:[%s6596_s1 + $0x1cf] sm:$0x20] %vm51_vm1, %v1569_v25  }
 0x24f   :  { %2930 = vst.msk [vmem:[%s6596_s1 + $0x1ae] sm:$0x40] %vm51_vm1, %v1569_v25  }
 0x250   :  { %2931 = vst.msk [vmem:[%s6596_s1 + $0x1ed] sm:$0x80] %vm51_vm1, %v1569_v25  }
 0x251   :  { %2940 = vst.msk [vmem:[%s6596_s1 + $0x15] sm:$0x1] %vm51_vm1, %v1618_v26  }
 0x252   :  { %2941 = vst.msk [vmem:[%s6596_s1 + $0x54] sm:$0x2] %vm51_vm1, %v1618_v26  }
 0x253   :  { %2942 = vst.msk [vmem:[%s6596_s1 + $0x33] sm:$0x4] %vm51_vm1, %v1618_v26  }
 0x254   :  { %2943 = vst.msk [vmem:[%s6596_s1 + $0x72] sm:$0x8] %vm51_vm1, %v1618_v26  }
 0x255   :  { %2944 = vst.msk [vmem:[%s6596_s1 + $0x91] sm:$0x10] %vm51_vm1, %v1618_v26  }
 0x256   :  { %2945 = vst.msk [vmem:[%s6596_s1 + $0xd0] sm:$0x20] %vm51_vm1, %v1618_v26  }
 0x257   :  { %2946 = vst.msk [vmem:[%s6596_s1 + $0xaf] sm:$0x40] %vm51_vm1, %v1618_v26  }
 0x258   :  { %2947 = vst.msk [vmem:[%s6596_s1 + $0xee] sm:$0x80] %vm51_vm1, %v1618_v26  }
 0x259   :  { %2956 = vst.msk [vmem:[%s6596_s1 + $0x215] sm:$0x1] %vm51_vm1, %v1668_v27  }
 0x25a   :  { %2957 = vst.msk [vmem:[%s6596_s1 + $0x254] sm:$0x2] %vm51_vm1, %v1668_v27  }
 0x25b   :  { %2958 = vst.msk [vmem:[%s6596_s1 + $0x233] sm:$0x4] %vm51_vm1, %v1668_v27  }
 0x25c   :  { %2959 = vst.msk [vmem:[%s6596_s1 + $0x272] sm:$0x8] %vm51_vm1, %v1668_v27  }
 0x25d   :  { %2960 = vst.msk [vmem:[%s6596_s1 + $0x291] sm:$0x10] %vm51_vm1, %v1668_v27  }
 0x25e   :  { %2961 = vst.msk [vmem:[%s6596_s1 + $0x2d0] sm:$0x20] %vm51_vm1, %v1668_v27  }
 0x25f   :  { %2962 = vst.msk [vmem:[%s6596_s1 + $0x2af] sm:$0x40] %vm51_vm1, %v1668_v27  }
 0x260   :  { %2963 = vst.msk [vmem:[%s6596_s1 + $0x2ee] sm:$0x80] %vm51_vm1, %v1668_v27  }
 0x261   :  { %2948 = vst.msk [vmem:[%s6596_s1 + $0x115] sm:$0x1] %vm51_vm1, %v1643_v28  }
 0x262   :  { %2949 = vst.msk [vmem:[%s6596_s1 + $0x154] sm:$0x2] %vm51_vm1, %v1643_v28  }
 0x263   :  { %2950 = vst.msk [vmem:[%s6596_s1 + $0x133] sm:$0x4] %vm51_vm1, %v1643_v28  }
 0x264   :  { %2951 = vst.msk [vmem:[%s6596_s1 + $0x172] sm:$0x8] %vm51_vm1, %v1643_v28  }
 0x265   :  { %2952 = vst.msk [vmem:[%s6596_s1 + $0x191] sm:$0x10] %vm51_vm1, %v1643_v28  }
 0x266   :  { %2953 = vst.msk [vmem:[%s6596_s1 + $0x1d0] sm:$0x20] %vm51_vm1, %v1643_v28  }
 0x267   :  { %2954 = vst.msk [vmem:[%s6596_s1 + $0x1af] sm:$0x40] %vm51_vm1, %v1643_v28  }
 0x268   :  { %2955 = vst.msk [vmem:[%s6596_s1 + $0x1ee] sm:$0x80] %vm51_vm1, %v1643_v28  }
 0x269   :  { %2964 = vst.msk [vmem:[%s6596_s1 + $0x16] sm:$0x1] %vm51_vm1, %v1692_v29  }
 0x26a   :  { %2965 = vst.msk [vmem:[%s6596_s1 + $0x55] sm:$0x2] %vm51_vm1, %v1692_v29  }
 0x26b   :  { %2966 = vst.msk [vmem:[%s6596_s1 + $0x34] sm:$0x4] %vm51_vm1, %v1692_v29  }
 0x26c   :  { %2967 = vst.msk [vmem:[%s6596_s1 + $0x73] sm:$0x8] %vm51_vm1, %v1692_v29  }
 0x26d   :  { %2968 = vst.msk [vmem:[%s6596_s1 + $0x92] sm:$0x10] %vm51_vm1, %v1692_v29  }
 0x26e   :  { %2969 = vst.msk [vmem:[%s6596_s1 + $0xd1] sm:$0x20] %vm51_vm1, %v1692_v29  }
 0x26f   :  { %2970 = vst.msk [vmem:[%s6596_s1 + $0xb0] sm:$0x40] %vm51_vm1, %v1692_v29  }
 0x270   :  { %2971 = vst.msk [vmem:[%s6596_s1 + $0xef] sm:$0x80] %vm51_vm1, %v1692_v29  }
 0x271   :  { %2980 = vst.msk [vmem:[%s6596_s1 + $0x216] sm:$0x1] %vm51_vm1, %v1742_v30  }
 0x272   :  { %2981 = vst.msk [vmem:[%s6596_s1 + $0x255] sm:$0x2] %vm51_vm1, %v1742_v30  }
 0x273   :  { %2982 = vst.msk [vmem:[%s6596_s1 + $0x234] sm:$0x4] %vm51_vm1, %v1742_v30  }
 0x274   :  { %2983 = vst.msk [vmem:[%s6596_s1 + $0x273] sm:$0x8] %vm51_vm1, %v1742_v30  }
 0x275   :  { %2984 = vst.msk [vmem:[%s6596_s1 + $0x292] sm:$0x10] %vm51_vm1, %v1742_v30  }
 0x276   :  { %2985 = vst.msk [vmem:[%s6596_s1 + $0x2d1] sm:$0x20] %vm51_vm1, %v1742_v30  }
 0x277   :  { %2986 = vst.msk [vmem:[%s6596_s1 + $0x2b0] sm:$0x40] %vm51_vm1, %v1742_v30  }
 0x278   :  { %2987 = vst.msk [vmem:[%s6596_s1 + $0x2ef] sm:$0x80] %vm51_vm1, %v1742_v30  }
 0x279   :  { %2972 = vst.msk [vmem:[%s6596_s1 + $0x116] sm:$0x1] %vm51_vm1, %v1717_v31  }
 0x27a   :  { %2973 = vst.msk [vmem:[%s6596_s1 + $0x155] sm:$0x2] %vm51_vm1, %v1717_v31  }
 0x27b   :  { %2974 = vst.msk [vmem:[%s6596_s1 + $0x134] sm:$0x4] %vm51_vm1, %v1717_v31  }
 0x27c   :  { %2975 = vst.msk [vmem:[%s6596_s1 + $0x173] sm:$0x8] %vm51_vm1, %v1717_v31  }
 0x27d   :  { %2976 = vst.msk [vmem:[%s6596_s1 + $0x192] sm:$0x10] %vm51_vm1, %v1717_v31  }
 0x27e   :  { %2977 = vst.msk [vmem:[%s6596_s1 + $0x1d1] sm:$0x20] %vm51_vm1, %v1717_v31  }
 0x27f   :  { %2978 = vst.msk [vmem:[%s6596_s1 + $0x1b0] sm:$0x40] %vm51_vm1, %v1717_v31  }
 0x280   :  { %2979 = vst.msk [vmem:[%s6596_s1 + $0x1ef] sm:$0x80] %vm51_vm1, %v1717_v31  }
 0x281   :  { %2988 = vst.msk [vmem:[%s6596_s1 + $0x17] sm:$0x1] %vm51_vm1, %v1766_v32  }
 0x282   :  { %2989 = vst.msk [vmem:[%s6596_s1 + $0x56] sm:$0x2] %vm51_vm1, %v1766_v32  }
 0x283   :  { %2990 = vst.msk [vmem:[%s6596_s1 + $0x35] sm:$0x4] %vm51_vm1, %v1766_v32  }
 0x284   :  { %2991 = vst.msk [vmem:[%s6596_s1 + $0x74] sm:$0x8] %vm51_vm1, %v1766_v32  }
 0x285   :  { %2992 = vst.msk [vmem:[%s6596_s1 + $0x93] sm:$0x10] %vm51_vm1, %v1766_v32  }
 0x286   :  { %2993 = vst.msk [vmem:[%s6596_s1 + $0xd2] sm:$0x20] %vm51_vm1, %v1766_v32  }
 0x287   :  { %2994 = vst.msk [vmem:[%s6596_s1 + $0xb1] sm:$0x40] %vm51_vm1, %v1766_v32  }
 0x288   :  { %2995 = vst.msk [vmem:[%s6596_s1 + $0xf0] sm:$0x80] %vm51_vm1, %v1766_v32  }
 0x289   :  { %3004 = vst.msk [vmem:[%s6596_s1 + $0x217] sm:$0x1] %vm51_vm1, %v1816_v33  }
 0x28a   :  { %3005 = vst.msk [vmem:[%s6596_s1 + $0x256] sm:$0x2] %vm51_vm1, %v1816_v33  }
 0x28b   :  { %3006 = vst.msk [vmem:[%s6596_s1 + $0x235] sm:$0x4] %vm51_vm1, %v1816_v33  }
 0x28c   :  { %3007 = vst.msk [vmem:[%s6596_s1 + $0x274] sm:$0x8] %vm51_vm1, %v1816_v33  }
 0x28d   :  { %3008 = vst.msk [vmem:[%s6596_s1 + $0x293] sm:$0x10] %vm51_vm1, %v1816_v33  }
 0x28e   :  { %3009 = vst.msk [vmem:[%s6596_s1 + $0x2d2] sm:$0x20] %vm51_vm1, %v1816_v33  }
 0x28f   :  { %3010 = vst.msk [vmem:[%s6596_s1 + $0x2b1] sm:$0x40] %vm51_vm1, %v1816_v33  }
 0x290   :  { %3011 = vst.msk [vmem:[%s6596_s1 + $0x2f0] sm:$0x80] %vm51_vm1, %v1816_v33  }
 0x291   :  { %2996 = vst.msk [vmem:[%s6596_s1 + $0x117] sm:$0x1] %vm51_vm1, %v1791_v34  }
 0x292   :  { %2997 = vst.msk [vmem:[%s6596_s1 + $0x156] sm:$0x2] %vm51_vm1, %v1791_v34  }
 0x293   :  { %2998 = vst.msk [vmem:[%s6596_s1 + $0x135] sm:$0x4] %vm51_vm1, %v1791_v34  }
 0x294   :  { %2999 = vst.msk [vmem:[%s6596_s1 + $0x174] sm:$0x8] %vm51_vm1, %v1791_v34  }
 0x295   :  { %3000 = vst.msk [vmem:[%s6596_s1 + $0x193] sm:$0x10] %vm51_vm1, %v1791_v34  }
 0x296   :  { %3001 = vst.msk [vmem:[%s6596_s1 + $0x1d2] sm:$0x20] %vm51_vm1, %v1791_v34  }
 0x297   :  { %3002 = vst.msk [vmem:[%s6596_s1 + $0x1b1] sm:$0x40] %vm51_vm1, %v1791_v34  }
 0x298   :  { %3003 = vst.msk [vmem:[%s6596_s1 + $0x1f0] sm:$0x80] %vm51_vm1, %v1791_v34  }
 0x299   :  { %3012 = vst.msk [vmem:[%s6596_s1 + $0x18] sm:$0x1] %vm51_vm1, %v1840_v35  }
 0x29a   :  { %3013 = vst.msk [vmem:[%s6596_s1 + $0x57] sm:$0x2] %vm51_vm1, %v1840_v35  }
 0x29b   :  { %3014 = vst.msk [vmem:[%s6596_s1 + $0x36] sm:$0x4] %vm51_vm1, %v1840_v35  }
 0x29c   :  { %3015 = vst.msk [vmem:[%s6596_s1 + $0x75] sm:$0x8] %vm51_vm1, %v1840_v35  }
 0x29d   :  { %3016 = vst.msk [vmem:[%s6596_s1 + $0x94] sm:$0x10] %vm51_vm1, %v1840_v35  }
 0x29e   :  { %3017 = vst.msk [vmem:[%s6596_s1 + $0xd3] sm:$0x20] %vm51_vm1, %v1840_v35  }
 0x29f   :  { %3018 = vst.msk [vmem:[%s6596_s1 + $0xb2] sm:$0x40] %vm51_vm1, %v1840_v35  }
 0x2a0   :  { %3019 = vst.msk [vmem:[%s6596_s1 + $0xf1] sm:$0x80] %vm51_vm1, %v1840_v35  }
 0x2a1   :  { %3028 = vst.msk [vmem:[%s6596_s1 + $0x218] sm:$0x1] %vm51_vm1, %v1890_v36  }
 0x2a2   :  { %3029 = vst.msk [vmem:[%s6596_s1 + $0x257] sm:$0x2] %vm51_vm1, %v1890_v36  }
 0x2a3   :  { %3030 = vst.msk [vmem:[%s6596_s1 + $0x236] sm:$0x4] %vm51_vm1, %v1890_v36  }
 0x2a4   :  { %3031 = vst.msk [vmem:[%s6596_s1 + $0x275] sm:$0x8] %vm51_vm1, %v1890_v36  }
 0x2a5   :  { %3032 = vst.msk [vmem:[%s6596_s1 + $0x294] sm:$0x10] %vm51_vm1, %v1890_v36  }
 0x2a6   :  { %3033 = vst.msk [vmem:[%s6596_s1 + $0x2d3] sm:$0x20] %vm51_vm1, %v1890_v36  }
 0x2a7   :  { %3034 = vst.msk [vmem:[%s6596_s1 + $0x2b2] sm:$0x40] %vm51_vm1, %v1890_v36  }
 0x2a8   :  { %3035 = vst.msk [vmem:[%s6596_s1 + $0x2f1] sm:$0x80] %vm51_vm1, %v1890_v36  }
 0x2a9   :  { %3020 = vst.msk [vmem:[%s6596_s1 + $0x118] sm:$0x1] %vm51_vm1, %v1865_v37  }
 0x2aa   :  { %3021 = vst.msk [vmem:[%s6596_s1 + $0x157] sm:$0x2] %vm51_vm1, %v1865_v37  }
 0x2ab   :  { %3022 = vst.msk [vmem:[%s6596_s1 + $0x136] sm:$0x4] %vm51_vm1, %v1865_v37  }
 0x2ac   :  { %3023 = vst.msk [vmem:[%s6596_s1 + $0x175] sm:$0x8] %vm51_vm1, %v1865_v37  }
 0x2ad   :  { %3024 = vst.msk [vmem:[%s6596_s1 + $0x194] sm:$0x10] %vm51_vm1, %v1865_v37  }
 0x2ae   :  { %3025 = vst.msk [vmem:[%s6596_s1 + $0x1d3] sm:$0x20] %vm51_vm1, %v1865_v37  }
 0x2af   :  { %3026 = vst.msk [vmem:[%s6596_s1 + $0x1b2] sm:$0x40] %vm51_vm1, %v1865_v37  }
 0x2b0   :  { %3027 = vst.msk [vmem:[%s6596_s1 + $0x1f1] sm:$0x80] %vm51_vm1, %v1865_v37  }
 0x2b1   :  { %3036 = vst.msk [vmem:[%s6596_s1 + $0x19] sm:$0x1] %vm51_vm1, %v1914_v38  }
 0x2b2   :  { %3037 = vst.msk [vmem:[%s6596_s1 + $0x58] sm:$0x2] %vm51_vm1, %v1914_v38  }
 0x2b3   :  { %3038 = vst.msk [vmem:[%s6596_s1 + $0x37] sm:$0x4] %vm51_vm1, %v1914_v38  }
 0x2b4   :  { %3039 = vst.msk [vmem:[%s6596_s1 + $0x76] sm:$0x8] %vm51_vm1, %v1914_v38  }
 0x2b5   :  { %3040 = vst.msk [vmem:[%s6596_s1 + $0x95] sm:$0x10] %vm51_vm1, %v1914_v38  }
 0x2b6   :  { %3041 = vst.msk [vmem:[%s6596_s1 + $0xd4] sm:$0x20] %vm51_vm1, %v1914_v38  }
 0x2b7   :  { %3042 = vst.msk [vmem:[%s6596_s1 + $0xb3] sm:$0x40] %vm51_vm1, %v1914_v38  }
 0x2b8   :  { %3043 = vst.msk [vmem:[%s6596_s1 + $0xf2] sm:$0x80] %vm51_vm1, %v1914_v38  }
 0x2b9   :  { %3052 = vst.msk [vmem:[%s6596_s1 + $0x219] sm:$0x1] %vm51_vm1, %v1964_v39  }
 0x2ba   :  { %3053 = vst.msk [vmem:[%s6596_s1 + $0x258] sm:$0x2] %vm51_vm1, %v1964_v39  }
 0x2bb   :  { %3054 = vst.msk [vmem:[%s6596_s1 + $0x237] sm:$0x4] %vm51_vm1, %v1964_v39  }
 0x2bc   :  { %3055 = vst.msk [vmem:[%s6596_s1 + $0x276] sm:$0x8] %vm51_vm1, %v1964_v39  }
 0x2bd   :  { %3056 = vst.msk [vmem:[%s6596_s1 + $0x295] sm:$0x10] %vm51_vm1, %v1964_v39  }
 0x2be   :  { %3057 = vst.msk [vmem:[%s6596_s1 + $0x2d4] sm:$0x20] %vm51_vm1, %v1964_v39  }
 0x2bf   :  { %3058 = vst.msk [vmem:[%s6596_s1 + $0x2b3] sm:$0x40] %vm51_vm1, %v1964_v39  }
 0x2c0   :  { %3059 = vst.msk [vmem:[%s6596_s1 + $0x2f2] sm:$0x80] %vm51_vm1, %v1964_v39  }
 0x2c1   :  { %3044 = vst.msk [vmem:[%s6596_s1 + $0x119] sm:$0x1] %vm51_vm1, %v1939_v40  }
 0x2c2   :  { %3045 = vst.msk [vmem:[%s6596_s1 + $0x158] sm:$0x2] %vm51_vm1, %v1939_v40  }
 0x2c3   :  { %3046 = vst.msk [vmem:[%s6596_s1 + $0x137] sm:$0x4] %vm51_vm1, %v1939_v40  }
 0x2c4   :  { %3047 = vst.msk [vmem:[%s6596_s1 + $0x176] sm:$0x8] %vm51_vm1, %v1939_v40  }
 0x2c5   :  { %3048 = vst.msk [vmem:[%s6596_s1 + $0x195] sm:$0x10] %vm51_vm1, %v1939_v40  }
 0x2c6   :  { %3049 = vst.msk [vmem:[%s6596_s1 + $0x1d4] sm:$0x20] %vm51_vm1, %v1939_v40  }
 0x2c7   :  { %3050 = vst.msk [vmem:[%s6596_s1 + $0x1b3] sm:$0x40] %vm51_vm1, %v1939_v40  }
 0x2c8   :  { %3051 = vst.msk [vmem:[%s6596_s1 + $0x1f2] sm:$0x80] %vm51_vm1, %v1939_v40  }
 0x2c9   :  { %3060 = vst.msk [vmem:[%s6596_s1 + $0x1a] sm:$0x1] %vm51_vm1, %v1988_v41  }
 0x2ca   :  { %3061 = vst.msk [vmem:[%s6596_s1 + $0x59] sm:$0x2] %vm51_vm1, %v1988_v41  }
 0x2cb   :  { %3062 = vst.msk [vmem:[%s6596_s1 + $0x38] sm:$0x4] %vm51_vm1, %v1988_v41  }
 0x2cc   :  { %3063 = vst.msk [vmem:[%s6596_s1 + $0x77] sm:$0x8] %vm51_vm1, %v1988_v41  }
 0x2cd   :  { %3064 = vst.msk [vmem:[%s6596_s1 + $0x96] sm:$0x10] %vm51_vm1, %v1988_v41  }
 0x2ce   :  { %3065 = vst.msk [vmem:[%s6596_s1 + $0xd5] sm:$0x20] %vm51_vm1, %v1988_v41  }
 0x2cf   :  { %3066 = vst.msk [vmem:[%s6596_s1 + $0xb4] sm:$0x40] %vm51_vm1, %v1988_v41  }
 0x2d0   :  { %3067 = vst.msk [vmem:[%s6596_s1 + $0xf3] sm:$0x80] %vm51_vm1, %v1988_v41  }
 0x2d1   :  { %3076 = vst.msk [vmem:[%s6596_s1 + $0x21a] sm:$0x1] %vm51_vm1, %v2038_v42  }
 0x2d2   :  { %3077 = vst.msk [vmem:[%s6596_s1 + $0x259] sm:$0x2] %vm51_vm1, %v2038_v42  }
 0x2d3   :  { %3078 = vst.msk [vmem:[%s6596_s1 + $0x238] sm:$0x4] %vm51_vm1, %v2038_v42  }
 0x2d4   :  { %3079 = vst.msk [vmem:[%s6596_s1 + $0x277] sm:$0x8] %vm51_vm1, %v2038_v42  }
 0x2d5   :  { %3080 = vst.msk [vmem:[%s6596_s1 + $0x296] sm:$0x10] %vm51_vm1, %v2038_v42  }
 0x2d6   :  { %3081 = vst.msk [vmem:[%s6596_s1 + $0x2d5] sm:$0x20] %vm51_vm1, %v2038_v42  }
 0x2d7   :  { %3082 = vst.msk [vmem:[%s6596_s1 + $0x2b4] sm:$0x40] %vm51_vm1, %v2038_v42  }
 0x2d8   :  { %3083 = vst.msk [vmem:[%s6596_s1 + $0x2f3] sm:$0x80] %vm51_vm1, %v2038_v42  }
 0x2d9   :  { %3068 = vst.msk [vmem:[%s6596_s1 + $0x11a] sm:$0x1] %vm51_vm1, %v2013_v43  }
 0x2da   :  { %3069 = vst.msk [vmem:[%s6596_s1 + $0x159] sm:$0x2] %vm51_vm1, %v2013_v43  }
 0x2db   :  { %3070 = vst.msk [vmem:[%s6596_s1 + $0x138] sm:$0x4] %vm51_vm1, %v2013_v43  }
 0x2dc   :  { %3071 = vst.msk [vmem:[%s6596_s1 + $0x177] sm:$0x8] %vm51_vm1, %v2013_v43  }
 0x2dd   :  { %3072 = vst.msk [vmem:[%s6596_s1 + $0x196] sm:$0x10] %vm51_vm1, %v2013_v43  }
 0x2de   :  { %3073 = vst.msk [vmem:[%s6596_s1 + $0x1d5] sm:$0x20] %vm51_vm1, %v2013_v43  }
 0x2df   :  { %3074 = vst.msk [vmem:[%s6596_s1 + $0x1b4] sm:$0x40] %vm51_vm1, %v2013_v43  }
 0x2e0   :  { %3075 = vst.msk [vmem:[%s6596_s1 + $0x1f3] sm:$0x80] %vm51_vm1, %v2013_v43  }
 0x2e1   :  { %3084 = vst.msk [vmem:[%s6596_s1 + $0x1b] sm:$0x1] %vm51_vm1, %v2062_v44  }
 0x2e2   :  { %3085 = vst.msk [vmem:[%s6596_s1 + $0x5a] sm:$0x2] %vm51_vm1, %v2062_v44  }
 0x2e3   :  { %3086 = vst.msk [vmem:[%s6596_s1 + $0x39] sm:$0x4] %vm51_vm1, %v2062_v44  }
 0x2e4   :  { %3087 = vst.msk [vmem:[%s6596_s1 + $0x78] sm:$0x8] %vm51_vm1, %v2062_v44  }
 0x2e5   :  { %3088 = vst.msk [vmem:[%s6596_s1 + $0x97] sm:$0x10] %vm51_vm1, %v2062_v44  }
 0x2e6   :  { %3089 = vst.msk [vmem:[%s6596_s1 + $0xd6] sm:$0x20] %vm51_vm1, %v2062_v44  }
 0x2e7   :  { %3090 = vst.msk [vmem:[%s6596_s1 + $0xb5] sm:$0x40] %vm51_vm1, %v2062_v44  }
 0x2e8   :  { %3091 = vst.msk [vmem:[%s6596_s1 + $0xf4] sm:$0x80] %vm51_vm1, %v2062_v44  }
 0x2e9   :  { %3100 = vst.msk [vmem:[%s6596_s1 + $0x21b] sm:$0x1] %vm51_vm1, %v2112_v45  }
 0x2ea   :  { %3101 = vst.msk [vmem:[%s6596_s1 + $0x25a] sm:$0x2] %vm51_vm1, %v2112_v45  }
 0x2eb   :  { %3102 = vst.msk [vmem:[%s6596_s1 + $0x239] sm:$0x4] %vm51_vm1, %v2112_v45  }
 0x2ec   :  { %3103 = vst.msk [vmem:[%s6596_s1 + $0x278] sm:$0x8] %vm51_vm1, %v2112_v45  }
 0x2ed   :  { %3104 = vst.msk [vmem:[%s6596_s1 + $0x297] sm:$0x10] %vm51_vm1, %v2112_v45  }
 0x2ee   :  { %3105 = vst.msk [vmem:[%s6596_s1 + $0x2d6] sm:$0x20] %vm51_vm1, %v2112_v45  }
 0x2ef   :  { %3106 = vst.msk [vmem:[%s6596_s1 + $0x2b5] sm:$0x40] %vm51_vm1, %v2112_v45  }
 0x2f0   :  { %3107 = vst.msk [vmem:[%s6596_s1 + $0x2f4] sm:$0x80] %vm51_vm1, %v2112_v45  }
 0x2f1   :  { %3092 = vst.msk [vmem:[%s6596_s1 + $0x11b] sm:$0x1] %vm51_vm1, %v2087_v46  }
 0x2f2   :  { %3093 = vst.msk [vmem:[%s6596_s1 + $0x15a] sm:$0x2] %vm51_vm1, %v2087_v46  }
 0x2f3   :  { %3094 = vst.msk [vmem:[%s6596_s1 + $0x139] sm:$0x4] %vm51_vm1, %v2087_v46  }
 0x2f4   :  { %3095 = vst.msk [vmem:[%s6596_s1 + $0x178] sm:$0x8] %vm51_vm1, %v2087_v46  }
 0x2f5   :  { %3096 = vst.msk [vmem:[%s6596_s1 + $0x197] sm:$0x10] %vm51_vm1, %v2087_v46  }
 0x2f6   :  { %3097 = vst.msk [vmem:[%s6596_s1 + $0x1d6] sm:$0x20] %vm51_vm1, %v2087_v46  }
 0x2f7   :  { %3098 = vst.msk [vmem:[%s6596_s1 + $0x1b5] sm:$0x40] %vm51_vm1, %v2087_v46  }
 0x2f8   :  { %3099 = vst.msk [vmem:[%s6596_s1 + $0x1f4] sm:$0x80] %vm51_vm1, %v2087_v46  }
 0x2f9   :  { %3108 = vst.msk [vmem:[%s6596_s1 + $0x1c] sm:$0x1] %vm51_vm1, %v2136_v47  }
 0x2fa   :  { %3109 = vst.msk [vmem:[%s6596_s1 + $0x5b] sm:$0x2] %vm51_vm1, %v2136_v47  }
 0x2fb   :  { %3110 = vst.msk [vmem:[%s6596_s1 + $0x3a] sm:$0x4] %vm51_vm1, %v2136_v47  }
 0x2fc   :  { %3111 = vst.msk [vmem:[%s6596_s1 + $0x79] sm:$0x8] %vm51_vm1, %v2136_v47  }
 0x2fd   :  { %3112 = vst.msk [vmem:[%s6596_s1 + $0x98] sm:$0x10] %vm51_vm1, %v2136_v47  }
 0x2fe   :  { %3113 = vst.msk [vmem:[%s6596_s1 + $0xd7] sm:$0x20] %vm51_vm1, %v2136_v47  }
 0x2ff   :  { %3114 = vst.msk [vmem:[%s6596_s1 + $0xb6] sm:$0x40] %vm51_vm1, %v2136_v47  }
 0x300   :  { %3115 = vst.msk [vmem:[%s6596_s1 + $0xf5] sm:$0x80] %vm51_vm1, %v2136_v47  }
 0x301   :  { %3124 = vst.msk [vmem:[%s6596_s1 + $0x21c] sm:$0x1] %vm51_vm1, %v2186_v48  }
 0x302   :  { %3125 = vst.msk [vmem:[%s6596_s1 + $0x25b] sm:$0x2] %vm51_vm1, %v2186_v48  }
 0x303   :  { %3126 = vst.msk [vmem:[%s6596_s1 + $0x23a] sm:$0x4] %vm51_vm1, %v2186_v48  }
 0x304   :  { %3127 = vst.msk [vmem:[%s6596_s1 + $0x279] sm:$0x8] %vm51_vm1, %v2186_v48  }
 0x305   :  { %3128 = vst.msk [vmem:[%s6596_s1 + $0x298] sm:$0x10] %vm51_vm1, %v2186_v48  }
 0x306   :  { %3129 = vst.msk [vmem:[%s6596_s1 + $0x2d7] sm:$0x20] %vm51_vm1, %v2186_v48  }
 0x307   :  { %3130 = vst.msk [vmem:[%s6596_s1 + $0x2b6] sm:$0x40] %vm51_vm1, %v2186_v48  }
 0x308   :  { %3131 = vst.msk [vmem:[%s6596_s1 + $0x2f5] sm:$0x80] %vm51_vm1, %v2186_v48  }
 0x309   :  { %3116 = vst.msk [vmem:[%s6596_s1 + $0x11c] sm:$0x1] %vm51_vm1, %v2161_v49  }
 0x30a   :  { %3117 = vst.msk [vmem:[%s6596_s1 + $0x15b] sm:$0x2] %vm51_vm1, %v2161_v49  }
 0x30b   :  { %3118 = vst.msk [vmem:[%s6596_s1 + $0x13a] sm:$0x4] %vm51_vm1, %v2161_v49  }
 0x30c   :  { %3119 = vst.msk [vmem:[%s6596_s1 + $0x179] sm:$0x8] %vm51_vm1, %v2161_v49  }
 0x30d   :  { %3120 = vst.msk [vmem:[%s6596_s1 + $0x198] sm:$0x10] %vm51_vm1, %v2161_v49  }
 0x30e   :  { %3121 = vst.msk [vmem:[%s6596_s1 + $0x1d7] sm:$0x20] %vm51_vm1, %v2161_v49  }
 0x30f   :  { %3122 = vst.msk [vmem:[%s6596_s1 + $0x1b6] sm:$0x40] %vm51_vm1, %v2161_v49  }
 0x310   :  { %3123 = vst.msk [vmem:[%s6596_s1 + $0x1f5] sm:$0x80] %vm51_vm1, %v2161_v49  }
 0x311   :  { %3132 = vst.msk [vmem:[%s6596_s1 + $0x1d] sm:$0x1] %vm51_vm1, %v2210_v50  }
 0x312   :  { %3133 = vst.msk [vmem:[%s6596_s1 + $0x5c] sm:$0x2] %vm51_vm1, %v2210_v50  }
 0x313   :  { %3134 = vst.msk [vmem:[%s6596_s1 + $0x3b] sm:$0x4] %vm51_vm1, %v2210_v50  }
 0x314   :  { %3135 = vst.msk [vmem:[%s6596_s1 + $0x7a] sm:$0x8] %vm51_vm1, %v2210_v50  }
 0x315   :  { %3136 = vst.msk [vmem:[%s6596_s1 + $0x99] sm:$0x10] %vm51_vm1, %v2210_v50  }
 0x316   :  { %3137 = vst.msk [vmem:[%s6596_s1 + $0xd8] sm:$0x20] %vm51_vm1, %v2210_v50  }
 0x317   :  { %3138 = vst.msk [vmem:[%s6596_s1 + $0xb7] sm:$0x40] %vm51_vm1, %v2210_v50  }
 0x318   :  { %3139 = vst.msk [vmem:[%s6596_s1 + $0xf6] sm:$0x80] %vm51_vm1, %v2210_v50  }
 0x319   :  { %3148 = vst.msk [vmem:[%s6596_s1 + $0x21d] sm:$0x1] %vm51_vm1, %v2260_v51  }
 0x31a   :  { %3149 = vst.msk [vmem:[%s6596_s1 + $0x25c] sm:$0x2] %vm51_vm1, %v2260_v51  }
 0x31b   :  { %3150 = vst.msk [vmem:[%s6596_s1 + $0x23b] sm:$0x4] %vm51_vm1, %v2260_v51  }
 0x31c   :  { %3151 = vst.msk [vmem:[%s6596_s1 + $0x27a] sm:$0x8] %vm51_vm1, %v2260_v51  }
 0x31d   :  { %3152 = vst.msk [vmem:[%s6596_s1 + $0x299] sm:$0x10] %vm51_vm1, %v2260_v51  }
 0x31e   :  { %3153 = vst.msk [vmem:[%s6596_s1 + $0x2d8] sm:$0x20] %vm51_vm1, %v2260_v51  }
 0x31f   :  { %3154 = vst.msk [vmem:[%s6596_s1 + $0x2b7] sm:$0x40] %vm51_vm1, %v2260_v51  }
 0x320   :  { %3155 = vst.msk [vmem:[%s6596_s1 + $0x2f6] sm:$0x80] %vm51_vm1, %v2260_v51  }
 0x321   :  { %3140 = vst.msk [vmem:[%s6596_s1 + $0x11d] sm:$0x1] %vm51_vm1, %v2235_v52  }
 0x322   :  { %3141 = vst.msk [vmem:[%s6596_s1 + $0x15c] sm:$0x2] %vm51_vm1, %v2235_v52  }
 0x323   :  { %3142 = vst.msk [vmem:[%s6596_s1 + $0x13b] sm:$0x4] %vm51_vm1, %v2235_v52  }
 0x324   :  { %3143 = vst.msk [vmem:[%s6596_s1 + $0x17a] sm:$0x8] %vm51_vm1, %v2235_v52  }
 0x325   :  { %3144 = vst.msk [vmem:[%s6596_s1 + $0x199] sm:$0x10] %vm51_vm1, %v2235_v52  }
 0x326   :  { %3145 = vst.msk [vmem:[%s6596_s1 + $0x1d8] sm:$0x20] %vm51_vm1, %v2235_v52  }
 0x327   :  { %3146 = vst.msk [vmem:[%s6596_s1 + $0x1b7] sm:$0x40] %vm51_vm1, %v2235_v52  }
 0x328   :  { %3147 = vst.msk [vmem:[%s6596_s1 + $0x1f6] sm:$0x80] %vm51_vm1, %v2235_v52  }
 0x329   :  { %3156 = vst.msk [vmem:[%s6596_s1 + $0x1e] sm:$0x1] %vm51_vm1, %v2284_v53  }
 0x32a   :  { %3157 = vst.msk [vmem:[%s6596_s1 + $0x5d] sm:$0x2] %vm51_vm1, %v2284_v53  }
 0x32b   :  { %3158 = vst.msk [vmem:[%s6596_s1 + $0x3c] sm:$0x4] %vm51_vm1, %v2284_v53  }
 0x32c   :  { %3159 = vst.msk [vmem:[%s6596_s1 + $0x7b] sm:$0x8] %vm51_vm1, %v2284_v53  }
 0x32d   :  { %3160 = vst.msk [vmem:[%s6596_s1 + $0x9a] sm:$0x10] %vm51_vm1, %v2284_v53  }
 0x32e   :  { %3161 = vst.msk [vmem:[%s6596_s1 + $0xd9] sm:$0x20] %vm51_vm1, %v2284_v53  }
 0x32f   :  { %3162 = vst.msk [vmem:[%s6596_s1 + $0xb8] sm:$0x40] %vm51_vm1, %v2284_v53  }
 0x330   :  { %3163 = vst.msk [vmem:[%s6596_s1 + $0xf7] sm:$0x80] %vm51_vm1, %v2284_v53  }
 0x331   :  { %3172 = vst.msk [vmem:[%s6596_s1 + $0x21e] sm:$0x1] %vm51_vm1, %v2334_v54  }
 0x332   :  { %3173 = vst.msk [vmem:[%s6596_s1 + $0x25d] sm:$0x2] %vm51_vm1, %v2334_v54  }
 0x333   :  { %3174 = vst.msk [vmem:[%s6596_s1 + $0x23c] sm:$0x4] %vm51_vm1, %v2334_v54  }
 0x334   :  { %3175 = vst.msk [vmem:[%s6596_s1 + $0x27b] sm:$0x8] %vm51_vm1, %v2334_v54  }
 0x335   :  { %3176 = vst.msk [vmem:[%s6596_s1 + $0x29a] sm:$0x10] %vm51_vm1, %v2334_v54  }
 0x336   :  { %3177 = vst.msk [vmem:[%s6596_s1 + $0x2d9] sm:$0x20] %vm51_vm1, %v2334_v54  }
 0x337   :  { %3178 = vst.msk [vmem:[%s6596_s1 + $0x2b8] sm:$0x40] %vm51_vm1, %v2334_v54  }
 0x338   :  { %3179 = vst.msk [vmem:[%s6596_s1 + $0x2f7] sm:$0x80] %vm51_vm1, %v2334_v54  }
 0x339   :  { %3164 = vst.msk [vmem:[%s6596_s1 + $0x11e] sm:$0x1] %vm51_vm1, %v2309_v55  }
 0x33a   :  { %3165 = vst.msk [vmem:[%s6596_s1 + $0x15d] sm:$0x2] %vm51_vm1, %v2309_v55  }
 0x33b   :  { %3166 = vst.msk [vmem:[%s6596_s1 + $0x13c] sm:$0x4] %vm51_vm1, %v2309_v55  }
 0x33c   :  { %3167 = vst.msk [vmem:[%s6596_s1 + $0x17b] sm:$0x8] %vm51_vm1, %v2309_v55  }
 0x33d   :  { %3168 = vst.msk [vmem:[%s6596_s1 + $0x19a] sm:$0x10] %vm51_vm1, %v2309_v55  }
 0x33e   :  { %3169 = vst.msk [vmem:[%s6596_s1 + $0x1d9] sm:$0x20] %vm51_vm1, %v2309_v55  }
 0x33f   :  { %3170 = vst.msk [vmem:[%s6596_s1 + $0x1b8] sm:$0x40] %vm51_vm1, %v2309_v55  }
 0x340   :  { %3171 = vst.msk [vmem:[%s6596_s1 + $0x1f7] sm:$0x80] %vm51_vm1, %v2309_v55  }
 0x341   :  { %3180 = vst.msk [vmem:[%s6596_s1 + $0x1f] sm:$0x1] %vm51_vm1, %v2358_v56  }
 0x342   :  { %3181 = vst.msk [vmem:[%s6596_s1 + $0x5e] sm:$0x2] %vm51_vm1, %v2358_v56  }
 0x343   :  { %3182 = vst.msk [vmem:[%s6596_s1 + $0x3d] sm:$0x4] %vm51_vm1, %v2358_v56  }
 0x344   :  { %3183 = vst.msk [vmem:[%s6596_s1 + $0x7c] sm:$0x8] %vm51_vm1, %v2358_v56  }
 0x345   :  { %3184 = vst.msk [vmem:[%s6596_s1 + $0x9b] sm:$0x10] %vm51_vm1, %v2358_v56  }
 0x346   :  { %3185 = vst.msk [vmem:[%s6596_s1 + $0xda] sm:$0x20] %vm51_vm1, %v2358_v56  }
 0x347   :  { %3186 = vst.msk [vmem:[%s6596_s1 + $0xb9] sm:$0x40] %vm51_vm1, %v2358_v56  }
 0x348   :  { %3187 = vst.msk [vmem:[%s6596_s1 + $0xf8] sm:$0x80] %vm51_vm1, %v2358_v56  }
 0x349   :  { %3196 = vst.msk [vmem:[%s6596_s1 + $0x21f] sm:$0x1] %vm51_vm1, %v2408_v57  }
 0x34a   :  { %3197 = vst.msk [vmem:[%s6596_s1 + $0x25e] sm:$0x2] %vm51_vm1, %v2408_v57  }
 0x34b   :  { %3198 = vst.msk [vmem:[%s6596_s1 + $0x23d] sm:$0x4] %vm51_vm1, %v2408_v57  }
 0x34c   :  { %3199 = vst.msk [vmem:[%s6596_s1 + $0x27c] sm:$0x8] %vm51_vm1, %v2408_v57  }
 0x34d   :  { %3200 = vst.msk [vmem:[%s6596_s1 + $0x29b] sm:$0x10] %vm51_vm1, %v2408_v57  }
 0x34e   :  { %3201 = vst.msk [vmem:[%s6596_s1 + $0x2da] sm:$0x20] %vm51_vm1, %v2408_v57  }
 0x34f   :  { %3202 = vst.msk [vmem:[%s6596_s1 + $0x2b9] sm:$0x40] %vm51_vm1, %v2408_v57  }
 0x350   :  { %3203 = vst.msk [vmem:[%s6596_s1 + $0x2f8] sm:$0x80] %vm51_vm1, %v2408_v57  }
 0x351   :  { %3188 = vst.msk [vmem:[%s6596_s1 + $0x11f] sm:$0x1] %vm51_vm1, %v2383_v58  }
 0x352   :  { %3189 = vst.msk [vmem:[%s6596_s1 + $0x15e] sm:$0x2] %vm51_vm1, %v2383_v58  }
 0x353   :  { %3190 = vst.msk [vmem:[%s6596_s1 + $0x13d] sm:$0x4] %vm51_vm1, %v2383_v58  }
 0x354   :  { %3191 = vst.msk [vmem:[%s6596_s1 + $0x17c] sm:$0x8] %vm51_vm1, %v2383_v58  }
 0x355   :  { %3192 = vst.msk [vmem:[%s6596_s1 + $0x19b] sm:$0x10] %vm51_vm1, %v2383_v58  }
 0x356   :  { %3193 = vst.msk [vmem:[%s6596_s1 + $0x1da] sm:$0x20] %vm51_vm1, %v2383_v58  }
 0x357   :  { %3194 = vst.msk [vmem:[%s6596_s1 + $0x1b9] sm:$0x40] %vm51_vm1, %v2383_v58  }
 0x358   :  { %3195 = vst.msk [vmem:[%s6596_s1 + $0x1f8] sm:$0x80] %vm51_vm1, %v2383_v58  }
 0x359   :  { %52 = vst.msk [vmem:[%s6596_s1] sm:$0x1] %vm51_vm1, %v50_v59  }
 0x35a   :  { %2437 = vst.msk [vmem:[%s6596_s1 + $0x3f] sm:$0x2] %vm51_vm1, %v50_v59  }
 0x35b   :  { %2438 = vst.msk [vmem:[%s6596_s1 + $0x20] sm:$0x1] %vm51_vm1, %v56_v60  }
 0x35c   :  { %2439 = vst.msk [vmem:[%s6596_s1 + $0x5f] sm:$0x2] %vm51_vm1, %v56_v60  }
 0x35d   :  { %2440 = vst.msk [vmem:[%s6596_s1 + $0x80] sm:$0x1] %vm51_vm1, %v63_v61  }
 0x35e   :  { %2441 = vst.msk [vmem:[%s6596_s1 + $0xbf] sm:$0x2] %vm51_vm1, %v63_v61  }
 0x35f   :  { %2442 = vst.msk [vmem:[%s6596_s1 + $0xa0] sm:$0x1] %vm51_vm1, %v70_v62  }
 0x360   :  { %2443 = vst.msk [vmem:[%s6596_s1 + $0xdf] sm:$0x2] %vm51_vm1, %v70_v62  }
 0x361   :  { %2444 = vst.msk [vmem:[%s6596_s1 + $0x100] sm:$0x1] %vm51_vm1, %v77_v63  }
 0x362   :  { %2445 = vst.msk [vmem:[%s6596_s1 + $0x13f] sm:$0x2] %vm51_vm1, %v77_v63  }
 0x363   :  { %2446 = vst.msk [vmem:[%s6596_s1 + $0x120] sm:$0x1] %vm51_vm1, %v84_v0  }
 0x364   :  { %2447 = vst.msk [vmem:[%s6596_s1 + $0x15f] sm:$0x2] %vm51_vm1, %v84_v0  }
 0x365   :  { %2448 = vst.msk [vmem:[%s6596_s1 + $0x180] sm:$0x1] %vm51_vm1, %v91_v1  }
 0x366   :  { %2449 = vst.msk [vmem:[%s6596_s1 + $0x1bf] sm:$0x2] %vm51_vm1, %v91_v1  }
 0x367   :  { %2450 = vst.msk [vmem:[%s6596_s1 + $0x1a0] sm:$0x1] %vm51_vm1, %v98_v2  }
 0x368   :  { %2451 = vst.msk [vmem:[%s6596_s1 + $0x1df] sm:$0x2] %vm51_vm1, %v98_v2  }
 0x369   :  { %2452 = vst.msk [vmem:[%s6596_s1 + $0x200] sm:$0x1] %vm51_vm1, %v105_v3  }
 0x36a   :  { %2453 = vst.msk [vmem:[%s6596_s1 + $0x23f] sm:$0x2] %vm51_vm1, %v105_v3  }
 0x36b   :  { %2454 = vst.msk [vmem:[%s6596_s1 + $0x220] sm:$0x1] %vm51_vm1, %v112_v4  }
 0x36c   :  { %2455 = vst.msk [vmem:[%s6596_s1 + $0x25f] sm:$0x2] %vm51_vm1, %v112_v4  }
 0x36d   :  { %2456 = vst.msk [vmem:[%s6596_s1 + $0x280] sm:$0x1] %vm51_vm1, %v119_v5  }
 0x36e   :  { %2457 = vst.msk [vmem:[%s6596_s1 + $0x2bf] sm:$0x2] %vm51_vm1, %v119_v5  }
 0x36f   :  { %2458 = vst.msk [vmem:[%s6596_s1 + $0x2a0] sm:$0x1] %vm51_vm1, %v126_v6  }
 0x370   :  { %2459 = vst.msk [vmem:[%s6596_s1 + $0x2df] sm:$0x2] %vm51_vm1, %v126_v6  }

// kernel: wrf_info_forward.1
= control target key start
LH: loop header
LB: loop body
LE: loop exit
PB: predicated region body
PF: predicated region fallthrough
CT: control target
= control target key end

     0   :  { %s3565_s12 = smov 0   ;;  %s6680_s0 = inlined_call_operand.vmem [shape: f32[2,6,2,1024], index: 0, kind: input, shape index: {}]   ;;  %s6681_s1 = inlined_call_operand.vmem [shape: f32[2,256,1024], index: 1, kind: input, shape index: {}]   ;;  %s6682_s2 = inlined_call_operand.vmem [shape: f32[2,3,256], index: 2, kind: input, shape index: {}]   ;;  %s6683_s3 = inlined_call_operand.vmem [shape: f32[2,6,2,256], index: 3, kind: output, shape index: {}]  }
   0x1 LB: > { %s3571_s13 = sadd.s32 4294967295, %s3541_s12   ;;  %p2887_p0 = scmp.ge.s32.totalorder %s3541_s12, 1  ;;  %s3541_s12 = sphi %s3565_s12, %s13_s12  }
   0x2   : > { %p157_p1 = scmp.lt.s32.totalorder %s3541_s12, 3 }
   0x4   : > { %p158_p2 = pnand %p2887_p0, %p157_p1 }
   0x6   : > { %161 = sbr.rel (%p158_p2) target bundleno = 1495 (0x5d7), region = 32 }
   0xb   : > { %p191_p3 = scmp.lt.s32.totalorder %s3571_s13, 1  ;;  %vm826_vm0 = vcmask 1045508   ;;  %vm824_vm1 = vcmask 1041408   ;;  %vm828_vm2 = vcmask 1043456   ;;  %p2923_p4 = scmp.ne.s32.totalorder %s3571_s13, 0 }
   0xd   : > { %s3577_s14 = scalar_select %p191_p3, %s3571_s13, 1 }
   0xf   : > { %s2929_s15 = sshll.u32 %s3577_s14, 11  ;;  %s2932_s19 = smul.u32 24, %s3577_s14 }
  0x10   : > { %s3583_s18 = scalar_lea.vmem %s6681_s1, %s2929_s15  ;;  %s2930_s23 = sshll.u32 %s3577_s14, 3 }
  0x11   : > { %v352_v0 = vld [vmem:[%s3583_s18 + $0x3c8] sm:$0xff]  ;;  %v351_v6 = vld [vmem:[%s3583_s18 + $0x3c0] sm:$0xff]  ;;  %v3744_v60 = vld [vmem:[%s3583_s18 + $0x3d8] sm:$0xff]  ;;  %s4437_s22 = scalar_lea.vmem %s6683_s3, %s2932_s19  ;;  %s4627_s26 = scalar_lea.vmem %s6682_s2, %s2930_s23 }
  0x12   : > { %v480_v1 = vld [vmem:[%s3583_s18 + $0x7c8] sm:$0xff]  ;;  %530 = vmatpush.msra.mxu2 %v352_v0  ;;  %v479_v7 = vld [vmem:[%s3583_s18 + $0x7c0] sm:$0xff]  ;;  %490 = vmatpush.msra.mxu0 %v351_v6  ;;  %v3747_v61 = vld [vmem:[%s3583_s18 + $0x7d8] sm:$0xff]  ;;  %s2931_s27 = smul.u32 96, %s3577_s14 }
  0x13   : > { %v344_v2 = vld [vmem:[%s3583_s18 + $0x388] sm:$0xff]  ;;  %550 = vmatpush.msra.mxu3 %v480_v1  ;;  %v343_v8 = vld [vmem:[%s3583_s18 + $0x380] sm:$0xff]  ;;  %510 = vmatpush.msra.mxu1 %v479_v7  ;;  %v3760_v0 = vld [vmem:[%s3583_s18 + $0x398] sm:$0xff] }
  0x14   : > { %v472_v3 = vld [vmem:[%s3583_s18 + $0x788] sm:$0xff]  ;;  %531 = vmatpush.msra.mxu2 %v344_v2  ;;  %v471_v9 = vld [vmem:[%s3583_s18 + $0x780] sm:$0xff]  ;;  %491 = vmatpush.msra.mxu0 %v343_v8  ;;  %v3763_v1 = vld [vmem:[%s3583_s18 + $0x798] sm:$0xff]  ;;  %s4637_s30 = scalar_lea.vmem %s6680_s0, %s2931_s27 }
  0x15   : > { %v336_v4 = vld [vmem:[%s3583_s18 + $0x348] sm:$0xff]  ;;  %551 = vmatpush.msra.mxu3 %v472_v3  ;;  %v335_v12 = vld [vmem:[%s3583_s18 + $0x340] sm:$0xff]  ;;  %511 = vmatpush.msra.mxu1 %v471_v9  ;;  %v3784_v6 = vld [vmem:[%s3583_s18 + $0x3d0] sm:$0xff] }
  0x16   : > { %v464_v5 = vld [vmem:[%s3583_s18 + $0x748] sm:$0xff]  ;;  %532 = vmatpush.msra.mxu2 %v336_v4  ;;  %v463_v13 = vld [vmem:[%s3583_s18 + $0x740] sm:$0xff]  ;;  %492 = vmatpush.msra.mxu0 %v335_v12  ;;  %v3776_v4 = vld [vmem:[%s3583_s18 + $0x358] sm:$0xff] }
  0x17   : > { %v328_v10 = vld [vmem:[%s3583_s18 + $0x308] sm:$0xff]  ;;  %552 = vmatpush.msra.mxu3 %v464_v5  ;;  %v327_v16 = vld [vmem:[%s3583_s18 + $0x300] sm:$0xff]  ;;  %512 = vmatpush.msra.mxu1 %v463_v13  ;;  %v3779_v5 = vld [vmem:[%s3583_s18 + $0x758] sm:$0xff] }
  0x18   : > { %v456_v11 = vld [vmem:[%s3583_s18 + $0x708] sm:$0xff]  ;;  %533 = vmatpush.msra.mxu2 %v328_v10  ;;  %v455_v17 = vld [vmem:[%s3583_s18 + $0x700] sm:$0xff]  ;;  %493 = vmatpush.msra.mxu0 %v327_v16  ;;  %v3787_v7 = vld [vmem:[%s3583_s18 + $0x7d0] sm:$0xff] }
  0x19   : > { %v320_v14 = vld [vmem:[%s3583_s18 + $0x2c8] sm:$0xff]  ;;  %553 = vmatpush.msra.mxu3 %v456_v11  ;;  %v319_v20 = vld [vmem:[%s3583_s18 + $0x2c0] sm:$0xff]  ;;  %513 = vmatpush.msra.mxu1 %v455_v17  ;;  %v3792_v8 = vld [vmem:[%s3583_s18 + $0x318] sm:$0xff] }
  0x1a   : > { %v448_v15 = vld [vmem:[%s3583_s18 + $0x6c8] sm:$0xff]  ;;  %534 = vmatpush.msra.mxu2 %v320_v14  ;;  %v447_v21 = vld [vmem:[%s3583_s18 + $0x6c0] sm:$0xff]  ;;  %494 = vmatpush.msra.mxu0 %v319_v20  ;;  %v3795_v9 = vld [vmem:[%s3583_s18 + $0x718] sm:$0xff] }
  0x1b   : > { %v312_v18 = vld [vmem:[%s3583_s18 + $0x288] sm:$0xff]  ;;  %554 = vmatpush.msra.mxu3 %v448_v15  ;;  %v311_v24 = vld [vmem:[%s3583_s18 + $0x280] sm:$0xff]  ;;  %514 = vmatpush.msra.mxu1 %v447_v21  ;;  %7047 = vst [vmem:[#allocation2_spill] sm:$0xff] %v3795_v9  ;;  %v3800_v10 = vld [vmem:[%s3583_s18 + $0x390] sm:$0xff] }
  0x1c   : > { %v440_v19 = vld [vmem:[%s3583_s18 + $0x688] sm:$0xff]  ;;  %535 = vmatpush.msra.mxu2 %v312_v18  ;;  %v439_v25 = vld [vmem:[%s3583_s18 + $0x680] sm:$0xff]  ;;  %495 = vmatpush.msra.mxu0 %v311_v24  ;;  %v3803_v11 = vld [vmem:[%s3583_s18 + $0x790] sm:$0xff] }
  0x1d   : > { %v304_v22 = vld [vmem:[%s3583_s18 + $0x248] sm:$0xff]  ;;  %555 = vmatpush.msra.mxu3 %v440_v19  ;;  %v3618_v28 = vld [vmem:[%s3583_s18 + $0x240] sm:$0xff]  ;;  %515 = vmatpush.msra.mxu1 %v439_v25  ;;  %v3808_v12 = vld [vmem:[%s3583_s18 + $0x2d8] sm:$0xff] }
  0x1e   : > { %v432_v23 = vld [vmem:[%s3583_s18 + $0x648] sm:$0xff]  ;;  %536 = vmatpush.msra.mxu2 %v304_v22  ;;  %v3621_v29 = vld [vmem:[%s3583_s18 + $0x640] sm:$0xff]  ;;  %496 = vmatpush.msra.mxu0 %v3618_v28  ;;  %7048 = vst [vmem:[#allocation3_spill] sm:$0xff] %v3808_v12  ;;  %v3811_v13 = vld [vmem:[%s3583_s18 + $0x6d8] sm:$0xff] }
  0x1f   : > { %v3612_v26 = vld [vmem:[%s3583_s18 + $0x208] sm:$0xff]  ;;  %556 = vmatpush.msra.mxu3 %v432_v23  ;;  %v3632_v32 = vld [vmem:[%s3583_s18 + $0x200] sm:$0xff]  ;;  %516 = vmatpush.msra.mxu1 %v3621_v29  ;;  %7049 = vst [vmem:[#allocation4_spill] sm:$0xff] %v3811_v13  ;;  %v3816_v14 = vld [vmem:[%s3583_s18 + $0x350] sm:$0xff] }
  0x20   : > { %v3615_v27 = vld [vmem:[%s3583_s18 + $0x608] sm:$0xff]  ;;  %537 = vmatpush.msra.mxu2 %v3612_v26  ;;  %v3635_v33 = vld [vmem:[%s3583_s18 + $0x600] sm:$0xff]  ;;  %497 = vmatpush.msra.mxu0 %v3632_v32  ;;  %v3819_v15 = vld [vmem:[%s3583_s18 + $0x750] sm:$0xff] }
  0x21   : > { %v3624_v30 = vld [vmem:[%s3583_s18 + $0x1c8] sm:$0xff]  ;;  %557 = vmatpush.msra.mxu3 %v3615_v27  ;;  %v3648_v36 = vld [vmem:[%s3583_s18 + $0x1c0] sm:$0xff]  ;;  %517 = vmatpush.msra.mxu1 %v3635_v33  ;;  %v3824_v16 = vld [vmem:[%s3583_s18 + $0x298] sm:$0xff] }
  0x22   : > { %v3627_v31 = vld [vmem:[%s3583_s18 + $0x5c8] sm:$0xff]  ;;  %538 = vmatpush.msra.mxu2 %v3624_v30  ;;  %v3651_v37 = vld [vmem:[%s3583_s18 + $0x5c0] sm:$0xff]  ;;  %498 = vmatpush.msra.mxu0 %v3648_v36  ;;  %7050 = vst [vmem:[#allocation5_spill] sm:$0xff] %v3824_v16  ;;  %v3827_v17 = vld [vmem:[%s3583_s18 + $0x698] sm:$0xff] }
  0x23   : > { %v3640_v34 = vld [vmem:[%s3583_s18 + $0x188] sm:$0xff]  ;;  %558 = vmatpush.msra.mxu3 %v3627_v31  ;;  %v3664_v40 = vld [vmem:[%s3583_s18 + $0x180] sm:$0xff]  ;;  %518 = vmatpush.msra.mxu1 %v3651_v37  ;;  %7051 = vst [vmem:[#allocation6_spill] sm:$0xff] %v3827_v17  ;;  %v3832_v18 = vld [vmem:[%s3583_s18 + $0x310] sm:$0xff] }
  0x24   : > { %v3643_v35 = vld [vmem:[%s3583_s18 + $0x588] sm:$0xff]  ;;  %539 = vmatpush.msra.mxu2 %v3640_v34  ;;  %v3667_v41 = vld [vmem:[%s3583_s18 + $0x580] sm:$0xff]  ;;  %499 = vmatpush.msra.mxu0 %v3664_v40  ;;  %7052 = vst [vmem:[#allocation7_spill] sm:$0xff] %v3832_v18  ;;  %v3835_v19 = vld [vmem:[%s3583_s18 + $0x710] sm:$0xff] }
  0x25   : > { %v3656_v38 = vld [vmem:[%s3583_s18 + $0x148] sm:$0xff]  ;;  %559 = vmatpush.msra.mxu3 %v3643_v35  ;;  %v3680_v44 = vld [vmem:[%s3583_s18 + $0x140] sm:$0xff]  ;;  %519 = vmatpush.msra.mxu1 %v3667_v41  ;;  %7053 = vst [vmem:[#allocation8_spill] sm:$0xff] %v3835_v19  ;;  %v3840_v20 = vld [vmem:[%s3583_s18 + $0x258] sm:$0xff] }
  0x26   : > { %v3659_v39 = vld [vmem:[%s3583_s18 + $0x548] sm:$0xff]  ;;  %540 = vmatpush.msra.mxu2 %v3656_v38  ;;  %v3683_v45 = vld [vmem:[%s3583_s18 + $0x540] sm:$0xff]  ;;  %500 = vmatpush.msra.mxu0 %v3680_v44  ;;  %7054 = vst [vmem:[#allocation9_spill] sm:$0xff] %v3840_v20  ;;  %v3843_v21 = vld [vmem:[%s3583_s18 + $0x658] sm:$0xff] }
  0x27   : > { %v3672_v42 = vld [vmem:[%s3583_s18 + $0x108] sm:$0xff]  ;;  %560 = vmatpush.msra.mxu3 %v3659_v39  ;;  %v3696_v48 = vld [vmem:[%s3583_s18 + $0x100] sm:$0xff]  ;;  %520 = vmatpush.msra.mxu1 %v3683_v45  ;;  %7055 = vst [vmem:[#allocation10_spill] sm:$0xff] %v3843_v21  ;;  %v3848_v22 = vld [vmem:[%s3583_s18 + $0x2d0] sm:$0xff] }
  0x28   : > { %v3675_v43 = vld [vmem:[%s3583_s18 + $0x508] sm:$0xff]  ;;  %541 = vmatpush.msra.mxu2 %v3672_v42  ;;  %v3699_v49 = vld [vmem:[%s3583_s18 + $0x500] sm:$0xff]  ;;  %501 = vmatpush.msra.mxu0 %v3696_v48  ;;  %7056 = vst [vmem:[#allocation11_spill] sm:$0xff] %v3848_v22  ;;  %v3851_v23 = vld [vmem:[%s3583_s18 + $0x6d0] sm:$0xff] }
  0x29   : > { %v3688_v46 = vld [vmem:[%s3583_s18 + $0xc8] sm:$0xff]  ;;  %561 = vmatpush.msra.mxu3 %v3675_v43  ;;  %v3712_v52 = vld [vmem:[%s3583_s18 + $0xc0] sm:$0xff]  ;;  %521 = vmatpush.msra.mxu1 %v3699_v49  ;;  %7057 = vst [vmem:[#allocation12_spill] sm:$0xff] %v3851_v23  ;;  %v3856_v24 = vld [vmem:[%s3583_s18 + $0x218] sm:$0xff] }
  0x2a   : > { %v3691_v47 = vld [vmem:[%s3583_s18 + $0x4c8] sm:$0xff]  ;;  %542 = vmatpush.msra.mxu2 %v3688_v46  ;;  %v3715_v53 = vld [vmem:[%s3583_s18 + $0x4c0] sm:$0xff]  ;;  %502 = vmatpush.msra.mxu0 %v3712_v52  ;;  %7058 = vst [vmem:[#allocation13_spill] sm:$0xff] %v3856_v24  ;;  %v3859_v25 = vld [vmem:[%s3583_s18 + $0x618] sm:$0xff] }
  0x2b   : > { %v3704_v50 = vld [vmem:[%s3583_s18 + $0x88] sm:$0xff]  ;;  %562 = vmatpush.msra.mxu3 %v3691_v47  ;;  %v3728_v56 = vld [vmem:[%s3583_s18 + $0x80] sm:$0xff]  ;;  %522 = vmatpush.msra.mxu1 %v3715_v53  ;;  %7059 = vst [vmem:[#allocation14_spill] sm:$0xff] %v3859_v25 }
  0x2c   : > { %v3707_v51 = vld [vmem:[%s3583_s18 + $0x488] sm:$0xff]  ;;  %543 = vmatpush.msra.mxu2 %v3704_v50  ;;  %v3731_v57 = vld [vmem:[%s3583_s18 + $0x480] sm:$0xff]  ;;  %503 = vmatpush.msra.mxu0 %v3728_v56 }
  0x2d   : > { %v3720_v54 = vld [vmem:[%s3583_s18 + $0x48] sm:$0xff]  ;;  %563 = vmatpush.msra.mxu3 %v3707_v51  ;;  %523 = vmatpush.msra.mxu1 %v3731_v57  ;;  %v3752_v62 = vld [vmem:[%s3583_s18 + $0x40] sm:$0xff] }
  0x2e   : > { %v3723_v55 = vld [vmem:[%s3583_s18 + $0x448] sm:$0xff]  ;;  %544 = vmatpush.msra.mxu2 %v3720_v54  ;;  %v3755_v63 = vld [vmem:[%s3583_s18 + $0x440] sm:$0xff]  ;;  %504 = vmatpush.msra.mxu0 %v3752_v62 }
  0x2f   : > { %v3736_v58 = vld [vmem:[%s3583_s18 + $0x8] sm:$0xff]  ;;  %564 = vmatpush.msra.mxu3 %v3723_v55  ;;  %v3768_v2 = vld [vmem:[%s3583_s18] sm:$0xff]  ;;  %524 = vmatpush.msra.mxu1 %v3755_v63 }
  0x30   : > { %v3739_v59 = vld [vmem:[%s3583_s18 + $0x408] sm:$0xff]  ;;  %545 = vmatpush.msra.mxu2 %v3736_v58  ;;  %v3771_v3 = vld [vmem:[%s3583_s18 + $0x400] sm:$0xff]  ;;  %505 = vmatpush.msra.mxu0 %v3768_v2 }
  0x31   : > { %565 = vmatpush.msra.mxu3 %v3739_v59  ;;  %525 = vmatpush.msra.mxu1 %v3771_v3 }
  0x32   : > { %610 = vmatpush.msrb.mxu2 %v3744_v60  ;;  %570 = vmatpush.msrb.mxu0 %v3784_v6 }
  0x33   : > { %630 = vmatpush.msrb.mxu3 %v3747_v61  ;;  %590 = vmatpush.msrb.mxu1 %v3787_v7 }
  0x34   : > { %611 = vmatpush.msrb.mxu2 %v3760_v0  ;;  %571 = vmatpush.msrb.mxu0 %v3800_v10 }
  0x35   : > { %631 = vmatpush.msrb.mxu3 %v3763_v1  ;;  %591 = vmatpush.msrb.mxu1 %v3803_v11 }
  0x36   : > { %612 = vmatpush.msrb.mxu2 %v3776_v4  ;;  %572 = vmatpush.msrb.mxu0 %v3816_v14 }
  0x37   : > { %632 = vmatpush.msrb.mxu3 %v3779_v5  ;;  %592 = vmatpush.msrb.mxu1 %v3819_v15 }
  0x38   : > { %613 = vmatpush.msrb.mxu2 %v3792_v8  ;;  %573 = vmatpush.msrb.mxu0 %v3832_v18  ;;  %v316_v18 = vld [vmem:[%s3583_s18 + $0x2a8] sm:$0xff] }
  0x39   : > { %633 = vmatpush.msrb.mxu3 %v3795_v9  ;;  %593 = vmatpush.msrb.mxu1 %v3835_v19  ;;  %v468_v19 = vld [vmem:[%s3583_s18 + $0x768] sm:$0xff] }
  0x3a   : > { %614 = vmatpush.msrb.mxu2 %v3808_v12  ;;  %574 = vmatpush.msrb.mxu0 %v3848_v22  ;;  %v3875_v12 = vld [vmem:[%s3583_s18 + $0x5d8] sm:$0xff]  ;;  %v444_v9 = vld [vmem:[%s3583_s18 + $0x6a8] sm:$0xff] }
  0x3b   : > { %634 = vmatpush.msrb.mxu3 %v3811_v13  ;;  %594 = vmatpush.msrb.mxu1 %v3851_v23  ;;  %v3872_v13 = vld [vmem:[%s3583_s18 + $0x1d8] sm:$0xff]  ;;  %7063 = vst [vmem:[#allocation18_spill] sm:$0xff] %v3875_v12 }
  0x3c   : > { %615 = vmatpush.msrb.mxu2 %v3824_v16  ;;  %v3867_v16 = vld [vmem:[%s3583_s18 + $0x690] sm:$0xff]  ;;  %7062 = vst [vmem:[#allocation17_spill] sm:$0xff] %v3872_v13  ;;  %v3888_v23 = vld [vmem:[%s3583_s18 + $0x198] sm:$0xff] }
  0x3d   : > { %635 = vmatpush.msrb.mxu3 %v3827_v17  ;;  %v3864_v17 = vld [vmem:[%s3583_s18 + $0x290] sm:$0xff]  ;;  %7061 = vst [vmem:[#allocation16_spill] sm:$0xff] %v3867_v16  ;;  %595 = vmatpush.msrb.mxu1 %v3867_v16  ;;  %v3891_v22 = vld [vmem:[%s3583_s18 + $0x598] sm:$0xff] }
  0x3e   : > { %616 = vmatpush.msrb.mxu2 %v3840_v20  ;;  %7060 = vst [vmem:[#allocation15_spill] sm:$0xff] %v3864_v17  ;;  %v3883_v20 = vld [vmem:[%s3583_s18 + $0x650] sm:$0xff]  ;;  %575 = vmatpush.msrb.mxu0 %v3864_v17  ;;  %v3904_v16 = vld [vmem:[%s3583_s18 + $0x158] sm:$0xff] }
  0x3f   : > { %636 = vmatpush.msrb.mxu3 %v3843_v21  ;;  %v3880_v21 = vld [vmem:[%s3583_s18 + $0x250] sm:$0xff]  ;;  %7065 = vst [vmem:[#allocation20_spill] sm:$0xff] %v3883_v20  ;;  %596 = vmatpush.msrb.mxu1 %v3883_v20  ;;  %v3907_v17 = vld [vmem:[%s3583_s18 + $0x558] sm:$0xff] }
  0x40   : > { %617 = vmatpush.msrb.mxu2 %v3856_v24  ;;  %7064 = vst [vmem:[#allocation19_spill] sm:$0xff] %v3880_v21  ;;  %v3899_v24 = vld [vmem:[%s3583_s18 + $0x610] sm:$0xff]  ;;  %576 = vmatpush.msrb.mxu0 %v3880_v21  ;;  %v3920_v20 = vld [vmem:[%s3583_s18 + $0x118] sm:$0xff] }
  0x41   : > { %637 = vmatpush.msrb.mxu3 %v3859_v25  ;;  %7066 = vst [vmem:[#allocation21_spill] sm:$0xff] %v3888_v23  ;;  %v3896_v25 = vld [vmem:[%s3583_s18 + $0x210] sm:$0xff]  ;;  %597 = vmatpush.msrb.mxu1 %v3899_v24  ;;  %v3923_v21 = vld [vmem:[%s3583_s18 + $0x518] sm:$0xff] }
  0x42   : > { %7067 = vst [vmem:[#allocation22_spill] sm:$0xff] %v3891_v22  ;;  %618 = vmatpush.msrb.mxu2 %v3872_v13  ;;  %v3915_v13 = vld [vmem:[%s3583_s18 + $0x5d0] sm:$0xff]  ;;  %577 = vmatpush.msrb.mxu0 %v3896_v25 }
  0x43   : > { %638 = vmatpush.msrb.mxu3 %v3875_v12  ;;  %7068 = vst [vmem:[#allocation23_spill] sm:$0xff] %v3896_v25  ;;  %v3912_v12 = vld [vmem:[%s3583_s18 + $0x1d0] sm:$0xff]  ;;  %598 = vmatpush.msrb.mxu1 %v3915_v13 }
  0x44   : > { %7069 = vst [vmem:[#allocation24_spill] sm:$0xff] %v3899_v24  ;;  %619 = vmatpush.msrb.mxu2 %v3888_v23  ;;  %578 = vmatpush.msrb.mxu0 %v3912_v12  ;;  %v3933_v23 = vld [vmem:[%s3583_s18 + $0x590] sm:$0xff]  ;;  %v3938_v24 = vld [vmem:[%s3583_s18 + $0xd8] sm:$0xff] }
  0x45   : > { %7070 = vst [vmem:[#allocation25_spill] sm:$0xff] %v3904_v16  ;;  %639 = vmatpush.msrb.mxu3 %v3891_v22  ;;  %v3930_v22 = vld [vmem:[%s3583_s18 + $0x190] sm:$0xff]  ;;  %599 = vmatpush.msrb.mxu1 %v3933_v23 }
  0x46   : > { %7071 = vst [vmem:[#allocation26_spill] sm:$0xff] %v3907_v17  ;;  %620 = vmatpush.msrb.mxu2 %v3904_v16  ;;  %v3941_v16 = vld [vmem:[%s3583_s18 + $0x4d8] sm:$0xff]  ;;  %579 = vmatpush.msrb.mxu0 %v3930_v22  ;;  %v3965_v25 = vld [vmem:[%s3583_s18 + $0x510] sm:$0xff] }
  0x47   : > { %7072 = vst [vmem:[#allocation27_spill] sm:$0xff] %v3912_v12  ;;  %640 = vmatpush.msrb.mxu3 %v3907_v17  ;;  %v6709_v17 = vmov 0.0   ;;  %v3949_v12 = vld [vmem:[%s3583_s18 + $0x550] sm:$0xff] }
  0x48   : > { %7073 = vst [vmem:[#allocation28_spill] sm:$0xff] %v3915_v13  ;;  %621 = vmatpush.msrb.mxu2 %v3920_v20  ;;  %566 = vmatmul.f32.vlgmr.msra.gmra.mxu3 %v6709_v17  ;;  %v3946_v13 = vld [vmem:[%s3583_s18 + $0x150] sm:$0xff] }
  0x49   : > { %7074 = vst [vmem:[#allocation29_spill] sm:$0xff] %v3920_v20  ;;  %641 = vmatpush.msrb.mxu3 %v3923_v21  ;;  %546 = vmatmul.f32.vlgmr.msra.gmra.mxu2 %v6709_v17  ;;  %v3957_v20 = vld [vmem:[%s3583_s18 + $0x498] sm:$0xff]  ;;  %v3962_v17 = vld [vmem:[%s3583_s18 + $0x110] sm:$0xff] }
  0x4a   : > { %7075 = vst [vmem:[#allocation30_spill] sm:$0xff] %v3923_v21  ;;  %v3954_v21 = vld [vmem:[%s3583_s18 + $0x98] sm:$0xff]  ;;  %622 = vmatpush.msrb.mxu2 %v3938_v24  ;;  %580 = vmatpush.msrb.mxu0 %v3946_v13 }
  0x4b   : > { %7076 = vst [vmem:[#allocation31_spill] sm:$0xff] %v3930_v22  ;;  %642 = vmatpush.msrb.mxu3 %v3941_v16  ;;  %600 = vmatpush.msrb.mxu1 %v3949_v12  ;;  %v3973_v22 = vld [vmem:[%s3583_s18 + $0x458] sm:$0xff] }
  0x4c   : > { %7077 = vst [vmem:[#allocation32_spill] sm:$0xff] %v3933_v23  ;;  %v3970_v23 = vld [vmem:[%s3583_s18 + $0x58] sm:$0xff]  ;;  %623 = vmatpush.msrb.mxu2 %v3954_v21  ;;  %581 = vmatpush.msrb.mxu0 %v3962_v17 }
  0x4d   : > { %7078 = vst [vmem:[#allocation33_spill] sm:$0xff] %v3938_v24  ;;  %643 = vmatpush.msrb.mxu3 %v3957_v20  ;;  %601 = vmatpush.msrb.mxu1 %v3965_v25  ;;  %v3983_v24 = vld [vmem:[%s3583_s18 + $0x4d0] sm:$0xff] }
  0x4e   : > { %7079 = vst [vmem:[#allocation34_spill] sm:$0xff] %v3941_v16  ;;  %v3980_v16 = vld [vmem:[%s3583_s18 + $0xd0] sm:$0xff]  ;;  %624 = vmatpush.msrb.mxu2 %v3970_v23 }
  0x4f   : > { %7080 = vst [vmem:[#allocation35_spill] sm:$0xff] %v3946_v13  ;;  %644 = vmatpush.msrb.mxu3 %v3973_v22  ;;  %582 = vmatpush.msrb.mxu0 %v3980_v16  ;;  %v4012_v13 = vld [vmem:[%s3583_s18 + $0x50] sm:$0xff] }
  0x50   : > { %7081 = vst [vmem:[#allocation36_spill] sm:$0xff] %v3949_v12  ;;  %v3988_v12 = vld [vmem:[%s3583_s18 + $0x18] sm:$0xff]  ;;  %602 = vmatpush.msrb.mxu1 %v3983_v24 }
  0x51   : > { %7082 = vst [vmem:[#allocation37_spill] sm:$0xff] %v3954_v21  ;;  %v3991_v21 = vld [vmem:[%s3583_s18 + $0x418] sm:$0xff]  ;;  %625 = vmatpush.msrb.mxu2 %v3988_v12 }
  0x52   : > { %7083 = vst [vmem:[#allocation38_spill] sm:$0xff] %v3957_v20  ;;  %v7092_v20 = vmov 0.0   ;;  %645 = vmatpush.msrb.mxu3 %v3991_v21 }
  0x53   : > { %7084 = vst [vmem:[#allocation39_spill] sm:$0xff] %v3962_v17  ;;  %506 = vmatmul.f32.vlgmr.msra.gmra.mxu0 %v7092_v20  ;;  %526 = vmatmul.f32.vlgmr.msra.gmra.mxu1 %v7092_v20  ;;  %v4005_v17 = vld [vmem:[%s3583_s18 + $0x490] sm:$0xff] }
  0x54   : > { %7085 = vst [vmem:[#allocation40_spill] sm:$0xff] %v3965_v25  ;;  %v356_v25 = vld [vmem:[%s3583_s18 + $0x3e8] sm:$0xff]  ;;  %626 = vmatmul.f32.vlgmr.msrb.gmra.mxu2 %v7092_v20  ;;  %646 = vmatmul.f32.vlgmr.msrb.gmra.mxu3 %v7092_v20 }
  0x55   : > { %7086 = vst [vmem:[#allocation41_spill] sm:$0xff] %v3970_v23  ;;  %v484_v23 = vld [vmem:[%s3583_s18 + $0x7e8] sm:$0xff]  ;;  %690 = vmatpush.msra.mxu2 %v356_v25  ;;  %603 = vmatpush.msrb.mxu1 %v4005_v17  ;;  %v4022_v25 = vld [vmem:[%s3583_s18 + $0x10] sm:$0xff] }
  0x56   : > { %7087 = vst [vmem:[#allocation42_spill] sm:$0xff] %v3973_v22  ;;  %v4002_v22 = vld [vmem:[%s3583_s18 + $0x90] sm:$0xff]  ;;  %710 = vmatpush.msra.mxu3 %v484_v23 }
  0x57   : > { %7088 = vst [vmem:[#allocation43_spill] sm:$0xff] %v3980_v16  ;;  %v348_v16 = vld [vmem:[%s3583_s18 + $0x3a8] sm:$0xff]  ;;  %583 = vmatpush.msrb.mxu0 %v4002_v22  ;;  %v4025_v23 = vld [vmem:[%s3583_s18 + $0x410] sm:$0xff] }
  0x58   : > { %7089 = vst [vmem:[#allocation44_spill] sm:$0xff] %v3983_v24  ;;  %v476_v24 = vld [vmem:[%s3583_s18 + $0x7a8] sm:$0xff]  ;;  %691 = vmatpush.msra.mxu2 %v348_v16 }
  0x59   : > { %7090 = vst [vmem:[#allocation45_spill] sm:$0xff] %v3988_v12  ;;  %v4015_v12 = vld [vmem:[%s3583_s18 + $0x450] sm:$0xff]  ;;  %711 = vmatpush.msra.mxu3 %v476_v24  ;;  %584 = vmatpush.msrb.mxu0 %v4012_v13  ;;  %v332_v16 = vld [vmem:[%s3583_s18 + $0x328] sm:$0xff] }
  0x5a   : > { %7091 = vst [vmem:[#allocation46_spill] sm:$0xff] %v3991_v21  ;;  %v340_v21 = vld [vmem:[%s3583_s18 + $0x368] sm:$0xff]  ;;  %604 = vmatpush.msrb.mxu1 %v4015_v12 }
  0x5b   : > { %7093 = vst [vmem:[#allocation47_spill] sm:$0xff] %v4002_v22  ;;  %692 = vmatpush.msra.mxu2 %v340_v21  ;;  %712 = vmatpush.msra.mxu3 %v468_v19  ;;  %v483_v22 = vld [vmem:[%s3583_s18 + $0x7e0] sm:$0xff]  ;;  %v460_v24 = vld [vmem:[%s3583_s18 + $0x728] sm:$0xff] }
  0x5c   : > { %7094 = vst [vmem:[#allocation48_spill] sm:$0xff] %v4005_v17  ;;  %v355_v17 = vld [vmem:[%s3583_s18 + $0x3e0] sm:$0xff]  ;;  %585 = vmatpush.msrb.mxu0 %v4022_v25  ;;  %605 = vmatpush.msrb.mxu1 %v4025_v23  ;;  %v324_v19 = vld [vmem:[%s3583_s18 + $0x2e8] sm:$0xff] }
  0x5d   : > { %7095 = vst [vmem:[#allocation49_spill] sm:$0xff] %v4012_v13  ;;  %586 = vmatmul.f32.vlgmr.msrb.gmra.mxu0 %v7092_v20  ;;  %606 = vmatmul.f32.vlgmr.msrb.gmra.mxu1 %v7092_v20  ;;  %v475_v21 = vld [vmem:[%s3583_s18 + $0x7a0] sm:$0xff]  ;;  %v452_v13 = vld [vmem:[%s3583_s18 + $0x6e8] sm:$0xff] }
  0x5e   : > { %7096 = vst [vmem:[#allocation50_spill] sm:$0xff] %v4015_v12  ;;  %v347_v12 = vld [vmem:[%s3583_s18 + $0x3a0] sm:$0xff]  ;;  %650 = vmatpush.msra.mxu0 %v355_v17  ;;  %670 = vmatpush.msra.mxu1 %v483_v22 }
  0x5f   : > { %7097 = vst [vmem:[#allocation51_spill] sm:$0xff] %v4022_v25  ;;  %693 = vmatpush.msra.mxu2 %v332_v16  ;;  %713 = vmatpush.msra.mxu3 %v460_v24  ;;  %v467_v25 = vld [vmem:[%s3583_s18 + $0x760] sm:$0xff]  ;;  %v308_v16 = vld [vmem:[%s3583_s18 + $0x268] sm:$0xff] }
  0x60   : > { %7098 = vst [vmem:[#allocation52_spill] sm:$0xff] %v4025_v23  ;;  %v339_v23 = vld [vmem:[%s3583_s18 + $0x360] sm:$0xff]  ;;  %651 = vmatpush.msra.mxu0 %v347_v12  ;;  %671 = vmatpush.msra.mxu1 %v475_v21  ;;  %v436_v24 = vld [vmem:[%s3583_s18 + $0x668] sm:$0xff] }
  0x61   : > { %694 = vmatpush.msra.mxu2 %v324_v19  ;;  %714 = vmatpush.msra.mxu3 %v452_v13  ;;  %v331_v17 = vld [vmem:[%s3583_s18 + $0x320] sm:$0xff]  ;;  %v300_v19 = vld [vmem:[%s3583_s18 + $0x228] sm:$0xff]  ;;  %487 = vst [vmem:[%s4437_s22] sm:$0xf] %v7092_v20 }
  0x62   : > { %v459_v22 = vld [vmem:[%s3583_s18 + $0x720] sm:$0xff]  ;;  %652 = vmatpush.msra.mxu0 %v339_v23  ;;  %672 = vmatpush.msra.mxu1 %v467_v25  ;;  %v428_v13 = vld [vmem:[%s3583_s18 + $0x628] sm:$0xff] }
  0x63   : > { %695 = vmatpush.msra.mxu2 %v316_v18  ;;  %715 = vmatpush.msra.mxu3 %v444_v9  ;;  %v323_v12 = vld [vmem:[%s3583_s18 + $0x2e0] sm:$0xff]  ;;  %v292_v18 = vld [vmem:[%s3583_s18 + $0x1e8] sm:$0xff] }
  0x64   : > { %v451_v21 = vld [vmem:[%s3583_s18 + $0x6e0] sm:$0xff]  ;;  %653 = vmatpush.msra.mxu0 %v331_v17  ;;  %673 = vmatpush.msra.mxu1 %v459_v22  ;;  %v420_v9 = vld [vmem:[%s3583_s18 + $0x5e8] sm:$0xff] }
  0x65   : > { %696 = vmatpush.msra.mxu2 %v308_v16  ;;  %716 = vmatpush.msra.mxu3 %v436_v24  ;;  %v315_v23 = vld [vmem:[%s3583_s18 + $0x2a0] sm:$0xff]  ;;  %v284_v16 = vld [vmem:[%s3583_s18 + $0x1a8] sm:$0xff] }
  0x66   : > { %v443_v25 = vld [vmem:[%s3583_s18 + $0x6a0] sm:$0xff]  ;;  %654 = vmatpush.msra.mxu0 %v323_v12  ;;  %674 = vmatpush.msra.mxu1 %v451_v21  ;;  %v412_v24 = vld [vmem:[%s3583_s18 + $0x5a8] sm:$0xff] }
  0x67   : > { %697 = vmatpush.msra.mxu2 %v300_v19  ;;  %717 = vmatpush.msra.mxu3 %v428_v13  ;;  %v307_v17 = vld [vmem:[%s3583_s18 + $0x260] sm:$0xff]  ;;  %v276_v19 = vld [vmem:[%s3583_s18 + $0x168] sm:$0xff] }
  0x68   : > { %v435_v22 = vld [vmem:[%s3583_s18 + $0x660] sm:$0xff]  ;;  %655 = vmatpush.msra.mxu0 %v315_v23  ;;  %675 = vmatpush.msra.mxu1 %v443_v25  ;;  %v404_v13 = vld [vmem:[%s3583_s18 + $0x568] sm:$0xff] }
  0x69   : > { %698 = vmatpush.msra.mxu2 %v292_v18  ;;  %718 = vmatpush.msra.mxu3 %v420_v9  ;;  %v299_v12 = vld [vmem:[%s3583_s18 + $0x220] sm:$0xff]  ;;  %v268_v18 = vld [vmem:[%s3583_s18 + $0x128] sm:$0xff] }
  0x6a   : > { %v427_v21 = vld [vmem:[%s3583_s18 + $0x620] sm:$0xff]  ;;  %656 = vmatpush.msra.mxu0 %v307_v17  ;;  %676 = vmatpush.msra.mxu1 %v435_v22  ;;  %v396_v9 = vld [vmem:[%s3583_s18 + $0x528] sm:$0xff] }
  0x6b   : > { %699 = vmatpush.msra.mxu2 %v284_v16  ;;  %719 = vmatpush.msra.mxu3 %v412_v24  ;;  %v291_v23 = vld [vmem:[%s3583_s18 + $0x1e0] sm:$0xff]  ;;  %v260_v16 = vld [vmem:[%s3583_s18 + $0xe8] sm:$0xff] }
  0x6c   : > { %v419_v25 = vld [vmem:[%s3583_s18 + $0x5e0] sm:$0xff]  ;;  %657 = vmatpush.msra.mxu0 %v299_v12  ;;  %677 = vmatpush.msra.mxu1 %v427_v21  ;;  %v388_v24 = vld [vmem:[%s3583_s18 + $0x4e8] sm:$0xff] }
  0x6d   : > { %700 = vmatpush.msra.mxu2 %v276_v19  ;;  %720 = vmatpush.msra.mxu3 %v404_v13  ;;  %v4070_v17 = vld [vmem:[%s3583_s18 + $0x1a0] sm:$0xff]  ;;  %v252_v19 = vld [vmem:[%s3583_s18 + $0xa8] sm:$0xff] }
  0x6e   : > { %v4073_v22 = vld [vmem:[%s3583_s18 + $0x5a0] sm:$0xff]  ;;  %658 = vmatpush.msra.mxu0 %v291_v23  ;;  %678 = vmatpush.msra.mxu1 %v419_v25  ;;  %v380_v13 = vld [vmem:[%s3583_s18 + $0x4a8] sm:$0xff] }
  0x6f   : > { %701 = vmatpush.msra.mxu2 %v268_v18  ;;  %721 = vmatpush.msra.mxu3 %v396_v9  ;;  %v4078_v12 = vld [vmem:[%s3583_s18 + $0x160] sm:$0xff]  ;;  %v4096_v18 = vld [vmem:[%s3583_s18 + $0x68] sm:$0xff] }
  0x70   : > { %7099 = vst [vmem:[#allocation53_spill] sm:$0xff] %v4078_v12  ;;  %v4081_v21 = vld [vmem:[%s3583_s18 + $0x560] sm:$0xff]  ;;  %659 = vmatpush.msra.mxu0 %v4070_v17  ;;  %679 = vmatpush.msra.mxu1 %v4073_v22  ;;  %v4099_v9 = vld [vmem:[%s3583_s18 + $0x468] sm:$0xff] }
  0x71   : > { %7100 = vst [vmem:[#allocation54_spill] sm:$0xff] %v4081_v21  ;;  %702 = vmatpush.msra.mxu2 %v260_v16  ;;  %722 = vmatpush.msra.mxu3 %v388_v24  ;;  %v4088_v23 = vld [vmem:[%s3583_s18 + $0x120] sm:$0xff] }
  0x72   : > { %7101 = vst [vmem:[#allocation55_spill] sm:$0xff] %v4088_v23  ;;  %v4091_v25 = vld [vmem:[%s3583_s18 + $0x520] sm:$0xff]  ;;  %660 = vmatpush.msra.mxu0 %v4078_v12  ;;  %680 = vmatpush.msra.mxu1 %v4081_v21  ;;  %v4110_v12 = vld [vmem:[%s3583_s18 + $0x28] sm:$0xff] }
  0x73   : > { %7102 = vst [vmem:[#allocation56_spill] sm:$0xff] %v4091_v25  ;;  %703 = vmatpush.msra.mxu2 %v252_v19  ;;  %723 = vmatpush.msra.mxu3 %v380_v13  ;;  %v4102_v16 = vld [vmem:[%s3583_s18 + $0xe0] sm:$0xff]  ;;  %v4113_v21 = vld [vmem:[%s3583_s18 + $0x428] sm:$0xff]  ;;  %v4118_v19 = vld [vmem:[%s3583_s18 + $0x3f8] sm:$0xff] }
  0x74   : > { %7103 = vst [vmem:[#allocation57_spill] sm:$0xff] %v4096_v18  ;;  %v4105_v24 = vld [vmem:[%s3583_s18 + $0x4e0] sm:$0xff]  ;;  %661 = vmatpush.msra.mxu0 %v4088_v23  ;;  %681 = vmatpush.msra.mxu1 %v4091_v25  ;;  %v4121_v13 = vld [vmem:[%s3583_s18 + $0x7f8] sm:$0xff] }
  0x75   : > { %7104 = vst [vmem:[#allocation58_spill] sm:$0xff] %v4099_v9  ;;  %704 = vmatpush.msra.mxu2 %v4096_v18  ;;  %724 = vmatpush.msra.mxu3 %v4099_v9  ;;  %v4126_v25 = vld [vmem:[%s3583_s18 + $0xa0] sm:$0xff]  ;;  %v4134_v9 = vld [vmem:[%s3583_s18 + $0x3b8] sm:$0xff] }
  0x76   : > { %7105 = vst [vmem:[#allocation59_spill] sm:$0xff] %v4102_v16  ;;  %662 = vmatpush.msra.mxu0 %v4102_v16  ;;  %682 = vmatpush.msra.mxu1 %v4105_v24  ;;  %v4129_v23 = vld [vmem:[%s3583_s18 + $0x4a0] sm:$0xff]  ;;  %v4137_v18 = vld [vmem:[%s3583_s18 + $0x7b8] sm:$0xff] }
  0x77   : > { %7106 = vst [vmem:[#allocation60_spill] sm:$0xff] %v4105_v24  ;;  %705 = vmatpush.msra.mxu2 %v4110_v12  ;;  %725 = vmatpush.msra.mxu3 %v4113_v21  ;;  %v4142_v24 = vld [vmem:[%s3583_s18 + $0x60] sm:$0xff] }
  0x78   : > { %7107 = vst [vmem:[#allocation61_spill] sm:$0xff] %v4110_v12  ;;  %v4145_v16 = vld [vmem:[%s3583_s18 + $0x460] sm:$0xff]  ;;  %663 = vmatpush.msra.mxu0 %v4126_v25  ;;  %683 = vmatpush.msra.mxu1 %v4129_v23  ;;  %v4153_v12 = vld [vmem:[%s3583_s18 + $0x778] sm:$0xff] }
  0x79   : > { %7108 = vst [vmem:[#allocation62_spill] sm:$0xff] %v4113_v21  ;;  %770 = vmatpush.msrb.mxu2 %v4118_v19  ;;  %790 = vmatpush.msrb.mxu3 %v4121_v13  ;;  %v4150_v21 = vld [vmem:[%s3583_s18 + $0x378] sm:$0xff] }
  0x7a   : > { %7109 = vst [vmem:[#allocation63_spill] sm:$0xff] %v4118_v19  ;;  %v4161_v19 = vld [vmem:[%s3583_s18 + $0x420] sm:$0xff]  ;;  %664 = vmatpush.msra.mxu0 %v4142_v24  ;;  %684 = vmatpush.msra.mxu1 %v4145_v16 }
  0x7b   : > { %7110 = vst [vmem:[#allocation64_spill] sm:$0xff] %v4121_v13  ;;  %771 = vmatpush.msrb.mxu2 %v4134_v9  ;;  %791 = vmatpush.msrb.mxu3 %v4137_v18  ;;  %v4158_v13 = vld [vmem:[%s3583_s18 + $0x20] sm:$0xff] }
  0x7c   : > { %7111 = vst [vmem:[#allocation65_spill] sm:$0xff] %v4126_v25  ;;  %v4169_v25 = vld [vmem:[%s3583_s18 + $0x7f0] sm:$0xff]  ;;  %665 = vmatpush.msra.mxu0 %v4158_v13  ;;  %685 = vmatpush.msra.mxu1 %v4161_v19 }
  0x7d   : > { %7112 = vst [vmem:[#allocation66_spill] sm:$0xff] %v4129_v23  ;;  %v4166_v23 = vld [vmem:[%s3583_s18 + $0x3f0] sm:$0xff]  ;;  %772 = vmatpush.msrb.mxu2 %v4150_v21  ;;  %792 = vmatpush.msrb.mxu3 %v4153_v12 }
  0x7e   : > { %7113 = vst [vmem:[#allocation67_spill] sm:$0xff] %v4134_v9  ;;  %v4177_v9 = vld [vmem:[%s3583_s18 + $0x738] sm:$0xff]  ;;  %730 = vmatpush.msrb.mxu0 %v4166_v23  ;;  %750 = vmatpush.msrb.mxu1 %v4169_v25 }
  0x7f   : > { %7114 = vst [vmem:[#allocation68_spill] sm:$0xff] %v4137_v18  ;;  %v4174_v18 = vld [vmem:[%s3583_s18 + $0x338] sm:$0xff]  ;;  %793 = vmatpush.msrb.mxu3 %v4177_v9  ;;  %706 = vmatmul.f32.vlgmr.msra.gmra.mxu2 %v7092_v20 }
  0x80   : > { %7115 = vst [vmem:[#allocation69_spill] sm:$0xff] %v4142_v24  ;;  %v4185_v24 = vld [vmem:[%s3583_s18 + $0x7b0] sm:$0xff]  ;;  %773 = vmatpush.msrb.mxu2 %v4174_v18  ;;  %726 = vmatmul.f32.vlgmr.msra.gmra.mxu3 %v7092_v20 }
  0x81   : > { %7116 = vst [vmem:[#allocation70_spill] sm:$0xff] %v4145_v16  ;;  %v4182_v16 = vld [vmem:[%s3583_s18 + $0x3b0] sm:$0xff]  ;;  %751 = vmatpush.msrb.mxu1 %v4185_v24  ;;  %666 = vmatmul.f32.vlgmr.msra.gmra.mxu0 %v7092_v20 }
  0x82   : > { %7117 = vst [vmem:[#allocation71_spill] sm:$0xff] %v4150_v21  ;;  %v4193_v21 = vld [vmem:[%s3583_s18 + $0x6f8] sm:$0xff]  ;;  %731 = vmatpush.msrb.mxu0 %v4182_v16  ;;  %686 = vmatmul.f32.vlgmr.msra.gmra.mxu1 %v7092_v20 }
  0x83   : > { %7118 = vst [vmem:[#allocation72_spill] sm:$0xff] %v4153_v12  ;;  %v4190_v12 = vld [vmem:[%s3583_s18 + $0x2f8] sm:$0xff]  ;;  %794 = vmatpush.msrb.mxu3 %v4193_v21 }
  0x84   : > { %7119 = vst [vmem:[#allocation73_spill] sm:$0xff] %v4158_v13  ;;  %v4201_v13 = vld [vmem:[%s3583_s18 + $0x770] sm:$0xff]  ;;  %774 = vmatpush.msrb.mxu2 %v4190_v12 }
  0x85   : > { %7120 = vst [vmem:[#allocation74_spill] sm:$0xff] %v4161_v19  ;;  %v4198_v19 = vld [vmem:[%s3583_s18 + $0x370] sm:$0xff]  ;;  %752 = vmatpush.msrb.mxu1 %v4201_v13 }
  0x86   : > { %7121 = vst [vmem:[#allocation75_spill] sm:$0xff] %v4166_v23  ;;  %v4209_v23 = vld [vmem:[%s3583_s18 + $0x6b8] sm:$0xff]  ;;  %732 = vmatpush.msrb.mxu0 %v4198_v19 }
  0x87   : > { %7122 = vst [vmem:[#allocation76_spill] sm:$0xff] %v4169_v25  ;;  %v4206_v25 = vld [vmem:[%s3583_s18 + $0x2b8] sm:$0xff]  ;;  %795 = vmatpush.msrb.mxu3 %v4209_v23 }
  0x88   : > { %7123 = vst [vmem:[#allocation77_spill] sm:$0xff] %v4174_v18  ;;  %v4217_v18 = vld [vmem:[%s3583_s18 + $0x730] sm:$0xff]  ;;  %775 = vmatpush.msrb.mxu2 %v4206_v25 }
  0x89   : > { %7124 = vst [vmem:[#allocation78_spill] sm:$0xff] %v4177_v9  ;;  %v4214_v9 = vld [vmem:[%s3583_s18 + $0x330] sm:$0xff]  ;;  %753 = vmatpush.msrb.mxu1 %v4217_v18 }
  0x8a   : > { %7125 = vst [vmem:[#allocation79_spill] sm:$0xff] %v4182_v16  ;;  %v4225_v16 = vld [vmem:[%s3583_s18 + $0x678] sm:$0xff]  ;;  %733 = vmatpush.msrb.mxu0 %v4214_v9 }
  0x8b   : > { %7126 = vst [vmem:[#allocation80_spill] sm:$0xff] %v4185_v24  ;;  %v4222_v24 = vld [vmem:[%s3583_s18 + $0x278] sm:$0xff]  ;;  %796 = vmatpush.msrb.mxu3 %v4225_v16 }
  0x8c   : > { %7127 = vst [vmem:[#allocation81_spill] sm:$0xff] %v4190_v12  ;;  %v4233_v12 = vld [vmem:[%s3583_s18 + $0x6f0] sm:$0xff]  ;;  %776 = vmatpush.msrb.mxu2 %v4222_v24 }
  0x8d   : > { %7128 = vst [vmem:[#allocation82_spill] sm:$0xff] %v4193_v21  ;;  %v4230_v21 = vld [vmem:[%s3583_s18 + $0x2f0] sm:$0xff]  ;;  %754 = vmatpush.msrb.mxu1 %v4233_v12 }
  0x8e   : > { %7129 = vst [vmem:[#allocation83_spill] sm:$0xff] %v4198_v19  ;;  %v4241_v19 = vld [vmem:[%s3583_s18 + $0x638] sm:$0xff]  ;;  %734 = vmatpush.msrb.mxu0 %v4230_v21 }
  0x8f   : > { %7130 = vst [vmem:[#allocation84_spill] sm:$0xff] %v4201_v13  ;;  %v4238_v13 = vld [vmem:[%s3583_s18 + $0x238] sm:$0xff]  ;;  %797 = vmatpush.msrb.mxu3 %v4241_v19 }
  0x90   : > { %7131 = vst [vmem:[#allocation85_spill] sm:$0xff] %v4206_v25  ;;  %v4249_v25 = vld [vmem:[%s3583_s18 + $0x6b0] sm:$0xff]  ;;  %777 = vmatpush.msrb.mxu2 %v4238_v13 }
  0x91   : > { %7132 = vst [vmem:[#allocation86_spill] sm:$0xff] %v4209_v23  ;;  %v4246_v23 = vld [vmem:[%s3583_s18 + $0x2b0] sm:$0xff]  ;;  %755 = vmatpush.msrb.mxu1 %v4249_v25 }
  0x92   : > { %7133 = vst [vmem:[#allocation87_spill] sm:$0xff] %v4214_v9  ;;  %v4257_v9 = vld [vmem:[%s3583_s18 + $0x5f8] sm:$0xff]  ;;  %735 = vmatpush.msrb.mxu0 %v4246_v23 }
  0x93   : > { %7134 = vst [vmem:[#allocation88_spill] sm:$0xff] %v4217_v18  ;;  %v4254_v18 = vld [vmem:[%s3583_s18 + $0x1f8] sm:$0xff]  ;;  %798 = vmatpush.msrb.mxu3 %v4257_v9 }
  0x94   : > { %7135 = vst [vmem:[#allocation89_spill] sm:$0xff] %v4222_v24  ;;  %v4265_v24 = vld [vmem:[%s3583_s18 + $0x670] sm:$0xff]  ;;  %778 = vmatpush.msrb.mxu2 %v4254_v18 }
  0x95   : > { %7136 = vst [vmem:[#allocation90_spill] sm:$0xff] %v4225_v16  ;;  %v4262_v16 = vld [vmem:[%s3583_s18 + $0x270] sm:$0xff]  ;;  %756 = vmatpush.msrb.mxu1 %v4265_v24 }
  0x96   : > { %7137 = vst [vmem:[#allocation91_spill] sm:$0xff] %v4230_v21  ;;  %v4273_v21 = vld [vmem:[%s3583_s18 + $0x5b8] sm:$0xff]  ;;  %736 = vmatpush.msrb.mxu0 %v4262_v16 }
  0x97   : > { %7138 = vst [vmem:[#allocation92_spill] sm:$0xff] %v4233_v12  ;;  %v4270_v12 = vld [vmem:[%s3583_s18 + $0x1b8] sm:$0xff]  ;;  %799 = vmatpush.msrb.mxu3 %v4273_v21 }
  0x98   : > { %7139 = vst [vmem:[#allocation93_spill] sm:$0xff] %v4238_v13  ;;  %v4281_v13 = vld [vmem:[%s3583_s18 + $0x630] sm:$0xff]  ;;  %779 = vmatpush.msrb.mxu2 %v4270_v12 }
  0x99   : > { %7140 = vst [vmem:[#allocation94_spill] sm:$0xff] %v4241_v19  ;;  %v4278_v19 = vld [vmem:[%s3583_s18 + $0x230] sm:$0xff]  ;;  %757 = vmatpush.msrb.mxu1 %v4281_v13 }
  0x9a   : > { %7141 = vst [vmem:[#allocation95_spill] sm:$0xff] %v4246_v23  ;;  %v4289_v23 = vld [vmem:[%s3583_s18 + $0x578] sm:$0xff]  ;;  %737 = vmatpush.msrb.mxu0 %v4278_v19 }
  0x9b   : > { %7142 = vst [vmem:[#allocation96_spill] sm:$0xff] %v4249_v25  ;;  %v4286_v25 = vld [vmem:[%s3583_s18 + $0x178] sm:$0xff]  ;;  %800 = vmatpush.msrb.mxu3 %v4289_v23 }
  0x9c   : > { %7143 = vst [vmem:[#allocation97_spill] sm:$0xff] %v4254_v18  ;;  %v4299_v18 = vld [vmem:[%s3583_s18 + $0x5f0] sm:$0xff]  ;;  %780 = vmatpush.msrb.mxu2 %v4286_v25 }
  0x9d   : > { %7144 = vst [vmem:[#allocation98_spill] sm:$0xff] %v4257_v9  ;;  %v4296_v9 = vld [vmem:[%s3583_s18 + $0x1f0] sm:$0xff]  ;;  %758 = vmatpush.msrb.mxu1 %v4299_v18 }
  0x9e   : > { %7145 = vst [vmem:[#allocation99_spill] sm:$0xff] %v4262_v16  ;;  %738 = vmatpush.msrb.mxu0 %v4296_v9  ;;  %v4331_v16 = vld [vmem:[%s3583_s18 + $0x570] sm:$0xff] }
  0x9f   : > { %7146 = vst [vmem:[#allocation100_spill] sm:$0xff] %v4265_v24  ;;  %v4304_v24 = vld [vmem:[%s3583_s18 + $0x138] sm:$0xff] }
  0xa0   : > { %7147 = vst [vmem:[#allocation101_spill] sm:$0xff] %v4270_v12  ;;  %v4307_v12 = vld [vmem:[%s3583_s18 + $0x538] sm:$0xff]  ;;  %781 = vmatpush.msrb.mxu2 %v4304_v24 }
  0xa1   : > { %7148 = vst [vmem:[#allocation102_spill] sm:$0xff] %v4273_v21  ;;  %v4312_v21 = vld [vmem:[%s3583_s18 + $0x1b0] sm:$0xff]  ;;  %801 = vmatpush.msrb.mxu3 %v4307_v12 }
  0xa2   : > { %7149 = vst [vmem:[#allocation103_spill] sm:$0xff] %v4278_v19  ;;  %v4328_v19 = vld [vmem:[%s3583_s18 + $0x170] sm:$0xff]  ;;  %739 = vmatpush.msrb.mxu0 %v4312_v21 }
  0xa3   : > { %7150 = vst [vmem:[#allocation104_spill] sm:$0xff] %v4281_v13  ;;  %v4315_v13 = vld [vmem:[%s3583_s18 + $0x5b0] sm:$0xff] }
  0xa4   : > { %7151 = vst [vmem:[#allocation105_spill] sm:$0xff] %v4286_v25  ;;  %v4323_v25 = vld [vmem:[%s3583_s18 + $0x4f8] sm:$0xff]  ;;  %759 = vmatpush.msrb.mxu1 %v4315_v13  ;;  %740 = vmatpush.msrb.mxu0 %v4328_v19 }
  0xa5   : > { %7152 = vst [vmem:[#allocation106_spill] sm:$0xff] %v4289_v23  ;;  %v4320_v23 = vld [vmem:[%s3583_s18 + $0xf8] sm:$0xff]  ;;  %802 = vmatpush.msrb.mxu3 %v4323_v25 }
  0xa6   : > { %7153 = vst [vmem:[#allocation107_spill] sm:$0xff] %v4296_v9  ;;  %v4339_v9 = vld [vmem:[%s3583_s18 + $0x4b8] sm:$0xff]  ;;  %782 = vmatpush.msrb.mxu2 %v4320_v23  ;;  %760 = vmatpush.msrb.mxu1 %v4331_v16 }
  0xa7   : > { %7154 = vst [vmem:[#allocation108_spill] sm:$0xff] %v4299_v18  ;;  %v4336_v18 = vld [vmem:[%s3583_s18 + $0xb8] sm:$0xff]  ;;  %803 = vmatpush.msrb.mxu3 %v4339_v9 }
  0xa8   : > { %7155 = vst [vmem:[#allocation109_spill] sm:$0xff] %v4304_v24  ;;  %v4347_v24 = vld [vmem:[%s3583_s18 + $0x530] sm:$0xff]  ;;  %783 = vmatpush.msrb.mxu2 %v4336_v18 }
  0xa9   : > { %7156 = vst [vmem:[#allocation110_spill] sm:$0xff] %v4307_v12  ;;  %v4344_v12 = vld [vmem:[%s3583_s18 + $0x130] sm:$0xff]  ;;  %761 = vmatpush.msrb.mxu1 %v4347_v24 }
  0xaa   : > { %7157 = vst [vmem:[#allocation111_spill] sm:$0xff] %v4312_v21  ;;  %v4355_v21 = vld [vmem:[%s3583_s18 + $0x478] sm:$0xff]  ;;  %741 = vmatpush.msrb.mxu0 %v4344_v12 }
  0xab   : > { %7158 = vst [vmem:[#allocation112_spill] sm:$0xff] %v4315_v13  ;;  %v4352_v13 = vld [vmem:[%s3583_s18 + $0x78] sm:$0xff]  ;;  %804 = vmatpush.msrb.mxu3 %v4355_v21 }
  0xac   : > { %7159 = vst [vmem:[#allocation113_spill] sm:$0xff] %v4320_v23  ;;  %v4365_v23 = vld [vmem:[%s3583_s18 + $0x4f0] sm:$0xff]  ;;  %784 = vmatpush.msrb.mxu2 %v4352_v13 }
  0xad   : > { %7160 = vst [vmem:[#allocation114_spill] sm:$0xff] %v4323_v25  ;;  %v4362_v25 = vld [vmem:[%s3583_s18 + $0xf0] sm:$0xff]  ;;  %762 = vmatpush.msrb.mxu1 %v4365_v23 }
  0xae   : > { %7161 = vst [vmem:[#allocation115_spill] sm:$0xff] %v4331_v16  ;;  %v4370_v16 = vld [vmem:[%s3583_s18 + $0x38] sm:$0xff]  ;;  %742 = vmatpush.msrb.mxu0 %v4362_v25 }
  0xaf   : > { %7162 = vst [vmem:[#allocation116_spill] sm:$0xff] %v4336_v18  ;;  %v4373_v18 = vld [vmem:[%s3583_s18 + $0x438] sm:$0xff]  ;;  %785 = vmatpush.msrb.mxu2 %v4370_v16 }
  0xb0   : > { %7163 = vst [vmem:[#allocation117_spill] sm:$0xff] %v4339_v9  ;;  %v4380_v9 = vld [vmem:[%s3583_s18 + $0xb0] sm:$0xff]  ;;  %805 = vmatpush.msrb.mxu3 %v4373_v18  ;;  %786 = vmatmul.f32.vlgmr.msrb.gmra.mxu2 %v7092_v20 }
  0xb1   : > { %7164 = vst [vmem:[#allocation118_spill] sm:$0xff] %v4347_v24  ;;  %806 = vmatmul.f32.vlgmr.msrb.gmra.mxu3 %v7092_v20  ;;  %743 = vmatpush.msrb.mxu0 %v4380_v9  ;;  %v4408_v24 = vld [vmem:[%s3583_s18 + $0x7c8] sm:$0xff] }
  0xb2   : > { %7165 = vst [vmem:[#allocation119_spill] sm:$0xff] %v4352_v13  ;;  %v4383_v13 = vld [vmem:[%s3583_s18 + $0x4b0] sm:$0xff]  ;;  %1007 = vmatpush.msra.mxu3 %v4408_v24 }
  0xb3   : > { %7166 = vst [vmem:[#allocation120_spill] sm:$0xff] %v4355_v21  ;;  %v4390_v21 = vld [vmem:[%s3583_s18 + $0x70] sm:$0xff]  ;;  %763 = vmatpush.msrb.mxu1 %v4383_v13 }
  0xb4   : > { %7167 = vst [vmem:[#allocation121_spill] sm:$0xff] %v4362_v25  ;;  %v4393_v25 = vld [vmem:[%s3583_s18 + $0x470] sm:$0xff]  ;;  %744 = vmatpush.msrb.mxu0 %v4390_v21 }
  0xb5   : > { %7168 = vst [vmem:[#allocation122_spill] sm:$0xff] %v4365_v23  ;;  %v4398_v23 = vld [vmem:[%s3583_s18 + $0x30] sm:$0xff]  ;;  %764 = vmatpush.msrb.mxu1 %v4393_v25 }
  0xb6   : > { %7169 = vst [vmem:[#allocation123_spill] sm:$0xff] %v4370_v16  ;;  %v4401_v16 = vld [vmem:[%s3583_s18 + $0x430] sm:$0xff]  ;;  %745 = vmatpush.msrb.mxu0 %v4398_v23 }
  0xb7   : > { %7170 = vst [vmem:[#allocation124_spill] sm:$0xff] %v4373_v18  ;;  %v4404_v18 = vld [vmem:[%s3583_s18 + $0x3c8] sm:$0xff]  ;;  %765 = vmatpush.msrb.mxu1 %v4401_v16  ;;  %746 = vmatmul.f32.vlgmr.msrb.gmra.mxu0 %v7092_v20 }
  0xb8   : > { %7171 = vst [vmem:[#allocation125_spill] sm:$0xff] %v4380_v9  ;;  %987 = vmatpush.msra.mxu2 %v4404_v18  ;;  %v4418_v9 = vld [vmem:[%s3583_s18 + $0x788] sm:$0xff]  ;;  %766 = vmatmul.f32.vlgmr.msrb.gmra.mxu1 %v7092_v20  ;;  %v4466_v20 = vld [vmem:[%s3583_s18 + $0x340] sm:$0xff] }
  0xb9   : > { %7172 = vst [vmem:[#allocation126_spill] sm:$0xff] %v4383_v13  ;;  %v4414_v13 = vld [vmem:[%s3583_s18 + $0x388] sm:$0xff]  ;;  %1008 = vmatpush.msra.mxu3 %v4418_v9 }
  0xba   : > { %7173 = vst [vmem:[#allocation127_spill] sm:$0xff] %v4401_v16  ;;  %988 = vmatpush.msra.mxu2 %v4414_v13  ;;  %v4458_v16 = vld [vmem:[%s3583_s18 + $0x308] sm:$0xff] }
  0xbb   : > { %7174 = vst [vmem:[#allocation128_spill] sm:$0xff] %v4404_v18  ;;  %v4444_v18 = vld [vmem:[%s3583_s18 + $0x748] sm:$0xff] }
  0xbc   : > { %7175 = vst [vmem:[#allocation129_spill] sm:$0xff] %v4408_v24  ;;  %v4427_v24 = vld [vmem:[%s3583_s18 + $0x3c0] sm:$0xff]  ;;  %1009 = vmatpush.msra.mxu3 %v4444_v18 }
  0xbd   : > { %7176 = vst [vmem:[#allocation130_spill] sm:$0xff] %v4414_v13  ;;  %947 = vmatpush.msra.mxu0 %v4427_v24  ;;  %v4431_v13 = vld [vmem:[%s3583_s18 + $0x7c0] sm:$0xff] }
  0xbe   : > { %7177 = vst [vmem:[#allocation131_spill] sm:$0xff] %v4418_v9  ;;  %967 = vmatpush.msra.mxu1 %v4431_v13  ;;  %v4440_v9 = vld [vmem:[%s3583_s18 + $0x348] sm:$0xff] }
  0xbf   : > { %7178 = vst [vmem:[#allocation132_spill] sm:$0xff] %v4427_v24  ;;  %989 = vmatpush.msra.mxu2 %v4440_v9  ;;  %v4454_v24 = vld [vmem:[%s3583_s18 + $0x780] sm:$0xff] }
  0xc0   : > { %7179 = vst [vmem:[#allocation133_spill] sm:$0xff] %v4431_v13  ;;  %v4450_v13 = vld [vmem:[%s3583_s18 + $0x380] sm:$0xff]  ;;  %968 = vmatpush.msra.mxu1 %v4454_v24 }
  0xc1   : > { %7180 = vst [vmem:[#allocation134_spill] sm:$0xff] %v4440_v9  ;;  %948 = vmatpush.msra.mxu0 %v4450_v13  ;;  %990 = vmatpush.msra.mxu2 %v4458_v16  ;;  %v4462_v9 = vld [vmem:[%s3583_s18 + $0x708] sm:$0xff] }
  0xc2   : > { %7181 = vst [vmem:[#allocation135_spill] sm:$0xff] %v4444_v18  ;;  %1010 = vmatpush.msra.mxu3 %v4462_v9  ;;  %v4470_v18 = vld [vmem:[%s3583_s18 + $0x740] sm:$0xff] }
  0xc3   : > { %7182 = vst [vmem:[#allocation136_spill] sm:$0xff] %v4450_v13  ;;  %949 = vmatpush.msra.mxu0 %v4466_v20  ;;  %969 = vmatpush.msra.mxu1 %v4470_v18  ;;  %v4498_v13 = vld [vmem:[%s3583_s18 + $0x2c0] sm:$0xff] }
  0xc4   : > { %7183 = vst [vmem:[#allocation137_spill] sm:$0xff] %v4454_v24  ;;  %v4474_v24 = vld [vmem:[%s3583_s18 + $0x2c8] sm:$0xff] }
  0xc5   : > { %7184 = vst [vmem:[#allocation138_spill] sm:$0xff] %v4458_v16  ;;  %991 = vmatpush.msra.mxu2 %v4474_v24  ;;  %v4478_v16 = vld [vmem:[%s3583_s18 + $0x6c8] sm:$0xff] }
  0xc6   : > { %7185 = vst [vmem:[#allocation139_spill] sm:$0xff] %v4462_v9  ;;  %1011 = vmatpush.msra.mxu3 %v4478_v16  ;;  %v4482_v9 = vld [vmem:[%s3583_s18 + $0x300] sm:$0xff] }
  0xc7   : > { %7186 = vst [vmem:[#allocation140_spill] sm:$0xff] %v4466_v20  ;;  %950 = vmatpush.msra.mxu0 %v4482_v9  ;;  %v4486_v20 = vld [vmem:[%s3583_s18 + $0x700] sm:$0xff] }
  0xc8   : > { %7187 = vst [vmem:[#allocation141_spill] sm:$0xff] %v4470_v18  ;;  %970 = vmatpush.msra.mxu1 %v4486_v20  ;;  %v4490_v18 = vld [vmem:[%s3583_s18 + $0x288] sm:$0xff] }
  0xc9   : > { %7188 = vst [vmem:[#allocation142_spill] sm:$0xff] %v4474_v24  ;;  %992 = vmatpush.msra.mxu2 %v4490_v18  ;;  %v4494_v24 = vld [vmem:[%s3583_s18 + $0x688] sm:$0xff]  ;;  %951 = vmatpush.msra.mxu0 %v4498_v13 }
  0xca   : > { %7189 = vst [vmem:[#allocation143_spill] sm:$0xff] %v4478_v16  ;;  %1012 = vmatpush.msra.mxu3 %v4494_v24  ;;  %v4502_v16 = vld [vmem:[%s3583_s18 + $0x6c0] sm:$0xff] }
  0xcb   : > { %7190 = vst [vmem:[#allocation144_spill] sm:$0xff] %v4482_v9  ;;  %971 = vmatpush.msra.mxu1 %v4502_v16  ;;  %v4506_v9 = vld [vmem:[%s3583_s18 + $0x248] sm:$0xff] }
  0xcc   : > { %7191 = vst [vmem:[#allocation145_spill] sm:$0xff] %v4486_v20  ;;  %993 = vmatpush.msra.mxu2 %v4506_v9  ;;  %v4510_v20 = vld [vmem:[%s3583_s18 + $0x648] sm:$0xff] }
  0xcd   : > { %7192 = vst [vmem:[#allocation146_spill] sm:$0xff] %v4490_v18  ;;  %1013 = vmatpush.msra.mxu3 %v4510_v20  ;;  %v4514_v18 = vld [vmem:[%s3583_s18 + $0x280] sm:$0xff] }
  0xce   : > { %7193 = vst [vmem:[#allocation147_spill] sm:$0xff] %v4494_v24  ;;  %952 = vmatpush.msra.mxu0 %v4514_v18  ;;  %v4518_v24 = vld [vmem:[%s3583_s18 + $0x680] sm:$0xff]  ;;  %994 = vmatpush.msra.mxu2 %v3612_v26  ;;  %v7194_v26 = vld [vmem:[#allocation2_spill] sm:$0xff] }
  0xcf   : > { %972 = vmatpush.msra.mxu1 %v4518_v24  ;;  %1014 = vmatpush.msra.mxu3 %v3615_v27  ;;  %v7195_v27 = vld [vmem:[#allocation7_spill] sm:$0xff] }
  0xd0   : > { %953 = vmatpush.msra.mxu0 %v3618_v28  ;;  %995 = vmatpush.msra.mxu2 %v3624_v30  ;;  %v7196_v28 = vld [vmem:[#allocation8_spill] sm:$0xff] }
  0xd1   : > { %973 = vmatpush.msra.mxu1 %v3621_v29  ;;  %1015 = vmatpush.msra.mxu3 %v3627_v31  ;;  %v7197_v29 = vld [vmem:[#allocation3_spill] sm:$0xff]  ;;  %v7198_v30 = vld [vmem:[#allocation4_spill] sm:$0xff] }
  0xd2   : > { %954 = vmatpush.msra.mxu0 %v3632_v32  ;;  %996 = vmatpush.msra.mxu2 %v3640_v34  ;;  %v7199_v31 = vld [vmem:[#allocation11_spill] sm:$0xff]  ;;  %v7200_v32 = vld [vmem:[#allocation12_spill] sm:$0xff]  ;;  %v7202_v34 = vld [vmem:[#allocation6_spill] sm:$0xff] }
  0xd3   : > { %974 = vmatpush.msra.mxu1 %v3635_v33  ;;  %1016 = vmatpush.msra.mxu3 %v3643_v35  ;;  %v7201_v33 = vld [vmem:[#allocation5_spill] sm:$0xff]  ;;  %v7203_v35 = vld [vmem:[#allocation15_spill] sm:$0xff] }
  0xd4   : > { %955 = vmatpush.msra.mxu0 %v3648_v36  ;;  %997 = vmatpush.msra.mxu2 %v3656_v38  ;;  %v7204_v36 = vld [vmem:[#allocation16_spill] sm:$0xff]  ;;  %v7206_v38 = vld [vmem:[#allocation10_spill] sm:$0xff] }
  0xd5   : > { %975 = vmatpush.msra.mxu1 %v3651_v37  ;;  %1017 = vmatpush.msra.mxu3 %v3659_v39  ;;  %v7205_v37 = vld [vmem:[#allocation9_spill] sm:$0xff]  ;;  %v7207_v39 = vld [vmem:[#allocation19_spill] sm:$0xff] }
  0xd6   : > { %956 = vmatpush.msra.mxu0 %v3664_v40  ;;  %998 = vmatpush.msra.mxu2 %v3672_v42  ;;  %v7208_v40 = vld [vmem:[#allocation20_spill] sm:$0xff]  ;;  %v7210_v42 = vld [vmem:[#allocation14_spill] sm:$0xff] }
  0xd7   : > { %976 = vmatpush.msra.mxu1 %v3667_v41  ;;  %1018 = vmatpush.msra.mxu3 %v3675_v43  ;;  %v7209_v41 = vld [vmem:[#allocation13_spill] sm:$0xff]  ;;  %v7211_v43 = vld [vmem:[#allocation23_spill] sm:$0xff] }
  0xd8   : > { %957 = vmatpush.msra.mxu0 %v3680_v44  ;;  %999 = vmatpush.msra.mxu2 %v3688_v46  ;;  %v7212_v44 = vld [vmem:[#allocation24_spill] sm:$0xff]  ;;  %v7214_v46 = vld [vmem:[#allocation18_spill] sm:$0xff] }
  0xd9   : > { %977 = vmatpush.msra.mxu1 %v3683_v45  ;;  %1019 = vmatpush.msra.mxu3 %v3691_v47  ;;  %v7213_v45 = vld [vmem:[#allocation17_spill] sm:$0xff]  ;;  %v7215_v47 = vld [vmem:[#allocation27_spill] sm:$0xff] }
  0xda   : > { %958 = vmatpush.msra.mxu0 %v3696_v48  ;;  %1000 = vmatpush.msra.mxu2 %v3704_v50  ;;  %v7216_v48 = vld [vmem:[#allocation28_spill] sm:$0xff]  ;;  %v7218_v50 = vld [vmem:[#allocation22_spill] sm:$0xff] }
  0xdb   : > { %978 = vmatpush.msra.mxu1 %v3699_v49  ;;  %1020 = vmatpush.msra.mxu3 %v3707_v51  ;;  %v7217_v49 = vld [vmem:[#allocation21_spill] sm:$0xff]  ;;  %v7219_v51 = vld [vmem:[#allocation31_spill] sm:$0xff] }
  0xdc   : > { %959 = vmatpush.msra.mxu0 %v3712_v52  ;;  %1001 = vmatpush.msra.mxu2 %v3720_v54  ;;  %v7220_v52 = vld [vmem:[#allocation32_spill] sm:$0xff]  ;;  %v7222_v54 = vld [vmem:[#allocation26_spill] sm:$0xff] }
  0xdd   : > { %979 = vmatpush.msra.mxu1 %v3715_v53  ;;  %1021 = vmatpush.msra.mxu3 %v3723_v55  ;;  %v7221_v53 = vld [vmem:[#allocation25_spill] sm:$0xff]  ;;  %v7223_v55 = vld [vmem:[#allocation35_spill] sm:$0xff] }
  0xde   : > { %960 = vmatpush.msra.mxu0 %v3728_v56  ;;  %1002 = vmatpush.msra.mxu2 %v3736_v58  ;;  %v7224_v56 = vld [vmem:[#allocation36_spill] sm:$0xff]  ;;  %v7226_v58 = vld [vmem:[#allocation30_spill] sm:$0xff] }
  0xdf   : > { %980 = vmatpush.msra.mxu1 %v3731_v57  ;;  %1022 = vmatpush.msra.mxu3 %v3739_v59  ;;  %v7225_v57 = vld [vmem:[#allocation29_spill] sm:$0xff]  ;;  %v547_v59 = vpop.f32.mrf.mxu2 }
  0xe0   : > { %961 = vmatpush.msra.mxu0 %v3752_v62  ;;  %1067 = vmatpush.msrb.mxu2 %v3744_v60  ;;  %v567_v60 = vpop.f32.mrf.mxu3  ;;  %v7228_v62 = vld [vmem:[#allocation40_spill] sm:$0xff] }
  0xe1   : > { %981 = vmatpush.msra.mxu1 %v3755_v63  ;;  %1087 = vmatpush.msrb.mxu3 %v3747_v61  ;;  %v7227_v61 = vld [vmem:[#allocation39_spill] sm:$0xff]  ;;  %v507_v63 = vpop.f32.mrf.mxu0 }
  0xe2   : > { %962 = vmatpush.msra.mxu0 %v3768_v2  ;;  %1068 = vmatpush.msrb.mxu2 %v3760_v0  ;;  %v527_v0 = vpop.f32.mrf.mxu1  ;;  %v7230_v2 = vld [vmem:[#allocation34_spill] sm:$0xff] }
  0xe3   : > { %982 = vmatpush.msra.mxu1 %v3771_v3  ;;  %1088 = vmatpush.msrb.mxu3 %v3763_v1  ;;  %v7229_v1 = vld [vmem:[#allocation33_spill] sm:$0xff]  ;;  %v7231_v3 = vld [vmem:[#allocation43_spill] sm:$0xff] }
  0xe4   : > { %1027 = vmatpush.msrb.mxu0 %v3784_v6  ;;  %1069 = vmatpush.msrb.mxu2 %v3776_v4  ;;  %v7232_v4 = vld [vmem:[#allocation44_spill] sm:$0xff]  ;;  %v7234_v6 = vld [vmem:[#allocation38_spill] sm:$0xff] }
  0xe5   : > { %1047 = vmatpush.msrb.mxu1 %v3787_v7  ;;  %1089 = vmatpush.msrb.mxu3 %v3779_v5  ;;  %v7233_v5 = vld [vmem:[#allocation37_spill] sm:$0xff]  ;;  %v7235_v7 = vld [vmem:[#allocation47_spill] sm:$0xff] }
  0xe6   : > { %1028 = vmatpush.msrb.mxu0 %v3800_v10  ;;  %1070 = vmatpush.msrb.mxu2 %v3792_v8  ;;  %v7236_v8 = vld [vmem:[#allocation48_spill] sm:$0xff]  ;;  %v7237_v10 = vld [vmem:[#allocation41_spill] sm:$0xff] }
  0xe7   : > { %1048 = vmatpush.msrb.mxu1 %v3803_v11  ;;  %1090 = vmatpush.msrb.mxu3 %v7194_v26  ;;  %v7238_v11 = vld [vmem:[#allocation42_spill] sm:$0xff]  ;;  %v7241_v26 = vld [vmem:[#allocation45_spill] sm:$0xff] }
  0xe8   : > { %1029 = vmatpush.msrb.mxu0 %v3816_v14  ;;  %1071 = vmatpush.msrb.mxu2 %v7197_v29  ;;  %v7239_v14 = vld [vmem:[#allocation49_spill] sm:$0xff]  ;;  %v7244_v29 = vld [vmem:[#allocation52_spill] sm:$0xff] }
  0xe9   : > { %1049 = vmatpush.msrb.mxu1 %v3819_v15  ;;  %1091 = vmatpush.msrb.mxu3 %v7198_v30  ;;  %v7240_v15 = vld [vmem:[#allocation50_spill] sm:$0xff]  ;;  %v627_v30 = vpop.f32.mrf.mxu2 }
  0xea   : > { %1030 = vmatpush.msrb.mxu0 %v7195_v27  ;;  %1072 = vmatpush.msrb.mxu2 %v7201_v33  ;;  %v7242_v27 = vld [vmem:[#allocation46_spill] sm:$0xff]  ;;  %v607_v33 = vpop.f32.mrf.mxu1 }
  0xeb   : > { %1050 = vmatpush.msrb.mxu1 %v7196_v28  ;;  %1092 = vmatpush.msrb.mxu3 %v7202_v34  ;;  %v7243_v28 = vld [vmem:[#allocation51_spill] sm:$0xff] }
  0xec   : > { %1031 = vmatpush.msrb.mxu0 %v7199_v31  ;;  %1073 = vmatpush.msrb.mxu2 %v7205_v37  ;;  %v647_v31 = vpop.f32.mrf.mxu3 }
  0xed   : > { %1051 = vmatpush.msrb.mxu1 %v7200_v32  ;;  %1093 = vmatpush.msrb.mxu3 %v7206_v38  ;;  %v587_v32 = vpop.f32.mrf.mxu0  ;;  %v2894_v38 = vld [vmem:[%s4627_s26 + $0x1] ss:$4 sm:$0x3] }
  0xee   : > { %1032 = vmatpush.msrb.mxu0 %v7203_v35  ;;  %1074 = vmatpush.msrb.mxu2 %v7209_v41  ;;  %v608_v34 = vadd.f32 %v607_v33, %v587_v32  ;;  %v648_v35 = vadd.f32 %v647_v31, %v627_v30 }
  0xef   : > { %1052 = vmatpush.msrb.mxu1 %v7204_v36  ;;  %1094 = vmatpush.msrb.mxu3 %v7210_v42  ;;  %v568_v36 = vadd.f32 %v567_v60, %v547_v59  ;;  %v211_v42 = vld [vmem:[%s4627_s26] ss:$4 sm:$0x3] }
  0xf0   : > { %1033 = vmatpush.msrb.mxu0 %v7207_v39  ;;  %1075 = vmatpush.msrb.mxu2 %v7213_v45  ;;  %v819_v37 = vrot.slane %v608_v34, 4  ;;  %v820_v39 = vrot.slane %v648_v35, 2  ;;  %v4640_v45 = vperm.slane %v211_v42, 1 }
  0xf1   : > { %1053 = vmatpush.msrb.mxu1 %v7208_v40  ;;  %1095 = vmatpush.msrb.mxu3 %v7214_v46  ;;  %v528_v40 = vadd.f32 %v527_v0, %v507_v63  ;;  %v818_v41 = vrot.slane %v568_v36, 6 }
  0xf2   : > { %1034 = vmatpush.msrb.mxu0 %v7211_v43  ;;  %1076 = vmatpush.msrb.mxu2 %v7217_v49  ;;  %v4632_v43 = vperm.slane %v2894_v38, 1  ;;  %7246 = vst [vmem:[#allocation7_spill] sm:$0xff] %v4640_v45 }
  0xf3   : > { %1054 = vmatpush.msrb.mxu1 %v7212_v44  ;;  %1096 = vmatpush.msrb.mxu3 %v7218_v50  ;;  %v827_v44 = vsel %vm826_vm0, %v819_v37, %v820_v39  ;;  %v825_v46 = vsel %vm824_vm1, %v528_v40, %v818_v41  ;;  %v489_v40 = vld [vmem:[%s4637_s30 + $0x8] sm:$0xff] }
  0xf4   : > { %1035 = vmatpush.msrb.mxu0 %v7215_v47  ;;  %1077 = vmatpush.msrb.mxu2 %v7221_v53  ;;  %7245 = vst [vmem:[#allocation2_spill] sm:$0xff] %v4632_v43  ;;  %v4643_v47 = vperm.slane %v2894_v38, 0  ;;  %v829_v49 = vsel %vm828_vm2, %v825_v46, %v827_v44  ;;  %v865_v50 = vmul.f32 0.0, %v4632_v43 }
  0xf5   : > { %1055 = vmatpush.msrb.mxu1 %v7216_v48  ;;  %1097 = vmatpush.msrb.mxu3 %v7222_v54  ;;  %v488_v48 = vld [vmem:[%s4637_s30] sm:$0xff] }
  0xf6   : > { %1036 = vmatpush.msrb.mxu0 %v7219_v51  ;;  %1078 = vmatpush.msrb.mxu2 %v7225_v57  ;;  %7247 = vst [vmem:[#allocation8_spill] sm:$0xff] %v4643_v47  ;;  %v4648_v51 = vperm.slane %v211_v42, 0  ;;  %v835_v53 = vadd.f32 %v829_v49, %v488_v48  ;;  %v864_v54 = vmul.f32 0.0, %v4643_v47 }
  0xf7   : > { %1056 = vmatpush.msrb.mxu1 %v7220_v52  ;;  %1098 = vmatpush.msrb.mxu3 %v7226_v58  ;;  %v838_v52 = vmul.f32 0.0, %v4640_v45 }
  0xf8   : > { %1037 = vmatpush.msrb.mxu0 %v7223_v55  ;;  %1079 = vmatpush.msrb.mxu2 %v7229_v1  ;;  %7248 = vst [vmem:[#allocation3_spill] sm:$0xff] %v4648_v51  ;;  %v871_v55 = vrot.slane %v865_v50, 6  ;;  %v867_v58 = vrot.slane %v835_v53, 4 }
  0xf9   : > { %1057 = vmatpush.msrb.mxu1 %v7224_v56  ;;  %1099 = vmatpush.msrb.mxu3 %v7230_v2  ;;  %v837_v56 = vmul.f32 0.0, %v4648_v51  ;;  %v841_v57 = vrot.slane %v838_v52, 6 }
  0xfa   : > { %1038 = vmatpush.msrb.mxu0 %v7227_v61  ;;  %1080 = vmatpush.msrb.mxu2 %v7233_v5  ;;  %v872_v59 = vsel %vm824_vm1, %v864_v54, %v871_v55 }
  0xfb   : > { %1058 = vmatpush.msrb.mxu1 %v7228_v62  ;;  %1100 = vmatpush.msrb.mxu3 %v7234_v6  ;;  %v842_v60 = vsel %vm824_vm1, %v837_v56, %v841_v57  ;;  %v874_v61 = vadd.f32 %v872_v59, %v867_v58 }
  0xfc   : > { %1039 = vmatpush.msrb.mxu0 %v7231_v3  ;;  %1081 = vmatpush.msrb.mxu2 %v7237_v10  ;;  %v844_v62 = vadd.f32 %v842_v60, %v835_v53 }
  0xfd   : > { %1059 = vmatpush.msrb.mxu1 %v7232_v4  ;;  %1101 = vmatpush.msrb.mxu3 %v7238_v11  ;;  %v2897_v63 = vmul.f32 -1.442695, %v874_v61 }
  0xfe   : > { %1040 = vmatpush.msrb.mxu0 %v7235_v7  ;;  %1082 = vmatpush.msrb.mxu2 %v7241_v26  ;;  %v2896_v0 = vmul.f32 -1.442695, %v844_v62  ;;  %v667_v5 = vpop.f32.mrf.mxu0 }
  0xff   : > { %1060 = vmatpush.msrb.mxu1 %v7236_v8  ;;  %1102 = vmatpush.msrb.mxu3 %v7242_v27  ;;  %2943 = vpow2.f32 %v2897_v63  ;;  %v687_v6 = vpop.f32.mrf.mxu1 }
 0x100   : > { %1041 = vmatpush.msrb.mxu0 %v7239_v14  ;;  %2945 = vpow2.f32 %v2896_v0  ;;  %v688_v35 = vadd.f32 %v687_v6, %v667_v5 }
 0x101   : > { %1061 = vmatpush.msrb.mxu1 %v7240_v15 }
 0x102   : > { %1042 = vmatpush.msrb.mxu0 %v7243_v28  ;;  %v707_v8 = vpop.f32.mrf.mxu2 }
 0x103   : > { %1062 = vmatpush.msrb.mxu1 %v7244_v29  ;;  %v727_v10 = vpop.f32.mrf.mxu3 }
 0x104   : > { %v728_v26 = vadd.f32 %v727_v10, %v707_v8 }
 0x105   : > { %v2944_v1 = vpop.eup %2943 }
 0x106   : > { %v2946_v2 = vpop.eup %2945  ;;  %v878_v3 = vadd.f32 1.0, %v2944_v1  ;;  %v821_v34 = vrot.slane %v728_v26, 6 }
 0x107   : > { %v848_v4 = vadd.f32 1.0, %v2946_v2  ;;  %v2895_v2 = vld [vmem:[%s4627_s26 + $0x2] ss:$4 sm:$0x3] }
 0x108   : > { %2947 = vrcp.f32 %v878_v3  ;;  %v830_v42 = vsel %vm824_vm1, %v688_v35, %v821_v34  ;;  %v890_v50 = vand.u32 2147483648, %v878_v3  ;;  %vm884_vm5 = vweird.f32 %v878_v3 }
 0x109   : > { %2949 = vrcp.f32 %v848_v4  ;;  %v888_v53 = vand.u32 2147483647, %v878_v3  ;;  %v860_v54 = vand.u32 2147483648, %v848_v4  ;;  %vm854_vm7 = vweird.f32 %v848_v4 }
 0x10a   : > { %v858_v55 = vand.u32 2147483647, %v848_v4  ;;  %v891_v57 = vor.u32 1.1754944e-38, %v890_v50  ;;  %v4698_v50 = vld [vmem:[%s3583_s18 + $0x3a0] sm:$0xff] }
 0x10b   : > { %vm889_vm9 = vcmp.eq.f32.partialorder %v888_v53, 8.507059e+37  ;;  %v861_v59 = vor.u32 1.1754944e-38, %v860_v54  ;;  %v4706_v53 = vld [vmem:[%s3583_s18 + $0x3a8] sm:$0xff] }
 0x10c   : > { %vm859_vm10 = vcmp.eq.f32.partialorder %v858_v55, 8.507059e+37  ;;  %v4710_v54 = vld [vmem:[%s3583_s18 + $0x7a8] sm:$0xff]  ;;  %v4714_v55 = vld [vmem:[%s3583_s18 + $0x360] sm:$0xff] }
 0x10e   : > { %v2948_v7 = vpop.eup %2947 }
 0x10f   : > { %v2950_v11 = vpop.eup %2949  ;;  %v880_v14 = vmul.f32 %v2948_v7, %v878_v3  ;;  %vm885_vm3 = vweird.f32 %v2948_v7  ;;  %v4663_v3 = vperm.slane %v2895_v2, 1 }
 0x110   : > { %v850_v15 = vmul.f32 %v2950_v11, %v848_v4  ;;  %vm855_vm4 = vweird.f32 %v2950_v11  ;;  %vm886_vm6 = vmor %vm884_vm5, %vm885_vm3  ;;  %v4665_v4 = vperm.slane %v2895_v2, 0  ;;  %v4755_v2 = vld [vmem:[%s3583_s18 + $0x2e0] sm:$0xff] }
 0x111   : > { %v881_v27 = vsub.f32 1.0, %v880_v14  ;;  %vm856_vm8 = vmor %vm854_vm7, %vm855_vm4 }
 0x112   : > { %v851_v30 = vsub.f32 1.0, %v850_v15 }
 0x113   : > { %v882_v37 = vmul.f32 %v2948_v7, %v881_v27 }
 0x114   : > { %v852_v41 = vmul.f32 %v2950_v11, %v851_v30 }
 0x115   : > { %v883_v48 = vadd.f32 %v2948_v7, %v882_v37 }
 0x116   : > { %v853_v52 = vadd.f32 %v2950_v11, %v852_v41 }
 0x117   : > { %v887_v56 = vsel %vm886_vm6, %v2948_v7, %v883_v48  ;;  %v4690_v48 = vld [vmem:[%s3583_s18 + $0x3e8] sm:$0xff] }
 0x118   : > { %v857_v58 = vsel %vm856_vm8, %v2950_v11, %v853_v52  ;;  %v892_v60 = vsel %vm889_vm9, %v891_v57, %v887_v56  ;;  %v4702_v52 = vld [vmem:[%s3583_s18 + $0x7a0] sm:$0xff] }
 0x119   : > { %v862_v62 = vsel %vm859_vm10, %v861_v59, %v857_v58  ;;  %v894_v63 = vmul.f32 0.0, %v892_v60  ;;  %v4718_v56 = vld [vmem:[%s3583_s18 + $0x760] sm:$0xff]  ;;  %v4726_v59 = vld [vmem:[%s3583_s18 + $0x368] sm:$0xff] }
 0x11a   : > { %v4730_v60 = vld [vmem:[%s3583_s18 + $0x768] sm:$0xff] }
 0x133   : > { %v787_v32 = vpop.f32.mrf.mxu2 }
 0x134   : > { %v747_v28 = vpop.f32.mrf.mxu0  ;;  %v807_v33 = vpop.f32.mrf.mxu3 }
 0x135   : > { %v767_v29 = vpop.f32.mrf.mxu1  ;;  %v808_v36 = vadd.f32 %v807_v33, %v787_v32 }
 0x136   : > { %v768_v31 = vadd.f32 %v767_v29, %v747_v28 }
 0x137   : > { %v823_v39 = vrot.slane %v808_v36, 2 }
 0x138   : > { %v822_v38 = vrot.slane %v768_v31, 4 }
 0x13a   : > { %v831_v44 = vsel %vm826_vm0, %v822_v38, %v823_v39 }
 0x13b   : > { %v832_v46 = vsel %vm828_vm2, %v830_v42, %v831_v44  ;;  %v4682_v44 = vld [vmem:[%s3583_s18 + $0x3e0] sm:$0xff] }
 0x13c   : > { %v836_v49 = vadd.f32 %v832_v46, %v489_v40  ;;  %v4686_v46 = vld [vmem:[%s3583_s18 + $0x7e0] sm:$0xff] }
 0x13e   : > { %2951 = vtanh.f32 %v836_v49  ;;  %v907_v11 = vrot.slane %v836_v49, 4  ;;  %v4694_v49 = vld [vmem:[%s3583_s18 + $0x7e8] sm:$0xff] }
 0x144   : > { %v2952_v61 = vpop.eup %2951 }
 0x145   : > { %v896_v0 = vmul.f32 %v2952_v61, %v862_v62  ;;  %v4735_v61 = vld [vmem:[%s3583_s18 + $0x320] sm:$0xff] }
 0x146   : > { %v4739_v62 = vld [vmem:[%s3583_s18 + $0x720] sm:$0xff] }
 0x147   : > { %v4659_v1 = vadd.f32 %v896_v0, %v894_v63  ;;  %v4743_v63 = vld [vmem:[%s3583_s18 + $0x328] sm:$0xff] }
 0x148   : > { %v4747_v0 = vld [vmem:[%s3583_s18 + $0x728] sm:$0xff] }
 0x149   : > { %899 = vst [vmem:[#allocation1] ss:$4 sm:$0xff] %v4659_v1 }
 0x150   : > { %v900_v5 = vld.sshfl [vmem:[#allocation1] sm:$0xff pattern:$0x73625140]  ;;  %v901_v6 = vld.sshfl [vmem:[#allocation1 + $0x8] sm:$0xff pattern:$0x73625140] }
 0x151   : > { %v905_v7 = vmul.f32 %v901_v6, %v4663_v3  ;;  %v904_v8 = vmul.f32 %v900_v5, %v4665_v4  ;;  %v4759_v5 = vld [vmem:[%s3583_s18 + $0x6e0] sm:$0xff]  ;;  %v4763_v6 = vld [vmem:[%s3583_s18 + $0x2e8] sm:$0xff] }
 0x153   : > { %v911_v10 = vrot.slane %v905_v7, 6  ;;  %v4767_v7 = vld [vmem:[%s3583_s18 + $0x6e8] sm:$0xff] }
 0x155   : > { %v912_v14 = vsel %vm824_vm1, %v904_v8, %v911_v10  ;;  %v4771_v8 = vld [vmem:[%s3583_s18 + $0x2a0] sm:$0xff] }
 0x156   : > { %v914_v15 = vadd.f32 %v912_v14, %v907_v11  ;;  %v4775_v10 = vld [vmem:[%s3583_s18 + $0x6a0] sm:$0xff]  ;;  %v4779_v11 = vld [vmem:[%s3583_s18 + $0x2a8] sm:$0xff] }
 0x157   : > { %v4783_v14 = vld [vmem:[%s3583_s18 + $0x6a8] sm:$0xff] }
 0x158   : > { %v2898_v26 = vmul.f32 -1.442695, %v914_v15  ;;  %v4787_v15 = vld [vmem:[%s3583_s18 + $0x260] sm:$0xff] }
 0x15a   : > { %2953 = vpow2.f32 %v2898_v26  ;;  %v4791_v26 = vld [vmem:[%s3583_s18 + $0x660] sm:$0xff] }
 0x160   : > { %v2954_v27 = vpop.eup %2953 }
 0x161   : > { %v918_v28 = vadd.f32 1.0, %v2954_v27  ;;  %v4795_v27 = vld [vmem:[%s3583_s18 + $0x268] sm:$0xff] }
 0x163   : > { %2955 = vrcp.f32 %v918_v28  ;;  %v930_v32 = vand.u32 2147483648, %v918_v28  ;;  %v928_v34 = vand.u32 2147483647, %v918_v28  ;;  %vm924_vm12 = vweird.f32 %v918_v28 }
 0x164   : > { %2957 = vtanh.f32 %v4659_v1 }
 0x165   : > { %v931_v36 = vor.u32 1.1754944e-38, %v930_v32  ;;  %vm929_vm14 = vcmp.eq.f32.partialorder %v928_v34, 8.507059e+37  ;;  %v4815_v32 = vld [vmem:[%s3583_s18 + $0x628] sm:$0xff]  ;;  %v4823_v34 = vld [vmem:[%s3583_s18 + $0x5e0] sm:$0xff] }
 0x166   : > { %7249 = vst [vmem:[#allocation4_spill] sm:$0xff] %v4815_v32 }
 0x167   : > { %7251 = vst [vmem:[#allocation12_spill] sm:$0xff] %v4823_v34 }
 0x169   : > { %v2956_v29 = vpop.eup %2955 }
 0x16a   : > { %v920_v30 = vmul.f32 %v2956_v29, %v918_v28  ;;  %vm925_vm11 = vweird.f32 %v2956_v29  ;;  %v2958_v38 = vpop.eup %2957  ;;  %v4799_v28 = vld [vmem:[%s3583_s18 + $0x668] sm:$0xff] }
 0x16b   : > { %vm926_vm13 = vmor %vm924_vm12, %vm925_vm11 }
 0x16c   : > { %v921_v31 = vsub.f32 1.0, %v920_v30  ;;  %v4807_v30 = vld [vmem:[%s3583_s18 + $0x620] sm:$0xff] }
 0x16e   : > { %v922_v33 = vmul.f32 %v2956_v29, %v921_v31  ;;  %v4811_v31 = vld [vmem:[%s3583_s18 + $0x228] sm:$0xff] }
 0x170   : > { %v923_v35 = vadd.f32 %v2956_v29, %v922_v33  ;;  %v4819_v33 = vld [vmem:[%s3583_s18 + $0x1e0] sm:$0xff] }
 0x171   : > { %7250 = vst [vmem:[#allocation11_spill] sm:$0xff] %v4819_v33 }
 0x172   : > { %v927_v37 = vsel %vm926_vm13, %v2956_v29, %v923_v35  ;;  %v4803_v29 = vld [vmem:[%s3583_s18 + $0x220] sm:$0xff]  ;;  %v4827_v35 = vld [vmem:[%s3583_s18 + $0x1e8] sm:$0xff] }
 0x173   : > { %v932_v39 = vsel %vm929_vm14, %v931_v36, %v927_v37  ;;  %7252 = vst [vmem:[#allocation5_spill] sm:$0xff] %v4827_v35  ;;  %v4831_v36 = vld [vmem:[%s3583_s18 + $0x5e8] sm:$0xff] }
 0x174   : > { %v935_v40 = vmul.f32 %v2958_v38, %v932_v39  ;;  %7253 = vst [vmem:[#allocation6_spill] sm:$0xff] %v4831_v36  ;;  %v4837_v37 = vld [vmem:[%s3583_s18 + $0x1a8] sm:$0xff]  ;;  %v7256_v39 = vld [vmem:[#allocation53_spill] sm:$0xff] }
 0x175   : > { %7254 = vst [vmem:[#allocation15_spill] sm:$0xff] %v4837_v37  ;;  %v4841_v38 = vld [vmem:[%s3583_s18 + $0x5a8] sm:$0xff] }
 0x176   : > { %2899 = vst [vmem:[%s4437_s22 + $0x4] sm:$0xf] %v935_v40 }
 0x177   : > { %942 = vst [vmem:[#allocation1] ss:$4 sm:$0xff] %v935_v40  ;;  %v7257_v40 = vld [vmem:[#allocation54_spill] sm:$0xff] }
 0x178   : > { %7255 = vst [vmem:[#allocation16_spill] sm:$0xff] %v4841_v38 }
 0x17e   : > { %v4672_v41 = vld.sshfl [vmem:[#allocation1] sm:$0xff pattern:$0x73625140]  ;;  %v4674_v42 = vld.sshfl [vmem:[#allocation1 + $0x8] sm:$0xff pattern:$0x73625140] }
 0x17f   : > { %1291 = vst [vmem:[#allocation1] ss:$4 sm:$0xff] %v4659_v1  ;;  %963 = vmatmul.f32.vlgmr.msra.gmra.mxu0 %v4672_v41  ;;  %983 = vmatmul.f32.vlgmr.msra.gmra.mxu1 %v4674_v42 }
 0x180   : > { %1003 = vmatmul.f32.vlgmr.msra.gmra.mxu2 %v4672_v41  ;;  %1023 = vmatmul.f32.vlgmr.msra.gmra.mxu3 %v4674_v42 }
 0x181   : > { %1107 = vmatpush.msra.mxu0 %v4682_v44  ;;  %1127 = vmatpush.msra.mxu1 %v4686_v46 }
 0x182   : > { %1147 = vmatpush.msra.mxu2 %v4690_v48  ;;  %1167 = vmatpush.msra.mxu3 %v4694_v49 }
 0x183   : > { %1108 = vmatpush.msra.mxu0 %v4698_v50  ;;  %1128 = vmatpush.msra.mxu1 %v4702_v52 }
 0x184   : > { %1148 = vmatpush.msra.mxu2 %v4706_v53  ;;  %1168 = vmatpush.msra.mxu3 %v4710_v54 }
 0x185   : > { %1109 = vmatpush.msra.mxu0 %v4714_v55  ;;  %1129 = vmatpush.msra.mxu1 %v4718_v56 }
 0x186   : > { %v4721_v57 = vld.sshfl [vmem:[#allocation1] sm:$0xff pattern:$0x73625140]  ;;  %v4723_v58 = vld.sshfl [vmem:[#allocation1 + $0x8] sm:$0xff pattern:$0x73625140]  ;;  %1149 = vmatpush.msra.mxu2 %v4726_v59  ;;  %1169 = vmatpush.msra.mxu3 %v4730_v60 }
 0x187   : > { %1323 = vst [vmem:[#allocation1] ss:$4 sm:$0xff] %v4659_v1  ;;  %1110 = vmatpush.msra.mxu0 %v4735_v61  ;;  %1130 = vmatpush.msra.mxu1 %v4739_v62 }
 0x188   : > { %1150 = vmatpush.msra.mxu2 %v4743_v63  ;;  %1170 = vmatpush.msra.mxu3 %v4747_v0 }
 0x189   : > { %1043 = vmatmul.f32.vlgmr.msrb.gmra.mxu0 %v4672_v41  ;;  %1063 = vmatmul.f32.vlgmr.msrb.gmra.mxu1 %v4674_v42 }
 0x18a   : > { %1083 = vmatmul.f32.vlgmr.msrb.gmra.mxu2 %v4672_v41  ;;  %1103 = vmatmul.f32.vlgmr.msrb.gmra.mxu3 %v4674_v42 }
 0x18b   : > { %1111 = vmatpush.msra.mxu0 %v4755_v2  ;;  %1131 = vmatpush.msra.mxu1 %v4759_v5 }
 0x18c   : > { %1151 = vmatpush.msra.mxu2 %v4763_v6  ;;  %1171 = vmatpush.msra.mxu3 %v4767_v7 }
 0x18d   : > { %1112 = vmatpush.msra.mxu0 %v4771_v8  ;;  %1132 = vmatpush.msra.mxu1 %v4775_v10 }
 0x18e   : > { %1152 = vmatpush.msra.mxu2 %v4779_v11  ;;  %1172 = vmatpush.msra.mxu3 %v4783_v14 }
 0x18f   : > { %1113 = vmatpush.msra.mxu0 %v4787_v15  ;;  %1133 = vmatpush.msra.mxu1 %v4791_v26 }
 0x190   : > { %1153 = vmatpush.msra.mxu2 %v4795_v27  ;;  %1173 = vmatpush.msra.mxu3 %v4799_v28 }
 0x191   : > { %1114 = vmatpush.msra.mxu0 %v4803_v29  ;;  %1134 = vmatpush.msra.mxu1 %v4807_v30 }
 0x192   : > { %1154 = vmatpush.msra.mxu2 %v4811_v31  ;;  %1174 = vmatpush.msra.mxu3 %v4815_v32  ;;  %v7290_v32 = vld [vmem:[#allocation71_spill] sm:$0xff] }
 0x193   : > { %1115 = vmatpush.msra.mxu0 %v4819_v33  ;;  %1135 = vmatpush.msra.mxu1 %v4823_v34  ;;  %v7275_v34 = vld [vmem:[#allocation58_spill] sm:$0xff] }
 0x194   : > { %1155 = vmatpush.msra.mxu2 %v4827_v35  ;;  %1175 = vmatpush.msra.mxu3 %v4831_v36  ;;  %v4847_v36 = vld [vmem:[%s3583_s18 + $0x168] sm:$0xff] }
 0x195   : > { %1116 = vmatpush.msra.mxu0 %v4070_v17  ;;  %1136 = vmatpush.msra.mxu1 %v4073_v22  ;;  %7258 = vst [vmem:[#allocation9_spill] sm:$0xff] %v4847_v36  ;;  %v4851_v17 = vld [vmem:[%s3583_s18 + $0x568] sm:$0xff]  ;;  %v7260_v22 = vld [vmem:[#allocation55_spill] sm:$0xff] }
 0x196   : > { %1156 = vmatpush.msra.mxu2 %v4837_v37  ;;  %1176 = vmatpush.msra.mxu3 %v4841_v38  ;;  %7259 = vst [vmem:[#allocation10_spill] sm:$0xff] %v4851_v17  ;;  %v7261_v37 = vld [vmem:[#allocation56_spill] sm:$0xff]  ;;  %v4857_v38 = vld [vmem:[%s3583_s18 + $0x128] sm:$0xff] }
 0x197   : > { %1117 = vmatpush.msra.mxu0 %v7256_v39  ;;  %1137 = vmatpush.msra.mxu1 %v7257_v40  ;;  %7262 = vst [vmem:[#allocation19_spill] sm:$0xff] %v4857_v38  ;;  %v4861_v39 = vld [vmem:[%s3583_s18 + $0x528] sm:$0xff]  ;;  %v7264_v40 = vld [vmem:[#allocation59_spill] sm:$0xff] }
 0x198   : > { %1157 = vmatpush.msra.mxu2 %v4847_v36  ;;  %1177 = vmatpush.msra.mxu3 %v4851_v17  ;;  %7263 = vst [vmem:[#allocation20_spill] sm:$0xff] %v4861_v39  ;;  %v7265_v36 = vld [vmem:[#allocation60_spill] sm:$0xff]  ;;  %v4867_v35 = vld [vmem:[%s3583_s18 + $0xe8] sm:$0xff] }
 0x199   : > { %1118 = vmatpush.msra.mxu0 %v7260_v22  ;;  %1138 = vmatpush.msra.mxu1 %v7261_v37  ;;  %7266 = vst [vmem:[#allocation13_spill] sm:$0xff] %v4867_v35  ;;  %v4871_v22 = vld [vmem:[%s3583_s18 + $0x4e8] sm:$0xff]  ;;  %v7268_v37 = vld [vmem:[#allocation65_spill] sm:$0xff] }
 0x19a   : > { %1158 = vmatpush.msra.mxu2 %v4857_v38  ;;  %1178 = vmatpush.msra.mxu3 %v4861_v39  ;;  %7267 = vst [vmem:[#allocation14_spill] sm:$0xff] %v4871_v22  ;;  %v7269_v17 = vld [vmem:[#allocation66_spill] sm:$0xff] }
 0x19b   : > { %1119 = vmatpush.msra.mxu0 %v7264_v40  ;;  %1139 = vmatpush.msra.mxu1 %v7265_v36  ;;  %v4877_v38 = vld [vmem:[%s3583_s18 + $0xa8] sm:$0xff]  ;;  %v7272_v36 = vld [vmem:[#allocation69_spill] sm:$0xff] }
 0x19c   : > { %1159 = vmatpush.msra.mxu2 %v4867_v35  ;;  %1179 = vmatpush.msra.mxu3 %v4871_v22  ;;  %7270 = vst [vmem:[#allocation23_spill] sm:$0xff] %v4877_v38  ;;  %v4881_v39 = vld [vmem:[%s3583_s18 + $0x4a8] sm:$0xff]  ;;  %v7274_v35 = vld [vmem:[#allocation57_spill] sm:$0xff] }
 0x19d   : > { %1120 = vmatpush.msra.mxu0 %v7268_v37  ;;  %1140 = vmatpush.msra.mxu1 %v7269_v17  ;;  %7271 = vst [vmem:[#allocation24_spill] sm:$0xff] %v4881_v39  ;;  %v7273_v40 = vld [vmem:[#allocation70_spill] sm:$0xff]  ;;  %v7276_v22 = vld [vmem:[#allocation73_spill] sm:$0xff] }
 0x19e   : > { %1160 = vmatpush.msra.mxu2 %v4877_v38  ;;  %1180 = vmatpush.msra.mxu3 %v4881_v39  ;;  %v7277_v37 = vld [vmem:[#allocation74_spill] sm:$0xff]  ;;  %v7278_v17 = vld [vmem:[#allocation61_spill] sm:$0xff]  ;;  %v7288_v39 = vld [vmem:[#allocation83_spill] sm:$0xff] }
 0x19f   : > { %1121 = vmatpush.msra.mxu0 %v7272_v36  ;;  %1141 = vmatpush.msra.mxu1 %v7273_v40  ;;  %v7279_v33 = vld [vmem:[#allocation62_spill] sm:$0xff]  ;;  %v7280_v36 = vld [vmem:[#allocation75_spill] sm:$0xff]  ;;  %v7289_v38 = vld [vmem:[#allocation84_spill] sm:$0xff] }
 0x1a0   : > { %1161 = vmatpush.msra.mxu2 %v7274_v35  ;;  %1181 = vmatpush.msra.mxu3 %v7275_v34  ;;  %v7281_v35 = vld [vmem:[#allocation76_spill] sm:$0xff]  ;;  %v7282_v34 = vld [vmem:[#allocation63_spill] sm:$0xff] }
 0x1a1   : > { %1122 = vmatpush.msra.mxu0 %v7276_v22  ;;  %1142 = vmatpush.msra.mxu1 %v7277_v37  ;;  %v7283_v22 = vld [vmem:[#allocation64_spill] sm:$0xff]  ;;  %v7284_v40 = vld [vmem:[#allocation79_spill] sm:$0xff] }
 0x1a2   : > { %1162 = vmatpush.msra.mxu2 %v7278_v17  ;;  %1182 = vmatpush.msra.mxu3 %v7279_v33  ;;  %v7285_v37 = vld [vmem:[#allocation80_spill] sm:$0xff]  ;;  %v7286_v33 = vld [vmem:[#allocation67_spill] sm:$0xff] }
 0x1a3   : > { %1123 = vmatmul.f32.vlgmr.msra.gmra.mxu0 %v4672_v41  ;;  %1143 = vmatmul.f32.vlgmr.msra.gmra.mxu1 %v4674_v42  ;;  %v7287_v17 = vld [vmem:[#allocation68_spill] sm:$0xff] }
 0x1a4   : > { %1163 = vmatmul.f32.vlgmr.msra.gmra.mxu2 %v4672_v41  ;;  %1183 = vmatmul.f32.vlgmr.msra.gmra.mxu3 %v4674_v42 }
 0x1a5   : > { %1187 = vmatpush.msrb.mxu0 %v7280_v36  ;;  %1207 = vmatpush.msrb.mxu1 %v7281_v35  ;;  %v7291_v36 = vld [vmem:[#allocation72_spill] sm:$0xff]  ;;  %v7292_v35 = vld [vmem:[#allocation87_spill] sm:$0xff] }
 0x1a6   : > { %1227 = vmatpush.msrb.mxu2 %v7282_v34  ;;  %1247 = vmatpush.msrb.mxu3 %v7283_v22  ;;  %v7293_v34 = vld [vmem:[#allocation88_spill] sm:$0xff]  ;;  %v7294_v22 = vld [vmem:[#allocation77_spill] sm:$0xff] }
 0x1a7   : > { %1188 = vmatpush.msrb.mxu0 %v7284_v40  ;;  %1208 = vmatpush.msrb.mxu1 %v7285_v37  ;;  %v7295_v40 = vld [vmem:[#allocation78_spill] sm:$0xff]  ;;  %v7296_v37 = vld [vmem:[#allocation91_spill] sm:$0xff] }
 0x1a8   : > { %1228 = vmatpush.msrb.mxu2 %v7286_v33  ;;  %1248 = vmatpush.msrb.mxu3 %v7287_v17  ;;  %v7297_v33 = vld [vmem:[#allocation92_spill] sm:$0xff]  ;;  %v7298_v17 = vld [vmem:[#allocation81_spill] sm:$0xff] }
 0x1a9   : > { %1189 = vmatpush.msrb.mxu0 %v7288_v39  ;;  %1209 = vmatpush.msrb.mxu1 %v7289_v38  ;;  %v7299_v39 = vld [vmem:[#allocation82_spill] sm:$0xff]  ;;  %v7300_v38 = vld [vmem:[#allocation95_spill] sm:$0xff] }
 0x1aa   : > { %1229 = vmatpush.msrb.mxu2 %v7290_v32  ;;  %1249 = vmatpush.msrb.mxu3 %v7291_v36  ;;  %v7301_v32 = vld [vmem:[#allocation96_spill] sm:$0xff]  ;;  %v7302_v36 = vld [vmem:[#allocation85_spill] sm:$0xff] }
 0x1ab   : > { %1190 = vmatpush.msrb.mxu0 %v7292_v35  ;;  %1210 = vmatpush.msrb.mxu1 %v7293_v34  ;;  %v7303_v35 = vld [vmem:[#allocation86_spill] sm:$0xff]  ;;  %v7304_v34 = vld [vmem:[#allocation99_spill] sm:$0xff] }
 0x1ac   : > { %1230 = vmatpush.msrb.mxu2 %v7294_v22  ;;  %1250 = vmatpush.msrb.mxu3 %v7295_v40  ;;  %v7305_v22 = vld [vmem:[#allocation100_spill] sm:$0xff]  ;;  %v7306_v40 = vld [vmem:[#allocation89_spill] sm:$0xff] }
 0x1ad   : > { %1191 = vmatpush.msrb.mxu0 %v7296_v37  ;;  %1211 = vmatpush.msrb.mxu1 %v7297_v33  ;;  %v7307_v37 = vld [vmem:[#allocation90_spill] sm:$0xff]  ;;  %v7308_v33 = vld [vmem:[#allocation103_spill] sm:$0xff] }
 0x1ae   : > { %1231 = vmatpush.msrb.mxu2 %v7298_v17  ;;  %1251 = vmatpush.msrb.mxu3 %v7299_v39  ;;  %v7309_v17 = vld [vmem:[#allocation104_spill] sm:$0xff]  ;;  %v7310_v39 = vld [vmem:[#allocation93_spill] sm:$0xff] }
 0x1af   : > { %1192 = vmatpush.msrb.mxu0 %v7300_v38  ;;  %1212 = vmatpush.msrb.mxu1 %v7301_v32  ;;  %v7311_v38 = vld [vmem:[#allocation94_spill] sm:$0xff]  ;;  %v7312_v32 = vld [vmem:[#allocation107_spill] sm:$0xff] }
 0x1b0   : > { %1232 = vmatpush.msrb.mxu2 %v7302_v36  ;;  %1252 = vmatpush.msrb.mxu3 %v7303_v35  ;;  %v7313_v36 = vld [vmem:[#allocation108_spill] sm:$0xff]  ;;  %v7314_v35 = vld [vmem:[#allocation97_spill] sm:$0xff] }
 0x1b1   : > { %1193 = vmatpush.msrb.mxu0 %v7304_v34  ;;  %1213 = vmatpush.msrb.mxu1 %v7305_v22  ;;  %v7315_v34 = vld [vmem:[#allocation98_spill] sm:$0xff]  ;;  %v7316_v22 = vld [vmem:[#allocation111_spill] sm:$0xff] }
 0x1b2   : > { %1233 = vmatpush.msrb.mxu2 %v7306_v40  ;;  %1253 = vmatpush.msrb.mxu3 %v7307_v37  ;;  %v7317_v40 = vld [vmem:[#allocation112_spill] sm:$0xff]  ;;  %v7318_v37 = vld [vmem:[#allocation101_spill] sm:$0xff] }
 0x1b3   : > { %1194 = vmatpush.msrb.mxu0 %v7308_v33  ;;  %1214 = vmatpush.msrb.mxu1 %v7309_v17  ;;  %v7319_v33 = vld [vmem:[#allocation102_spill] sm:$0xff]  ;;  %v7320_v17 = vld [vmem:[#allocation115_spill] sm:$0xff] }
 0x1b4   : > { %1234 = vmatpush.msrb.mxu2 %v7310_v39  ;;  %1254 = vmatpush.msrb.mxu3 %v7311_v38  ;;  %v7321_v39 = vld [vmem:[#allocation105_spill] sm:$0xff]  ;;  %v7322_v38 = vld [vmem:[#allocation106_spill] sm:$0xff] }
 0x1b5   : > { %1195 = vmatpush.msrb.mxu0 %v7312_v32  ;;  %1215 = vmatpush.msrb.mxu1 %v7313_v36  ;;  %v7323_v32 = vld [vmem:[#allocation118_spill] sm:$0xff]  ;;  %v7324_v36 = vld [vmem:[#allocation109_spill] sm:$0xff] }
 0x1b6   : > { %1235 = vmatpush.msrb.mxu2 %v7314_v35  ;;  %1255 = vmatpush.msrb.mxu3 %v7315_v34  ;;  %v7325_v35 = vld [vmem:[#allocation110_spill] sm:$0xff]  ;;  %v7326_v34 = vld [vmem:[#allocation121_spill] sm:$0xff] }
 0x1b7   : > { %1196 = vmatpush.msrb.mxu0 %v7316_v22  ;;  %1216 = vmatpush.msrb.mxu1 %v7317_v40  ;;  %v7327_v22 = vld [vmem:[#allocation122_spill] sm:$0xff]  ;;  %v7328_v40 = vld [vmem:[#allocation113_spill] sm:$0xff] }
 0x1b8   : > { %1236 = vmatpush.msrb.mxu2 %v7318_v37  ;;  %1256 = vmatpush.msrb.mxu3 %v7319_v33  ;;  %v7330_v37 = vld [vmem:[#allocation125_spill] sm:$0xff]  ;;  %v7331_v33 = vld [vmem:[#allocation126_spill] sm:$0xff] }
 0x1b9   : > { %1197 = vmatpush.msrb.mxu0 %v4328_v19  ;;  %1217 = vmatpush.msrb.mxu1 %v7320_v17  ;;  %v7329_v19 = vld [vmem:[#allocation114_spill] sm:$0xff]  ;;  %v7332_v17 = vld [vmem:[#allocation116_spill] sm:$0xff] }
 0x1ba   : > { %1237 = vmatpush.msrb.mxu2 %v7321_v39  ;;  %1257 = vmatpush.msrb.mxu3 %v7322_v38  ;;  %v7334_v39 = vld [vmem:[#allocation119_spill] sm:$0xff]  ;;  %v7335_v38 = vld [vmem:[#allocation120_spill] sm:$0xff] }
 0x1bb   : > { %1198 = vmatpush.msrb.mxu0 %v4344_v12  ;;  %1218 = vmatpush.msrb.mxu1 %v7323_v32  ;;  %v7333_v12 = vld [vmem:[#allocation117_spill] sm:$0xff]  ;;  %v7336_v32 = vld [vmem:[#allocation127_spill] sm:$0xff] }
 0x1bc   : > { %1238 = vmatpush.msrb.mxu2 %v7324_v36  ;;  %1258 = vmatpush.msrb.mxu3 %v7325_v35  ;;  %v7337_v36 = vld [vmem:[#allocation123_spill] sm:$0xff]  ;;  %v7338_v35 = vld [vmem:[#allocation124_spill] sm:$0xff] }
 0x1bd   : > { %1199 = vmatpush.msrb.mxu0 %v7326_v34  ;;  %1219 = vmatpush.msrb.mxu1 %v7327_v22  ;;  %v7341_v34 = vld [vmem:[#allocation128_spill] sm:$0xff] }
 0x1be   : > { %1239 = vmatpush.msrb.mxu2 %v7328_v40  ;;  %1259 = vmatpush.msrb.mxu3 %v7329_v19  ;;  %v7343_v22 = vld [vmem:[#allocation136_spill] sm:$0xff]  ;;  %v7344_v40 = vld [vmem:[#allocation137_spill] sm:$0xff]  ;;  %v7345_v19 = vld [vmem:[#allocation130_spill] sm:$0xff] }
 0x1bf   : > { %1200 = vmatpush.msrb.mxu0 %v7330_v37  ;;  %1220 = vmatpush.msrb.mxu1 %v7331_v33  ;;  %v7346_v37 = vld [vmem:[#allocation131_spill] sm:$0xff]  ;;  %v7347_v33 = vld [vmem:[#allocation140_spill] sm:$0xff] }
 0x1c0   : > { %1240 = vmatpush.msrb.mxu2 %v7332_v17  ;;  %1260 = vmatpush.msrb.mxu3 %v7333_v12  ;;  %v7350_v17 = vld [vmem:[#allocation135_spill] sm:$0xff]  ;;  %v7351_v12 = vld [vmem:[#allocation144_spill] sm:$0xff] }
 0x1c1   : > { %1201 = vmatpush.msrb.mxu0 %v4390_v21  ;;  %1221 = vmatpush.msrb.mxu1 %v4393_v25  ;;  %v7339_v21 = vld [vmem:[#allocation132_spill] sm:$0xff]  ;;  %v7340_v25 = vld [vmem:[#allocation133_spill] sm:$0xff] }
 0x1c2   : > { %1241 = vmatpush.msrb.mxu2 %v7334_v39  ;;  %1261 = vmatpush.msrb.mxu3 %v7335_v38  ;;  %v7352_v39 = vld [vmem:[#allocation145_spill] sm:$0xff]  ;;  %v7353_v38 = vld [vmem:[#allocation138_spill] sm:$0xff] }
 0x1c3   : > { %1202 = vmatpush.msrb.mxu0 %v4398_v23  ;;  %1222 = vmatpush.msrb.mxu1 %v7336_v32  ;;  %v7342_v23 = vld [vmem:[#allocation129_spill] sm:$0xff]  ;;  %v7354_v32 = vld [vmem:[#allocation139_spill] sm:$0xff] }
 0x1c4   : > { %1242 = vmatpush.msrb.mxu2 %v7337_v36  ;;  %1262 = vmatpush.msrb.mxu3 %v7338_v35  ;;  %v7355_v36 = vld [vmem:[#allocation142_spill] sm:$0xff]  ;;  %v7356_v35 = vld [vmem:[#allocation143_spill] sm:$0xff] }
 0x1c5   : > { %1203 = vmatmul.f32.vlgmr.msrb.gmra.mxu0 %v4672_v41  ;;  %1223 = vmatmul.f32.vlgmr.msrb.gmra.mxu1 %v4674_v42 }
 0x1c6   : > { %1243 = vmatmul.f32.vlgmr.msrb.gmra.mxu2 %v4672_v41  ;;  %1263 = vmatmul.f32.vlgmr.msrb.gmra.mxu3 %v4674_v42  ;;  %v7348_v41 = vld [vmem:[#allocation141_spill] sm:$0xff]  ;;  %v7349_v42 = vld [vmem:[#allocation134_spill] sm:$0xff] }
 0x1c7   : > { %1411 = vmatpush.msra.mxu0 %v7339_v21  ;;  %1431 = vmatpush.msra.mxu1 %v7340_v25  ;;  %v7357_v21 = vld [vmem:[#allocation146_spill] sm:$0xff]  ;;  %v7358_v25 = vld [vmem:[#allocation147_spill] sm:$0xff] }
 0x1c8   : > { %1451 = vmatpush.msra.mxu2 %v7341_v34  ;;  %1471 = vmatpush.msra.mxu3 %v7342_v23  ;;  %v4989_v34 = vld [vmem:[%s3583_s18 + $0x240] sm:$0xff]  ;;  %v5011_v23 = vld [vmem:[%s3583_s18 + $0x608] sm:$0xff] }
 0x1c9   : > { %1412 = vmatpush.msra.mxu0 %v7343_v22  ;;  %1432 = vmatpush.msra.mxu1 %v7344_v40  ;;  %7363 = vst [vmem:[#allocation21_spill] sm:$0xff] %v5011_v23  ;;  %v5023_v22 = vld [vmem:[%s3583_s18 + $0x1c8] sm:$0xff] }
 0x1ca   : > { %1452 = vmatpush.msra.mxu2 %v7345_v19  ;;  %1472 = vmatpush.msra.mxu3 %v7346_v37  ;;  %7366 = vst [vmem:[#allocation32_spill] sm:$0xff] %v5023_v22  ;;  %v5027_v40 = vld [vmem:[%s3583_s18 + $0x5c8] sm:$0xff]  ;;  %v5031_v19 = vld [vmem:[%s3583_s18 + $0x180] sm:$0xff] }
 0x1cb   : > { %1413 = vmatpush.msra.mxu0 %v7347_v33  ;;  %1433 = vmatpush.msra.mxu1 %v7348_v41  ;;  %7367 = vst [vmem:[#allocation25_spill] sm:$0xff] %v5027_v40  ;;  %v5035_v37 = vld [vmem:[%s3583_s18 + $0x580] sm:$0xff]  ;;  %v5039_v33 = vld [vmem:[%s3583_s18 + $0x188] sm:$0xff] }
 0x1cc   : > { %1453 = vmatpush.msra.mxu2 %v7349_v42  ;;  %1473 = vmatpush.msra.mxu3 %v7350_v17  ;;  %7368 = vst [vmem:[#allocation26_spill] sm:$0xff] %v5031_v19  ;;  %v5043_v41 = vld [vmem:[%s3583_s18 + $0x588] sm:$0xff]  ;;  %v5047_v42 = vld [vmem:[%s3583_s18 + $0x140] sm:$0xff] }
 0x1cd   : > { %1414 = vmatpush.msra.mxu0 %v7351_v12  ;;  %1434 = vmatpush.msra.mxu1 %v7352_v39  ;;  %7369 = vst [vmem:[#allocation35_spill] sm:$0xff] %v5035_v37  ;;  %v5051_v17 = vld [vmem:[%s3583_s18 + $0x540] sm:$0xff]  ;;  %v5055_v12 = vld [vmem:[%s3583_s18 + $0x148] sm:$0xff] }
 0x1ce   : > { %1454 = vmatpush.msra.mxu2 %v7353_v38  ;;  %1474 = vmatpush.msra.mxu3 %v7354_v32  ;;  %7370 = vst [vmem:[#allocation36_spill] sm:$0xff] %v5039_v33  ;;  %v5059_v39 = vld [vmem:[%s3583_s18 + $0x548] sm:$0xff]  ;;  %v5063_v38 = vld [vmem:[%s3583_s18 + $0x100] sm:$0xff] }
 0x1cf   : > { %1415 = vmatpush.msra.mxu0 %v4498_v13  ;;  %1435 = vmatpush.msra.mxu1 %v4502_v16  ;;  %v4993_v16 = vld [vmem:[%s3583_s18 + $0x640] sm:$0xff]  ;;  %v5007_v13 = vld [vmem:[%s3583_s18 + $0x208] sm:$0xff]  ;;  %7371 = vst [vmem:[#allocation29_spill] sm:$0xff] %v5043_v41 }
 0x1d0   : > { %1455 = vmatpush.msra.mxu2 %v7355_v36  ;;  %1475 = vmatpush.msra.mxu3 %v7356_v35  ;;  %7359 = vst [vmem:[#allocation17_spill] sm:$0xff] %v4993_v16  ;;  %v5067_v32 = vld [vmem:[%s3583_s18 + $0x500] sm:$0xff]  ;;  %v5071_v36 = vld [vmem:[%s3583_s18 + $0x108] sm:$0xff] }
 0x1d1   : > { %1416 = vmatpush.msra.mxu0 %v4514_v18  ;;  %1436 = vmatpush.msra.mxu1 %v4518_v24  ;;  %v4999_v18 = vld [vmem:[%s3583_s18 + $0x200] sm:$0xff]  ;;  %7362 = vst [vmem:[#allocation28_spill] sm:$0xff] %v5007_v13  ;;  %v5075_v35 = vld [vmem:[%s3583_s18 + $0x508] sm:$0xff] }
 0x1d2   : > { %1456 = vmatpush.msra.mxu2 %v7357_v21  ;;  %1476 = vmatpush.msra.mxu3 %v7358_v25  ;;  %7360 = vst [vmem:[#allocation18_spill] sm:$0xff] %v4999_v18  ;;  %v5003_v24 = vld [vmem:[%s3583_s18 + $0x600] sm:$0xff] }
 0x1d3   : > { %1417 = vmatpush.msra.mxu0 %v4989_v34  ;;  %1437 = vmatpush.msra.mxu1 %v4993_v16  ;;  %7361 = vst [vmem:[#allocation27_spill] sm:$0xff] %v5003_v24  ;;  %v5079_v21 = vld [vmem:[%s3583_s18 + $0xc0] sm:$0xff] }
 0x1d4   : > { %1457 = vmatpush.msra.mxu2 %v4506_v9  ;;  %1477 = vmatpush.msra.mxu3 %v4510_v20  ;;  %v5015_v9 = vld [vmem:[%s3583_s18 + $0x1c0] sm:$0xff]  ;;  %7372 = vst [vmem:[#allocation30_spill] sm:$0xff] %v5047_v42 }
 0x1d5   : > { %1418 = vmatpush.msra.mxu0 %v4999_v18  ;;  %1438 = vmatpush.msra.mxu1 %v5003_v24  ;;  %7364 = vst [vmem:[#allocation22_spill] sm:$0xff] %v5015_v9  ;;  %v5019_v20 = vld [vmem:[%s3583_s18 + $0x5c0] sm:$0xff] }
 0x1d6   : > { %1458 = vmatpush.msra.mxu2 %v5007_v13  ;;  %1478 = vmatpush.msra.mxu3 %v5011_v23  ;;  %7365 = vst [vmem:[#allocation31_spill] sm:$0xff] %v5019_v20  ;;  %v5083_v25 = vld [vmem:[%s3583_s18 + $0x4c0] sm:$0xff]  ;;  %v1325_v23 = vld.sshfl [vmem:[#allocation1 + $0x8] sm:$0xff pattern:$0x73625140]  ;;  %v2900_v13 = vld [vmem:[%s4637_s30 + $0x10] sm:$0xff] }
 0x1d7   : > { %1419 = vmatpush.msra.mxu0 %v5015_v9  ;;  %1439 = vmatpush.msra.mxu1 %v5019_v20  ;;  %7373 = vst [vmem:[#allocation39_spill] sm:$0xff] %v5051_v17 }
 0x1d8   : > { %1459 = vmatpush.msra.mxu2 %v5023_v22  ;;  %1479 = vmatpush.msra.mxu3 %v5027_v40  ;;  %7374 = vst [vmem:[#allocation40_spill] sm:$0xff] %v5055_v12 }
 0x1d9   : > { %1420 = vmatpush.msra.mxu0 %v5031_v19  ;;  %1440 = vmatpush.msra.mxu1 %v5035_v37  ;;  %7375 = vst [vmem:[#allocation33_spill] sm:$0xff] %v5059_v39 }
 0x1da   : > { %1460 = vmatpush.msra.mxu2 %v5039_v33  ;;  %1480 = vmatpush.msra.mxu3 %v5043_v41  ;;  %7376 = vst [vmem:[#allocation34_spill] sm:$0xff] %v5063_v38 }
 0x1db   : > { %1421 = vmatpush.msra.mxu0 %v5047_v42  ;;  %1441 = vmatpush.msra.mxu1 %v5051_v17  ;;  %7377 = vst [vmem:[#allocation43_spill] sm:$0xff] %v5067_v32  ;;  %v5379_v17 = vld [vmem:[%s3583_s18 + $0x458] sm:$0xff]  ;;  %v5387_v42 = vld [vmem:[%s3583_s18 + $0x410] sm:$0xff] }
 0x1dc   : > { %1461 = vmatpush.msra.mxu2 %v5055_v12  ;;  %1481 = vmatpush.msra.mxu3 %v5059_v39  ;;  %7378 = vst [vmem:[#allocation44_spill] sm:$0xff] %v5071_v36  ;;  %v5367_v39 = vld [vmem:[%s3583_s18 + $0x50] sm:$0xff] }
 0x1dd   : > { %1422 = vmatpush.msra.mxu0 %v5063_v38  ;;  %1442 = vmatpush.msra.mxu1 %v5067_v32  ;;  %7379 = vst [vmem:[#allocation37_spill] sm:$0xff] %v5075_v35  ;;  %v5087_v32 = vld [vmem:[%s3583_s18 + $0xc8] sm:$0xff]  ;;  %v5351_v38 = vld [vmem:[%s3583_s18 + $0x90] sm:$0xff] }
 0x1de   : > { %1462 = vmatpush.msra.mxu2 %v5071_v36  ;;  %1482 = vmatpush.msra.mxu3 %v5075_v35  ;;  %7380 = vst [vmem:[#allocation38_spill] sm:$0xff] %v5079_v21  ;;  %v5091_v36 = vld [vmem:[%s3583_s18 + $0x4c8] sm:$0xff]  ;;  %v5095_v35 = vld [vmem:[%s3583_s18 + $0x80] sm:$0xff] }
 0x1df   : > { %1423 = vmatpush.msra.mxu0 %v5079_v21  ;;  %7381 = vst [vmem:[#allocation47_spill] sm:$0xff] %v5083_v25  ;;  %1443 = vmatpush.msra.mxu1 %v5083_v25  ;;  %v5099_v21 = vld [vmem:[%s3583_s18 + $0x480] sm:$0xff]  ;;  %v5103_v25 = vld [vmem:[%s3583_s18 + $0x88] sm:$0xff] }
 0x1e0   : > { %7382 = vst [vmem:[#allocation48_spill] sm:$0xff] %v5087_v32  ;;  %1463 = vmatpush.msra.mxu2 %v5087_v32  ;;  %1483 = vmatpush.msra.mxu3 %v5091_v36  ;;  %v5107_v32 = vld [vmem:[%s3583_s18 + $0x488] sm:$0xff] }
 0x1e1   : > { %7383 = vst [vmem:[#allocation41_spill] sm:$0xff] %v5091_v36  ;;  %1424 = vmatpush.msra.mxu0 %v5095_v35  ;;  %1444 = vmatpush.msra.mxu1 %v5099_v21  ;;  %v5111_v36 = vld [vmem:[%s3583_s18 + $0x40] sm:$0xff] }
 0x1e2   : > { %7384 = vst [vmem:[#allocation42_spill] sm:$0xff] %v5095_v35  ;;  %1464 = vmatpush.msra.mxu2 %v5103_v25  ;;  %1484 = vmatpush.msra.mxu3 %v5107_v32  ;;  %v5115_v35 = vld [vmem:[%s3583_s18 + $0x440] sm:$0xff] }
 0x1e3   : > { %7385 = vst [vmem:[#allocation49_spill] sm:$0xff] %v5099_v21  ;;  %1425 = vmatpush.msra.mxu0 %v5111_v36  ;;  %1445 = vmatpush.msra.mxu1 %v5115_v35  ;;  %v5119_v21 = vld [vmem:[%s3583_s18 + $0x48] sm:$0xff] }
 0x1e4   : > { %7386 = vst [vmem:[#allocation50_spill] sm:$0xff] %v5103_v25  ;;  %1465 = vmatpush.msra.mxu2 %v5119_v21  ;;  %v5123_v25 = vld [vmem:[%s3583_s18 + $0x448] sm:$0xff] }
 0x1e5   : > { %7387 = vst [vmem:[#allocation45_spill] sm:$0xff] %v5107_v32  ;;  %1485 = vmatpush.msra.mxu3 %v5123_v25  ;;  %v5127_v32 = vld [vmem:[%s3583_s18] sm:$0xff] }
 0x1e6   : > { %7388 = vst [vmem:[#allocation46_spill] sm:$0xff] %v5111_v36  ;;  %1426 = vmatpush.msra.mxu0 %v5127_v32  ;;  %v5131_v36 = vld [vmem:[%s3583_s18 + $0x400] sm:$0xff] }
 0x1e7   : > { %7389 = vst [vmem:[#allocation51_spill] sm:$0xff] %v5115_v35  ;;  %1446 = vmatpush.msra.mxu1 %v5131_v36  ;;  %v5135_v35 = vld [vmem:[%s3583_s18 + $0x8] sm:$0xff] }
 0x1e8   : > { %7390 = vst [vmem:[#allocation52_spill] sm:$0xff] %v5119_v21  ;;  %1466 = vmatpush.msra.mxu2 %v5135_v35  ;;  %v5139_v21 = vld [vmem:[%s3583_s18 + $0x408] sm:$0xff] }
 0x1e9   : > { %7391 = vst [vmem:[#allocation53_spill] sm:$0xff] %v5123_v25  ;;  %1486 = vmatpush.msra.mxu3 %v5139_v21  ;;  %v5143_v25 = vld [vmem:[%s3583_s18 + $0x3d0] sm:$0xff] }
 0x1ea   : > { %7392 = vst [vmem:[#allocation54_spill] sm:$0xff] %v5127_v32  ;;  %1491 = vmatpush.msrb.mxu0 %v5143_v25  ;;  %v5147_v32 = vld [vmem:[%s3583_s18 + $0x7d0] sm:$0xff] }
 0x1eb   : > { %7393 = vst [vmem:[#allocation55_spill] sm:$0xff] %v5131_v36  ;;  %1511 = vmatpush.msrb.mxu1 %v5147_v32  ;;  %v5151_v36 = vld [vmem:[%s3583_s18 + $0x3d8] sm:$0xff] }
 0x1ec   : > { %7394 = vst [vmem:[#allocation56_spill] sm:$0xff] %v5135_v35  ;;  %1531 = vmatpush.msrb.mxu2 %v5151_v36  ;;  %v5155_v35 = vld [vmem:[%s3583_s18 + $0x7d8] sm:$0xff] }
 0x1ed   : > { %7395 = vst [vmem:[#allocation59_spill] sm:$0xff] %v5139_v21  ;;  %1551 = vmatpush.msrb.mxu3 %v5155_v35  ;;  %v5159_v21 = vld [vmem:[%s3583_s18 + $0x390] sm:$0xff] }
 0x1ee   : > { %7396 = vst [vmem:[#allocation60_spill] sm:$0xff] %v5143_v25  ;;  %1492 = vmatpush.msrb.mxu0 %v5159_v21  ;;  %v5163_v25 = vld [vmem:[%s3583_s18 + $0x790] sm:$0xff] }
 0x1ef   : > { %7397 = vst [vmem:[#allocation65_spill] sm:$0xff] %v5147_v32  ;;  %1512 = vmatpush.msrb.mxu1 %v5163_v25  ;;  %v5167_v32 = vld [vmem:[%s3583_s18 + $0x398] sm:$0xff] }
 0x1f0   : > { %7398 = vst [vmem:[#allocation66_spill] sm:$0xff] %v5151_v36  ;;  %1532 = vmatpush.msrb.mxu2 %v5167_v32  ;;  %v5171_v36 = vld [vmem:[%s3583_s18 + $0x798] sm:$0xff] }
 0x1f1   : > { %7399 = vst [vmem:[#allocation69_spill] sm:$0xff] %v5155_v35  ;;  %1552 = vmatpush.msrb.mxu3 %v5171_v36  ;;  %v5175_v35 = vld [vmem:[%s3583_s18 + $0x350] sm:$0xff] }
 0x1f2   : > { %7400 = vst [vmem:[#allocation70_spill] sm:$0xff] %v5159_v21  ;;  %1493 = vmatpush.msrb.mxu0 %v5175_v35  ;;  %v5179_v21 = vld [vmem:[%s3583_s18 + $0x750] sm:$0xff] }
 0x1f3   : > { %7401 = vst [vmem:[#allocation57_spill] sm:$0xff] %v5163_v25  ;;  %1513 = vmatpush.msrb.mxu1 %v5179_v21  ;;  %v5183_v25 = vld [vmem:[%s3583_s18 + $0x358] sm:$0xff] }
 0x1f4   : > { %7402 = vst [vmem:[#allocation58_spill] sm:$0xff] %v5167_v32  ;;  %1533 = vmatpush.msrb.mxu2 %v5183_v25  ;;  %v5187_v32 = vld [vmem:[%s3583_s18 + $0x758] sm:$0xff] }
 0x1f5   : > { %7403 = vst [vmem:[#allocation73_spill] sm:$0xff] %v5171_v36  ;;  %1553 = vmatpush.msrb.mxu3 %v5187_v32  ;;  %v5191_v36 = vld [vmem:[%s3583_s18 + $0x310] sm:$0xff] }
 0x1f6   : > { %7404 = vst [vmem:[#allocation74_spill] sm:$0xff] %v5175_v35  ;;  %1494 = vmatpush.msrb.mxu0 %v5191_v36  ;;  %v5195_v35 = vld [vmem:[%s3583_s18 + $0x710] sm:$0xff] }
 0x1f7   : > { %7405 = vst [vmem:[#allocation61_spill] sm:$0xff] %v5179_v21  ;;  %1514 = vmatpush.msrb.mxu1 %v5195_v35  ;;  %v5199_v21 = vld [vmem:[%s3583_s18 + $0x318] sm:$0xff] }
 0x1f8   : > { %7406 = vst [vmem:[#allocation62_spill] sm:$0xff] %v5183_v25  ;;  %1534 = vmatpush.msrb.mxu2 %v5199_v21  ;;  %v5203_v25 = vld [vmem:[%s3583_s18 + $0x718] sm:$0xff] }
 0x1f9   : > { %7407 = vst [vmem:[#allocation75_spill] sm:$0xff] %v5187_v32  ;;  %1554 = vmatpush.msrb.mxu3 %v5203_v25  ;;  %v5207_v32 = vld [vmem:[%s3583_s18 + $0x2d0] sm:$0xff] }
 0x1fa   : > { %7408 = vst [vmem:[#allocation76_spill] sm:$0xff] %v5191_v36  ;;  %1495 = vmatpush.msrb.mxu0 %v5207_v32  ;;  %v5211_v36 = vld [vmem:[%s3583_s18 + $0x6d0] sm:$0xff] }
 0x1fb   : > { %7409 = vst [vmem:[#allocation63_spill] sm:$0xff] %v5195_v35  ;;  %1515 = vmatpush.msrb.mxu1 %v5211_v36  ;;  %v5215_v35 = vld [vmem:[%s3583_s18 + $0x2d8] sm:$0xff] }
 0x1fc   : > { %7410 = vst [vmem:[#allocation64_spill] sm:$0xff] %v5199_v21  ;;  %1535 = vmatpush.msrb.mxu2 %v5215_v35  ;;  %v5219_v21 = vld [vmem:[%s3583_s18 + $0x6d8] sm:$0xff]  ;;  %v984_v12 = vpop.f32.mrf.mxu1 }
 0x1fd   : > { %7411 = vst [vmem:[#allocation79_spill] sm:$0xff] %v5203_v25  ;;  %1555 = vmatpush.msrb.mxu3 %v5219_v21  ;;  %v5223_v25 = vld [vmem:[%s3583_s18 + $0x290] sm:$0xff] }
 0x1fe   : > { %7412 = vst [vmem:[#allocation80_spill] sm:$0xff] %v5207_v32  ;;  %1496 = vmatpush.msrb.mxu0 %v5223_v25  ;;  %v5227_v32 = vld [vmem:[%s3583_s18 + $0x690] sm:$0xff] }
 0x1ff   : > { %7413 = vst [vmem:[#allocation67_spill] sm:$0xff] %v5211_v36  ;;  %1516 = vmatpush.msrb.mxu1 %v5227_v32  ;;  %v5231_v36 = vld [vmem:[%s3583_s18 + $0x298] sm:$0xff] }
 0x200   : > { %7414 = vst [vmem:[#allocation68_spill] sm:$0xff] %v5215_v35  ;;  %1536 = vmatpush.msrb.mxu2 %v5231_v36  ;;  %v5235_v35 = vld [vmem:[%s3583_s18 + $0x698] sm:$0xff] }
 0x201   : > { %7415 = vst [vmem:[#allocation83_spill] sm:$0xff] %v5219_v21  ;;  %1556 = vmatpush.msrb.mxu3 %v5235_v35  ;;  %v5239_v21 = vld [vmem:[%s3583_s18 + $0x250] sm:$0xff] }
 0x202   : > { %7416 = vst [vmem:[#allocation84_spill] sm:$0xff] %v5223_v25  ;;  %1497 = vmatpush.msrb.mxu0 %v5239_v21  ;;  %v5243_v25 = vld [vmem:[%s3583_s18 + $0x650] sm:$0xff] }
 0x203   : > { %7417 = vst [vmem:[#allocation71_spill] sm:$0xff] %v5227_v32  ;;  %1517 = vmatpush.msrb.mxu1 %v5243_v25  ;;  %v5247_v32 = vld [vmem:[%s3583_s18 + $0x258] sm:$0xff] }
 0x204   : > { %7418 = vst [vmem:[#allocation72_spill] sm:$0xff] %v5231_v36  ;;  %1537 = vmatpush.msrb.mxu2 %v5247_v32  ;;  %v5251_v36 = vld [vmem:[%s3583_s18 + $0x658] sm:$0xff] }
 0x205   : > { %7419 = vst [vmem:[#allocation87_spill] sm:$0xff] %v5235_v35  ;;  %1557 = vmatpush.msrb.mxu3 %v5251_v36  ;;  %v5255_v35 = vld [vmem:[%s3583_s18 + $0x210] sm:$0xff] }
 0x206   : > { %7420 = vst [vmem:[#allocation88_spill] sm:$0xff] %v5239_v21  ;;  %1498 = vmatpush.msrb.mxu0 %v5255_v35  ;;  %v5259_v21 = vld [vmem:[%s3583_s18 + $0x610] sm:$0xff]  ;;  %v1064_v33 = vpop.f32.mrf.mxu1 }
 0x207   : > { %7421 = vst [vmem:[#allocation77_spill] sm:$0xff] %v5243_v25  ;;  %1518 = vmatpush.msrb.mxu1 %v5259_v21  ;;  %v5263_v25 = vld [vmem:[%s3583_s18 + $0x218] sm:$0xff] }
 0x208   : > { %7422 = vst [vmem:[#allocation78_spill] sm:$0xff] %v5247_v32  ;;  %1538 = vmatpush.msrb.mxu2 %v5263_v25  ;;  %v5267_v32 = vld [vmem:[%s3583_s18 + $0x618] sm:$0xff] }
 0x209   : > { %7423 = vst [vmem:[#allocation91_spill] sm:$0xff] %v5251_v36  ;;  %1558 = vmatpush.msrb.mxu3 %v5267_v32  ;;  %v5271_v36 = vld [vmem:[%s3583_s18 + $0x1d0] sm:$0xff] }
 0x20a   : > { %7424 = vst [vmem:[#allocation92_spill] sm:$0xff] %v5255_v35  ;;  %1499 = vmatpush.msrb.mxu0 %v5271_v36  ;;  %v5275_v35 = vld [vmem:[%s3583_s18 + $0x5d0] sm:$0xff] }
 0x20b   : > { %7425 = vst [vmem:[#allocation81_spill] sm:$0xff] %v5259_v21  ;;  %1519 = vmatpush.msrb.mxu1 %v5275_v35  ;;  %v5279_v21 = vld [vmem:[%s3583_s18 + $0x1d8] sm:$0xff] }
 0x20c   : > { %7426 = vst [vmem:[#allocation82_spill] sm:$0xff] %v5263_v25  ;;  %1539 = vmatpush.msrb.mxu2 %v5279_v21  ;;  %v5283_v25 = vld [vmem:[%s3583_s18 + $0x5d8] sm:$0xff] }
 0x20d   : > { %7427 = vst [vmem:[#allocation95_spill] sm:$0xff] %v5267_v32  ;;  %1559 = vmatpush.msrb.mxu3 %v5283_v25  ;;  %v5287_v32 = vld [vmem:[%s3583_s18 + $0x190] sm:$0xff] }
 0x20e   : > { %7428 = vst [vmem:[#allocation96_spill] sm:$0xff] %v5271_v36  ;;  %1500 = vmatpush.msrb.mxu0 %v5287_v32  ;;  %v5291_v36 = vld [vmem:[%s3583_s18 + $0x590] sm:$0xff] }
 0x20f   : > { %7429 = vst [vmem:[#allocation85_spill] sm:$0xff] %v5275_v35  ;;  %1520 = vmatpush.msrb.mxu1 %v5291_v36  ;;  %v5295_v35 = vld [vmem:[%s3583_s18 + $0x198] sm:$0xff] }
 0x210   : > { %7430 = vst [vmem:[#allocation86_spill] sm:$0xff] %v5279_v21  ;;  %1540 = vmatpush.msrb.mxu2 %v5295_v35  ;;  %v5299_v21 = vld [vmem:[%s3583_s18 + $0x598] sm:$0xff] }
 0x211   : > { %7431 = vst [vmem:[#allocation99_spill] sm:$0xff] %v5283_v25  ;;  %1560 = vmatpush.msrb.mxu3 %v5299_v21  ;;  %v5303_v25 = vld [vmem:[%s3583_s18 + $0x150] sm:$0xff] }
 0x212   : > { %7432 = vst [vmem:[#allocation100_spill] sm:$0xff] %v5287_v32  ;;  %1501 = vmatpush.msrb.mxu0 %v5303_v25  ;;  %v5307_v32 = vld [vmem:[%s3583_s18 + $0x550] sm:$0xff] }
 0x213   : > { %7433 = vst [vmem:[#allocation89_spill] sm:$0xff] %v5291_v36  ;;  %1521 = vmatpush.msrb.mxu1 %v5307_v32  ;;  %v5311_v36 = vld [vmem:[%s3583_s18 + $0x158] sm:$0xff] }
 0x214   : > { %7434 = vst [vmem:[#allocation90_spill] sm:$0xff] %v5295_v35  ;;  %1541 = vmatpush.msrb.mxu2 %v5311_v36  ;;  %v5315_v35 = vld [vmem:[%s3583_s18 + $0x558] sm:$0xff] }
 0x215   : > { %7435 = vst [vmem:[#allocation103_spill] sm:$0xff] %v5299_v21  ;;  %1561 = vmatpush.msrb.mxu3 %v5315_v35  ;;  %v5319_v21 = vld [vmem:[%s3583_s18 + $0x110] sm:$0xff] }
 0x216   : > { %7436 = vst [vmem:[#allocation104_spill] sm:$0xff] %v5303_v25  ;;  %1502 = vmatpush.msrb.mxu0 %v5319_v21  ;;  %v5323_v25 = vld [vmem:[%s3583_s18 + $0x510] sm:$0xff] }
 0x217   : > { %7437 = vst [vmem:[#allocation93_spill] sm:$0xff] %v5307_v32  ;;  %1522 = vmatpush.msrb.mxu1 %v5323_v25  ;;  %v5327_v32 = vld [vmem:[%s3583_s18 + $0x118] sm:$0xff] }
 0x218   : > { %7438 = vst [vmem:[#allocation94_spill] sm:$0xff] %v5311_v36  ;;  %1542 = vmatpush.msrb.mxu2 %v5327_v32  ;;  %v5331_v36 = vld [vmem:[%s3583_s18 + $0x518] sm:$0xff] }
 0x219   : > { %7439 = vst [vmem:[#allocation107_spill] sm:$0xff] %v5315_v35  ;;  %1562 = vmatpush.msrb.mxu3 %v5331_v36  ;;  %v5335_v35 = vld [vmem:[%s3583_s18 + $0xd0] sm:$0xff] }
 0x21a   : > { %7440 = vst [vmem:[#allocation108_spill] sm:$0xff] %v5319_v21  ;;  %1503 = vmatpush.msrb.mxu0 %v5335_v35  ;;  %v5339_v21 = vld [vmem:[%s3583_s18 + $0x4d0] sm:$0xff] }
 0x21b   : > { %7441 = vst [vmem:[#allocation97_spill] sm:$0xff] %v5323_v25  ;;  %1523 = vmatpush.msrb.mxu1 %v5339_v21  ;;  %v5343_v25 = vld [vmem:[%s3583_s18 + $0xd8] sm:$0xff] }
 0x21c   : > { %7442 = vst [vmem:[#allocation98_spill] sm:$0xff] %v5327_v32  ;;  %1543 = vmatpush.msrb.mxu2 %v5343_v25  ;;  %v5347_v32 = vld [vmem:[%s3583_s18 + $0x4d8] sm:$0xff]  ;;  %1504 = vmatpush.msrb.mxu0 %v5351_v38 }
 0x21d   : > { %7443 = vst [vmem:[#allocation111_spill] sm:$0xff] %v5331_v36  ;;  %1563 = vmatpush.msrb.mxu3 %v5347_v32  ;;  %v1024_v36 = vpop.f32.mrf.mxu3 }
 0x21e   : > { %7444 = vst [vmem:[#allocation112_spill] sm:$0xff] %v5335_v35  ;;  %v5355_v35 = vld [vmem:[%s3583_s18 + $0x490] sm:$0xff]  ;;  %1505 = vmatpush.msrb.mxu0 %v5367_v39 }
 0x21f   : > { %7445 = vst [vmem:[#allocation101_spill] sm:$0xff] %v5339_v21  ;;  %1524 = vmatpush.msrb.mxu1 %v5355_v35  ;;  %v5359_v21 = vld [vmem:[%s3583_s18 + $0x98] sm:$0xff] }
 0x220   : > { %7446 = vst [vmem:[#allocation102_spill] sm:$0xff] %v5343_v25  ;;  %1544 = vmatpush.msrb.mxu2 %v5359_v21  ;;  %v5363_v25 = vld [vmem:[%s3583_s18 + $0x498] sm:$0xff] }
 0x221   : > { %7447 = vst [vmem:[#allocation115_spill] sm:$0xff] %v5347_v32  ;;  %1564 = vmatpush.msrb.mxu3 %v5363_v25  ;;  %v1004_v32 = vpop.f32.mrf.mxu2 }
 0x222   : > { %7448 = vst [vmem:[#allocation105_spill] sm:$0xff] %v5351_v38  ;;  %v5371_v38 = vld [vmem:[%s3583_s18 + $0x450] sm:$0xff]  ;;  %v1025_v19 = vadd.f32 %v1024_v36, %v1004_v32  ;;  %v1324_v32 = vld.sshfl [vmem:[#allocation1] sm:$0xff pattern:$0x73625140]  ;;  %v1144_v36 = vpop.f32.mrf.mxu1 }
 0x223   : > { %7449 = vst [vmem:[#allocation106_spill] sm:$0xff] %v5355_v35  ;;  %1525 = vmatpush.msrb.mxu1 %v5371_v38  ;;  %v964_v35 = vpop.f32.mrf.mxu0  ;;  %1565 = vmatpush.msrb.mxu3 %v5379_v17 }
 0x224   : > { %7450 = vst [vmem:[#allocation118_spill] sm:$0xff] %v5359_v21  ;;  %v5375_v21 = vld [vmem:[%s3583_s18 + $0x58] sm:$0xff]  ;;  %v1275_v22 = vrot.slane %v1025_v19, 6 }
 0x225   : > { %7451 = vst [vmem:[#allocation109_spill] sm:$0xff] %v5363_v25  ;;  %1545 = vmatpush.msrb.mxu2 %v5375_v21  ;;  %v5383_v25 = vld [vmem:[%s3583_s18 + $0x10] sm:$0xff]  ;;  %1526 = vmatpush.msrb.mxu1 %v5387_v42  ;;  %v1104_v41 = vpop.f32.mrf.mxu3 }
 0x226   : > { %7452 = vst [vmem:[#allocation110_spill] sm:$0xff] %v5367_v39  ;;  %1506 = vmatpush.msrb.mxu0 %v5383_v25  ;;  %v5391_v39 = vld [vmem:[%s3583_s18 + $0x18] sm:$0xff] }
 0x227   : > { %7453 = vst [vmem:[#allocation121_spill] sm:$0xff] %v5371_v38  ;;  %1546 = vmatpush.msrb.mxu2 %v5391_v39  ;;  %v5395_v38 = vld [vmem:[%s3583_s18 + $0x418] sm:$0xff] }
 0x228   : > { %7454 = vst [vmem:[#allocation122_spill] sm:$0xff] %v5375_v21  ;;  %1566 = vmatpush.msrb.mxu3 %v5395_v38 }
 0x229   : > { %7455 = vst [vmem:[#allocation113_spill] sm:$0xff] %v5379_v17  ;;  %v1084_v21 = vpop.f32.mrf.mxu2 }
 0x22a   : > { %7456 = vst [vmem:[#allocation114_spill] sm:$0xff] %v5383_v25  ;;  %v1105_v37 = vadd.f32 %v1104_v41, %v1084_v21  ;;  %v1297_v41 = vmul.f32 %v4723_v58, %v4640_v45 }
 0x22b   : > { %7457 = vst [vmem:[#allocation125_spill] sm:$0xff] %v5387_v42  ;;  %v1044_v17 = vpop.f32.mrf.mxu0  ;;  %v985_v42 = vadd.f32 %v984_v12, %v964_v35 }
 0x22c   : > { %7458 = vst [vmem:[#allocation126_spill] sm:$0xff] %v5391_v39  ;;  %v1065_v25 = vadd.f32 %v1064_v33, %v1044_v17  ;;  %v1277_v40 = vrot.slane %v1105_v37, 2  ;;  %v1300_v19 = vrot.slane %v1297_v41, 6  ;;  %v1328_v17 = vmul.f32 %v1324_v32, %v4643_v47 }
 0x22d   : > { %7459 = vst [vmem:[#allocation116_spill] sm:$0xff] %v5395_v38  ;;  %v1281_v39 = vsel %vm824_vm1, %v985_v42, %v1275_v22  ;;  %v1329_v38 = vmul.f32 %v1325_v23, %v4632_v43  ;;  %v1184_v21 = vpop.f32.mrf.mxu3 }
 0x22e   : > { %v1276_v20 = vrot.slane %v1065_v25, 4 }
 0x22f   : > { %v1335_v33 = vrot.slane %v1329_v38, 6 }
 0x230   : > { %v1282_v9 = vsel %vm826_vm0, %v1276_v20, %v1277_v40  ;;  %v1296_v20 = vmul.f32 %v4721_v57, %v4648_v51  ;;  %v2901_v51 = vld [vmem:[%s4637_s30 + $0x18] sm:$0xff] }
 0x231   : > { %v1283_v24 = vsel %vm828_vm2, %v1281_v39, %v1282_v9  ;;  %v1336_v22 = vsel %vm824_vm1, %v1328_v17, %v1335_v33  ;;  %v1164_v57 = vpop.f32.mrf.mxu2 }
 0x232   : > { %v1289_v18 = vadd.f32 %v2900_v13, %v1283_v24  ;;  %v1301_v9 = vsel %vm824_vm1, %v1296_v20, %v1300_v19 }
 0x233   : > { %v1124_v38 = vpop.f32.mrf.mxu0 }
 0x234   : > { %v1331_v37 = vrot.slane %v1289_v18, 4  ;;  %v1303_v42 = vadd.f32 %v1301_v9, %v1289_v18 }
 0x236   : > { %v1338_v40 = vadd.f32 %v1336_v22, %v1331_v37  ;;  %v2902_v24 = vmul.f32 -1.442695, %v1303_v42  ;;  %v1185_v37 = vadd.f32 %v1184_v21, %v1164_v57 }
 0x238   : > { %v2903_v23 = vmul.f32 -1.442695, %v1338_v40  ;;  %v1278_v9 = vrot.slane %v1185_v37, 6 }
 0x23a   : > { %2959 = vpow2.f32 %v2903_v23 }
 0x23b   : > { %2961 = vpow2.f32 %v2902_v24  ;;  %v1145_v24 = vadd.f32 %v1144_v36, %v1124_v38 }
 0x23d   : > { %v1284_v45 = vsel %vm824_vm1, %v1145_v24, %v1278_v9 }
 0x240   : > { %v2960_v58 = vpop.eup %2959 }
 0x241   : > { %v2962_v13 = vpop.eup %2961  ;;  %v1342_v12 = vadd.f32 1.0, %v2960_v58 }
 0x242   : > { %v1307_v39 = vadd.f32 1.0, %v2962_v13  ;;  %v1204_v18 = vpop.f32.mrf.mxu0  ;;  %v1224_v33 = vpop.f32.mrf.mxu1 }
 0x243   : > { %2963 = vrcp.f32 %v1342_v12  ;;  %v1225_v17 = vadd.f32 %v1224_v33, %v1204_v18  ;;  %vm1348_vm3 = vweird.f32 %v1342_v12  ;;  %v1352_v18 = vand.u32 2147483647, %v1342_v12 }
 0x244   : > { %2965 = vrcp.f32 %v1307_v39  ;;  %v1319_v33 = vand.u32 2147483648, %v1307_v39  ;;  %vm1313_vm6 = vweird.f32 %v1307_v39  ;;  %v1317_v38 = vand.u32 2147483647, %v1307_v39 }
 0x245   : > { %v1279_v58 = vrot.slane %v1225_v17, 4  ;;  %vm1353_vm8 = vcmp.eq.f32.partialorder %v1352_v18, 8.507059e+37 }
 0x246   : > { %v1320_v17 = vor.u32 1.1754944e-38, %v1319_v33  ;;  %vm1318_vm9 = vcmp.eq.f32.partialorder %v1317_v38, 8.507059e+37 }
 0x249   : > { %v2964_v35 = vpop.eup %2963  ;;  %v1244_v22 = vpop.f32.mrf.mxu2 }
 0x24a   : > { %v2966_v25 = vpop.eup %2965  ;;  %v1344_v41 = vmul.f32 %v2964_v35, %v1342_v12  ;;  %v1264_v40 = vpop.f32.mrf.mxu3  ;;  %vm1349_vm15 = vweird.f32 %v2964_v35 }
 0x24b   : > { %v1309_v32 = vmul.f32 %v2966_v25, %v1307_v39  ;;  %v1265_v42 = vadd.f32 %v1264_v40, %v1244_v22  ;;  %vm1314_vm4 = vweird.f32 %v2966_v25  ;;  %vm1350_vm5 = vmor %vm1348_vm3, %vm1349_vm15 }
 0x24c   : > { %v1345_v19 = vsub.f32 1.0, %v1344_v41  ;;  %v1354_v41 = vand.u32 2147483648, %v1342_v12  ;;  %vm1315_vm7 = vmor %vm1313_vm6, %vm1314_vm4 }
 0x24d   : > { %v1310_v20 = vsub.f32 1.0, %v1309_v32  ;;  %v1280_v13 = vrot.slane %v1265_v42, 2 }
 0x24e   : > { %v1346_v23 = vmul.f32 %v2964_v35, %v1345_v19  ;;  %v1355_v37 = vor.u32 1.1754944e-38, %v1354_v41 }
 0x24f   : > { %v1311_v47 = vmul.f32 %v2966_v25, %v1310_v20  ;;  %v1285_v43 = vsel %vm826_vm0, %v1279_v58, %v1280_v13 }
 0x250   : > { %v1286_v16 = vsel %vm828_vm2, %v1284_v45, %v1285_v43  ;;  %v1347_v57 = vadd.f32 %v2964_v35, %v1346_v23 }
 0x251   : > { %v1290_v21 = vadd.f32 %v2901_v51, %v1286_v16  ;;  %v1312_v32 = vadd.f32 %v2966_v25, %v1311_v47 }
 0x252   : > { %v1351_v36 = vsel %vm1350_vm5, %v2964_v35, %v1347_v57 }
 0x253   : > { %2967 = vtanh.f32 %v1290_v21  ;;  %v1316_v19 = vsel %vm1315_vm7, %v2966_v25, %v1312_v32  ;;  %v1356_v43 = vsel %vm1353_vm8, %v1355_v37, %v1351_v36  ;;  %v1371_v40 = vrot.slane %v1290_v21, 4 }
 0x254   : > { %v1321_v51 = vsel %vm1318_vm9, %v1320_v17, %v1316_v19  ;;  %v1358_v16 = vmul.f32 %v1356_v43, %v4659_v1 }
 0x259   : > { %v2968_v45 = vpop.eup %2967 }
 0x25a   : > { %v1360_v47 = vmul.f32 %v2968_v45, %v1321_v51  ;;  %v5544_v45 = vld [vmem:[%s3583_s18 + $0x20] sm:$0xff] }
 0x25b   : > { %v5548_v51 = vld [vmem:[%s3583_s18 + $0x420] sm:$0xff] }
 0x25c   : > { %v5415_v20 = vadd.f32 %v1360_v47, %v1358_v16  ;;  %v5552_v16 = vld [vmem:[%s3583_s18 + $0x28] sm:$0xff] }
 0x25d   : > { %v5556_v47 = vld [vmem:[%s3583_s18 + $0x428] sm:$0xff] }
 0x25e   : > { %1363 = vst [vmem:[#allocation1] ss:$4 sm:$0xff] %v5415_v20 }
 0x265   : > { %v1364_v12 = vld.sshfl [vmem:[#allocation1] sm:$0xff pattern:$0x73625140]  ;;  %v1365_v22 = vld.sshfl [vmem:[#allocation1 + $0x8] sm:$0xff pattern:$0x73625140] }
 0x266   : > { %v1369_v39 = vmul.f32 %v1365_v22, %v4663_v3  ;;  %v1368_v35 = vmul.f32 %v1364_v12, %v4665_v4  ;;  %v5564_v12 = vld [vmem:[%s3583_s18 + $0x3f0] sm:$0xff] }
 0x267   : > { %v5568_v22 = vld [vmem:[%s3583_s18 + $0x7f0] sm:$0xff] }
 0x268   : > { %v1375_v25 = vrot.slane %v1369_v39, 6  ;;  %v5572_v39 = vld [vmem:[%s3583_s18 + $0x3f8] sm:$0xff] }
 0x26a   : > { %v1376_v9 = vsel %vm824_vm1, %v1368_v35, %v1375_v25  ;;  %v5576_v35 = vld [vmem:[%s3583_s18 + $0x7f8] sm:$0xff]  ;;  %v5580_v25 = vld [vmem:[%s3583_s18 + $0x3b0] sm:$0xff] }
 0x26b   : > { %v1378_v42 = vadd.f32 %v1376_v9, %v1371_v40  ;;  %v5584_v40 = vld [vmem:[%s3583_s18 + $0x7b0] sm:$0xff]  ;;  %v5588_v9 = vld [vmem:[%s3583_s18 + $0x3b8] sm:$0xff] }
 0x26d   : > { %v2904_v23 = vmul.f32 -1.442695, %v1378_v42  ;;  %v5592_v42 = vld [vmem:[%s3583_s18 + $0x7b8] sm:$0xff] }
 0x26f   : > { %2969 = vpow2.f32 %v2904_v23  ;;  %v5596_v23 = vld [vmem:[%s3583_s18 + $0x370] sm:$0xff] }
 0x275   : > { %v2970_v24 = vpop.eup %2969 }
 0x276   : > { %v1382_v1 = vadd.f32 1.0, %v2970_v24  ;;  %v5600_v24 = vld [vmem:[%s3583_s18 + $0x770] sm:$0xff] }
 0x278   : > { %2971 = vrcp.f32 %v1382_v1  ;;  %v1394_v41 = vand.u32 2147483648, %v1382_v1  ;;  %v1392_v18 = vand.u32 2147483647, %v1382_v1  ;;  %vm1388_vm11 = vweird.f32 %v1382_v1 }
 0x279   : > { %2973 = vtanh.f32 %v5415_v20 }
 0x27a   : > { %v1395_v21 = vor.u32 1.1754944e-38, %v1394_v41  ;;  %vm1393_vm13 = vcmp.eq.f32.partialorder %v1392_v18, 8.507059e+37  ;;  %v5620_v41 = vld [vmem:[%s3583_s18 + $0x338] sm:$0xff]  ;;  %v5628_v18 = vld [vmem:[%s3583_s18 + $0x2f0] sm:$0xff] }
 0x27b   : > { %7475 = vst [vmem:[#allocation117_spill] sm:$0xff] %v5620_v41 }
 0x27c   : > { %7477 = vst [vmem:[#allocation120_spill] sm:$0xff] %v5628_v18 }
 0x27e   : > { %v2972_v58 = vpop.eup %2971 }
 0x27f   : > { %v1384_v13 = vmul.f32 %v2972_v58, %v1382_v1  ;;  %vm1389_vm10 = vweird.f32 %v2972_v58  ;;  %v2974_v36 = vpop.eup %2973  ;;  %v5604_v1 = vld [vmem:[%s3583_s18 + $0x378] sm:$0xff] }
 0x280   : > { %vm1390_vm12 = vmor %vm1388_vm11, %vm1389_vm10 }
 0x281   : > { %v1385_v57 = vsub.f32 1.0, %v1384_v13  ;;  %v5612_v13 = vld [vmem:[%s3583_s18 + $0x330] sm:$0xff] }
 0x283   : > { %v1386_v32 = vmul.f32 %v2972_v58, %v1385_v57  ;;  %v5616_v57 = vld [vmem:[%s3583_s18 + $0x730] sm:$0xff] }
 0x285   : > { %v1387_v33 = vadd.f32 %v2972_v58, %v1386_v32  ;;  %v5624_v32 = vld [vmem:[%s3583_s18 + $0x738] sm:$0xff] }
 0x286   : > { %7476 = vst [vmem:[#allocation119_spill] sm:$0xff] %v5624_v32 }
 0x287   : > { %v1391_v38 = vsel %vm1390_vm12, %v2972_v58, %v1387_v33  ;;  %v5608_v58 = vld [vmem:[%s3583_s18 + $0x778] sm:$0xff]  ;;  %v5632_v33 = vld [vmem:[%s3583_s18 + $0x6f0] sm:$0xff] }
 0x288   : > { %v1396_v37 = vsel %vm1393_vm13, %v1395_v21, %v1391_v38  ;;  %7478 = vst [vmem:[#allocation127_spill] sm:$0xff] %v5632_v33  ;;  %v5636_v21 = vld [vmem:[%s3583_s18 + $0x2f8] sm:$0xff] }
 0x289   : > { %v1399_v19 = vmul.f32 %v2974_v36, %v1396_v37  ;;  %7479 = vst [vmem:[#allocation123_spill] sm:$0xff] %v5636_v21  ;;  %v5640_v38 = vld [vmem:[%s3583_s18 + $0x6f8] sm:$0xff]  ;;  %v5644_v36 = vld [vmem:[%s3583_s18 + $0x2b0] sm:$0xff] }
 0x28a   : > { %7480 = vst [vmem:[#allocation124_spill] sm:$0xff] %v5640_v38  ;;  %v5648_v37 = vld [vmem:[%s3583_s18 + $0x6b0] sm:$0xff] }
 0x28b   : > { %2905 = vst [vmem:[%s4437_s22 + $0x8] sm:$0xf] %v1399_v19 }
 0x28c   : > { %1406 = vst [vmem:[#allocation1] ss:$4 sm:$0xff] %v1399_v19  ;;  %v5652_v19 = vld [vmem:[%s3583_s18 + $0x2b8] sm:$0xff] }
 0x28d   : > { %7481 = vst [vmem:[#allocation132_spill] sm:$0xff] %v5644_v36 }
 0x28e   : > { %7482 = vst [vmem:[#allocation133_spill] sm:$0xff] %v5648_v37 }
 0x28f   : > { %7483 = vst [vmem:[#allocation128_spill] sm:$0xff] %v5652_v19 }
 0x293   : > { %v5423_v17 = vld.sshfl [vmem:[#allocation1] sm:$0xff pattern:$0x73625140]  ;;  %v5425_v43 = vld.sshfl [vmem:[#allocation1 + $0x8] sm:$0xff pattern:$0x73625140] }
 0x294   : > { %1427 = vmatmul.f32.vlgmr.msra.gmra.mxu0 %v5423_v17  ;;  %1447 = vmatmul.f32.vlgmr.msra.gmra.mxu1 %v5425_v43  ;;  %1755 = vst [vmem:[#allocation1] ss:$4 sm:$0xff] %v5415_v20 }
 0x295   : > { %1467 = vmatmul.f32.vlgmr.msra.gmra.mxu2 %v5423_v17  ;;  %1487 = vmatmul.f32.vlgmr.msra.gmra.mxu3 %v5425_v43 }
 0x296   : > { %1571 = vmatpush.msra.mxu0 %v4682_v44  ;;  %1591 = vmatpush.msra.mxu1 %v4686_v46 }
 0x297   : > { %1611 = vmatpush.msra.mxu2 %v4690_v48  ;;  %1631 = vmatpush.msra.mxu3 %v4694_v49  ;;  %v7460_v48 = vld [vmem:[#allocation4_spill] sm:$0xff]  ;;  %v7461_v49 = vld [vmem:[#allocation11_spill] sm:$0xff] }
 0x298   : > { %1572 = vmatpush.msra.mxu0 %v4698_v50  ;;  %1592 = vmatpush.msra.mxu1 %v4702_v52  ;;  %v7462_v50 = vld [vmem:[#allocation12_spill] sm:$0xff]  ;;  %v7463_v52 = vld [vmem:[#allocation5_spill] sm:$0xff] }
 0x299   : > { %1612 = vmatpush.msra.mxu2 %v4706_v53  ;;  %1632 = vmatpush.msra.mxu3 %v4710_v54  ;;  %v7464_v53 = vld [vmem:[#allocation6_spill] sm:$0xff]  ;;  %v5478_v54 = vld [vmem:[%s3583_s18 + $0x1a0] sm:$0xff] }
 0x29a   : > { %1573 = vmatpush.msra.mxu0 %v4714_v55  ;;  %1593 = vmatpush.msra.mxu1 %v4718_v56  ;;  %v5482_v55 = vld [vmem:[%s3583_s18 + $0x5a0] sm:$0xff]  ;;  %v7465_v56 = vld [vmem:[#allocation15_spill] sm:$0xff] }
 0x29b   : > { %1613 = vmatpush.msra.mxu2 %v4726_v59  ;;  %1633 = vmatpush.msra.mxu3 %v4730_v60  ;;  %v5444_v44 = vld.sshfl [vmem:[#allocation1] sm:$0xff pattern:$0x73625140]  ;;  %v5446_v46 = vld.sshfl [vmem:[#allocation1 + $0x8] sm:$0xff pattern:$0x73625140] }
 0x29c   : > { %1574 = vmatpush.msra.mxu0 %v4735_v61  ;;  %1594 = vmatpush.msra.mxu1 %v4739_v62  ;;  %1787 = vst [vmem:[#allocation1] ss:$4 sm:$0xff] %v5415_v20  ;;  %v7466_v59 = vld [vmem:[#allocation16_spill] sm:$0xff]  ;;  %v5488_v60 = vld [vmem:[%s3583_s18 + $0x160] sm:$0xff] }
 0x29d   : > { %1614 = vmatpush.msra.mxu2 %v4743_v63  ;;  %1634 = vmatpush.msra.mxu3 %v4747_v0  ;;  %v5492_v61 = vld [vmem:[%s3583_s18 + $0x560] sm:$0xff]  ;;  %v7468_v63 = vld [vmem:[#allocation10_spill] sm:$0xff] }
 0x29e   : > { %1507 = vmatmul.f32.vlgmr.msrb.gmra.mxu0 %v5423_v17  ;;  %1527 = vmatmul.f32.vlgmr.msrb.gmra.mxu1 %v5425_v43  ;;  %v7467_v62 = vld [vmem:[#allocation9_spill] sm:$0xff] }
 0x29f   : > { %1547 = vmatmul.f32.vlgmr.msrb.gmra.mxu2 %v5423_v17  ;;  %1567 = vmatmul.f32.vlgmr.msrb.gmra.mxu3 %v5425_v43  ;;  %v5498_v0 = vld [vmem:[%s3583_s18 + $0x120] sm:$0xff] }
 0x2a0   : > { %1575 = vmatpush.msra.mxu0 %v4755_v2  ;;  %1595 = vmatpush.msra.mxu1 %v4759_v5  ;;  %v5502_v2 = vld [vmem:[%s3583_s18 + $0x520] sm:$0xff]  ;;  %v7469_v5 = vld [vmem:[#allocation19_spill] sm:$0xff] }
 0x2a1   : > { %1615 = vmatpush.msra.mxu2 %v4763_v6  ;;  %1635 = vmatpush.msra.mxu3 %v4767_v7  ;;  %v7470_v6 = vld [vmem:[#allocation20_spill] sm:$0xff]  ;;  %v5508_v7 = vld [vmem:[%s3583_s18 + $0xe0] sm:$0xff] }
 0x2a2   : > { %1576 = vmatpush.msra.mxu0 %v4771_v8  ;;  %1596 = vmatpush.msra.mxu1 %v4775_v10  ;;  %v5512_v8 = vld [vmem:[%s3583_s18 + $0x4e0] sm:$0xff] }
 0x2a3   : > { %1616 = vmatpush.msra.mxu2 %v4779_v11  ;;  %1636 = vmatpush.msra.mxu3 %v4783_v14  ;;  %v7471_v10 = vld [vmem:[#allocation13_spill] sm:$0xff]  ;;  %v7472_v11 = vld [vmem:[#allocation14_spill] sm:$0xff] }
 0x2a4   : > { %1577 = vmatpush.msra.mxu0 %v4787_v15  ;;  %1597 = vmatpush.msra.mxu1 %v4791_v26  ;;  %v5518_v14 = vld [vmem:[%s3583_s18 + $0xa0] sm:$0xff]  ;;  %v7473_v26 = vld [vmem:[#allocation23_spill] sm:$0xff] }
 0x2a5   : > { %1617 = vmatpush.msra.mxu2 %v4795_v27  ;;  %1637 = vmatpush.msra.mxu3 %v4799_v28  ;;  %v5522_v15 = vld [vmem:[%s3583_s18 + $0x4a0] sm:$0xff]  ;;  %v7474_v27 = vld [vmem:[#allocation24_spill] sm:$0xff] }
 0x2a6   : > { %1578 = vmatpush.msra.mxu0 %v4803_v29  ;;  %1598 = vmatpush.msra.mxu1 %v4807_v30  ;;  %v5528_v28 = vld [vmem:[%s3583_s18 + $0x60] sm:$0xff]  ;;  %v5536_v30 = vld [vmem:[%s3583_s18 + $0x68] sm:$0xff] }
 0x2a7   : > { %1618 = vmatpush.msra.mxu2 %v4811_v31  ;;  %1638 = vmatpush.msra.mxu3 %v7460_v48  ;;  %v5532_v29 = vld [vmem:[%s3583_s18 + $0x460] sm:$0xff]  ;;  %v5540_v31 = vld [vmem:[%s3583_s18 + $0x468] sm:$0xff]  ;;  %v5656_v48 = vld [vmem:[%s3583_s18 + $0x6b8] sm:$0xff] }
 0x2a8   : > { %1579 = vmatpush.msra.mxu0 %v7461_v49  ;;  %1599 = vmatpush.msra.mxu1 %v7462_v50  ;;  %7484 = vst [vmem:[#allocation129_spill] sm:$0xff] %v5656_v48  ;;  %v5660_v49 = vld [vmem:[%s3583_s18 + $0x270] sm:$0xff] }
 0x2a9   : > { %1619 = vmatpush.msra.mxu2 %v7463_v52  ;;  %1639 = vmatpush.msra.mxu3 %v7464_v53  ;;  %7485 = vst [vmem:[#allocation136_spill] sm:$0xff] %v5660_v49  ;;  %v5664_v50 = vld [vmem:[%s3583_s18 + $0x670] sm:$0xff]  ;;  %v5668_v52 = vld [vmem:[%s3583_s18 + $0x278] sm:$0xff] }
 0x2aa   : > { %1580 = vmatpush.msra.mxu0 %v5478_v54  ;;  %1600 = vmatpush.msra.mxu1 %v5482_v55  ;;  %7486 = vst [vmem:[#allocation137_spill] sm:$0xff] %v5664_v50  ;;  %v5672_v53 = vld [vmem:[%s3583_s18 + $0x678] sm:$0xff] }
 0x2ab   : > { %1620 = vmatpush.msra.mxu2 %v7465_v56  ;;  %1640 = vmatpush.msra.mxu3 %v7466_v59  ;;  %7487 = vst [vmem:[#allocation130_spill] sm:$0xff] %v5668_v52  ;;  %v5676_v56 = vld [vmem:[%s3583_s18 + $0x230] sm:$0xff] }
 0x2ac   : > { %1581 = vmatpush.msra.mxu0 %v5488_v60  ;;  %1601 = vmatpush.msra.mxu1 %v5492_v61  ;;  %7488 = vst [vmem:[#allocation131_spill] sm:$0xff] %v5672_v53  ;;  %v5680_v59 = vld [vmem:[%s3583_s18 + $0x630] sm:$0xff] }
 0x2ad   : > { %1621 = vmatpush.msra.mxu2 %v7467_v62  ;;  %1641 = vmatpush.msra.mxu3 %v7468_v63  ;;  %7489 = vst [vmem:[#allocation140_spill] sm:$0xff] %v5676_v56  ;;  %v5684_v62 = vld [vmem:[%s3583_s18 + $0x238] sm:$0xff] }
 0x2ae   : > { %1582 = vmatpush.msra.mxu0 %v5498_v0  ;;  %1602 = vmatpush.msra.mxu1 %v5502_v2  ;;  %7490 = vst [vmem:[#allocation141_spill] sm:$0xff] %v5680_v59  ;;  %v5688_v63 = vld [vmem:[%s3583_s18 + $0x638] sm:$0xff] }
 0x2af   : > { %1622 = vmatpush.msra.mxu2 %v7469_v5  ;;  %1642 = vmatpush.msra.mxu3 %v7470_v6  ;;  %7491 = vst [vmem:[#allocation134_spill] sm:$0xff] %v5684_v62  ;;  %v5692_v5 = vld [vmem:[%s3583_s18 + $0x1f0] sm:$0xff] }
 0x2b0   : > { %1583 = vmatpush.msra.mxu0 %v5508_v7  ;;  %1603 = vmatpush.msra.mxu1 %v5512_v8  ;;  %7492 = vst [vmem:[#allocation135_spill] sm:$0xff] %v5688_v63  ;;  %v5696_v6 = vld [vmem:[%s3583_s18 + $0x5f0] sm:$0xff] }
 0x2b1   : > { %1623 = vmatpush.msra.mxu2 %v7471_v10  ;;  %1643 = vmatpush.msra.mxu3 %v7472_v11  ;;  %7493 = vst [vmem:[#allocation144_spill] sm:$0xff] %v5692_v5  ;;  %v5700_v10 = vld [vmem:[%s3583_s18 + $0x1f8] sm:$0xff] }
 0x2b2   : > { %1584 = vmatpush.msra.mxu0 %v5518_v14  ;;  %1604 = vmatpush.msra.mxu1 %v5522_v15  ;;  %7494 = vst [vmem:[#allocation145_spill] sm:$0xff] %v5696_v6  ;;  %v5704_v11 = vld [vmem:[%s3583_s18 + $0x5f8] sm:$0xff] }
 0x2b3   : > { %1624 = vmatpush.msra.mxu2 %v7473_v26  ;;  %1644 = vmatpush.msra.mxu3 %v7474_v27  ;;  %7495 = vst [vmem:[#allocation138_spill] sm:$0xff] %v5700_v10  ;;  %v5708_v26 = vld [vmem:[%s3583_s18 + $0x1b0] sm:$0xff] }
 0x2b4   : > { %1585 = vmatpush.msra.mxu0 %v5528_v28  ;;  %1605 = vmatpush.msra.mxu1 %v5532_v29  ;;  %7496 = vst [vmem:[#allocation139_spill] sm:$0xff] %v5704_v11  ;;  %v5712_v27 = vld [vmem:[%s3583_s18 + $0x5b0] sm:$0xff] }
 0x2b5   : > { %1625 = vmatpush.msra.mxu2 %v5536_v30  ;;  %1645 = vmatpush.msra.mxu3 %v5540_v31  ;;  %7497 = vst [vmem:[#allocation142_spill] sm:$0xff] %v5708_v26 }
 0x2b6   : > { %1586 = vmatpush.msra.mxu0 %v5544_v45  ;;  %1606 = vmatpush.msra.mxu1 %v5548_v51  ;;  %7498 = vst [vmem:[#allocation143_spill] sm:$0xff] %v5712_v27 }
 0x2b7   : > { %1626 = vmatpush.msra.mxu2 %v5552_v16  ;;  %1646 = vmatpush.msra.mxu3 %v5556_v47 }
 0x2b8   : > { %1587 = vmatmul.f32.vlgmr.msra.gmra.mxu0 %v5423_v17  ;;  %1607 = vmatmul.f32.vlgmr.msra.gmra.mxu1 %v5425_v43 }
 0x2b9   : > { %1627 = vmatmul.f32.vlgmr.msra.gmra.mxu2 %v5423_v17  ;;  %1647 = vmatmul.f32.vlgmr.msra.gmra.mxu3 %v5425_v43 }
 0x2ba   : > { %1651 = vmatpush.msrb.mxu0 %v5564_v12  ;;  %1671 = vmatpush.msrb.mxu1 %v5568_v22 }
 0x2bb   : > { %1691 = vmatpush.msrb.mxu2 %v5572_v39  ;;  %1711 = vmatpush.msrb.mxu3 %v5576_v35 }
 0x2bc   : > { %1652 = vmatpush.msrb.mxu0 %v5580_v25  ;;  %1672 = vmatpush.msrb.mxu1 %v5584_v40 }
 0x2bd   : > { %1692 = vmatpush.msrb.mxu2 %v5588_v9  ;;  %1712 = vmatpush.msrb.mxu3 %v5592_v42 }
 0x2be   : > { %1653 = vmatpush.msrb.mxu0 %v5596_v23  ;;  %1673 = vmatpush.msrb.mxu1 %v5600_v24 }
 0x2bf   : > { %1693 = vmatpush.msrb.mxu2 %v5604_v1  ;;  %1713 = vmatpush.msrb.mxu3 %v5608_v58 }
 0x2c0   : > { %1654 = vmatpush.msrb.mxu0 %v5612_v13  ;;  %1674 = vmatpush.msrb.mxu1 %v5616_v57 }
 0x2c1   : > { %1694 = vmatpush.msrb.mxu2 %v5620_v41  ;;  %1714 = vmatpush.msrb.mxu3 %v5624_v32 }
 0x2c2   : > { %1655 = vmatpush.msrb.mxu0 %v5628_v18  ;;  %1675 = vmatpush.msrb.mxu1 %v5632_v33  ;;  %v7653_v33 = vld [vmem:[#allocation7_spill] sm:$0xff] }
 0x2c3   : > { %1695 = vmatpush.msrb.mxu2 %v5636_v21  ;;  %1715 = vmatpush.msrb.mxu3 %v5640_v38 }
 0x2c4   : > { %1656 = vmatpush.msrb.mxu0 %v5644_v36  ;;  %1676 = vmatpush.msrb.mxu1 %v5648_v37  ;;  %v1789_v37 = vld.sshfl [vmem:[#allocation1 + $0x8] sm:$0xff pattern:$0x73625140] }
 0x2c5   : > { %1696 = vmatpush.msrb.mxu2 %v5652_v19  ;;  %1716 = vmatpush.msrb.mxu3 %v5656_v48 }
 0x2c6   : > { %1657 = vmatpush.msrb.mxu0 %v5660_v49  ;;  %1677 = vmatpush.msrb.mxu1 %v5664_v50 }
 0x2c7   : > { %1697 = vmatpush.msrb.mxu2 %v5668_v52  ;;  %1717 = vmatpush.msrb.mxu3 %v5672_v53 }
 0x2c8   : > { %1658 = vmatpush.msrb.mxu0 %v5676_v56  ;;  %1678 = vmatpush.msrb.mxu1 %v5680_v59  ;;  %v7644_v59 = vld [vmem:[#allocation110_spill] sm:$0xff] }
 0x2c9   : > { %1698 = vmatpush.msrb.mxu2 %v5684_v62  ;;  %1718 = vmatpush.msrb.mxu3 %v5688_v63  ;;  %v7559_v63 = vld [vmem:[#allocation25_spill] sm:$0xff]  ;;  %v7561_v62 = vld [vmem:[#allocation35_spill] sm:$0xff]  ;;  %v7646_v56 = vld [vmem:[#allocation122_spill] sm:$0xff] }
 0x2ca   : > { %1659 = vmatpush.msrb.mxu0 %v5692_v5  ;;  %1679 = vmatpush.msrb.mxu1 %v5696_v6  ;;  %v5716_v6 = vld [vmem:[%s3583_s18 + $0x1b8] sm:$0xff] }
 0x2cb   : > { %1699 = vmatpush.msrb.mxu2 %v5700_v10  ;;  %1719 = vmatpush.msrb.mxu3 %v5704_v11  ;;  %7499 = vst [vmem:[#allocation146_spill] sm:$0xff] %v5716_v6  ;;  %v5720_v10 = vld [vmem:[%s3583_s18 + $0x5b8] sm:$0xff]  ;;  %v5724_v11 = vld [vmem:[%s3583_s18 + $0x170] sm:$0xff] }
 0x2cc   : > { %1660 = vmatpush.msrb.mxu0 %v5708_v26  ;;  %1680 = vmatpush.msrb.mxu1 %v5712_v27  ;;  %7500 = vst [vmem:[#allocation147_spill] sm:$0xff] %v5720_v10  ;;  %v5728_v26 = vld [vmem:[%s3583_s18 + $0x570] sm:$0xff]  ;;  %v5732_v27 = vld [vmem:[%s3583_s18 + $0x178] sm:$0xff] }
 0x2cd   : > { %1700 = vmatpush.msrb.mxu2 %v5716_v6  ;;  %1720 = vmatpush.msrb.mxu3 %v5720_v10  ;;  %7501 = vst [vmem:[#allocation4_spill] sm:$0xff] %v5724_v11  ;;  %v5736_v6 = vld [vmem:[%s3583_s18 + $0x578] sm:$0xff]  ;;  %v5740_v10 = vld [vmem:[%s3583_s18 + $0x130] sm:$0xff] }
 0x2ce   : > { %1661 = vmatpush.msrb.mxu0 %v5724_v11  ;;  %7502 = vst [vmem:[#allocation11_spill] sm:$0xff] %v5728_v26  ;;  %1681 = vmatpush.msrb.mxu1 %v5728_v26  ;;  %v5744_v11 = vld [vmem:[%s3583_s18 + $0x530] sm:$0xff]  ;;  %v5748_v26 = vld [vmem:[%s3583_s18 + $0x138] sm:$0xff] }
 0x2cf   : > { %7503 = vst [vmem:[#allocation12_spill] sm:$0xff] %v5732_v27  ;;  %1701 = vmatpush.msrb.mxu2 %v5732_v27  ;;  %1721 = vmatpush.msrb.mxu3 %v5736_v6  ;;  %v5752_v27 = vld [vmem:[%s3583_s18 + $0x538] sm:$0xff] }
 0x2d0   : > { %7504 = vst [vmem:[#allocation5_spill] sm:$0xff] %v5736_v6  ;;  %1662 = vmatpush.msrb.mxu0 %v5740_v10  ;;  %1682 = vmatpush.msrb.mxu1 %v5744_v11  ;;  %v5756_v6 = vld [vmem:[%s3583_s18 + $0xf0] sm:$0xff]  ;;  %v5796_v5 = vld [vmem:[%s3583_s18 + $0x78] sm:$0xff] }
 0x2d1   : > { %7505 = vst [vmem:[#allocation6_spill] sm:$0xff] %v5740_v10  ;;  %1702 = vmatpush.msrb.mxu2 %v5748_v26  ;;  %1722 = vmatpush.msrb.mxu3 %v5752_v27  ;;  %v5760_v10 = vld [vmem:[%s3583_s18 + $0x4f0] sm:$0xff] }
 0x2d2   : > { %7506 = vst [vmem:[#allocation15_spill] sm:$0xff] %v5744_v11  ;;  %1663 = vmatpush.msrb.mxu0 %v5756_v6  ;;  %1683 = vmatpush.msrb.mxu1 %v5760_v10  ;;  %v5764_v11 = vld [vmem:[%s3583_s18 + $0xf8] sm:$0xff] }
 0x2d3   : > { %7507 = vst [vmem:[#allocation16_spill] sm:$0xff] %v5748_v26  ;;  %1703 = vmatpush.msrb.mxu2 %v5764_v11  ;;  %v5768_v26 = vld [vmem:[%s3583_s18 + $0x4f8] sm:$0xff] }
 0x2d4   : > { %7508 = vst [vmem:[#allocation9_spill] sm:$0xff] %v5752_v27  ;;  %1723 = vmatpush.msrb.mxu3 %v5768_v26  ;;  %v5772_v27 = vld [vmem:[%s3583_s18 + $0xb0] sm:$0xff] }
 0x2d5   : > { %7509 = vst [vmem:[#allocation10_spill] sm:$0xff] %v5756_v6  ;;  %1664 = vmatpush.msrb.mxu0 %v5772_v27  ;;  %v5776_v6 = vld [vmem:[%s3583_s18 + $0x4b0] sm:$0xff] }
 0x2d6   : > { %7510 = vst [vmem:[#allocation19_spill] sm:$0xff] %v5760_v10  ;;  %1684 = vmatpush.msrb.mxu1 %v5776_v6  ;;  %v5780_v10 = vld [vmem:[%s3583_s18 + $0xb8] sm:$0xff] }
 0x2d7   : > { %7511 = vst [vmem:[#allocation20_spill] sm:$0xff] %v5764_v11  ;;  %1704 = vmatpush.msrb.mxu2 %v5780_v10  ;;  %v5784_v11 = vld [vmem:[%s3583_s18 + $0x4b8] sm:$0xff] }
 0x2d8   : > { %7512 = vst [vmem:[#allocation13_spill] sm:$0xff] %v5768_v26  ;;  %1724 = vmatpush.msrb.mxu3 %v5784_v11  ;;  %v5788_v26 = vld [vmem:[%s3583_s18 + $0x70] sm:$0xff] }
 0x2d9   : > { %7513 = vst [vmem:[#allocation14_spill] sm:$0xff] %v5772_v27  ;;  %1665 = vmatpush.msrb.mxu0 %v5788_v26  ;;  %v5792_v27 = vld [vmem:[%s3583_s18 + $0x470] sm:$0xff]  ;;  %1705 = vmatpush.msrb.mxu2 %v5796_v5 }
 0x2da   : > { %7514 = vst [vmem:[#allocation23_spill] sm:$0xff] %v5776_v6  ;;  %1685 = vmatpush.msrb.mxu1 %v5792_v27  ;;  %v5800_v6 = vld [vmem:[%s3583_s18 + $0x478] sm:$0xff] }
 0x2db   : > { %7515 = vst [vmem:[#allocation24_spill] sm:$0xff] %v5780_v10  ;;  %1725 = vmatpush.msrb.mxu3 %v5800_v6  ;;  %v5804_v10 = vld [vmem:[%s3583_s18 + $0x30] sm:$0xff] }
 0x2dc   : > { %7516 = vst [vmem:[#allocation148_spill] sm:$0xff] %v5784_v11  ;;  %1666 = vmatpush.msrb.mxu0 %v5804_v10  ;;  %v7555_v11 = vld [vmem:[#allocation21_spill] sm:$0xff] }
 0x2dd   : > { %7517 = vst [vmem:[#allocation149_spill] sm:$0xff] %v5788_v26  ;;  %v5808_v26 = vld [vmem:[%s3583_s18 + $0x430] sm:$0xff]  ;;  %1667 = vmatmul.f32.vlgmr.msrb.gmra.mxu0 %v5423_v17 }
 0x2de   : > { %7518 = vst [vmem:[#allocation150_spill] sm:$0xff] %v5792_v27  ;;  %1686 = vmatpush.msrb.mxu1 %v5808_v26  ;;  %v5812_v27 = vld [vmem:[%s3583_s18 + $0x38] sm:$0xff] }
 0x2df   : > { %7519 = vst [vmem:[#allocation151_spill] sm:$0xff] %v5796_v5  ;;  %1706 = vmatpush.msrb.mxu2 %v5812_v27  ;;  %v5816_v5 = vld [vmem:[%s3583_s18 + $0x438] sm:$0xff]  ;;  %1687 = vmatmul.f32.vlgmr.msrb.gmra.mxu1 %v5425_v43 }
 0x2e0   : > { %7520 = vst [vmem:[#allocation152_spill] sm:$0xff] %v5800_v6  ;;  %1726 = vmatpush.msrb.mxu3 %v5816_v5  ;;  %1707 = vmatmul.f32.vlgmr.msrb.gmra.mxu2 %v5423_v17  ;;  %v5840_v17 = vld [vmem:[%s3583_s18 + $0x380] sm:$0xff]  ;;  %v7553_v6 = vld [vmem:[#allocation27_spill] sm:$0xff] }
 0x2e1   : > { %7521 = vst [vmem:[#allocation153_spill] sm:$0xff] %v5804_v10  ;;  %1727 = vmatmul.f32.vlgmr.msrb.gmra.mxu3 %v5425_v43  ;;  %v5836_v10 = vld [vmem:[%s3583_s18 + $0x7c8] sm:$0xff]  ;;  %v5844_v43 = vld [vmem:[%s3583_s18 + $0x780] sm:$0xff] }
 0x2e2   : > { %7522 = vst [vmem:[#allocation154_spill] sm:$0xff] %v5808_v26  ;;  %v5824_v26 = vld [vmem:[%s3583_s18 + $0x3c0] sm:$0xff]  ;;  %1935 = vmatpush.msra.mxu3 %v5836_v10 }
 0x2e3   : > { %7523 = vst [vmem:[#allocation155_spill] sm:$0xff] %v5812_v27  ;;  %1875 = vmatpush.msra.mxu0 %v5824_v26  ;;  %v5828_v27 = vld [vmem:[%s3583_s18 + $0x7c0] sm:$0xff] }
 0x2e4   : > { %7524 = vst [vmem:[#allocation156_spill] sm:$0xff] %v5816_v5  ;;  %1895 = vmatpush.msra.mxu1 %v5828_v27  ;;  %v5832_v5 = vld [vmem:[%s3583_s18 + $0x3c8] sm:$0xff] }
 0x2e5   : > { %7525 = vst [vmem:[#allocation157_spill] sm:$0xff] %v5824_v26  ;;  %1915 = vmatpush.msra.mxu2 %v5832_v5  ;;  %1876 = vmatpush.msra.mxu0 %v5840_v17  ;;  %v5904_v26 = vld [vmem:[%s3583_s18 + $0x280] sm:$0xff] }
 0x2e6   : > { %7526 = vst [vmem:[#allocation158_spill] sm:$0xff] %v5828_v27  ;;  %1896 = vmatpush.msra.mxu1 %v5844_v43  ;;  %v5848_v27 = vld [vmem:[%s3583_s18 + $0x388] sm:$0xff] }
 0x2e7   : > { %7527 = vst [vmem:[#allocation159_spill] sm:$0xff] %v5832_v5  ;;  %1916 = vmatpush.msra.mxu2 %v5848_v27  ;;  %v5852_v5 = vld [vmem:[%s3583_s18 + $0x788] sm:$0xff] }
 0x2e8   : > { %7528 = vst [vmem:[#allocation160_spill] sm:$0xff] %v5836_v10  ;;  %1936 = vmatpush.msra.mxu3 %v5852_v5  ;;  %v5856_v10 = vld [vmem:[%s3583_s18 + $0x340] sm:$0xff] }
 0x2e9   : > { %7529 = vst [vmem:[#allocation161_spill] sm:$0xff] %v5840_v17  ;;  %1877 = vmatpush.msra.mxu0 %v5856_v10  ;;  %v5860_v17 = vld [vmem:[%s3583_s18 + $0x740] sm:$0xff] }
 0x2ea   : > { %7530 = vst [vmem:[#allocation162_spill] sm:$0xff] %v5844_v43  ;;  %1897 = vmatpush.msra.mxu1 %v5860_v17  ;;  %v5864_v43 = vld [vmem:[%s3583_s18 + $0x348] sm:$0xff] }
 0x2eb   : > { %7531 = vst [vmem:[#allocation163_spill] sm:$0xff] %v5848_v27  ;;  %1917 = vmatpush.msra.mxu2 %v5864_v43  ;;  %v5868_v27 = vld [vmem:[%s3583_s18 + $0x748] sm:$0xff] }
 0x2ec   : > { %7532 = vst [vmem:[#allocation164_spill] sm:$0xff] %v5852_v5  ;;  %1937 = vmatpush.msra.mxu3 %v5868_v27  ;;  %v5872_v5 = vld [vmem:[%s3583_s18 + $0x300] sm:$0xff] }
 0x2ed   : > { %7533 = vst [vmem:[#allocation165_spill] sm:$0xff] %v5856_v10  ;;  %1878 = vmatpush.msra.mxu0 %v5872_v5  ;;  %v5876_v10 = vld [vmem:[%s3583_s18 + $0x700] sm:$0xff] }
 0x2ee   : > { %7534 = vst [vmem:[#allocation166_spill] sm:$0xff] %v5860_v17  ;;  %1898 = vmatpush.msra.mxu1 %v5876_v10  ;;  %v5880_v17 = vld [vmem:[%s3583_s18 + $0x308] sm:$0xff] }
 0x2ef   : > { %7535 = vst [vmem:[#allocation167_spill] sm:$0xff] %v5864_v43  ;;  %1918 = vmatpush.msra.mxu2 %v5880_v17  ;;  %v5884_v43 = vld [vmem:[%s3583_s18 + $0x708] sm:$0xff] }
 0x2f0   : > { %7536 = vst [vmem:[#allocation168_spill] sm:$0xff] %v5868_v27  ;;  %1938 = vmatpush.msra.mxu3 %v5884_v43  ;;  %v5888_v27 = vld [vmem:[%s3583_s18 + $0x2c0] sm:$0xff] }
 0x2f1   : > { %7537 = vst [vmem:[#allocation169_spill] sm:$0xff] %v5872_v5  ;;  %1879 = vmatpush.msra.mxu0 %v5888_v27  ;;  %v5892_v5 = vld [vmem:[%s3583_s18 + $0x6c0] sm:$0xff] }
 0x2f2   : > { %7538 = vst [vmem:[#allocation170_spill] sm:$0xff] %v5876_v10  ;;  %1899 = vmatpush.msra.mxu1 %v5892_v5  ;;  %v5896_v10 = vld [vmem:[%s3583_s18 + $0x2c8] sm:$0xff] }
 0x2f3   : > { %7539 = vst [vmem:[#allocation171_spill] sm:$0xff] %v5880_v17  ;;  %1919 = vmatpush.msra.mxu2 %v5896_v10  ;;  %v5900_v17 = vld [vmem:[%s3583_s18 + $0x6c8] sm:$0xff]  ;;  %1880 = vmatpush.msra.mxu0 %v5904_v26 }
 0x2f4   : > { %7540 = vst [vmem:[#allocation172_spill] sm:$0xff] %v5884_v43  ;;  %1939 = vmatpush.msra.mxu3 %v5900_v17  ;;  %v5908_v43 = vld [vmem:[%s3583_s18 + $0x680] sm:$0xff] }
 0x2f5   : > { %7541 = vst [vmem:[#allocation173_spill] sm:$0xff] %v5888_v27  ;;  %1900 = vmatpush.msra.mxu1 %v5908_v43  ;;  %v5912_v27 = vld [vmem:[%s3583_s18 + $0x288] sm:$0xff]  ;;  %1881 = vmatpush.msra.mxu0 %v4989_v34  ;;  %v7557_v34 = vld [vmem:[#allocation31_spill] sm:$0xff] }
 0x2f6   : > { %7542 = vst [vmem:[#allocation174_spill] sm:$0xff] %v5892_v5  ;;  %1920 = vmatpush.msra.mxu2 %v5912_v27  ;;  %v5916_v5 = vld [vmem:[%s3583_s18 + $0x688] sm:$0xff] }
 0x2f7   : > { %7543 = vst [vmem:[#allocation175_spill] sm:$0xff] %v5896_v10  ;;  %1940 = vmatpush.msra.mxu3 %v5916_v5  ;;  %v7549_v10 = vld [vmem:[#allocation17_spill] sm:$0xff] }
 0x2f8   : > { %7544 = vst [vmem:[#allocation176_spill] sm:$0xff] %v5900_v17  ;;  %1901 = vmatpush.msra.mxu1 %v7549_v10  ;;  %v5922_v17 = vld [vmem:[%s3583_s18 + $0x248] sm:$0xff]  ;;  %v7558_v10 = vld [vmem:[#allocation32_spill] sm:$0xff] }
 0x2f9   : > { %7545 = vst [vmem:[#allocation177_spill] sm:$0xff] %v5904_v26  ;;  %1921 = vmatpush.msra.mxu2 %v5922_v17  ;;  %v5926_v26 = vld [vmem:[%s3583_s18 + $0x648] sm:$0xff] }
 0x2fa   : > { %7546 = vst [vmem:[#allocation178_spill] sm:$0xff] %v5908_v43  ;;  %1941 = vmatpush.msra.mxu3 %v5926_v26  ;;  %v7552_v43 = vld [vmem:[#allocation18_spill] sm:$0xff]  ;;  %1902 = vmatpush.msra.mxu1 %v7553_v6 }
 0x2fb   : > { %7547 = vst [vmem:[#allocation179_spill] sm:$0xff] %v5912_v27  ;;  %1882 = vmatpush.msra.mxu0 %v7552_v43  ;;  %v7554_v27 = vld [vmem:[#allocation28_spill] sm:$0xff]  ;;  %v7563_v43 = vld [vmem:[#allocation29_spill] sm:$0xff]  ;;  %v7564_v6 = vld [vmem:[#allocation30_spill] sm:$0xff] }
 0x2fc   : > { %7548 = vst [vmem:[#allocation180_spill] sm:$0xff] %v5916_v5  ;;  %1922 = vmatpush.msra.mxu2 %v7554_v27  ;;  %1942 = vmatpush.msra.mxu3 %v7555_v11  ;;  %v7556_v5 = vld [vmem:[#allocation22_spill] sm:$0xff]  ;;  %v7565_v27 = vld [vmem:[#allocation39_spill] sm:$0xff]  ;;  %v7566_v11 = vld [vmem:[#allocation40_spill] sm:$0xff] }
 0x2fd   : > { %7550 = vst [vmem:[#allocation17_spill] sm:$0xff] %v5922_v17  ;;  %1883 = vmatpush.msra.mxu0 %v7556_v5  ;;  %1903 = vmatpush.msra.mxu1 %v7557_v34  ;;  %v7560_v17 = vld [vmem:[#allocation26_spill] sm:$0xff]  ;;  %v7567_v5 = vld [vmem:[#allocation33_spill] sm:$0xff] }
 0x2fe   : > { %7551 = vst [vmem:[#allocation181_spill] sm:$0xff] %v5926_v26  ;;  %1923 = vmatpush.msra.mxu2 %v7558_v10  ;;  %1943 = vmatpush.msra.mxu3 %v7559_v63  ;;  %v7562_v26 = vld [vmem:[#allocation36_spill] sm:$0xff]  ;;  %v7568_v34 = vld [vmem:[#allocation34_spill] sm:$0xff]  ;;  %v7569_v10 = vld [vmem:[#allocation43_spill] sm:$0xff] }
 0x2ff   : > { %1884 = vmatpush.msra.mxu0 %v7560_v17  ;;  %1904 = vmatpush.msra.mxu1 %v7561_v62  ;;  %v7570_v63 = vld [vmem:[#allocation44_spill] sm:$0xff]  ;;  %v7571_v17 = vld [vmem:[#allocation37_spill] sm:$0xff]  ;;  %v7572_v62 = vld [vmem:[#allocation38_spill] sm:$0xff] }
 0x300   : > { %1924 = vmatpush.msra.mxu2 %v7562_v26  ;;  %1944 = vmatpush.msra.mxu3 %v7563_v43  ;;  %v7573_v26 = vld [vmem:[#allocation47_spill] sm:$0xff]  ;;  %v7574_v43 = vld [vmem:[#allocation48_spill] sm:$0xff] }
 0x301   : > { %1885 = vmatpush.msra.mxu0 %v7564_v6  ;;  %1905 = vmatpush.msra.mxu1 %v7565_v27  ;;  %v7575_v6 = vld [vmem:[#allocation41_spill] sm:$0xff]  ;;  %v7576_v27 = vld [vmem:[#allocation42_spill] sm:$0xff] }
 0x302   : > { %1925 = vmatpush.msra.mxu2 %v7566_v11  ;;  %1945 = vmatpush.msra.mxu3 %v7567_v5  ;;  %v7577_v11 = vld [vmem:[#allocation49_spill] sm:$0xff]  ;;  %v7578_v5 = vld [vmem:[#allocation50_spill] sm:$0xff] }
 0x303   : > { %1886 = vmatpush.msra.mxu0 %v7568_v34  ;;  %1906 = vmatpush.msra.mxu1 %v7569_v10  ;;  %v7579_v34 = vld [vmem:[#allocation45_spill] sm:$0xff]  ;;  %v7580_v10 = vld [vmem:[#allocation46_spill] sm:$0xff] }
 0x304   : > { %1926 = vmatpush.msra.mxu2 %v7570_v63  ;;  %1946 = vmatpush.msra.mxu3 %v7571_v17  ;;  %v7581_v63 = vld [vmem:[#allocation51_spill] sm:$0xff]  ;;  %v7582_v17 = vld [vmem:[#allocation52_spill] sm:$0xff] }
 0x305   : > { %1887 = vmatpush.msra.mxu0 %v7572_v62  ;;  %1907 = vmatpush.msra.mxu1 %v7573_v26  ;;  %v7583_v62 = vld [vmem:[#allocation53_spill] sm:$0xff]  ;;  %v7584_v26 = vld [vmem:[#allocation54_spill] sm:$0xff] }
 0x306   : > { %1927 = vmatpush.msra.mxu2 %v7574_v43  ;;  %1947 = vmatpush.msra.mxu3 %v7575_v6  ;;  %v7585_v43 = vld [vmem:[#allocation55_spill] sm:$0xff]  ;;  %v7586_v6 = vld [vmem:[#allocation56_spill] sm:$0xff] }
 0x307   : > { %1888 = vmatpush.msra.mxu0 %v7576_v27  ;;  %1908 = vmatpush.msra.mxu1 %v7577_v11  ;;  %v7587_v27 = vld [vmem:[#allocation59_spill] sm:$0xff]  ;;  %v7588_v11 = vld [vmem:[#allocation60_spill] sm:$0xff] }
 0x308   : > { %1928 = vmatpush.msra.mxu2 %v7578_v5  ;;  %1948 = vmatpush.msra.mxu3 %v7579_v34  ;;  %v7589_v5 = vld [vmem:[#allocation65_spill] sm:$0xff]  ;;  %v7590_v34 = vld [vmem:[#allocation66_spill] sm:$0xff] }
 0x309   : > { %1889 = vmatpush.msra.mxu0 %v7580_v10  ;;  %1909 = vmatpush.msra.mxu1 %v7581_v63  ;;  %v7591_v10 = vld [vmem:[#allocation69_spill] sm:$0xff]  ;;  %v7592_v63 = vld [vmem:[#allocation70_spill] sm:$0xff] }
 0x30a   : > { %1929 = vmatpush.msra.mxu2 %v7582_v17  ;;  %1949 = vmatpush.msra.mxu3 %v7583_v62  ;;  %v7593_v17 = vld [vmem:[#allocation57_spill] sm:$0xff]  ;;  %v7594_v62 = vld [vmem:[#allocation58_spill] sm:$0xff] }
 0x30b   : > { %1890 = vmatpush.msra.mxu0 %v7584_v26  ;;  %1910 = vmatpush.msra.mxu1 %v7585_v43  ;;  %v7595_v26 = vld [vmem:[#allocation73_spill] sm:$0xff]  ;;  %v7596_v43 = vld [vmem:[#allocation74_spill] sm:$0xff] }
 0x30c   : > { %1930 = vmatpush.msra.mxu2 %v7586_v6  ;;  %1950 = vmatpush.msra.mxu3 %v7587_v27  ;;  %v7597_v6 = vld [vmem:[#allocation61_spill] sm:$0xff]  ;;  %v7598_v27 = vld [vmem:[#allocation62_spill] sm:$0xff] }
 0x30d   : > { %1955 = vmatpush.msrb.mxu0 %v7588_v11  ;;  %1975 = vmatpush.msrb.mxu1 %v7589_v5  ;;  %v7599_v11 = vld [vmem:[#allocation75_spill] sm:$0xff]  ;;  %v7600_v5 = vld [vmem:[#allocation76_spill] sm:$0xff] }
 0x30e   : > { %1995 = vmatpush.msrb.mxu2 %v7590_v34  ;;  %2015 = vmatpush.msrb.mxu3 %v7591_v10  ;;  %v7601_v34 = vld [vmem:[#allocation63_spill] sm:$0xff]  ;;  %v7602_v10 = vld [vmem:[#allocation64_spill] sm:$0xff] }
 0x30f   : > { %1956 = vmatpush.msrb.mxu0 %v7592_v63  ;;  %1976 = vmatpush.msrb.mxu1 %v7593_v17  ;;  %v7603_v63 = vld [vmem:[#allocation79_spill] sm:$0xff]  ;;  %v7604_v17 = vld [vmem:[#allocation80_spill] sm:$0xff] }
 0x310   : > { %1996 = vmatpush.msrb.mxu2 %v7594_v62  ;;  %2016 = vmatpush.msrb.mxu3 %v7595_v26  ;;  %v7605_v62 = vld [vmem:[#allocation67_spill] sm:$0xff]  ;;  %v7606_v26 = vld [vmem:[#allocation68_spill] sm:$0xff] }
 0x311   : > { %1957 = vmatpush.msrb.mxu0 %v7596_v43  ;;  %1977 = vmatpush.msrb.mxu1 %v7597_v6  ;;  %v7607_v43 = vld [vmem:[#allocation83_spill] sm:$0xff]  ;;  %v7608_v6 = vld [vmem:[#allocation84_spill] sm:$0xff] }
 0x312   : > { %1997 = vmatpush.msrb.mxu2 %v7598_v27  ;;  %2017 = vmatpush.msrb.mxu3 %v7599_v11  ;;  %v7609_v27 = vld [vmem:[#allocation71_spill] sm:$0xff]  ;;  %v7610_v11 = vld [vmem:[#allocation72_spill] sm:$0xff] }
 0x313   : > { %1958 = vmatpush.msrb.mxu0 %v7600_v5  ;;  %1978 = vmatpush.msrb.mxu1 %v7601_v34  ;;  %v7611_v5 = vld [vmem:[#allocation87_spill] sm:$0xff]  ;;  %v7612_v34 = vld [vmem:[#allocation88_spill] sm:$0xff] }
 0x314   : > { %1998 = vmatpush.msrb.mxu2 %v7602_v10  ;;  %2018 = vmatpush.msrb.mxu3 %v7603_v63  ;;  %v7613_v10 = vld [vmem:[#allocation77_spill] sm:$0xff]  ;;  %v7614_v63 = vld [vmem:[#allocation78_spill] sm:$0xff] }
 0x315   : > { %1959 = vmatpush.msrb.mxu0 %v7604_v17  ;;  %1979 = vmatpush.msrb.mxu1 %v7605_v62  ;;  %v7615_v17 = vld [vmem:[#allocation91_spill] sm:$0xff]  ;;  %v7616_v62 = vld [vmem:[#allocation92_spill] sm:$0xff] }
 0x316   : > { %1999 = vmatpush.msrb.mxu2 %v7606_v26  ;;  %2019 = vmatpush.msrb.mxu3 %v7607_v43  ;;  %v7617_v26 = vld [vmem:[#allocation81_spill] sm:$0xff]  ;;  %v7618_v43 = vld [vmem:[#allocation82_spill] sm:$0xff] }
 0x317   : > { %1960 = vmatpush.msrb.mxu0 %v7608_v6  ;;  %1980 = vmatpush.msrb.mxu1 %v7609_v27  ;;  %v7619_v6 = vld [vmem:[#allocation95_spill] sm:$0xff]  ;;  %v7620_v27 = vld [vmem:[#allocation96_spill] sm:$0xff] }
 0x318   : > { %2000 = vmatpush.msrb.mxu2 %v7610_v11  ;;  %2020 = vmatpush.msrb.mxu3 %v7611_v5  ;;  %v7621_v11 = vld [vmem:[#allocation85_spill] sm:$0xff]  ;;  %v7622_v5 = vld [vmem:[#allocation86_spill] sm:$0xff] }
 0x319   : > { %1961 = vmatpush.msrb.mxu0 %v7612_v34  ;;  %1981 = vmatpush.msrb.mxu1 %v7613_v10  ;;  %v7623_v34 = vld [vmem:[#allocation99_spill] sm:$0xff]  ;;  %v7624_v10 = vld [vmem:[#allocation100_spill] sm:$0xff] }
 0x31a   : > { %2001 = vmatpush.msrb.mxu2 %v7614_v63  ;;  %2021 = vmatpush.msrb.mxu3 %v7615_v17  ;;  %v7625_v63 = vld [vmem:[#allocation89_spill] sm:$0xff]  ;;  %v7626_v17 = vld [vmem:[#allocation90_spill] sm:$0xff] }
 0x31b   : > { %1962 = vmatpush.msrb.mxu0 %v7616_v62  ;;  %1982 = vmatpush.msrb.mxu1 %v7617_v26  ;;  %v7627_v62 = vld [vmem:[#allocation103_spill] sm:$0xff]  ;;  %v7628_v26 = vld [vmem:[#allocation104_spill] sm:$0xff] }
 0x31c   : > { %2002 = vmatpush.msrb.mxu2 %v7618_v43  ;;  %2022 = vmatpush.msrb.mxu3 %v7619_v6  ;;  %v7629_v43 = vld [vmem:[#allocation93_spill] sm:$0xff]  ;;  %v7630_v6 = vld [vmem:[#allocation94_spill] sm:$0xff] }
 0x31d   : > { %1963 = vmatpush.msrb.mxu0 %v7620_v27  ;;  %1983 = vmatpush.msrb.mxu1 %v7621_v11  ;;  %v7631_v27 = vld [vmem:[#allocation107_spill] sm:$0xff]  ;;  %v7632_v11 = vld [vmem:[#allocation108_spill] sm:$0xff] }
 0x31e   : > { %2003 = vmatpush.msrb.mxu2 %v7622_v5  ;;  %2023 = vmatpush.msrb.mxu3 %v7623_v34  ;;  %v7633_v5 = vld [vmem:[#allocation97_spill] sm:$0xff]  ;;  %v7634_v34 = vld [vmem:[#allocation98_spill] sm:$0xff] }
 0x31f   : > { %1964 = vmatpush.msrb.mxu0 %v7624_v10  ;;  %1984 = vmatpush.msrb.mxu1 %v7625_v63  ;;  %v7635_v10 = vld [vmem:[#allocation111_spill] sm:$0xff]  ;;  %v7636_v63 = vld [vmem:[#allocation112_spill] sm:$0xff] }
 0x320   : > { %2004 = vmatpush.msrb.mxu2 %v7626_v17  ;;  %2024 = vmatpush.msrb.mxu3 %v7627_v62  ;;  %v7637_v17 = vld [vmem:[#allocation101_spill] sm:$0xff]  ;;  %v7638_v62 = vld [vmem:[#allocation102_spill] sm:$0xff] }
 0x321   : > { %1965 = vmatpush.msrb.mxu0 %v7628_v26  ;;  %1985 = vmatpush.msrb.mxu1 %v7629_v43  ;;  %v7639_v26 = vld [vmem:[#allocation115_spill] sm:$0xff]  ;;  %v7640_v43 = vld [vmem:[#allocation105_spill] sm:$0xff] }
 0x322   : > { %2005 = vmatpush.msrb.mxu2 %v7630_v6  ;;  %2025 = vmatpush.msrb.mxu3 %v7631_v27  ;;  %v7641_v6 = vld [vmem:[#allocation106_spill] sm:$0xff] }
 0x323   : > { %1966 = vmatpush.msrb.mxu0 %v7632_v11  ;;  %1986 = vmatpush.msrb.mxu1 %v7633_v5  ;;  %v7642_v27 = vld [vmem:[#allocation118_spill] sm:$0xff]  ;;  %v7643_v11 = vld [vmem:[#allocation109_spill] sm:$0xff]  ;;  %v1468_v5 = vpop.f32.mrf.mxu2 }
 0x324   : > { %2006 = vmatpush.msrb.mxu2 %v7634_v34  ;;  %2026 = vmatpush.msrb.mxu3 %v7635_v10  ;;  %v1488_v34 = vpop.f32.mrf.mxu3  ;;  %v7645_v10 = vld [vmem:[#allocation121_spill] sm:$0xff] }
 0x325   : > { %1967 = vmatpush.msrb.mxu0 %v7636_v63  ;;  %1987 = vmatpush.msrb.mxu1 %v7637_v17  ;;  %v1428_v63 = vpop.f32.mrf.mxu0  ;;  %v1448_v17 = vpop.f32.mrf.mxu1  ;;  %v1489_v50 = vadd.f32 %v1488_v34, %v1468_v5  ;;  %v1788_v5 = vld.sshfl [vmem:[#allocation1] sm:$0xff pattern:$0x73625140] }
 0x326   : > { %2007 = vmatpush.msrb.mxu2 %v7638_v62  ;;  %2027 = vmatpush.msrb.mxu3 %v7639_v26  ;;  %v7647_v62 = vld [vmem:[#allocation113_spill] sm:$0xff]  ;;  %v7648_v26 = vld [vmem:[#allocation114_spill] sm:$0xff] }
 0x327   : > { %1968 = vmatpush.msrb.mxu0 %v7640_v43  ;;  %1988 = vmatpush.msrb.mxu1 %v7641_v6  ;;  %v7649_v43 = vld [vmem:[#allocation125_spill] sm:$0xff]  ;;  %v7650_v6 = vld [vmem:[#allocation126_spill] sm:$0xff] }
 0x328   : > { %2008 = vmatpush.msrb.mxu2 %v7642_v27  ;;  %2028 = vmatpush.msrb.mxu3 %v7643_v11  ;;  %v7651_v27 = vld [vmem:[#allocation116_spill] sm:$0xff] }
 0x329   : > { %1969 = vmatpush.msrb.mxu0 %v7644_v59  ;;  %1989 = vmatpush.msrb.mxu1 %v7645_v10 }
 0x32a   : > { %2009 = vmatpush.msrb.mxu2 %v7646_v56  ;;  %2029 = vmatpush.msrb.mxu3 %v7647_v62  ;;  %v1739_v56 = vrot.slane %v1489_v50, 6  ;;  %v1449_v62 = vadd.f32 %v1448_v17, %v1428_v63  ;;  %v7655_v17 = vld [vmem:[#allocation3_spill] sm:$0xff] }
 0x32b   : > { %1970 = vmatpush.msrb.mxu0 %v7648_v26  ;;  %1990 = vmatpush.msrb.mxu1 %v7649_v43  ;;  %v1548_v11 = vpop.f32.mrf.mxu2 }
 0x32c   : > { %2010 = vmatpush.msrb.mxu2 %v7650_v6  ;;  %2030 = vmatpush.msrb.mxu3 %v7651_v27  ;;  %v1568_v53 = vpop.f32.mrf.mxu3  ;;  %v1745_v43 = vsel %vm824_vm1, %v1449_v62, %v1739_v56  ;;  %v2906_v6 = vld [vmem:[%s4637_s30 + $0x20] sm:$0xff]  ;;  %v7652_v27 = vld [vmem:[#allocation2_spill] sm:$0xff] }
 0x32d   : > { %v1508_v59 = vpop.f32.mrf.mxu0  ;;  %v1528_v52 = vpop.f32.mrf.mxu1  ;;  %v1569_v10 = vadd.f32 %v1568_v53, %v1548_v11  ;;  %v1793_v38 = vmul.f32 %v1789_v37, %v7652_v27  ;;  %v1761_v53 = vmul.f32 %v5446_v46, %v7653_v33  ;;  %v2907_v33 = vld [vmem:[%s4637_s30 + $0x28] sm:$0xff] }
 0x32e   : > { %v1529_v49 = vadd.f32 %v1528_v52, %v1508_v59 }
 0x32f   : > { %v1741_v48 = vrot.slane %v1569_v10, 2  ;;  %v1799_v52 = vrot.slane %v1793_v38, 6  ;;  %v1764_v50 = vrot.slane %v1761_v53, 6 }
 0x330   : > { %v1740_v19 = vrot.slane %v1529_v49, 4  ;;  %v7654_v49 = vld [vmem:[#allocation8_spill] sm:$0xff] }
 0x331   : > { %v1792_v63 = vmul.f32 %v1788_v5, %v7654_v49 }
 0x332   : > { %v1746_v26 = vsel %vm826_vm0, %v1740_v19, %v1741_v48  ;;  %v1760_v19 = vmul.f32 %v5444_v44, %v7655_v17 }
 0x333   : > { %v1747_v36 = vsel %vm828_vm2, %v1745_v43, %v1746_v26  ;;  %v1800_v48 = vsel %vm824_vm1, %v1792_v63, %v1799_v52 }
 0x334   : > { %v1753_v21 = vadd.f32 %v2906_v6, %v1747_v36  ;;  %v1765_v59 = vsel %vm824_vm1, %v1760_v19, %v1764_v50 }
 0x335   : > { %v1588_v26 = vpop.f32.mrf.mxu0  ;;  %v1608_v43 = vpop.f32.mrf.mxu1 }
 0x336   : > { %v1795_v34 = vrot.slane %v1753_v21, 4  ;;  %v1767_v10 = vadd.f32 %v1765_v59, %v1753_v21 }
 0x338   : > { %v1802_v11 = vadd.f32 %v1800_v48, %v1795_v34  ;;  %v2908_v36 = vmul.f32 -1.442695, %v1767_v10 }
 0x33a   : > { %v2909_v37 = vmul.f32 -1.442695, %v1802_v11 }
 0x33c   : > { %2975 = vpow2.f32 %v2909_v37  ;;  %v1628_v44 = vpop.f32.mrf.mxu2  ;;  %v1648_v53 = vpop.f32.mrf.mxu3 }
 0x33d   : > { %2977 = vpow2.f32 %v2908_v36  ;;  %v1649_v63 = vadd.f32 %v1648_v53, %v1628_v44 }
 0x33f   : > { %v1742_v37 = vrot.slane %v1649_v63, 6 }
 0x342   : > { %v2976_v46 = vpop.eup %2975 }
 0x343   : > { %v2978_v56 = vpop.eup %2977  ;;  %v1806_v38 = vadd.f32 1.0, %v2976_v46 }
 0x344   : > { %v1771_v62 = vadd.f32 1.0, %v2978_v56  ;;  %v1609_v56 = vadd.f32 %v1608_v43, %v1588_v26 }
 0x345   : > { %2979 = vrcp.f32 %v1806_v38  ;;  %vm1812_vm15 = vweird.f32 %v1806_v38 }
 0x346   : > { %2981 = vrcp.f32 %v1771_v62  ;;  %v1748_v18 = vsel %vm824_vm1, %v1609_v56, %v1742_v37  ;;  %vm1777_vm5 = vweird.f32 %v1771_v62  ;;  %v1781_v26 = vand.u32 2147483647, %v1771_v62 }
 0x348   : > { %vm1782_vm8 = vcmp.eq.f32.partialorder %v1781_v26, 8.507059e+37 }
 0x34b   : > { %v2980_v6 = vpop.eup %2979 }
 0x34c   : > { %v2982_v5 = vpop.eup %2981  ;;  %v1808_v52 = vmul.f32 %v2980_v6, %v1806_v38  ;;  %vm1813_vm14 = vweird.f32 %v2980_v6 }
 0x34d   : > { %v1773_v34 = vmul.f32 %v2982_v5, %v1771_v62  ;;  %vm1778_vm3 = vweird.f32 %v2982_v5  ;;  %vm1814_vm4 = vmor %vm1812_vm15, %vm1813_vm14 }
 0x34e   : > { %v1809_v19 = vsub.f32 1.0, %v1808_v52  ;;  %v1818_v52 = vand.u32 2147483648, %v1806_v38  ;;  %vm1779_vm6 = vmor %vm1777_vm5, %vm1778_vm3 }
 0x34f   : > { %v1774_v11 = vsub.f32 1.0, %v1773_v34 }
 0x350   : > { %v1810_v46 = vmul.f32 %v2980_v6, %v1809_v19  ;;  %v1819_v63 = vor.u32 1.1754944e-38, %v1818_v52 }
 0x351   : > { %v1775_v27 = vmul.f32 %v2982_v5, %v1774_v11 }
 0x352   : > { %v1811_v44 = vadd.f32 %v2980_v6, %v1810_v46 }
 0x353   : > { %v1776_v34 = vadd.f32 %v2982_v5, %v1775_v27 }
 0x354   : > { %v1815_v43 = vsel %vm1814_vm4, %v2980_v6, %v1811_v44 }
 0x355   : > { %v1780_v19 = vsel %vm1779_vm6, %v2982_v5, %v1776_v34 }
 0x35a   : > { %v1668_v21 = vpop.f32.mrf.mxu0 }
 0x35c   : > { %v1688_v50 = vpop.f32.mrf.mxu1 }
 0x35d   : > { %v1689_v48 = vadd.f32 %v1688_v50, %v1668_v21  ;;  %v1816_v21 = vand.u32 2147483647, %v1806_v38  ;;  %v1783_v50 = vand.u32 2147483648, %v1771_v62 }
 0x35f   : > { %v1743_v17 = vrot.slane %v1689_v48, 4  ;;  %vm1817_vm7 = vcmp.eq.f32.partialorder %v1816_v21, 8.507059e+37 }
 0x363   : > { %v1708_v59 = vpop.f32.mrf.mxu2 }
 0x364   : > { %v1728_v10 = vpop.f32.mrf.mxu3 }
 0x365   : > { %v1729_v36 = vadd.f32 %v1728_v10, %v1708_v59 }
 0x367   : > { %v1744_v49 = vrot.slane %v1729_v36, 2 }
 0x369   : > { %v1749_v32 = vsel %vm826_vm0, %v1743_v17, %v1744_v49  ;;  %v1784_v49 = vor.u32 1.1754944e-38, %v1783_v50 }
 0x36a   : > { %v1750_v41 = vsel %vm828_vm2, %v1748_v18, %v1749_v32  ;;  %v1820_v32 = vsel %vm1817_vm7, %v1819_v63, %v1815_v43 }
 0x36b   : > { %v1754_v53 = vadd.f32 %v2907_v33, %v1750_v41  ;;  %v1785_v41 = vsel %vm1782_vm8, %v1784_v49, %v1780_v19  ;;  %v1822_v33 = vmul.f32 %v1820_v32, %v5415_v20 }
 0x36d   : > { %2983 = vtanh.f32 %v1754_v53  ;;  %v1835_v11 = vrot.slane %v1754_v53, 4 }
 0x373   : > { %v2984_v18 = vpop.eup %2983 }
 0x374   : > { %v1824_v27 = vmul.f32 %v2984_v18, %v1785_v41  ;;  %v6064_v18 = vld [vmem:[%s3583_s18 + $0x3e0] sm:$0xff] }
 0x375   : > { %v6068_v41 = vld [vmem:[%s3583_s18 + $0x7e0] sm:$0xff] }
 0x376   : > { %v6046_v17 = vadd.f32 %v1824_v27, %v1822_v33  ;;  %v6072_v33 = vld [vmem:[%s3583_s18 + $0x3e8] sm:$0xff] }
 0x377   : > { %v6076_v27 = vld [vmem:[%s3583_s18 + $0x7e8] sm:$0xff] }
 0x378   : > { %1827 = vst [vmem:[#allocation1] ss:$4 sm:$0xff] %v6046_v17 }
 0x37f   : > { %v1828_v38 = vld.sshfl [vmem:[#allocation1] sm:$0xff pattern:$0x73625140]  ;;  %v1829_v48 = vld.sshfl [vmem:[#allocation1 + $0x8] sm:$0xff pattern:$0x73625140] }
 0x380   : > { %v1833_v62 = vmul.f32 %v1829_v48, %v4663_v3  ;;  %v1832_v6 = vmul.f32 %v1828_v38, %v4665_v4  ;;  %v6080_v38 = vld [vmem:[%s3583_s18 + $0x3a0] sm:$0xff] }
 0x381   : > { %v6084_v48 = vld [vmem:[%s3583_s18 + $0x7a0] sm:$0xff] }
 0x382   : > { %v1839_v5 = vrot.slane %v1833_v62, 6  ;;  %v6088_v62 = vld [vmem:[%s3583_s18 + $0x3a8] sm:$0xff] }
 0x384   : > { %v1840_v59 = vsel %vm824_vm1, %v1832_v6, %v1839_v5  ;;  %v6092_v6 = vld [vmem:[%s3583_s18 + $0x7a8] sm:$0xff]  ;;  %v6096_v5 = vld [vmem:[%s3583_s18 + $0x360] sm:$0xff] }
 0x385   : > { %v1842_v10 = vadd.f32 %v1840_v59, %v1835_v11  ;;  %v6100_v11 = vld [vmem:[%s3583_s18 + $0x760] sm:$0xff]  ;;  %v6104_v59 = vld [vmem:[%s3583_s18 + $0x368] sm:$0xff] }
 0x387   : > { %v2910_v37 = vmul.f32 -1.442695, %v1842_v10  ;;  %v6108_v10 = vld [vmem:[%s3583_s18 + $0x768] sm:$0xff] }
 0x389   : > { %2985 = vpow2.f32 %v2910_v37 }
 0x38f   : > { %v2986_v36 = vpop.eup %2985 }
 0x390   : > { %v1846_v20 = vadd.f32 1.0, %v2986_v36 }
 0x392   : > { %2987 = vrcp.f32 %v1846_v20  ;;  %v1858_v52 = vand.u32 2147483648, %v1846_v20  ;;  %v1856_v21 = vand.u32 2147483647, %v1846_v20  ;;  %vm1852_vm10 = vweird.f32 %v1846_v20 }
 0x393   : > { %2989 = vtanh.f32 %v6046_v17 }
 0x394   : > { %v1859_v53 = vor.u32 1.1754944e-38, %v1858_v52  ;;  %vm1857_vm12 = vcmp.eq.f32.partialorder %v1856_v21, 8.507059e+37  ;;  %v6137_v52 = vld [vmem:[%s3583_s18 + $0x2e0] sm:$0xff]  ;;  %v6145_v21 = vld [vmem:[%s3583_s18 + $0x2e8] sm:$0xff] }
 0x398   : > { %v2988_v46 = vpop.eup %2987 }
 0x399   : > { %v1848_v56 = vmul.f32 %v2988_v46, %v1846_v20  ;;  %vm1853_vm9 = vweird.f32 %v2988_v46  ;;  %v2990_v43 = vpop.eup %2989  ;;  %v6116_v20 = vld [vmem:[%s3583_s18 + $0x320] sm:$0xff] }
 0x39a   : > { %vm1854_vm11 = vmor %vm1852_vm10, %vm1853_vm9 }
 0x39b   : > { %v1849_v44 = vsub.f32 1.0, %v1848_v56  ;;  %v6125_v56 = vld [vmem:[%s3583_s18 + $0x328] sm:$0xff] }
 0x39d   : > { %v1850_v34 = vmul.f32 %v2988_v46, %v1849_v44  ;;  %v6129_v44 = vld [vmem:[%s3583_s18 + $0x728] sm:$0xff] }
 0x39f   : > { %v1851_v50 = vadd.f32 %v2988_v46, %v1850_v34  ;;  %v6141_v34 = vld [vmem:[%s3583_s18 + $0x6e0] sm:$0xff] }
 0x3a1   : > { %v1855_v26 = vsel %vm1854_vm11, %v2988_v46, %v1851_v50  ;;  %v6120_v46 = vld [vmem:[%s3583_s18 + $0x720] sm:$0xff]  ;;  %v6149_v50 = vld [vmem:[%s3583_s18 + $0x6e8] sm:$0xff] }
 0x3a2   : > { %v1860_v63 = vsel %vm1857_vm12, %v1859_v53, %v1855_v26  ;;  %7656 = vst [vmem:[#allocation18_spill] sm:$0xff] %v6149_v50  ;;  %v6153_v53 = vld [vmem:[%s3583_s18 + $0x2a0] sm:$0xff] }
 0x3a3   : > { %v1863_v19 = vmul.f32 %v2990_v43, %v1860_v63  ;;  %7657 = vst [vmem:[#allocation27_spill] sm:$0xff] %v6153_v53  ;;  %v6157_v26 = vld [vmem:[%s3583_s18 + $0x6a0] sm:$0xff]  ;;  %v6161_v43 = vld [vmem:[%s3583_s18 + $0x2a8] sm:$0xff] }
 0x3a4   : > { %7658 = vst [vmem:[#allocation28_spill] sm:$0xff] %v6157_v26  ;;  %v6165_v63 = vld [vmem:[%s3583_s18 + $0x6a8] sm:$0xff] }
 0x3a5   : > { %2911 = vst [vmem:[%s4437_s22 + $0xc] sm:$0xf] %v1863_v19 }
 0x3a6   : > { %1870 = vst [vmem:[#allocation1] ss:$4 sm:$0xff] %v1863_v19  ;;  %v6169_v19 = vld [vmem:[%s3583_s18 + $0x260] sm:$0xff] }
 0x3a7   : > { %7659 = vst [vmem:[#allocation21_spill] sm:$0xff] %v6161_v43 }
 0x3a8   : > { %7660 = vst [vmem:[#allocation22_spill] sm:$0xff] %v6165_v63 }
 0x3a9   : > { %7661 = vst [vmem:[#allocation31_spill] sm:$0xff] %v6169_v19 }
 0x3ad   : > { %v6054_v49 = vld.sshfl [vmem:[#allocation1] sm:$0xff pattern:$0x73625140]  ;;  %v6056_v32 = vld.sshfl [vmem:[#allocation1 + $0x8] sm:$0xff pattern:$0x73625140] }
 0x3ae   : > { %1891 = vmatmul.f32.vlgmr.msra.gmra.mxu0 %v6054_v49  ;;  %1911 = vmatmul.f32.vlgmr.msra.gmra.mxu1 %v6056_v32  ;;  %2219 = vst [vmem:[#allocation1] ss:$4 sm:$0xff] %v6046_v17 }
 0x3af   : > { %1931 = vmatmul.f32.vlgmr.msra.gmra.mxu2 %v6054_v49  ;;  %1951 = vmatmul.f32.vlgmr.msra.gmra.mxu3 %v6056_v32 }
 0x3b0   : > { %2035 = vmatpush.msra.mxu0 %v6064_v18  ;;  %2055 = vmatpush.msra.mxu1 %v6068_v41 }
 0x3b1   : > { %2075 = vmatpush.msra.mxu2 %v6072_v33  ;;  %2095 = vmatpush.msra.mxu3 %v6076_v27 }
 0x3b2   : > { %2036 = vmatpush.msra.mxu0 %v6080_v38  ;;  %2056 = vmatpush.msra.mxu1 %v6084_v48 }
 0x3b3   : > { %2076 = vmatpush.msra.mxu2 %v6088_v62  ;;  %2096 = vmatpush.msra.mxu3 %v6092_v6 }
 0x3b4   : > { %2037 = vmatpush.msra.mxu0 %v6096_v5  ;;  %2057 = vmatpush.msra.mxu1 %v6100_v11 }
 0x3b5   : > { %2077 = vmatpush.msra.mxu2 %v6104_v59  ;;  %2097 = vmatpush.msra.mxu3 %v6108_v10  ;;  %v6111_v37 = vld.sshfl [vmem:[#allocation1] sm:$0xff pattern:$0x73625140]  ;;  %v6113_v36 = vld.sshfl [vmem:[#allocation1 + $0x8] sm:$0xff pattern:$0x73625140] }
 0x3b6   : > { %2038 = vmatpush.msra.mxu0 %v6116_v20  ;;  %2058 = vmatpush.msra.mxu1 %v6120_v46  ;;  %2251 = vst [vmem:[#allocation1] ss:$4 sm:$0xff] %v6046_v17 }
 0x3b7   : > { %2078 = vmatpush.msra.mxu2 %v6125_v56  ;;  %2098 = vmatpush.msra.mxu3 %v6129_v44 }
 0x3b8   : > { %1971 = vmatmul.f32.vlgmr.msrb.gmra.mxu0 %v6054_v49  ;;  %1991 = vmatmul.f32.vlgmr.msrb.gmra.mxu1 %v6056_v32 }
 0x3b9   : > { %2011 = vmatmul.f32.vlgmr.msrb.gmra.mxu2 %v6054_v49  ;;  %2031 = vmatmul.f32.vlgmr.msrb.gmra.mxu3 %v6056_v32 }
 0x3ba   : > { %2039 = vmatpush.msra.mxu0 %v6137_v52  ;;  %2059 = vmatpush.msra.mxu1 %v6141_v34 }
 0x3bb   : > { %2079 = vmatpush.msra.mxu2 %v6145_v21  ;;  %2099 = vmatpush.msra.mxu3 %v6149_v50  ;;  %v6201_v50 = vld [vmem:[%s3583_s18 + $0x1e0] sm:$0xff] }
 0x3bc   : > { %2040 = vmatpush.msra.mxu0 %v6153_v53  ;;  %2060 = vmatpush.msra.mxu1 %v6157_v26  ;;  %v6173_v53 = vld [vmem:[%s3583_s18 + $0x660] sm:$0xff]  ;;  %v6177_v26 = vld [vmem:[%s3583_s18 + $0x268] sm:$0xff]  ;;  %7668 = vst [vmem:[#allocation30_spill] sm:$0xff] %v6201_v50 }
 0x3bd   : > { %2080 = vmatpush.msra.mxu2 %v6161_v43  ;;  %2100 = vmatpush.msra.mxu3 %v6165_v63  ;;  %7662 = vst [vmem:[#allocation32_spill] sm:$0xff] %v6173_v53  ;;  %v6181_v43 = vld [vmem:[%s3583_s18 + $0x668] sm:$0xff]  ;;  %v6185_v63 = vld [vmem:[%s3583_s18 + $0x220] sm:$0xff] }
 0x3be   : > { %2041 = vmatpush.msra.mxu0 %v6169_v19  ;;  %2061 = vmatpush.msra.mxu1 %v6173_v53  ;;  %7663 = vst [vmem:[#allocation25_spill] sm:$0xff] %v6177_v26  ;;  %v6189_v19 = vld [vmem:[%s3583_s18 + $0x620] sm:$0xff]  ;;  %v6193_v53 = vld [vmem:[%s3583_s18 + $0x228] sm:$0xff] }
 0x3bf   : > { %2081 = vmatpush.msra.mxu2 %v6177_v26  ;;  %7664 = vst [vmem:[#allocation26_spill] sm:$0xff] %v6181_v43  ;;  %2101 = vmatpush.msra.mxu3 %v6181_v43  ;;  %v6197_v26 = vld [vmem:[%s3583_s18 + $0x628] sm:$0xff] }
 0x3c0   : > { %7665 = vst [vmem:[#allocation35_spill] sm:$0xff] %v6185_v63  ;;  %2042 = vmatpush.msra.mxu0 %v6185_v63  ;;  %2062 = vmatpush.msra.mxu1 %v6189_v19  ;;  %v6205_v63 = vld [vmem:[%s3583_s18 + $0x5e0] sm:$0xff]  ;;  %v6213_v43 = vld [vmem:[%s3583_s18 + $0x5e8] sm:$0xff] }
 0x3c1   : > { %7666 = vst [vmem:[#allocation36_spill] sm:$0xff] %v6189_v19  ;;  %2082 = vmatpush.msra.mxu2 %v6193_v53  ;;  %2102 = vmatpush.msra.mxu3 %v6197_v26  ;;  %v6209_v19 = vld [vmem:[%s3583_s18 + $0x1e8] sm:$0xff] }
 0x3c2   : > { %7667 = vst [vmem:[#allocation29_spill] sm:$0xff] %v6197_v26  ;;  %2043 = vmatpush.msra.mxu0 %v6201_v50  ;;  %2063 = vmatpush.msra.mxu1 %v6205_v63  ;;  %v6219_v50 = vld [vmem:[%s3583_s18 + $0x1a8] sm:$0xff] }
 0x3c3   : > { %2083 = vmatpush.msra.mxu2 %v6209_v19  ;;  %7669 = vst [vmem:[#allocation39_spill] sm:$0xff] %v6213_v43  ;;  %2103 = vmatpush.msra.mxu3 %v6213_v43  ;;  %v6223_v26 = vld [vmem:[%s3583_s18 + $0x5a8] sm:$0xff] }
 0x3c4   : > { %2044 = vmatpush.msra.mxu0 %v5478_v54  ;;  %2064 = vmatpush.msra.mxu1 %v5482_v55  ;;  %v6229_v43 = vld [vmem:[%s3583_s18 + $0x168] sm:$0xff] }
 0x3c5   : > { %2084 = vmatpush.msra.mxu2 %v6219_v50  ;;  %2104 = vmatpush.msra.mxu3 %v6223_v26  ;;  %v6233_v54 = vld [vmem:[%s3583_s18 + $0x568] sm:$0xff] }
 0x3c6   : > { %2045 = vmatpush.msra.mxu0 %v5488_v60  ;;  %2065 = vmatpush.msra.mxu1 %v5492_v61  ;;  %v6239_v55 = vld [vmem:[%s3583_s18 + $0x128] sm:$0xff] }
 0x3c7   : > { %2085 = vmatpush.msra.mxu2 %v6229_v43  ;;  %2105 = vmatpush.msra.mxu3 %v6233_v54  ;;  %v6243_v60 = vld [vmem:[%s3583_s18 + $0x528] sm:$0xff] }
 0x3c8   : > { %2046 = vmatpush.msra.mxu0 %v5498_v0  ;;  %2066 = vmatpush.msra.mxu1 %v5502_v2  ;;  %7670 = vst [vmem:[#allocation40_spill] sm:$0xff] %v6243_v60  ;;  %v6249_v61 = vld [vmem:[%s3583_s18 + $0xe8] sm:$0xff] }
 0x3c9   : > { %2086 = vmatpush.msra.mxu2 %v6239_v55  ;;  %2106 = vmatpush.msra.mxu3 %v6243_v60  ;;  %v6253_v0 = vld [vmem:[%s3583_s18 + $0x4e8] sm:$0xff] }
 0x3ca   : > { %2047 = vmatpush.msra.mxu0 %v5508_v7  ;;  %2067 = vmatpush.msra.mxu1 %v5512_v8  ;;  %v6259_v2 = vld [vmem:[%s3583_s18 + $0xa8] sm:$0xff]  ;;  %v7671_v7 = vld [vmem:[#allocation117_spill] sm:$0xff]  ;;  %v7672_v8 = vld [vmem:[#allocation119_spill] sm:$0xff] }
 0x3cb   : > { %2087 = vmatpush.msra.mxu2 %v6249_v61  ;;  %2107 = vmatpush.msra.mxu3 %v6253_v0  ;;  %v6263_v60 = vld [vmem:[%s3583_s18 + $0x4a8] sm:$0xff] }
 0x3cc   : > { %2048 = vmatpush.msra.mxu0 %v5518_v14  ;;  %2068 = vmatpush.msra.mxu1 %v5522_v15  ;;  %v7673_v14 = vld [vmem:[#allocation120_spill] sm:$0xff]  ;;  %v7674_v15 = vld [vmem:[#allocation127_spill] sm:$0xff] }
 0x3cd   : > { %2088 = vmatpush.msra.mxu2 %v6259_v2  ;;  %2108 = vmatpush.msra.mxu3 %v6263_v60 }
 0x3ce   : > { %2049 = vmatpush.msra.mxu0 %v5528_v28  ;;  %2069 = vmatpush.msra.mxu1 %v5532_v29  ;;  %v7675_v28 = vld [vmem:[#allocation123_spill] sm:$0xff]  ;;  %v7676_v29 = vld [vmem:[#allocation124_spill] sm:$0xff] }
 0x3cf   : > { %2089 = vmatpush.msra.mxu2 %v5536_v30  ;;  %2109 = vmatpush.msra.mxu3 %v5540_v31  ;;  %v7677_v30 = vld [vmem:[#allocation132_spill] sm:$0xff]  ;;  %v7678_v31 = vld [vmem:[#allocation133_spill] sm:$0xff] }
 0x3d0   : > { %2050 = vmatpush.msra.mxu0 %v5544_v45  ;;  %2070 = vmatpush.msra.mxu1 %v5548_v51  ;;  %v7679_v45 = vld [vmem:[#allocation128_spill] sm:$0xff]  ;;  %v7680_v51 = vld [vmem:[#allocation129_spill] sm:$0xff] }
 0x3d1   : > { %2090 = vmatpush.msra.mxu2 %v5552_v16  ;;  %2110 = vmatpush.msra.mxu3 %v5556_v47  ;;  %v7681_v16 = vld [vmem:[#allocation136_spill] sm:$0xff]  ;;  %v7682_v47 = vld [vmem:[#allocation137_spill] sm:$0xff] }
 0x3d2   : > { %2051 = vmatmul.f32.vlgmr.msra.gmra.mxu0 %v6054_v49  ;;  %2071 = vmatmul.f32.vlgmr.msra.gmra.mxu1 %v6056_v32 }
 0x3d3   : > { %2091 = vmatmul.f32.vlgmr.msra.gmra.mxu2 %v6054_v49  ;;  %2111 = vmatmul.f32.vlgmr.msra.gmra.mxu3 %v6056_v32 }
 0x3d4   : > { %2115 = vmatpush.msrb.mxu0 %v5564_v12  ;;  %2135 = vmatpush.msrb.mxu1 %v5568_v22  ;;  %v7683_v12 = vld [vmem:[#allocation130_spill] sm:$0xff]  ;;  %v7684_v22 = vld [vmem:[#allocation131_spill] sm:$0xff] }
 0x3d5   : > { %2155 = vmatpush.msrb.mxu2 %v5572_v39  ;;  %2175 = vmatpush.msrb.mxu3 %v5576_v35  ;;  %v7685_v39 = vld [vmem:[#allocation140_spill] sm:$0xff]  ;;  %v7686_v35 = vld [vmem:[#allocation141_spill] sm:$0xff] }
 0x3d6   : > { %2116 = vmatpush.msrb.mxu0 %v5580_v25  ;;  %2136 = vmatpush.msrb.mxu1 %v5584_v40  ;;  %v7687_v25 = vld [vmem:[#allocation134_spill] sm:$0xff]  ;;  %v7688_v40 = vld [vmem:[#allocation135_spill] sm:$0xff] }
 0x3d7   : > { %2156 = vmatpush.msrb.mxu2 %v5588_v9  ;;  %2176 = vmatpush.msrb.mxu3 %v5592_v42  ;;  %v7689_v9 = vld [vmem:[#allocation144_spill] sm:$0xff]  ;;  %v7690_v42 = vld [vmem:[#allocation145_spill] sm:$0xff] }
 0x3d8   : > { %2117 = vmatpush.msrb.mxu0 %v5596_v23  ;;  %2137 = vmatpush.msrb.mxu1 %v5600_v24  ;;  %v7691_v23 = vld [vmem:[#allocation138_spill] sm:$0xff]  ;;  %v7692_v24 = vld [vmem:[#allocation139_spill] sm:$0xff] }
 0x3d9   : > { %2157 = vmatpush.msrb.mxu2 %v5604_v1  ;;  %2177 = vmatpush.msrb.mxu3 %v5608_v58  ;;  %v7693_v1 = vld [vmem:[#allocation142_spill] sm:$0xff]  ;;  %v7694_v58 = vld [vmem:[#allocation143_spill] sm:$0xff] }
 0x3da   : > { %2118 = vmatpush.msrb.mxu0 %v5612_v13  ;;  %2138 = vmatpush.msrb.mxu1 %v5616_v57  ;;  %v7695_v13 = vld [vmem:[#allocation146_spill] sm:$0xff]  ;;  %v7696_v57 = vld [vmem:[#allocation147_spill] sm:$0xff] }
 0x3db   : > { %2158 = vmatpush.msrb.mxu2 %v7671_v7  ;;  %2178 = vmatpush.msrb.mxu3 %v7672_v8  ;;  %v7697_v7 = vld [vmem:[#allocation4_spill] sm:$0xff]  ;;  %v7698_v8 = vld [vmem:[#allocation11_spill] sm:$0xff] }
 0x3dc   : > { %2119 = vmatpush.msrb.mxu0 %v7673_v14  ;;  %2139 = vmatpush.msrb.mxu1 %v7674_v15  ;;  %v7699_v14 = vld [vmem:[#allocation12_spill] sm:$0xff]  ;;  %v7700_v15 = vld [vmem:[#allocation5_spill] sm:$0xff] }
 0x3dd   : > { %2159 = vmatpush.msrb.mxu2 %v7675_v28  ;;  %2179 = vmatpush.msrb.mxu3 %v7676_v29  ;;  %v7701_v28 = vld [vmem:[#allocation6_spill] sm:$0xff]  ;;  %v7702_v29 = vld [vmem:[#allocation15_spill] sm:$0xff] }
 0x3de   : > { %2120 = vmatpush.msrb.mxu0 %v7677_v30  ;;  %2140 = vmatpush.msrb.mxu1 %v7678_v31  ;;  %v7703_v30 = vld [vmem:[#allocation16_spill] sm:$0xff]  ;;  %v7704_v31 = vld [vmem:[#allocation9_spill] sm:$0xff] }
 0x3df   : > { %2160 = vmatpush.msrb.mxu2 %v7679_v45  ;;  %2180 = vmatpush.msrb.mxu3 %v7680_v51  ;;  %v7705_v45 = vld [vmem:[#allocation10_spill] sm:$0xff]  ;;  %v7706_v51 = vld [vmem:[#allocation19_spill] sm:$0xff] }
 0x3e0   : > { %2121 = vmatpush.msrb.mxu0 %v7681_v16  ;;  %2141 = vmatpush.msrb.mxu1 %v7682_v47  ;;  %v7707_v16 = vld [vmem:[#allocation20_spill] sm:$0xff]  ;;  %v7708_v47 = vld [vmem:[#allocation13_spill] sm:$0xff] }
 0x3e1   : > { %2161 = vmatpush.msrb.mxu2 %v7683_v12  ;;  %2181 = vmatpush.msrb.mxu3 %v7684_v22  ;;  %v7709_v12 = vld [vmem:[#allocation14_spill] sm:$0xff]  ;;  %v7710_v22 = vld [vmem:[#allocation23_spill] sm:$0xff] }
 0x3e2   : > { %2122 = vmatpush.msrb.mxu0 %v7685_v39  ;;  %2142 = vmatpush.msrb.mxu1 %v7686_v35  ;;  %v7711_v39 = vld [vmem:[#allocation24_spill] sm:$0xff] }
 0x3e3   : > { %2162 = vmatpush.msrb.mxu2 %v7687_v25  ;;  %2182 = vmatpush.msrb.mxu3 %v7688_v40  ;;  %v7712_v35 = vld [vmem:[#allocation148_spill] sm:$0xff]  ;;  %v7713_v25 = vld [vmem:[#allocation149_spill] sm:$0xff]  ;;  %v7714_v40 = vld [vmem:[#allocation150_spill] sm:$0xff] }
 0x3e4   : > { %2123 = vmatpush.msrb.mxu0 %v7689_v9  ;;  %2143 = vmatpush.msrb.mxu1 %v7690_v42  ;;  %v7715_v9 = vld [vmem:[#allocation151_spill] sm:$0xff]  ;;  %v7716_v42 = vld [vmem:[#allocation152_spill] sm:$0xff] }
 0x3e5   : > { %2163 = vmatpush.msrb.mxu2 %v7691_v23  ;;  %2183 = vmatpush.msrb.mxu3 %v7692_v24  ;;  %v7717_v23 = vld [vmem:[#allocation153_spill] sm:$0xff]  ;;  %v7718_v24 = vld [vmem:[#allocation154_spill] sm:$0xff] }
 0x3e6   : > { %2124 = vmatpush.msrb.mxu0 %v7693_v1  ;;  %2144 = vmatpush.msrb.mxu1 %v7694_v58  ;;  %v7719_v1 = vld [vmem:[#allocation155_spill] sm:$0xff]  ;;  %v7720_v58 = vld [vmem:[#allocation156_spill] sm:$0xff] }
 0x3e7   : > { %2164 = vmatpush.msrb.mxu2 %v7695_v13  ;;  %2184 = vmatpush.msrb.mxu3 %v7696_v57  ;;  %v7721_v13 = vld [vmem:[#allocation157_spill] sm:$0xff]  ;;  %v7722_v57 = vld [vmem:[#allocation158_spill] sm:$0xff] }
 0x3e8   : > { %2125 = vmatpush.msrb.mxu0 %v7697_v7  ;;  %2145 = vmatpush.msrb.mxu1 %v7698_v8  ;;  %v7723_v7 = vld [vmem:[#allocation159_spill] sm:$0xff]  ;;  %v7724_v8 = vld [vmem:[#allocation160_spill] sm:$0xff] }
 0x3e9   : > { %2165 = vmatpush.msrb.mxu2 %v7699_v14  ;;  %2185 = vmatpush.msrb.mxu3 %v7700_v15  ;;  %v7725_v14 = vld [vmem:[#allocation161_spill] sm:$0xff]  ;;  %v7726_v15 = vld [vmem:[#allocation162_spill] sm:$0xff] }
 0x3ea   : > { %2126 = vmatpush.msrb.mxu0 %v7701_v28  ;;  %2146 = vmatpush.msrb.mxu1 %v7702_v29  ;;  %v7727_v28 = vld [vmem:[#allocation163_spill] sm:$0xff]  ;;  %v7728_v29 = vld [vmem:[#allocation164_spill] sm:$0xff] }
 0x3eb   : > { %2166 = vmatpush.msrb.mxu2 %v7703_v30  ;;  %2186 = vmatpush.msrb.mxu3 %v7704_v31  ;;  %v7729_v30 = vld [vmem:[#allocation165_spill] sm:$0xff]  ;;  %v7732_v31 = vld [vmem:[#allocation168_spill] sm:$0xff] }
 0x3ec   : > { %2127 = vmatpush.msrb.mxu0 %v7705_v45  ;;  %2147 = vmatpush.msrb.mxu1 %v7706_v51  ;;  %v7733_v45 = vld [vmem:[#allocation169_spill] sm:$0xff]  ;;  %v7734_v51 = vld [vmem:[#allocation170_spill] sm:$0xff] }
 0x3ed   : > { %2167 = vmatpush.msrb.mxu2 %v7707_v16  ;;  %2187 = vmatpush.msrb.mxu3 %v7708_v47  ;;  %v7735_v16 = vld [vmem:[#allocation171_spill] sm:$0xff]  ;;  %v7736_v47 = vld [vmem:[#allocation172_spill] sm:$0xff] }
 0x3ee   : > { %2128 = vmatpush.msrb.mxu0 %v7709_v12  ;;  %2148 = vmatpush.msrb.mxu1 %v7710_v22  ;;  %v7737_v12 = vld [vmem:[#allocation173_spill] sm:$0xff]  ;;  %v7738_v22 = vld [vmem:[#allocation174_spill] sm:$0xff] }
 0x3ef   : > { %2168 = vmatpush.msrb.mxu2 %v7711_v39  ;;  %2188 = vmatpush.msrb.mxu3 %v7712_v35  ;;  %v7739_v39 = vld [vmem:[#allocation175_spill] sm:$0xff]  ;;  %v7740_v35 = vld [vmem:[#allocation176_spill] sm:$0xff] }
 0x3f0   : > { %2129 = vmatpush.msrb.mxu0 %v7713_v25  ;;  %2149 = vmatpush.msrb.mxu1 %v7714_v40  ;;  %v7741_v25 = vld [vmem:[#allocation177_spill] sm:$0xff]  ;;  %v7742_v40 = vld [vmem:[#allocation178_spill] sm:$0xff] }
 0x3f1   : > { %2169 = vmatpush.msrb.mxu2 %v7715_v9  ;;  %2189 = vmatpush.msrb.mxu3 %v7716_v42  ;;  %v7743_v9 = vld [vmem:[#allocation179_spill] sm:$0xff]  ;;  %v7744_v42 = vld [vmem:[#allocation180_spill] sm:$0xff] }
 0x3f2   : > { %2130 = vmatpush.msrb.mxu0 %v7717_v23  ;;  %2150 = vmatpush.msrb.mxu1 %v7718_v24  ;;  %v3351_v23 = vld [vmem:[%s3583_s18 + $0x240] sm:$0xff] }
 0x3f3   : > { %2170 = vmatpush.msrb.mxu2 %v7719_v1  ;;  %2190 = vmatpush.msrb.mxu3 %v7720_v58  ;;  %v3352_v24 = vld [vmem:[%s3583_s18 + $0x640] sm:$0xff] }
 0x3f4   : > { %2131 = vmatmul.f32.vlgmr.msrb.gmra.mxu0 %v6054_v49  ;;  %2151 = vmatmul.f32.vlgmr.msrb.gmra.mxu1 %v6056_v32  ;;  %v7745_v1 = vld [vmem:[#allocation17_spill] sm:$0xff] }
 0x3f5   : > { %2171 = vmatmul.f32.vlgmr.msrb.gmra.mxu2 %v6054_v49  ;;  %2191 = vmatmul.f32.vlgmr.msrb.gmra.mxu3 %v6056_v32  ;;  %v7730_v49 = vld [vmem:[#allocation166_spill] sm:$0xff]  ;;  %v7731_v32 = vld [vmem:[#allocation167_spill] sm:$0xff]  ;;  %v7746_v58 = vld [vmem:[#allocation181_spill] sm:$0xff] }
 0x3f6   : > { %2339 = vmatpush.msra.mxu0 %v7721_v13  ;;  %2359 = vmatpush.msra.mxu1 %v7722_v57  ;;  %v3353_v13 = vld [vmem:[%s3583_s18 + $0x200] sm:$0xff] }
 0x3f7   : > { %2379 = vmatpush.msra.mxu2 %v7723_v7  ;;  %2399 = vmatpush.msra.mxu3 %v7724_v8  ;;  %v3354_v57 = vld [vmem:[%s3583_s18 + $0x600] sm:$0xff]  ;;  %v3355_v7 = vld [vmem:[%s3583_s18 + $0x208] sm:$0xff] }
 0x3f8   : > { %2340 = vmatpush.msra.mxu0 %v7725_v14  ;;  %2360 = vmatpush.msra.mxu1 %v7726_v15  ;;  %v3356_v8 = vld [vmem:[%s3583_s18 + $0x608] sm:$0xff]  ;;  %v3357_v14 = vld [vmem:[%s3583_s18 + $0x1c0] sm:$0xff] }
 0x3f9   : > { %2380 = vmatpush.msra.mxu2 %v7727_v28  ;;  %2400 = vmatpush.msra.mxu3 %v7728_v29  ;;  %v3358_v15 = vld [vmem:[%s3583_s18 + $0x5c0] sm:$0xff]  ;;  %v3359_v28 = vld [vmem:[%s3583_s18 + $0x1c8] sm:$0xff] }
 0x3fa   : > { %2341 = vmatpush.msra.mxu0 %v7729_v30  ;;  %2361 = vmatpush.msra.mxu1 %v7730_v49  ;;  %v3360_v29 = vld [vmem:[%s3583_s18 + $0x5c8] sm:$0xff]  ;;  %v3361_v30 = vld [vmem:[%s3583_s18 + $0x180] sm:$0xff] }
 0x3fb   : > { %2381 = vmatpush.msra.mxu2 %v7731_v32  ;;  %2401 = vmatpush.msra.mxu3 %v7732_v31  ;;  %v3362_v49 = vld [vmem:[%s3583_s18 + $0x580] sm:$0xff]  ;;  %v3363_v32 = vld [vmem:[%s3583_s18 + $0x188] sm:$0xff] }
 0x3fc   : > { %2342 = vmatpush.msra.mxu0 %v7733_v45  ;;  %2362 = vmatpush.msra.mxu1 %v7734_v51  ;;  %v3364_v31 = vld [vmem:[%s3583_s18 + $0x588] sm:$0xff]  ;;  %v3365_v45 = vld [vmem:[%s3583_s18 + $0x140] sm:$0xff] }
 0x3fd   : > { %2382 = vmatpush.msra.mxu2 %v7735_v16  ;;  %2402 = vmatpush.msra.mxu3 %v7736_v47  ;;  %v3366_v51 = vld [vmem:[%s3583_s18 + $0x540] sm:$0xff]  ;;  %v3367_v16 = vld [vmem:[%s3583_s18 + $0x148] sm:$0xff] }
 0x3fe   : > { %2343 = vmatpush.msra.mxu0 %v7737_v12  ;;  %2363 = vmatpush.msra.mxu1 %v7738_v22  ;;  %v3368_v47 = vld [vmem:[%s3583_s18 + $0x548] sm:$0xff]  ;;  %v3369_v12 = vld [vmem:[%s3583_s18 + $0x100] sm:$0xff] }
 0x3ff   : > { %2383 = vmatpush.msra.mxu2 %v7739_v39  ;;  %2403 = vmatpush.msra.mxu3 %v7740_v35  ;;  %v3370_v22 = vld [vmem:[%s3583_s18 + $0x500] sm:$0xff]  ;;  %v3371_v39 = vld [vmem:[%s3583_s18 + $0x108] sm:$0xff] }
 0x400   : > { %2344 = vmatpush.msra.mxu0 %v7741_v25  ;;  %2364 = vmatpush.msra.mxu1 %v7742_v40  ;;  %v3372_v35 = vld [vmem:[%s3583_s18 + $0x508] sm:$0xff]  ;;  %v3373_v25 = vld [vmem:[%s3583_s18 + $0xc0] sm:$0xff] }
 0x401   : > { %2384 = vmatpush.msra.mxu2 %v7743_v9  ;;  %2404 = vmatpush.msra.mxu3 %v7744_v42  ;;  %v3374_v40 = vld [vmem:[%s3583_s18 + $0x4c0] sm:$0xff]  ;;  %v3375_v9 = vld [vmem:[%s3583_s18 + $0xc8] sm:$0xff] }
 0x402   : > { %2345 = vmatpush.msra.mxu0 %v3351_v23  ;;  %2365 = vmatpush.msra.mxu1 %v3352_v24  ;;  %v3376_v42 = vld [vmem:[%s3583_s18 + $0x4c8] sm:$0xff]  ;;  %v3377_v23 = vld [vmem:[%s3583_s18 + $0x80] sm:$0xff] }
 0x403   : > { %2385 = vmatpush.msra.mxu2 %v7745_v1  ;;  %2405 = vmatpush.msra.mxu3 %v7746_v58  ;;  %v3378_v24 = vld [vmem:[%s3583_s18 + $0x480] sm:$0xff]  ;;  %v3379_v1 = vld [vmem:[%s3583_s18 + $0x88] sm:$0xff] }
 0x404   : > { %2346 = vmatpush.msra.mxu0 %v3353_v13  ;;  %2366 = vmatpush.msra.mxu1 %v3354_v57  ;;  %v3380_v58 = vld [vmem:[%s3583_s18 + $0x488] sm:$0xff]  ;;  %v3381_v13 = vld [vmem:[%s3583_s18 + $0x40] sm:$0xff] }
 0x405   : > { %2386 = vmatpush.msra.mxu2 %v3355_v7  ;;  %2406 = vmatpush.msra.mxu3 %v3356_v8  ;;  %v3382_v57 = vld [vmem:[%s3583_s18 + $0x440] sm:$0xff]  ;;  %v3383_v7 = vld [vmem:[%s3583_s18 + $0x48] sm:$0xff] }
 0x406   : > { %2347 = vmatpush.msra.mxu0 %v3357_v14  ;;  %2367 = vmatpush.msra.mxu1 %v3358_v15  ;;  %v3384_v8 = vld [vmem:[%s3583_s18 + $0x448] sm:$0xff]  ;;  %v3385_v14 = vld [vmem:[%s3583_s18] sm:$0xff] }
 0x407   : > { %2387 = vmatpush.msra.mxu2 %v3359_v28  ;;  %2407 = vmatpush.msra.mxu3 %v3360_v29  ;;  %v3386_v15 = vld [vmem:[%s3583_s18 + $0x400] sm:$0xff]  ;;  %v3387_v28 = vld [vmem:[%s3583_s18 + $0x8] sm:$0xff] }
 0x408   : > { %2348 = vmatpush.msra.mxu0 %v3361_v30  ;;  %2368 = vmatpush.msra.mxu1 %v3362_v49  ;;  %v3388_v29 = vld [vmem:[%s3583_s18 + $0x408] sm:$0xff]  ;;  %v3389_v30 = vld [vmem:[%s3583_s18 + $0x3d0] sm:$0xff] }
 0x409   : > { %2388 = vmatpush.msra.mxu2 %v3363_v32  ;;  %2408 = vmatpush.msra.mxu3 %v3364_v31  ;;  %v3390_v49 = vld [vmem:[%s3583_s18 + $0x7d0] sm:$0xff]  ;;  %v3391_v32 = vld [vmem:[%s3583_s18 + $0x3d8] sm:$0xff] }
 0x40a   : > { %2349 = vmatpush.msra.mxu0 %v3365_v45  ;;  %2369 = vmatpush.msra.mxu1 %v3366_v51  ;;  %v3392_v31 = vld [vmem:[%s3583_s18 + $0x7d8] sm:$0xff]  ;;  %v3393_v45 = vld [vmem:[%s3583_s18 + $0x390] sm:$0xff] }
 0x40b   : > { %2389 = vmatpush.msra.mxu2 %v3367_v16  ;;  %2409 = vmatpush.msra.mxu3 %v3368_v47  ;;  %v3394_v51 = vld [vmem:[%s3583_s18 + $0x790] sm:$0xff]  ;;  %v3395_v16 = vld [vmem:[%s3583_s18 + $0x398] sm:$0xff] }
 0x40c   : > { %2350 = vmatpush.msra.mxu0 %v3369_v12  ;;  %2370 = vmatpush.msra.mxu1 %v3370_v22  ;;  %v3396_v47 = vld [vmem:[%s3583_s18 + $0x798] sm:$0xff]  ;;  %v3397_v12 = vld [vmem:[%s3583_s18 + $0x350] sm:$0xff] }
 0x40d   : > { %2390 = vmatpush.msra.mxu2 %v3371_v39  ;;  %2410 = vmatpush.msra.mxu3 %v3372_v35  ;;  %v3398_v22 = vld [vmem:[%s3583_s18 + $0x750] sm:$0xff]  ;;  %v3399_v39 = vld [vmem:[%s3583_s18 + $0x358] sm:$0xff] }
 0x40e   : > { %2351 = vmatpush.msra.mxu0 %v3373_v25  ;;  %2371 = vmatpush.msra.mxu1 %v3374_v40  ;;  %v3400_v35 = vld [vmem:[%s3583_s18 + $0x758] sm:$0xff]  ;;  %v3401_v25 = vld [vmem:[%s3583_s18 + $0x310] sm:$0xff] }
 0x40f   : > { %2391 = vmatpush.msra.mxu2 %v3375_v9  ;;  %2411 = vmatpush.msra.mxu3 %v3376_v42  ;;  %v3402_v40 = vld [vmem:[%s3583_s18 + $0x710] sm:$0xff]  ;;  %v3403_v9 = vld [vmem:[%s3583_s18 + $0x318] sm:$0xff] }
 0x410   : > { %2352 = vmatpush.msra.mxu0 %v3377_v23  ;;  %2372 = vmatpush.msra.mxu1 %v3378_v24  ;;  %v3404_v42 = vld [vmem:[%s3583_s18 + $0x718] sm:$0xff]  ;;  %v3405_v23 = vld [vmem:[%s3583_s18 + $0x2d0] sm:$0xff] }
 0x411   : > { %2392 = vmatpush.msra.mxu2 %v3379_v1  ;;  %2412 = vmatpush.msra.mxu3 %v3380_v58  ;;  %v3406_v24 = vld [vmem:[%s3583_s18 + $0x6d0] sm:$0xff]  ;;  %v3407_v1 = vld [vmem:[%s3583_s18 + $0x2d8] sm:$0xff] }
 0x412   : > { %2353 = vmatpush.msra.mxu0 %v3381_v13  ;;  %2373 = vmatpush.msra.mxu1 %v3382_v57  ;;  %v3408_v58 = vld [vmem:[%s3583_s18 + $0x6d8] sm:$0xff]  ;;  %v3409_v13 = vld [vmem:[%s3583_s18 + $0x290] sm:$0xff] }
 0x413   : > { %2393 = vmatpush.msra.mxu2 %v3383_v7  ;;  %2413 = vmatpush.msra.mxu3 %v3384_v8  ;;  %v3410_v57 = vld [vmem:[%s3583_s18 + $0x690] sm:$0xff]  ;;  %v3411_v7 = vld [vmem:[%s3583_s18 + $0x298] sm:$0xff] }
 0x414   : > { %2354 = vmatpush.msra.mxu0 %v3385_v14  ;;  %2374 = vmatpush.msra.mxu1 %v3386_v15  ;;  %v3412_v8 = vld [vmem:[%s3583_s18 + $0x698] sm:$0xff]  ;;  %v3413_v14 = vld [vmem:[%s3583_s18 + $0x250] sm:$0xff] }
 0x415   : > { %2394 = vmatpush.msra.mxu2 %v3387_v28  ;;  %2414 = vmatpush.msra.mxu3 %v3388_v29  ;;  %v3414_v15 = vld [vmem:[%s3583_s18 + $0x650] sm:$0xff]  ;;  %v3415_v28 = vld [vmem:[%s3583_s18 + $0x258] sm:$0xff] }
 0x416   : > { %2419 = vmatpush.msrb.mxu0 %v3389_v30  ;;  %2439 = vmatpush.msrb.mxu1 %v3390_v49  ;;  %v3416_v29 = vld [vmem:[%s3583_s18 + $0x658] sm:$0xff]  ;;  %v3417_v30 = vld [vmem:[%s3583_s18 + $0x210] sm:$0xff] }
 0x417   : > { %2459 = vmatpush.msrb.mxu2 %v3391_v32  ;;  %2479 = vmatpush.msrb.mxu3 %v3392_v31  ;;  %v3418_v49 = vld [vmem:[%s3583_s18 + $0x610] sm:$0xff]  ;;  %v3419_v32 = vld [vmem:[%s3583_s18 + $0x218] sm:$0xff] }
 0x418   : > { %2420 = vmatpush.msrb.mxu0 %v3393_v45  ;;  %2440 = vmatpush.msrb.mxu1 %v3394_v51  ;;  %v3420_v31 = vld [vmem:[%s3583_s18 + $0x618] sm:$0xff]  ;;  %v3421_v45 = vld [vmem:[%s3583_s18 + $0x1d0] sm:$0xff] }
 0x419   : > { %2460 = vmatpush.msrb.mxu2 %v3395_v16  ;;  %2480 = vmatpush.msrb.mxu3 %v3396_v47  ;;  %v3422_v51 = vld [vmem:[%s3583_s18 + $0x5d0] sm:$0xff]  ;;  %v3423_v16 = vld [vmem:[%s3583_s18 + $0x1d8] sm:$0xff] }
 0x41a   : > { %2421 = vmatpush.msrb.mxu0 %v3397_v12  ;;  %2441 = vmatpush.msrb.mxu1 %v3398_v22  ;;  %v3424_v47 = vld [vmem:[%s3583_s18 + $0x5d8] sm:$0xff]  ;;  %v3425_v12 = vld [vmem:[%s3583_s18 + $0x190] sm:$0xff] }
 0x41b   : > { %2461 = vmatpush.msrb.mxu2 %v3399_v39  ;;  %2481 = vmatpush.msrb.mxu3 %v3400_v35  ;;  %v3426_v22 = vld [vmem:[%s3583_s18 + $0x590] sm:$0xff]  ;;  %v3427_v39 = vld [vmem:[%s3583_s18 + $0x198] sm:$0xff] }
 0x41c   : > { %2422 = vmatpush.msrb.mxu0 %v3401_v25  ;;  %2442 = vmatpush.msrb.mxu1 %v3402_v40  ;;  %v3428_v35 = vld [vmem:[%s3583_s18 + $0x598] sm:$0xff]  ;;  %v3429_v25 = vld [vmem:[%s3583_s18 + $0x150] sm:$0xff] }
 0x41d   : > { %2462 = vmatpush.msrb.mxu2 %v3403_v9  ;;  %2482 = vmatpush.msrb.mxu3 %v3404_v42  ;;  %v3430_v40 = vld [vmem:[%s3583_s18 + $0x550] sm:$0xff]  ;;  %v3431_v9 = vld [vmem:[%s3583_s18 + $0x158] sm:$0xff] }
 0x41e   : > { %2423 = vmatpush.msrb.mxu0 %v3405_v23  ;;  %2443 = vmatpush.msrb.mxu1 %v3406_v24  ;;  %v3432_v42 = vld [vmem:[%s3583_s18 + $0x558] sm:$0xff]  ;;  %v3433_v23 = vld [vmem:[%s3583_s18 + $0x110] sm:$0xff] }
 0x41f   : > { %2463 = vmatpush.msrb.mxu2 %v3407_v1  ;;  %2483 = vmatpush.msrb.mxu3 %v3408_v58  ;;  %v3434_v24 = vld [vmem:[%s3583_s18 + $0x510] sm:$0xff]  ;;  %v3435_v1 = vld [vmem:[%s3583_s18 + $0x118] sm:$0xff] }
 0x420   : > { %2424 = vmatpush.msrb.mxu0 %v3409_v13  ;;  %2444 = vmatpush.msrb.mxu1 %v3410_v57  ;;  %v3436_v58 = vld [vmem:[%s3583_s18 + $0x518] sm:$0xff]  ;;  %v3437_v13 = vld [vmem:[%s3583_s18 + $0xd0] sm:$0xff] }
 0x421   : > { %2464 = vmatpush.msrb.mxu2 %v3411_v7  ;;  %2484 = vmatpush.msrb.mxu3 %v3412_v8  ;;  %v3438_v57 = vld [vmem:[%s3583_s18 + $0x4d0] sm:$0xff]  ;;  %v3439_v7 = vld [vmem:[%s3583_s18 + $0xd8] sm:$0xff] }
 0x422   : > { %2425 = vmatpush.msrb.mxu0 %v3413_v14  ;;  %2445 = vmatpush.msrb.mxu1 %v3414_v15  ;;  %v3440_v8 = vld [vmem:[%s3583_s18 + $0x4d8] sm:$0xff]  ;;  %v3441_v14 = vld [vmem:[%s3583_s18 + $0x90] sm:$0xff] }
 0x423   : > { %2465 = vmatpush.msrb.mxu2 %v3415_v28  ;;  %2485 = vmatpush.msrb.mxu3 %v3416_v29  ;;  %v3442_v15 = vld [vmem:[%s3583_s18 + $0x490] sm:$0xff]  ;;  %v3443_v28 = vld [vmem:[%s3583_s18 + $0x98] sm:$0xff] }
 0x424   : > { %2426 = vmatpush.msrb.mxu0 %v3417_v30  ;;  %2446 = vmatpush.msrb.mxu1 %v3418_v49  ;;  %v3444_v29 = vld [vmem:[%s3583_s18 + $0x498] sm:$0xff] }
 0x425   : > { %2466 = vmatpush.msrb.mxu2 %v3419_v32  ;;  %2486 = vmatpush.msrb.mxu3 %v3420_v31  ;;  %v3445_v32 = vld [vmem:[%s3583_s18 + $0x50] sm:$0xff] }
 0x426   : > { %2427 = vmatpush.msrb.mxu0 %v3421_v45  ;;  %2447 = vmatpush.msrb.mxu1 %v3422_v51  ;;  %v3446_v31 = vld [vmem:[%s3583_s18 + $0x450] sm:$0xff] }
 0x427   : > { %2467 = vmatpush.msrb.mxu2 %v3423_v16  ;;  %2487 = vmatpush.msrb.mxu3 %v3424_v47  ;;  %v3447_v16 = vld [vmem:[%s3583_s18 + $0x58] sm:$0xff] }
 0x428   : > { %2428 = vmatpush.msrb.mxu0 %v3425_v12  ;;  %2448 = vmatpush.msrb.mxu1 %v3426_v22  ;;  %v3448_v47 = vld [vmem:[%s3583_s18 + $0x458] sm:$0xff]  ;;  %v3449_v12 = vld [vmem:[%s3583_s18 + $0x10] sm:$0xff] }
 0x429   : > { %2468 = vmatpush.msrb.mxu2 %v3427_v39  ;;  %2488 = vmatpush.msrb.mxu3 %v3428_v35  ;;  %v3450_v22 = vld [vmem:[%s3583_s18 + $0x410] sm:$0xff]  ;;  %v3451_v39 = vld [vmem:[%s3583_s18 + $0x18] sm:$0xff] }
 0x42a   : > { %2429 = vmatpush.msrb.mxu0 %v3429_v25  ;;  %2449 = vmatpush.msrb.mxu1 %v3430_v40  ;;  %v3452_v35 = vld [vmem:[%s3583_s18 + $0x418] sm:$0xff] }
 0x42b   : > { %2469 = vmatpush.msrb.mxu2 %v3431_v9  ;;  %2489 = vmatpush.msrb.mxu3 %v3432_v42  ;;  %v1892_v45 = vpop.f32.mrf.mxu0  ;;  %v1912_v51 = vpop.f32.mrf.mxu1 }
 0x42c   : > { %2430 = vmatpush.msrb.mxu0 %v3433_v23  ;;  %2450 = vmatpush.msrb.mxu1 %v3434_v24 }
 0x42d   : > { %2470 = vmatpush.msrb.mxu2 %v3435_v1  ;;  %2490 = vmatpush.msrb.mxu3 %v3436_v58 }
 0x42e   : > { %2431 = vmatpush.msrb.mxu0 %v3437_v13  ;;  %2451 = vmatpush.msrb.mxu1 %v3438_v57 }
 0x42f   : > { %2471 = vmatpush.msrb.mxu2 %v3439_v7  ;;  %2491 = vmatpush.msrb.mxu3 %v3440_v8  ;;  %v1913_v7 = vadd.f32 %v1912_v51, %v1892_v45  ;;  %v7750_v51 = vld [vmem:[#allocation3_spill] sm:$0xff] }
 0x430   : > { %2432 = vmatpush.msrb.mxu0 %v3441_v14  ;;  %2452 = vmatpush.msrb.mxu1 %v3442_v15  ;;  %v2253_v15 = vld.sshfl [vmem:[#allocation1 + $0x8] sm:$0xff pattern:$0x73625140] }
 0x431   : > { %2472 = vmatpush.msrb.mxu2 %v3443_v28  ;;  %2492 = vmatpush.msrb.mxu3 %v3444_v29  ;;  %v2912_v28 = vld [vmem:[%s4637_s30 + $0x30] sm:$0xff] }
 0x432   : > { %v1932_v30 = vpop.f32.mrf.mxu2  ;;  %v1952_v49 = vpop.f32.mrf.mxu3  ;;  %2433 = vmatpush.msrb.mxu0 %v3445_v32  ;;  %2453 = vmatpush.msrb.mxu1 %v3446_v31  ;;  %v7747_v32 = vld [vmem:[#allocation2_spill] sm:$0xff] }
 0x433   : > { %2473 = vmatpush.msrb.mxu2 %v3447_v16  ;;  %2493 = vmatpush.msrb.mxu3 %v3448_v47  ;;  %v1953_v24 = vadd.f32 %v1952_v49, %v1932_v30  ;;  %v2257_v31 = vmul.f32 %v2253_v15, %v7747_v32  ;;  %v7748_v47 = vld [vmem:[#allocation7_spill] sm:$0xff]  ;;  %v2252_v30 = vld.sshfl [vmem:[#allocation1] sm:$0xff pattern:$0x73625140] }
 0x434   : > { %2434 = vmatpush.msrb.mxu0 %v3449_v12  ;;  %2454 = vmatpush.msrb.mxu1 %v3450_v22  ;;  %v2225_v12 = vmul.f32 %v6113_v36, %v7748_v47 }
 0x435   : > { %2474 = vmatpush.msrb.mxu2 %v3451_v39  ;;  %2494 = vmatpush.msrb.mxu3 %v3452_v35  ;;  %v1972_v9 = vpop.f32.mrf.mxu0  ;;  %v1992_v42 = vpop.f32.mrf.mxu1  ;;  %v2203_v13 = vrot.slane %v1953_v24, 6  ;;  %v2263_v49 = vrot.slane %v2257_v31, 6  ;;  %v7749_v35 = vld [vmem:[#allocation8_spill] sm:$0xff] }
 0x436   : > { %v1993_v1 = vadd.f32 %v1992_v42, %v1972_v9  ;;  %v2228_v39 = vrot.slane %v2225_v12, 6  ;;  %v2256_v45 = vmul.f32 %v2252_v30, %v7749_v35 }
 0x437   : > { %v2209_v14 = vsel %vm824_vm1, %v1913_v7, %v2203_v13 }
 0x438   : > { %v2204_v57 = vrot.slane %v1993_v1, 4 }
 0x43c   : > { %v2012_v25 = vpop.f32.mrf.mxu2  ;;  %v2032_v40 = vpop.f32.mrf.mxu3 }
 0x43d   : > { %v2033_v23 = vadd.f32 %v2032_v40, %v2012_v25  ;;  %v2224_v25 = vmul.f32 %v6111_v37, %v7750_v51  ;;  %v2264_v40 = vsel %vm824_vm1, %v2256_v45, %v2263_v49 }
 0x43f   : > { %v2205_v58 = vrot.slane %v2033_v23, 2  ;;  %v2229_v42 = vsel %vm824_vm1, %v2224_v25, %v2228_v39 }
 0x441   : > { %v2210_v8 = vsel %vm826_vm0, %v2204_v57, %v2205_v58 }
 0x442   : > { %v2211_v29 = vsel %vm828_vm2, %v2209_v14, %v2210_v8 }
 0x443   : > { %v2217_v16 = vadd.f32 %v2912_v28, %v2211_v29 }
 0x445   : > { %v2259_v22 = vrot.slane %v2217_v16, 4  ;;  %v2231_v23 = vadd.f32 %v2229_v42, %v2217_v16 }
 0x447   : > { %v2266_v9 = vadd.f32 %v2264_v40, %v2259_v22  ;;  %v2914_v1 = vmul.f32 -1.442695, %v2231_v23 }
 0x449   : > { %v2915_v24 = vmul.f32 -1.442695, %v2266_v9 }
 0x44b   : > { %2991 = vpow2.f32 %v2915_v24 }
 0x44c   : > { %2993 = vpow2.f32 %v2914_v1 }
 0x44f   : > { %v2052_v7 = vpop.f32.mrf.mxu0  ;;  %v2072_v8 = vpop.f32.mrf.mxu1 }
 0x450   : > { %v2073_v23 = vadd.f32 %v2072_v8, %v2052_v7 }
 0x451   : > { %v2992_v36 = vpop.eup %2991 }
 0x452   : > { %v2994_v58 = vpop.eup %2993  ;;  %v2270_v13 = vadd.f32 1.0, %v2992_v36  ;;  %v2913_v36 = vld [vmem:[%s4637_s30 + $0x38] sm:$0xff] }
 0x453   : > { %v2235_v57 = vadd.f32 1.0, %v2994_v58 }
 0x454   : > { %2995 = vrcp.f32 %v2270_v13  ;;  %vm2276_vm14 = vweird.f32 %v2270_v13 }
 0x455   : > { %2997 = vrcp.f32 %v2235_v57  ;;  %vm2241_vm4 = vweird.f32 %v2235_v57  ;;  %v2245_v7 = vand.u32 2147483647, %v2235_v57 }
 0x456   : > { %v2092_v37 = vpop.f32.mrf.mxu2  ;;  %v2112_v15 = vpop.f32.mrf.mxu3 }
 0x457   : > { %v2113_v30 = vadd.f32 %v2112_v15, %v2092_v37  ;;  %vm2246_vm7 = vcmp.eq.f32.partialorder %v2245_v7, 8.507059e+37 }
 0x459   : > { %v2206_v40 = vrot.slane %v2113_v30, 6 }
 0x45a   : > { %v2996_v14 = vpop.eup %2995 }
 0x45b   : > { %v2998_v28 = vpop.eup %2997  ;;  %v2272_v29 = vmul.f32 %v2996_v14, %v2270_v13  ;;  %v2212_v51 = vsel %vm824_vm1, %v2073_v23, %v2206_v40  ;;  %vm2277_vm13 = vweird.f32 %v2996_v14 }
 0x45c   : > { %v2237_v31 = vmul.f32 %v2998_v28, %v2235_v57  ;;  %vm2242_vm15 = vweird.f32 %v2998_v28  ;;  %vm2278_vm3 = vmor %vm2276_vm14, %vm2277_vm13 }
 0x45d   : > { %v2273_v49 = vsub.f32 1.0, %v2272_v29  ;;  %v2282_v29 = vand.u32 2147483648, %v2270_v13  ;;  %vm2243_vm5 = vmor %vm2241_vm4, %vm2242_vm15 }
 0x45e   : > { %v2238_v39 = vsub.f32 1.0, %v2237_v31 }
 0x45f   : > { %v2274_v42 = vmul.f32 %v2996_v14, %v2273_v49  ;;  %v2283_v30 = vor.u32 1.1754944e-38, %v2282_v29 }
 0x460   : > { %v2239_v58 = vmul.f32 %v2998_v28, %v2238_v39 }
 0x461   : > { %v2275_v37 = vadd.f32 %v2996_v14, %v2274_v42 }
 0x462   : > { %v2240_v31 = vadd.f32 %v2998_v28, %v2239_v58 }
 0x463   : > { %v2279_v8 = vsel %vm2278_vm3, %v2996_v14, %v2275_v37 }
 0x464   : > { %v2244_v49 = vsel %vm2243_vm5, %v2998_v28, %v2240_v31 }
 0x471   : > { %v2132_v16 = vpop.f32.mrf.mxu0  ;;  %v2152_v12 = vpop.f32.mrf.mxu1 }
 0x472   : > { %v2153_v22 = vadd.f32 %v2152_v12, %v2132_v16  ;;  %v2280_v16 = vand.u32 2147483647, %v2270_v13  ;;  %v2247_v12 = vand.u32 2147483648, %v2235_v57 }
 0x474   : > { %v2207_v24 = vrot.slane %v2153_v22, 4  ;;  %vm2281_vm6 = vcmp.eq.f32.partialorder %v2280_v16, 8.507059e+37  ;;  %v2248_v22 = vor.u32 1.1754944e-38, %v2247_v12 }
 0x478   : > { %v2172_v45 = vpop.f32.mrf.mxu2  ;;  %v2192_v25 = vpop.f32.mrf.mxu3 }
 0x479   : > { %v2193_v9 = vadd.f32 %v2192_v25, %v2172_v45 }
 0x47b   : > { %v2208_v1 = vrot.slane %v2193_v9, 2 }
 0x47d   : > { %v2213_v35 = vsel %vm826_vm0, %v2207_v24, %v2208_v1 }
 0x47e   : > { %v2214_v47 = vsel %vm828_vm2, %v2212_v51, %v2213_v35  ;;  %v2284_v35 = vsel %vm2281_vm6, %v2283_v30, %v2279_v8 }
 0x47f   : > { %v2218_v15 = vadd.f32 %v2913_v36, %v2214_v47  ;;  %v2249_v47 = vsel %vm2246_vm7, %v2248_v22, %v2244_v49  ;;  %v2286_v39 = vmul.f32 %v2284_v35, %v6046_v17 }
 0x481   : > { %2999 = vtanh.f32 %v2218_v15  ;;  %v2299_v9 = vrot.slane %v2218_v15, 4 }
 0x487   : > { %v3000_v51 = vpop.eup %2999 }
 0x488   : > { %v2288_v45 = vmul.f32 %v3000_v51, %v2249_v47  ;;  %v3460_v51 = vld [vmem:[%s3583_s18 + $0x4e0] sm:$0xff] }
 0x489   : > { %v3464_v47 = vld [vmem:[%s3583_s18 + $0x460] sm:$0xff] }
 0x48a   : > { %v6491_v25 = vadd.f32 %v2288_v45, %v2286_v39  ;;  %v3465_v39 = vld [vmem:[%s3583_s18 + $0x68] sm:$0xff]  ;;  %v3468_v45 = vld [vmem:[%s3583_s18 + $0x420] sm:$0xff] }
 0x48c   : > { %2291 = vst [vmem:[#allocation1] ss:$4 sm:$0xff] %v6491_v25 }
 0x493   : > { %v2292_v13 = vld.sshfl [vmem:[#allocation1] sm:$0xff pattern:$0x73625140]  ;;  %v2293_v40 = vld.sshfl [vmem:[#allocation1 + $0x8] sm:$0xff pattern:$0x73625140] }
 0x494   : > { %v2297_v57 = vmul.f32 %v2293_v40, %v4663_v3  ;;  %v2296_v14 = vmul.f32 %v2292_v13, %v4665_v4  ;;  %v3471_v13 = vld [vmem:[%s3583_s18 + $0x3f0] sm:$0xff] }
 0x495   : > { %v3472_v40 = vld [vmem:[%s3583_s18 + $0x7f0] sm:$0xff] }
 0x496   : > { %v2303_v28 = vrot.slane %v2297_v57, 6  ;;  %v3473_v57 = vld [vmem:[%s3583_s18 + $0x3f8] sm:$0xff] }
 0x498   : > { %v2304_v42 = vsel %vm824_vm1, %v2296_v14, %v2303_v28  ;;  %v3474_v14 = vld [vmem:[%s3583_s18 + $0x7f8] sm:$0xff]  ;;  %v3475_v28 = vld [vmem:[%s3583_s18 + $0x3b0] sm:$0xff] }
 0x499   : > { %v2306_v23 = vadd.f32 %v2304_v42, %v2299_v9  ;;  %v3476_v9 = vld [vmem:[%s3583_s18 + $0x7b0] sm:$0xff]  ;;  %v3477_v42 = vld [vmem:[%s3583_s18 + $0x3b8] sm:$0xff] }
 0x49b   : > { %v2916_v24 = vmul.f32 -1.442695, %v2306_v23  ;;  %v3478_v23 = vld [vmem:[%s3583_s18 + $0x7b8] sm:$0xff] }
 0x49d   : > { %3001 = vpow2.f32 %v2916_v24  ;;  %v3479_v24 = vld [vmem:[%s3583_s18 + $0x370] sm:$0xff] }
 0x4a3   : > { %v3002_v1 = vpop.eup %3001 }
 0x4a4   : > { %v2310_v17 = vadd.f32 1.0, %v3002_v1  ;;  %v3480_v1 = vld [vmem:[%s3583_s18 + $0x770] sm:$0xff] }
 0x4a6   : > { %3003 = vrcp.f32 %v2310_v17  ;;  %v2322_v29 = vand.u32 2147483648, %v2310_v17  ;;  %v2320_v16 = vand.u32 2147483647, %v2310_v17  ;;  %vm2316_vm9 = vweird.f32 %v2310_v17 }
 0x4a7   : > { %3005 = vtanh.f32 %v6491_v25 }
 0x4a8   : > { %v2323_v15 = vor.u32 1.1754944e-38, %v2322_v29  ;;  %vm2321_vm11 = vcmp.eq.f32.partialorder %v2320_v16, 8.507059e+37  ;;  %v3485_v29 = vld [vmem:[%s3583_s18 + $0x338] sm:$0xff]  ;;  %v3487_v16 = vld [vmem:[%s3583_s18 + $0x2f0] sm:$0xff] }
 0x4ac   : > { %v3004_v36 = vpop.eup %3003 }
 0x4ad   : > { %v2312_v58 = vmul.f32 %v3004_v36, %v2310_v17  ;;  %vm2317_vm8 = vweird.f32 %v3004_v36  ;;  %v3006_v8 = vpop.eup %3005  ;;  %v3481_v17 = vld [vmem:[%s3583_s18 + $0x378] sm:$0xff] }
 0x4ae   : > { %vm2318_vm10 = vmor %vm2316_vm9, %vm2317_vm8 }
 0x4af   : > { %v2313_v37 = vsub.f32 1.0, %v2312_v58  ;;  %v3483_v58 = vld [vmem:[%s3583_s18 + $0x330] sm:$0xff] }
 0x4b1   : > { %v2314_v31 = vmul.f32 %v3004_v36, %v2313_v37  ;;  %v3484_v37 = vld [vmem:[%s3583_s18 + $0x730] sm:$0xff] }
 0x4b3   : > { %v2315_v12 = vadd.f32 %v3004_v36, %v2314_v31  ;;  %v3486_v31 = vld [vmem:[%s3583_s18 + $0x738] sm:$0xff] }
 0x4b5   : > { %v2319_v7 = vsel %vm2318_vm10, %v3004_v36, %v2315_v12  ;;  %v3482_v36 = vld [vmem:[%s3583_s18 + $0x778] sm:$0xff]  ;;  %v3488_v12 = vld [vmem:[%s3583_s18 + $0x6f0] sm:$0xff] }
 0x4b6   : > { %v2324_v30 = vsel %vm2321_vm11, %v2323_v15, %v2319_v7  ;;  %v3489_v15 = vld [vmem:[%s3583_s18 + $0x2f8] sm:$0xff] }
 0x4b7   : > { %v2327_v49 = vmul.f32 %v3006_v8, %v2324_v30  ;;  %v3490_v7 = vld [vmem:[%s3583_s18 + $0x6f8] sm:$0xff]  ;;  %v3491_v8 = vld [vmem:[%s3583_s18 + $0x2b0] sm:$0xff] }
 0x4b8   : > { %v3492_v30 = vld [vmem:[%s3583_s18 + $0x6b0] sm:$0xff] }
 0x4b9   : > { %2917 = vst [vmem:[%s4437_s22 + $0x10] sm:$0xf] %v2327_v49 }
 0x4ba   : > { %2334 = vst [vmem:[#allocation1] ss:$4 sm:$0xff] %v2327_v49  ;;  %v3493_v49 = vld [vmem:[%s3583_s18 + $0x2b8] sm:$0xff] }
 0x4c1   : > { %v6499_v22 = vld.sshfl [vmem:[#allocation1] sm:$0xff pattern:$0x73625140]  ;;  %v6501_v35 = vld.sshfl [vmem:[#allocation1 + $0x8] sm:$0xff pattern:$0x73625140] }
 0x4c2   : > { %2355 = vmatmul.f32.vlgmr.msra.gmra.mxu0 %v6499_v22  ;;  %2375 = vmatmul.f32.vlgmr.msra.gmra.mxu1 %v6501_v35  ;;  %2683 = vst [vmem:[#allocation1] ss:$4 sm:$0xff] %v6491_v25 }
 0x4c3   : > { %2395 = vmatmul.f32.vlgmr.msra.gmra.mxu2 %v6499_v22  ;;  %2415 = vmatmul.f32.vlgmr.msra.gmra.mxu3 %v6501_v35 }
 0x4c4   : > { %2499 = vmatpush.msra.mxu0 %v6064_v18  ;;  %2519 = vmatpush.msra.mxu1 %v6068_v41 }
 0x4c5   : > { %2539 = vmatpush.msra.mxu2 %v6072_v33  ;;  %2559 = vmatpush.msra.mxu3 %v6076_v27  ;;  %v7751_v33 = vld [vmem:[#allocation18_spill] sm:$0xff]  ;;  %v7752_v27 = vld [vmem:[#allocation27_spill] sm:$0xff] }
 0x4c6   : > { %2500 = vmatpush.msra.mxu0 %v6080_v38  ;;  %2520 = vmatpush.msra.mxu1 %v6084_v48  ;;  %v7753_v38 = vld [vmem:[#allocation28_spill] sm:$0xff]  ;;  %v7754_v48 = vld [vmem:[#allocation21_spill] sm:$0xff] }
 0x4c7   : > { %2540 = vmatpush.msra.mxu2 %v6088_v62  ;;  %2560 = vmatpush.msra.mxu3 %v6092_v6  ;;  %v7755_v62 = vld [vmem:[#allocation22_spill] sm:$0xff]  ;;  %v7756_v6 = vld [vmem:[#allocation31_spill] sm:$0xff] }
 0x4c8   : > { %2501 = vmatpush.msra.mxu0 %v6096_v5  ;;  %2521 = vmatpush.msra.mxu1 %v6100_v11  ;;  %v7757_v5 = vld [vmem:[#allocation32_spill] sm:$0xff]  ;;  %v7758_v11 = vld [vmem:[#allocation25_spill] sm:$0xff] }
 0x4c9   : > { %2541 = vmatpush.msra.mxu2 %v6104_v59  ;;  %2561 = vmatpush.msra.mxu3 %v6108_v10  ;;  %v6520_v18 = vld.sshfl [vmem:[#allocation1] sm:$0xff pattern:$0x73625140]  ;;  %v6522_v41 = vld.sshfl [vmem:[#allocation1 + $0x8] sm:$0xff pattern:$0x73625140] }
 0x4ca   : > { %2502 = vmatpush.msra.mxu0 %v6116_v20  ;;  %2522 = vmatpush.msra.mxu1 %v6120_v46  ;;  %2715 = vst [vmem:[#allocation1] ss:$4 sm:$0xff] %v6491_v25  ;;  %v7759_v59 = vld [vmem:[#allocation26_spill] sm:$0xff]  ;;  %v7760_v10 = vld [vmem:[#allocation35_spill] sm:$0xff]  ;;  %v7761_v20 = vld [vmem:[#allocation36_spill] sm:$0xff] }
 0x4cb   : > { %2542 = vmatpush.msra.mxu2 %v6125_v56  ;;  %2562 = vmatpush.msra.mxu3 %v6129_v44  ;;  %v7762_v46 = vld [vmem:[#allocation29_spill] sm:$0xff]  ;;  %v7763_v56 = vld [vmem:[#allocation30_spill] sm:$0xff]  ;;  %v7764_v44 = vld [vmem:[#allocation39_spill] sm:$0xff] }
 0x4cc   : > { %2435 = vmatmul.f32.vlgmr.msrb.gmra.mxu0 %v6499_v22  ;;  %2455 = vmatmul.f32.vlgmr.msrb.gmra.mxu1 %v6501_v35 }
 0x4cd   : > { %2475 = vmatmul.f32.vlgmr.msrb.gmra.mxu2 %v6499_v22  ;;  %2495 = vmatmul.f32.vlgmr.msrb.gmra.mxu3 %v6501_v35 }
 0x4ce   : > { %2503 = vmatpush.msra.mxu0 %v6137_v52  ;;  %2523 = vmatpush.msra.mxu1 %v6141_v34  ;;  %v3453_v52 = vld [vmem:[%s3583_s18 + $0x1a0] sm:$0xff] }
 0x4cf   : > { %2543 = vmatpush.msra.mxu2 %v6145_v21  ;;  %2563 = vmatpush.msra.mxu3 %v7751_v33  ;;  %v3454_v34 = vld [vmem:[%s3583_s18 + $0x5a0] sm:$0xff]  ;;  %v3494_v33 = vld [vmem:[%s3583_s18 + $0x6b8] sm:$0xff] }
 0x4d0   : > { %2504 = vmatpush.msra.mxu0 %v7752_v27  ;;  %2524 = vmatpush.msra.mxu1 %v7753_v38  ;;  %v3455_v21 = vld [vmem:[%s3583_s18 + $0x160] sm:$0xff]  ;;  %v3495_v27 = vld [vmem:[%s3583_s18 + $0x270] sm:$0xff] }
 0x4d1   : > { %2544 = vmatpush.msra.mxu2 %v7754_v48  ;;  %2564 = vmatpush.msra.mxu3 %v7755_v62  ;;  %v3496_v38 = vld [vmem:[%s3583_s18 + $0x670] sm:$0xff]  ;;  %v3497_v48 = vld [vmem:[%s3583_s18 + $0x278] sm:$0xff] }
 0x4d2   : > { %2505 = vmatpush.msra.mxu0 %v7756_v6  ;;  %2525 = vmatpush.msra.mxu1 %v7757_v5  ;;  %v3498_v62 = vld [vmem:[%s3583_s18 + $0x678] sm:$0xff]  ;;  %v3499_v6 = vld [vmem:[%s3583_s18 + $0x230] sm:$0xff] }
 0x4d3   : > { %2545 = vmatpush.msra.mxu2 %v7758_v11  ;;  %2565 = vmatpush.msra.mxu3 %v7759_v59  ;;  %v3500_v5 = vld [vmem:[%s3583_s18 + $0x630] sm:$0xff]  ;;  %v3501_v11 = vld [vmem:[%s3583_s18 + $0x238] sm:$0xff] }
 0x4d4   : > { %2506 = vmatpush.msra.mxu0 %v7760_v10  ;;  %2526 = vmatpush.msra.mxu1 %v7761_v20  ;;  %v3502_v59 = vld [vmem:[%s3583_s18 + $0x638] sm:$0xff]  ;;  %v3503_v10 = vld [vmem:[%s3583_s18 + $0x1f0] sm:$0xff] }
 0x4d5   : > { %2546 = vmatpush.msra.mxu2 %v6193_v53  ;;  %2566 = vmatpush.msra.mxu3 %v7762_v46  ;;  %v3456_v53 = vld [vmem:[%s3583_s18 + $0x560] sm:$0xff]  ;;  %v3504_v20 = vld [vmem:[%s3583_s18 + $0x5f0] sm:$0xff]  ;;  %v3505_v46 = vld [vmem:[%s3583_s18 + $0x1f8] sm:$0xff] }
 0x4d6   : > { %2507 = vmatpush.msra.mxu0 %v7763_v56  ;;  %2527 = vmatpush.msra.mxu1 %v6205_v63  ;;  %v3457_v63 = vld [vmem:[%s3583_s18 + $0x120] sm:$0xff]  ;;  %v3506_v56 = vld [vmem:[%s3583_s18 + $0x5f8] sm:$0xff] }
 0x4d7   : > { %2547 = vmatpush.msra.mxu2 %v6209_v19  ;;  %2567 = vmatpush.msra.mxu3 %v7764_v44  ;;  %v3458_v19 = vld [vmem:[%s3583_s18 + $0x520] sm:$0xff]  ;;  %v3507_v44 = vld [vmem:[%s3583_s18 + $0x1b0] sm:$0xff] }
 0x4d8   : > { %2508 = vmatpush.msra.mxu0 %v3453_v52  ;;  %2528 = vmatpush.msra.mxu1 %v3454_v34  ;;  %v3508_v52 = vld [vmem:[%s3583_s18 + $0x5b0] sm:$0xff]  ;;  %v3509_v34 = vld [vmem:[%s3583_s18 + $0x1b8] sm:$0xff] }
 0x4d9   : > { %2548 = vmatpush.msra.mxu2 %v6219_v50  ;;  %2568 = vmatpush.msra.mxu3 %v6223_v26  ;;  %v7765_v50 = vld [vmem:[#allocation40_spill] sm:$0xff]  ;;  %v3459_v26 = vld [vmem:[%s3583_s18 + $0xe0] sm:$0xff] }
 0x4da   : > { %2509 = vmatpush.msra.mxu0 %v3455_v21  ;;  %2529 = vmatpush.msra.mxu1 %v3456_v53  ;;  %v3510_v21 = vld [vmem:[%s3583_s18 + $0x5b8] sm:$0xff]  ;;  %v3511_v53 = vld [vmem:[%s3583_s18 + $0x170] sm:$0xff] }
 0x4db   : > { %2549 = vmatpush.msra.mxu2 %v6229_v43  ;;  %2569 = vmatpush.msra.mxu3 %v6233_v54  ;;  %v3461_v43 = vld [vmem:[%s3583_s18 + $0xa0] sm:$0xff] }
 0x4dc   : > { %2510 = vmatpush.msra.mxu0 %v3457_v63  ;;  %2530 = vmatpush.msra.mxu1 %v3458_v19  ;;  %v3462_v54 = vld [vmem:[%s3583_s18 + $0x4a0] sm:$0xff]  ;;  %v3512_v63 = vld [vmem:[%s3583_s18 + $0x570] sm:$0xff]  ;;  %v3513_v19 = vld [vmem:[%s3583_s18 + $0x178] sm:$0xff] }
 0x4dd   : > { %2550 = vmatpush.msra.mxu2 %v6239_v55  ;;  %2570 = vmatpush.msra.mxu3 %v7765_v50  ;;  %v3463_v55 = vld [vmem:[%s3583_s18 + $0x60] sm:$0xff]  ;;  %v3514_v50 = vld [vmem:[%s3583_s18 + $0x578] sm:$0xff] }
 0x4de   : > { %2511 = vmatpush.msra.mxu0 %v3459_v26  ;;  %2531 = vmatpush.msra.mxu1 %v3460_v51  ;;  %v3515_v26 = vld [vmem:[%s3583_s18 + $0x130] sm:$0xff] }
 0x4df   : > { %2551 = vmatpush.msra.mxu2 %v6249_v61  ;;  %2571 = vmatpush.msra.mxu3 %v6253_v0  ;;  %v3466_v61 = vld [vmem:[%s3583_s18 + $0x468] sm:$0xff]  ;;  %v3467_v0 = vld [vmem:[%s3583_s18 + $0x20] sm:$0xff]  ;;  %v3516_v51 = vld [vmem:[%s3583_s18 + $0x530] sm:$0xff] }
 0x4e0   : > { %2512 = vmatpush.msra.mxu0 %v3461_v43  ;;  %2532 = vmatpush.msra.mxu1 %v3462_v54  ;;  %v3517_v43 = vld [vmem:[%s3583_s18 + $0x138] sm:$0xff] }
 0x4e1   : > { %2552 = vmatpush.msra.mxu2 %v6259_v2  ;;  %2572 = vmatpush.msra.mxu3 %v6263_v60  ;;  %v3469_v2 = vld [vmem:[%s3583_s18 + $0x28] sm:$0xff]  ;;  %v3518_v54 = vld [vmem:[%s3583_s18 + $0x538] sm:$0xff] }
 0x4e2   : > { %2513 = vmatpush.msra.mxu0 %v3463_v55  ;;  %2533 = vmatpush.msra.mxu1 %v3464_v47  ;;  %v3470_v60 = vld [vmem:[%s3583_s18 + $0x428] sm:$0xff]  ;;  %v3519_v55 = vld [vmem:[%s3583_s18 + $0xf0] sm:$0xff] }
 0x4e3   : > { %2553 = vmatpush.msra.mxu2 %v3465_v39  ;;  %2573 = vmatpush.msra.mxu3 %v3466_v61  ;;  %v3520_v47 = vld [vmem:[%s3583_s18 + $0x4f0] sm:$0xff]  ;;  %v3521_v39 = vld [vmem:[%s3583_s18 + $0xf8] sm:$0xff] }
 0x4e4   : > { %2514 = vmatpush.msra.mxu0 %v3467_v0  ;;  %2534 = vmatpush.msra.mxu1 %v3468_v45  ;;  %v3522_v61 = vld [vmem:[%s3583_s18 + $0x4f8] sm:$0xff]  ;;  %v3523_v0 = vld [vmem:[%s3583_s18 + $0xb0] sm:$0xff] }
 0x4e5   : > { %2554 = vmatpush.msra.mxu2 %v3469_v2  ;;  %2574 = vmatpush.msra.mxu3 %v3470_v60  ;;  %v3524_v45 = vld [vmem:[%s3583_s18 + $0x4b0] sm:$0xff]  ;;  %v3525_v2 = vld [vmem:[%s3583_s18 + $0xb8] sm:$0xff] }
 0x4e6   : > { %2515 = vmatmul.f32.vlgmr.msra.gmra.mxu0 %v6499_v22  ;;  %2535 = vmatmul.f32.vlgmr.msra.gmra.mxu1 %v6501_v35  ;;  %v3526_v60 = vld [vmem:[%s3583_s18 + $0x4b8] sm:$0xff] }
 0x4e7   : > { %2555 = vmatmul.f32.vlgmr.msra.gmra.mxu2 %v6499_v22  ;;  %2575 = vmatmul.f32.vlgmr.msra.gmra.mxu3 %v6501_v35 }
 0x4e8   : > { %2579 = vmatpush.msrb.mxu0 %v3471_v13  ;;  %2599 = vmatpush.msrb.mxu1 %v3472_v40  ;;  %v3527_v13 = vld [vmem:[%s3583_s18 + $0x70] sm:$0xff] }
 0x4e9   : > { %2619 = vmatpush.msrb.mxu2 %v3473_v57  ;;  %2639 = vmatpush.msrb.mxu3 %v3474_v14  ;;  %v3528_v40 = vld [vmem:[%s3583_s18 + $0x470] sm:$0xff]  ;;  %v3529_v57 = vld [vmem:[%s3583_s18 + $0x78] sm:$0xff] }
 0x4ea   : > { %2580 = vmatpush.msrb.mxu0 %v3475_v28  ;;  %2600 = vmatpush.msrb.mxu1 %v3476_v9  ;;  %v3530_v14 = vld [vmem:[%s3583_s18 + $0x478] sm:$0xff]  ;;  %v3531_v28 = vld [vmem:[%s3583_s18 + $0x30] sm:$0xff] }
 0x4eb   : > { %2620 = vmatpush.msrb.mxu2 %v3477_v42  ;;  %2640 = vmatpush.msrb.mxu3 %v3478_v23  ;;  %v3532_v9 = vld [vmem:[%s3583_s18 + $0x430] sm:$0xff]  ;;  %v3533_v42 = vld [vmem:[%s3583_s18 + $0x38] sm:$0xff] }
 0x4ec   : > { %2581 = vmatpush.msrb.mxu0 %v3479_v24  ;;  %2601 = vmatpush.msrb.mxu1 %v3480_v1  ;;  %v3534_v23 = vld [vmem:[%s3583_s18 + $0x438] sm:$0xff] }
 0x4ed   : > { %2621 = vmatpush.msrb.mxu2 %v3481_v17  ;;  %2641 = vmatpush.msrb.mxu3 %v3482_v36 }
 0x4ee   : > { %2582 = vmatpush.msrb.mxu0 %v3483_v58  ;;  %2602 = vmatpush.msrb.mxu1 %v3484_v37 }
 0x4ef   : > { %2622 = vmatpush.msrb.mxu2 %v3485_v29  ;;  %2642 = vmatpush.msrb.mxu3 %v3486_v31 }
 0x4f0   : > { %2583 = vmatpush.msrb.mxu0 %v3487_v16  ;;  %2603 = vmatpush.msrb.mxu1 %v3488_v12 }
 0x4f1   : > { %2623 = vmatpush.msrb.mxu2 %v3489_v15  ;;  %2643 = vmatpush.msrb.mxu3 %v3490_v7 }
 0x4f2   : > { %2584 = vmatpush.msrb.mxu0 %v3491_v8  ;;  %2604 = vmatpush.msrb.mxu1 %v3492_v30 }
 0x4f3   : > { %2624 = vmatpush.msrb.mxu2 %v3493_v49  ;;  %2644 = vmatpush.msrb.mxu3 %v3494_v33  ;;  %v2717_v33 = vld.sshfl [vmem:[#allocation1 + $0x8] sm:$0xff pattern:$0x73625140] }
 0x4f4   : > { %2585 = vmatpush.msrb.mxu0 %v3495_v27  ;;  %2605 = vmatpush.msrb.mxu1 %v3496_v38  ;;  %v2918_v27 = vld [vmem:[%s4637_s30 + $0x40] sm:$0xff] }
 0x4f5   : > { %2625 = vmatpush.msrb.mxu2 %v3497_v48  ;;  %2645 = vmatpush.msrb.mxu3 %v3498_v62  ;;  %v2721_v48 = vmul.f32 %v2717_v33, %v7747_v32 }
 0x4f6   : > { %2586 = vmatpush.msrb.mxu0 %v3499_v6  ;;  %2606 = vmatpush.msrb.mxu1 %v3500_v5  ;;  %v7766_v6 = vld [vmem:[#allocation7_spill] sm:$0xff] }
 0x4f7   : > { %2626 = vmatpush.msrb.mxu2 %v3501_v11  ;;  %2646 = vmatpush.msrb.mxu3 %v3502_v59  ;;  %v2689_v5 = vmul.f32 %v6522_v41, %v7766_v6  ;;  %v2716_v11 = vld.sshfl [vmem:[#allocation1] sm:$0xff pattern:$0x73625140]  ;;  %v2727_v59 = vrot.slane %v2721_v48, 6 }
 0x4f8   : > { %2587 = vmatpush.msrb.mxu0 %v3503_v10  ;;  %2607 = vmatpush.msrb.mxu1 %v3504_v20 }
 0x4f9   : > { %2627 = vmatpush.msrb.mxu2 %v3505_v46  ;;  %2647 = vmatpush.msrb.mxu3 %v3506_v56  ;;  %v2692_v20 = vrot.slane %v2689_v5, 6  ;;  %v7767_v46 = vld [vmem:[#allocation8_spill] sm:$0xff] }
 0x4fa   : > { %2588 = vmatpush.msrb.mxu0 %v3507_v44  ;;  %2608 = vmatpush.msrb.mxu1 %v3508_v52  ;;  %v2720_v56 = vmul.f32 %v2716_v11, %v7767_v46  ;;  %v7768_v44 = vld [vmem:[#allocation3_spill] sm:$0xff] }
 0x4fb   : > { %2628 = vmatpush.msrb.mxu2 %v3509_v34  ;;  %2648 = vmatpush.msrb.mxu3 %v3510_v21  ;;  %v2688_v52 = vmul.f32 %v6520_v18, %v7768_v44 }
 0x4fc   : > { %2589 = vmatpush.msrb.mxu0 %v3511_v53  ;;  %2609 = vmatpush.msrb.mxu1 %v3512_v63  ;;  %v2728_v34 = vsel %vm824_vm1, %v2720_v56, %v2727_v59 }
 0x4fd   : > { %2629 = vmatpush.msrb.mxu2 %v3513_v19  ;;  %2649 = vmatpush.msrb.mxu3 %v3514_v50  ;;  %v2693_v53 = vsel %vm824_vm1, %v2688_v52, %v2692_v20 }
 0x4fe   : > { %2590 = vmatpush.msrb.mxu0 %v3515_v26  ;;  %2610 = vmatpush.msrb.mxu1 %v3516_v51 }
 0x4ff   : > { %2630 = vmatpush.msrb.mxu2 %v3517_v43  ;;  %2650 = vmatpush.msrb.mxu3 %v3518_v54 }
 0x500   : > { %2591 = vmatpush.msrb.mxu0 %v3519_v55  ;;  %2611 = vmatpush.msrb.mxu1 %v3520_v47 }
 0x501   : > { %2631 = vmatpush.msrb.mxu2 %v3521_v39  ;;  %2651 = vmatpush.msrb.mxu3 %v3522_v61 }
 0x502   : > { %2592 = vmatpush.msrb.mxu0 %v3523_v0  ;;  %2612 = vmatpush.msrb.mxu1 %v3524_v45 }
 0x503   : > { %2632 = vmatpush.msrb.mxu2 %v3525_v2  ;;  %2652 = vmatpush.msrb.mxu3 %v3526_v60 }
 0x504   : > { %2593 = vmatpush.msrb.mxu0 %v3527_v13  ;;  %2613 = vmatpush.msrb.mxu1 %v3528_v40 }
 0x505   : > { %2633 = vmatpush.msrb.mxu2 %v3529_v57  ;;  %2653 = vmatpush.msrb.mxu3 %v3530_v14 }
 0x506   : > { %2594 = vmatpush.msrb.mxu0 %v3531_v28  ;;  %2614 = vmatpush.msrb.mxu1 %v3532_v9 }
 0x507   : > { %2634 = vmatpush.msrb.mxu2 %v3533_v42  ;;  %2654 = vmatpush.msrb.mxu3 %v3534_v23 }
 0x508   : > { %2595 = vmatmul.f32.vlgmr.msrb.gmra.mxu0 %v6499_v22  ;;  %2615 = vmatmul.f32.vlgmr.msrb.gmra.mxu1 %v6501_v35 }
 0x509   : > { %2635 = vmatmul.f32.vlgmr.msrb.gmra.mxu2 %v6499_v22  ;;  %2655 = vmatmul.f32.vlgmr.msrb.gmra.mxu3 %v6501_v35 }
 0x53f   : > { %v2356_v17 = vpop.f32.mrf.mxu0  ;;  %v2376_v36 = vpop.f32.mrf.mxu1 }
 0x540   : > { %v2377_v49 = vadd.f32 %v2376_v36, %v2356_v17  ;;  %v2919_v36 = vld [vmem:[%s4637_s30 + $0x48] sm:$0xff] }
 0x546   : > { %v2396_v24 = vpop.f32.mrf.mxu2  ;;  %v2416_v1 = vpop.f32.mrf.mxu3 }
 0x547   : > { %v2417_v12 = vadd.f32 %v2416_v1, %v2396_v24 }
 0x549   : > { %v2436_v29 = vpop.f32.mrf.mxu0  ;;  %v2456_v31 = vpop.f32.mrf.mxu1  ;;  %v2667_v8 = vrot.slane %v2417_v12, 6 }
 0x54a   : > { %v2457_v15 = vadd.f32 %v2456_v31, %v2436_v29 }
 0x54b   : > { %v2673_v35 = vsel %vm824_vm1, %v2377_v49, %v2667_v8 }
 0x54c   : > { %v2668_v30 = vrot.slane %v2457_v15, 4 }
 0x550   : > { %v2476_v58 = vpop.f32.mrf.mxu2  ;;  %v2496_v37 = vpop.f32.mrf.mxu3 }
 0x551   : > { %v2497_v16 = vadd.f32 %v2496_v37, %v2476_v58 }
 0x553   : > { %v2669_v7 = vrot.slane %v2497_v16, 2 }
 0x555   : > { %v2674_v22 = vsel %vm826_vm0, %v2668_v30, %v2669_v7 }
 0x556   : > { %v2675_v38 = vsel %vm828_vm2, %v2673_v35, %v2674_v22 }
 0x557   : > { %v2681_v62 = vadd.f32 %v2918_v27, %v2675_v38 }
 0x559   : > { %v2723_v10 = vrot.slane %v2681_v62, 4  ;;  %v2695_v63 = vadd.f32 %v2693_v53, %v2681_v62 }
 0x55b   : > { %v2730_v21 = vadd.f32 %v2728_v34, %v2723_v10  ;;  %v2920_v19 = vmul.f32 -1.442695, %v2695_v63 }
 0x55d   : > { %v2921_v32 = vmul.f32 -1.442695, %v2730_v21 }
 0x55f   : > { %3007 = vpow2.f32 %v2921_v32 }
 0x560   : > { %3009 = vpow2.f32 %v2920_v19 }
 0x563   : > { %v2516_v43 = vpop.f32.mrf.mxu0  ;;  %v2536_v54 = vpop.f32.mrf.mxu1 }
 0x564   : > { %v2537_v24 = vadd.f32 %v2536_v54, %v2516_v43 }
 0x565   : > { %v3008_v41 = vpop.eup %3007 }
 0x566   : > { %v3010_v50 = vpop.eup %3009  ;;  %v2734_v26 = vadd.f32 1.0, %v3008_v41 }
 0x567   : > { %v2699_v51 = vadd.f32 1.0, %v3010_v50 }
 0x568   : > { %3011 = vrcp.f32 %v2734_v26  ;;  %v2746_v15 = vand.u32 2147483648, %v2734_v26  ;;  %vm2740_vm13 = vweird.f32 %v2734_v26  ;;  %v2744_v8 = vand.u32 2147483647, %v2734_v26 }
 0x569   : > { %3013 = vrcp.f32 %v2699_v51  ;;  %v2711_v30 = vand.u32 2147483648, %v2699_v51  ;;  %vm2705_vm3 = vweird.f32 %v2699_v51  ;;  %v2709_v49 = vand.u32 2147483647, %v2699_v51 }
 0x56a   : > { %v2556_v18 = vpop.f32.mrf.mxu2  ;;  %v2576_v47 = vpop.f32.mrf.mxu3  ;;  %v2747_v35 = vor.u32 1.1754944e-38, %v2746_v15 }
 0x56b   : > { %v2577_v60 = vadd.f32 %v2576_v47, %v2556_v18  ;;  %v2712_v27 = vor.u32 1.1754944e-38, %v2711_v30 }
 0x56d   : > { %v2670_v9 = vrot.slane %v2577_v60, 6 }
 0x56e   : > { %v3012_v55 = vpop.eup %3011 }
 0x56f   : > { %v3014_v39 = vpop.eup %3013  ;;  %v2736_v61 = vmul.f32 %v3012_v55, %v2734_v26  ;;  %v2676_v37 = vsel %vm824_vm1, %v2537_v24, %v2670_v9  ;;  %vm2741_vm12 = vweird.f32 %v3012_v55 }
 0x570   : > { %v2701_v0 = vmul.f32 %v3014_v39, %v2699_v51  ;;  %vm2706_vm14 = vweird.f32 %v3014_v39  ;;  %vm2742_vm15 = vmor %vm2740_vm13, %vm2741_vm12 }
 0x571   : > { %v2737_v13 = vsub.f32 1.0, %v2736_v61  ;;  %vm2707_vm4 = vmor %vm2705_vm3, %vm2706_vm14 }
 0x572   : > { %v2702_v57 = vsub.f32 1.0, %v2701_v0 }
 0x573   : > { %v2738_v23 = vmul.f32 %v3012_v55, %v2737_v13 }
 0x574   : > { %v2703_v58 = vmul.f32 %v3014_v39, %v2702_v57 }
 0x575   : > { %v2739_v16 = vadd.f32 %v3012_v55, %v2738_v23 }
 0x576   : > { %v2704_v7 = vadd.f32 %v3014_v39, %v2703_v58 }
 0x577   : > { %v2743_v22 = vsel %vm2742_vm15, %v3012_v55, %v2739_v16 }
 0x578   : > { %v2708_v33 = vsel %vm2707_vm4, %v3014_v39, %v2704_v7 }
 0x585   : > { %v2596_v45 = vpop.f32.mrf.mxu0  ;;  %v2616_v2 = vpop.f32.mrf.mxu1 }
 0x586   : > { %v2617_v40 = vadd.f32 %v2616_v2, %v2596_v45 }
 0x588   : > { %v2671_v1 = vrot.slane %v2617_v40, 4 }
 0x58c   : > { %v2636_v14 = vpop.f32.mrf.mxu2  ;;  %v2656_v28 = vpop.f32.mrf.mxu3 }
 0x58d   : > { %v2657_v42 = vadd.f32 %v2656_v28, %v2636_v14 }
 0x58f   : > { %v2672_v17 = vrot.slane %v2657_v42, 2 }
 0x591   : > { %v2677_v29 = vsel %vm826_vm0, %v2671_v1, %v2672_v17  ;;  %vm2745_vm0 = vcmp.eq.f32.partialorder %v2744_v8, 8.507059e+37 }
 0x592   : > { %v2678_v31 = vsel %vm828_vm2, %v2676_v37, %v2677_v29  ;;  %v2748_v38 = vsel %vm2745_vm0, %v2747_v35, %v2743_v22  ;;  %vm2710_vm2 = vcmp.eq.f32.partialorder %v2709_v49, 8.507059e+37 }
 0x593   : > { %v2682_v12 = vadd.f32 %v2919_v36, %v2678_v31  ;;  %v2713_v62 = vsel %vm2710_vm2, %v2712_v27, %v2708_v33  ;;  %v2750_v6 = vmul.f32 %v2748_v38, %v6491_v25 }
 0x595   : > { %3015 = vtanh.f32 %v2682_v12  ;;  %v2763_v44 = vrot.slane %v2682_v12, 4 }
 0x59b   : > { %v3016_v48 = vpop.eup %3015 }
 0x59c   : > { %v2752_v5 = vmul.f32 %v3016_v48, %v2713_v62 }
 0x59e   : > { %v2753_v11 = vadd.f32 %v2752_v5, %v2750_v6 }
 0x5a0   : > { %2755 = vst [vmem:[#allocation1] ss:$4 sm:$0xff] %v2753_v11 }
 0x5a7   : > { %v2756_v59 = vld.sshfl [vmem:[#allocation1] sm:$0xff pattern:$0x73625140]  ;;  %v2757_v10 = vld.sshfl [vmem:[#allocation1 + $0x8] sm:$0xff pattern:$0x73625140] }
 0x5a8   : > { %v2761_v20 = vmul.f32 %v2757_v10, %v4663_v3  ;;  %v2760_v46 = vmul.f32 %v2756_v59, %v4665_v4 }
 0x5aa   : > { %v2767_v56 = vrot.slane %v2761_v20, 6 }
 0x5ac   : > { %v2768_v52 = vsel %vm824_vm1, %v2760_v46, %v2767_v56 }
 0x5ad   : > { %v2770_v34 = vadd.f32 %v2768_v52, %v2763_v44 }
 0x5af   : > { %v2922_v21 = vmul.f32 -1.442695, %v2770_v34 }
 0x5b1   : > { %3017 = vpow2.f32 %v2922_v21 }
 0x5b7   : > { %v3018_v53 = vpop.eup %3017 }
 0x5b8   : > { %v2774_v63 = vadd.f32 1.0, %v3018_v53 }
 0x5ba   : > { %3019 = vrcp.f32 %v2774_v63  ;;  %v2786_v41 = vand.u32 2147483648, %v2774_v63  ;;  %v2784_v3 = vand.u32 2147483647, %v2774_v63  ;;  %vm2780_vm6 = vweird.f32 %v2774_v63 }
 0x5bb   : > { %3021 = vtanh.f32 %v2753_v11 }
 0x5bc   : > { %v2787_v4 = vor.u32 1.1754944e-38, %v2786_v41  ;;  %vm2785_vm1 = vcmp.eq.f32.partialorder %v2784_v3, 8.507059e+37 }
 0x5c0   : > { %v3020_v25 = vpop.eup %3019 }
 0x5c1   : > { %v2776_v32 = vmul.f32 %v3020_v25, %v2774_v63  ;;  %vm2781_vm5 = vweird.f32 %v3020_v25  ;;  %v3022_v43 = vpop.eup %3021 }
 0x5c2   : > { %vm2782_vm7 = vmor %vm2780_vm6, %vm2781_vm5 }
 0x5c3   : > { %v2777_v19 = vsub.f32 1.0, %v2776_v32 }
 0x5c5   : > { %v2778_v50 = vmul.f32 %v3020_v25, %v2777_v19 }
 0x5c7   : > { %v2779_v26 = vadd.f32 %v3020_v25, %v2778_v50  ;;  %2795 = sbr.rel (%p2923_p4) target bundleno = 1486 (0x5ce), region = 36 }
 0x5c9   : > { %v2783_v51 = vsel %vm2782_vm7, %v3020_v25, %v2779_v26 }
 0x5ca   : > { %v2788_v54 = vsel %vm2785_vm1, %v2787_v4, %v2783_v51 }
 0x5cb   : > { %v2791_v55 = vmul.f32 %v3022_v43, %v2788_v54 }
 0x5cd   : > { %2924 = vst [vmem:[%s4437_s22 + $0x14] sm:$0xf] %v2791_v55 }
 0x5ce PF: > { %p2925_p5 = scmp.eq.s32.totalorder %s3571_s13, 0 }
 0x5d0   : > { %2801 = sbr.rel (%p2925_p5) target bundleno = 1495 (0x5d7), region = 40 }
 0x5d5   : > { %v3544_v18 = vmov 0.0  }
 0x5d6   : > { %2926 = vst [vmem:[%s4437_s22 + $0x14] sm:$0xf] %v3544_v18 }
 0x5d7 PF: > { %s13_s12 = sadd.s32 1, %s3541_s12  }
 0x5d8   : > { %p10_p6 = scmp.ge.s32.totalorder %s13_s12, 4  }
 0x5da   :  { %12 = sbr.rel (!%p10_p6) target bundleno = 1 (0x1), region = 88 }

</bundles_post_ra>
